<compile_context>
chip_gen: v5e
topology: v5e:2x2
jax: 0.10.0
libtpu: 0.0.40
codegen_flags: <defaults>
</compile_context>

<pallas_src>
import functools

import jax
import jax.numpy as jnp
from jax.experimental import pallas as pl
from jax.experimental.pallas import tpu as pltpu

EPS = 1e-5
NUM_CLASSES = 5


# ----------------------------- Pallas kernels -----------------------------

def _conv3x3_rows(x_ref, w_ref, h, w):
    """3x3 conv (stride 1, pad 1) over one padded image block.

    x_ref: (H+2, W+2, Cin) bf16 padded input for one batch element.
    w_ref: (3, 3*Cin, Cout) bf16; contraction dim ordered (kw, cin); BN scale
           already folded into the weights.
    Returns f32 (H*W, Cout); rows flattened h-major / w-minor.
    """
    # Fold the 3 horizontal taps into the contraction dim, in VMEM:
    #   xk[r, ww, kw*Cin + ci] = xpad[r, ww + kw, ci]
    xk = jnp.concatenate([x_ref[:, kw:kw + w, :] for kw in range(3)], axis=-1)
    k3 = xk.shape[-1]
    # The 3 vertical taps are leading-axis shifts -> 3 accumulated MXU matmuls
    # (no zero-init accumulator).
    acc = jnp.dot(xk[0:h].reshape(h * w, k3), w_ref[0],
                  preferred_element_type=jnp.float32)
    acc = acc + jnp.dot(xk[1:h + 1].reshape(h * w, k3), w_ref[1],
                        preferred_element_type=jnp.float32)
    acc = acc + jnp.dot(xk[2:h + 2].reshape(h * w, k3), w_ref[2],
                        preferred_element_type=jnp.float32)
    return acc


def conv_bn_relu_pool_kernel(x_ref, w_ref, b_ref, o_ref, *, h, w):
    """Fused conv3x3 + folded BatchNorm + ReLU + MaxPool2d(2).

    b_ref: (1, Cout) f32 effective bias.  o_ref: (H//2, W//2, Cout) bf16.
    """
    y = jnp.maximum(_conv3x3_rows(x_ref, w_ref, h, w) + b_ref[...], 0.0)
    cout = y.shape[-1]
    ho, wo = h // 2, w // 2
    # pool along W: adjacent flattened rows are (hh, 2m) / (hh, 2m+1)
    z = jnp.max(y.reshape(h * wo, 2, cout), axis=1)            # (H*Wo, Cout)
    # pool along H: rows 2i*Wo + m  /  (2i+1)*Wo + m
    z4 = z.reshape(ho, 2, wo, cout)
    o_ref[...] = jnp.maximum(z4[:, 0], z4[:, 1]).astype(o_ref.dtype)


def conv_bn_relu_gap_kernel(x_ref, w_ref, b_ref, o_ref, *, h, w):
    """Fused conv3x3 + folded BatchNorm + ReLU + AdaptiveAvgPool2d((1,1)).

    o_ref: (1, Cout) f32.
    """
    y = jnp.maximum(_conv3x3_rows(x_ref, w_ref, h, w) + b_ref[...], 0.0)
    o_ref[...] = jnp.sum(y, axis=0, keepdims=True) * (1.0 / (h * w))


def head_kernel(g_ref, w1_ref, b1_ref, w2_ref, b2_ref, o_ref):
    """fc1 + ReLU + fc2 on the globally pooled features. g_ref: (B, C) f32."""
    hid = jnp.dot(g_ref[...], w1_ref[...],
                  preferred_element_type=jnp.float32) + b1_ref[...]
    hid = jnp.maximum(hid, 0.0)
    o_ref[...] = (jnp.dot(hid, w2_ref[...], preferred_element_type=jnp.float32)
                  + b2_ref[...]).astype(o_ref.dtype)


# ----------------------------- pallas_call wrappers -----------------------------

def conv_bn_relu_pool(x, w_taps, bias):
    """x: (B, H, W, Cin) bf16 -> (B, H//2, W//2, Cout) bf16."""
    b, h, w, cin = x.shape
    cout = w_taps.shape[-1]
    assert h % 2 == 0 and w % 2 == 0  # TODO(synk): odd dims (PyTorch floors)
    ho, wo = h // 2, w // 2
    xp = jnp.pad(x, ((0, 0), (1, 1), (1, 1), (0, 0)))   # only wrapper-side glue
    return pl.pallas_call(
        functools.partial(conv_bn_relu_pool_kernel, h=h, w=w),
        out_shape=jax.ShapeDtypeStruct((b, ho, wo, cout), jnp.bfloat16),
        grid=(b,),
        in_specs=[
            pl.BlockSpec((None, h + 2, w + 2, cin), lambda i: (i, 0, 0, 0)),
            pl.BlockSpec((3, 3 * cin, cout), lambda i: (0, 0, 0)),
            pl.BlockSpec((1, cout), lambda i: (0, 0)),
        ],
        out_specs=pl.BlockSpec((None, ho, wo, cout), lambda i: (i, 0, 0, 0)),
        compiler_params=pltpu.CompilerParams(
            dimension_semantics=("parallel",)),
    )(xp, w_taps, bias)


def conv_bn_relu_gap(x, w_taps, bias):
    """x: (B, H, W, Cin) bf16 -> (B, Cout) f32 (conv + BN + ReLU + GAP)."""
    b, h, w, cin = x.shape
    cout = w_taps.shape[-1]
    xp = jnp.pad(x, ((0, 0), (1, 1), (1, 1), (0, 0)))
    out = pl.pallas_call(
        functools.partial(conv_bn_relu_gap_kernel, h=h, w=w),
        out_shape=jax.ShapeDtypeStruct((b, 1, cout), jnp.float32),
        grid=(b,),
        in_specs=[
            pl.BlockSpec((None, h + 2, w + 2, cin), lambda i: (i, 0, 0, 0)),
            pl.BlockSpec((3, 3 * cin, cout), lambda i: (0, 0, 0)),
            pl.BlockSpec((1, cout), lambda i: (0, 0)),
        ],
        out_specs=pl.BlockSpec((None, 1, cout), lambda i: (i, 0, 0)),
        compiler_params=pltpu.CompilerParams(
            dimension_semantics=("parallel",)),
    )(xp, w_taps, bias)
    return out.reshape(b, cout)


def head(g, w1, b1, w2, b2):
    """g: (B, 256) f32 -> (B, num_classes) f32 (fc1 + ReLU + fc2)."""
    b, ch = g.shape
    hid = w1.shape[1]
    nc = w2.shape[1]
    return pl.pallas_call(
        head_kernel,
        out_shape=jax.ShapeDtypeStruct((b, nc), jnp.float32),
        grid=(1,),
        in_specs=[
            pl.BlockSpec((b, ch), lambda i: (0, 0)),
            pl.BlockSpec((ch, hid), lambda i: (0, 0)),
            pl.BlockSpec((1, hid), lambda i: (0, 0)),
            pl.BlockSpec((hid, nc), lambda i: (0, 0)),
            pl.BlockSpec((1, nc), lambda i: (0, 0)),
        ],
        out_specs=pl.BlockSpec((b, nc), lambda i: (0, 0)),
        compiler_params=pltpu.CompilerParams(
            dimension_semantics=("arbitrary",)),
    )(g, w1, b1, w2, b2)


# ----------------------------- params & forward -----------------------------

def init_params(key, num_classes=NUM_CLASSES):
    chans = [3, 32, 64, 128, 256]
    keys = jax.random.split(key, 20)
    ki = 0
    convs = []
    for cin, cout in zip(chans[:-1], chans[1:]):
        wt = 0.05 * jax.random.normal(keys[ki], (cout, cin, 3, 3), jnp.float32); ki += 1
        cb = 0.05 * jax.random.normal(keys[ki], (cout,), jnp.float32); ki += 1
        gamma = 1.0 + 0.1 * jax.random.normal(keys[ki], (cout,), jnp.float32); ki += 1
        beta = 0.1 * jax.random.normal(keys[ki], (cout,), jnp.float32); ki += 1
        # deterministic non-trivial running stats for eval-mode BatchNorm
        rmean = 0.05 * jnp.cos(jnp.arange(cout, dtype=jnp.float32))
        rvar = 1.0 + 0.1 * jnp.sin(jnp.arange(cout, dtype=jnp.float32)) ** 2
        scale = gamma / jnp.sqrt(rvar + EPS)
        bias = beta + (cb - rmean) * scale       # conv bias + BN shift, folded
        # torch conv weight (Cout, Cin, kh, kw) -> (kh, (kw, cin), Cout); fold
        # the BN scale into the weights so the epilogue is only +bias, ReLU.
        w_taps = jnp.transpose(wt, (2, 3, 1, 0)).reshape(3, 3 * cin, cout) * scale
        convs.append((w_taps.astype(jnp.bfloat16), bias.reshape(1, cout)))
    w1 = 0.05 * jax.random.normal(keys[ki], (128, 256), jnp.float32); ki += 1
    b1 = 0.05 * jax.random.normal(keys[ki], (128,), jnp.float32); ki += 1
    w2 = 0.05 * jax.random.normal(keys[ki], (num_classes, 128), jnp.float32); ki += 1
    b2 = 0.05 * jax.random.normal(keys[ki], (num_classes,), jnp.float32); ki += 1
    fc = (w1.T, b1.reshape(1, -1), w2.T, b2.reshape(1, -1))   # y = x @ W.T + b
    return {"conv": convs, "fc": fc}


def yoga_pose_cnn_forward(x_nchw, params):
    """Forward pass of YogaPoseCNN. x_nchw: (B, 3, H, W) float32 (PyTorch NCHW)."""
    x = jnp.transpose(x_nchw, (0, 2, 3, 1)).astype(jnp.bfloat16)   # NCHW -> NHWC
    convs = params["conv"]
    for w_taps, bias in convs[:3]:                 # conv1..3: conv+BN+ReLU+pool
        x = conv_bn_relu_pool(x, w_taps, bias)
    w_taps, bias = convs[3]                        # conv4: conv+BN+ReLU+GAP
    g = conv_bn_relu_gap(x, w_taps, bias)          # (B, 256) f32
    w1, b1, w2, b2 = params["fc"]
    return head(g, w1, b1, w2, b2)                 # fc1 + ReLU + fc2


if __name__ == "__main__":
    key = jax.random.PRNGKey(0)
    pkey, xkey = jax.random.split(key)
    params = init_params(pkey)
    # conv1 requires 3 input channels; batch=2, 16x16 spatial (NCHW like PyTorch).
    x = jax.random.normal(xkey, (2, 3, 16, 16), jnp.float32)
    fwd = jax.jit(functools.partial(yoga_pose_cnn_forward, params=params))
    out = fwd(x)
    jax.block_until_ready(out)
    assert out.shape == (2, NUM_CLASSES) and out.dtype == jnp.float32
    print("KERNEL_OK")
</pallas_src>

<mosaic_0001>
module attributes {stable_mosaic.version = 11 : i64} {
  func.func @conv_bn_relu_pool_kernel(%arg0: i32, %arg1: memref<1x18x18x3xbf16, #tpu.memory_space<vmem>>, %arg2: memref<3x9x32xbf16, #tpu.memory_space<vmem>>, %arg3: memref<1x32xf32, #tpu.memory_space<vmem>>, %arg4: memref<1x8x8x32xbf16, #tpu.memory_space<vmem>>) attributes {dimension_semantics = [#tpu.dimension_semantics<parallel>], iteration_bounds = array<i64: 2>, scalar_prefetch = 0 : i64, scratch_operands = 0 : i64, tpu.core_type = #tpu.core_type<tc>, window_params = [{transform_indices = @transform_0, window_bounds = array<i64: 1, 18, 18, 3>}, {pipeline_mode = #tpu.pipeline_mode<synchronous>, transform_indices = @transform_1, window_bounds = array<i64: 3, 9, 32>}, {pipeline_mode = #tpu.pipeline_mode<synchronous>, transform_indices = @transform_2, window_bounds = array<i64: 1, 32>}, {transform_indices = @transform_3, window_bounds = array<i64: 1, 8, 8, 32>}]} {
    %c0 = arith.constant 0 : index
    %c0_0 = arith.constant 0 : index
    %c0_1 = arith.constant 0 : index
    %c0_2 = arith.constant 0 : index
    %0 = vector.load %arg1[%c0, %c0_0, %c0_1, %c0_2] : memref<1x18x18x3xbf16, #tpu.memory_space<vmem>>, vector<1x18x16x3xbf16>
    %1 = vector.shape_cast %0 : vector<1x18x16x3xbf16> to vector<18x16x3xbf16>
    %c0_3 = arith.constant 0 : index
    %c0_4 = arith.constant 0 : index
    %c1 = arith.constant 1 : index
    %c0_5 = arith.constant 0 : index
    %2 = vector.load %arg1[%c0_3, %c0_4, %c1, %c0_5] : memref<1x18x18x3xbf16, #tpu.memory_space<vmem>>, vector<1x18x16x3xbf16>
    %3 = vector.shape_cast %2 : vector<1x18x16x3xbf16> to vector<18x16x3xbf16>
    %c0_6 = arith.constant 0 : index
    %c0_7 = arith.constant 0 : index
    %c2 = arith.constant 2 : index
    %c0_8 = arith.constant 0 : index
    %4 = vector.load %arg1[%c0_6, %c0_7, %c2, %c0_8] : memref<1x18x18x3xbf16, #tpu.memory_space<vmem>>, vector<1x18x16x3xbf16>
    %5 = vector.shape_cast %4 : vector<1x18x16x3xbf16> to vector<18x16x3xbf16>
    %6 = tpu.concatenate %1, %3, %5 in 2 : vector<18x16x3xbf16>, vector<18x16x3xbf16>, vector<18x16x3xbf16> -> vector<18x16x9xbf16>
    %7 = vector.extract_strided_slice %6 {offsets = [0, 0, 0], sizes = [16, 16, 9], strides = [1, 1, 1]} : vector<18x16x9xbf16> to vector<16x16x9xbf16>
    %8 = vector.shape_cast %7 : vector<16x16x9xbf16> to vector<256x9xbf16>
    %c0_9 = arith.constant 0 : index
    %c0_10 = arith.constant 0 : index
    %c0_11 = arith.constant 0 : index
    %9 = vector.load %arg2[%c0_9, %c0_10, %c0_11] : memref<3x9x32xbf16, #tpu.memory_space<vmem>>, vector<1x9x32xbf16>
    %10 = vector.shape_cast %9 : vector<1x9x32xbf16> to vector<9x32xbf16>
    %cst = arith.constant dense<0.000000e+00> : vector<256x32xf32>
    %11 = tpu.matmul %8, %10, %cst {dimension_numbers = #tpu.dot_dimension_numbers<[1], [0], [0], [1], [0, 0, 1, 1], [], []>} : vector<256x9xbf16>, vector<9x32xbf16>, vector<256x32xf32> -> vector<256x32xf32>
    %12 = vector.extract_strided_slice %6 {offsets = [1, 0, 0], sizes = [16, 16, 9], strides = [1, 1, 1]} : vector<18x16x9xbf16> to vector<16x16x9xbf16>
    %13 = vector.shape_cast %12 : vector<16x16x9xbf16> to vector<256x9xbf16>
    %c1_12 = arith.constant 1 : index
    %c0_13 = arith.constant 0 : index
    %c0_14 = arith.constant 0 : index
    %14 = vector.load %arg2[%c1_12, %c0_13, %c0_14] : memref<3x9x32xbf16, #tpu.memory_space<vmem>>, vector<1x9x32xbf16>
    %15 = vector.shape_cast %14 : vector<1x9x32xbf16> to vector<9x32xbf16>
    %cst_15 = arith.constant dense<0.000000e+00> : vector<256x32xf32>
    %16 = tpu.matmul %13, %15, %cst_15 {dimension_numbers = #tpu.dot_dimension_numbers<[1], [0], [0], [1], [0, 0, 1, 1], [], []>} : vector<256x9xbf16>, vector<9x32xbf16>, vector<256x32xf32> -> vector<256x32xf32>
    %17 = arith.addf %11, %16 : vector<256x32xf32>
    %18 = vector.extract_strided_slice %6 {offsets = [2, 0, 0], sizes = [16, 16, 9], strides = [1, 1, 1]} : vector<18x16x9xbf16> to vector<16x16x9xbf16>
    %19 = vector.shape_cast %18 : vector<16x16x9xbf16> to vector<256x9xbf16>
    %c2_16 = arith.constant 2 : index
    %c0_17 = arith.constant 0 : index
    %c0_18 = arith.constant 0 : index
    %20 = vector.load %arg2[%c2_16, %c0_17, %c0_18] : memref<3x9x32xbf16, #tpu.memory_space<vmem>>, vector<1x9x32xbf16>
    %21 = vector.shape_cast %20 : vector<1x9x32xbf16> to vector<9x32xbf16>
    %cst_19 = arith.constant dense<0.000000e+00> : vector<256x32xf32>
    %22 = tpu.matmul %19, %21, %cst_19 {dimension_numbers = #tpu.dot_dimension_numbers<[1], [0], [0], [1], [0, 0, 1, 1], [], []>} : vector<256x9xbf16>, vector<9x32xbf16>, vector<256x32xf32> -> vector<256x32xf32>
    %23 = arith.addf %17, %22 : vector<256x32xf32>
    %c0_20 = arith.constant 0 : index
    %c0_21 = arith.constant 0 : index
    %24 = vector.load %arg3[%c0_20, %c0_21] : memref<1x32xf32, #tpu.memory_space<vmem>>, vector<1x32xf32>
    %25 = vector.broadcast %24 : vector<1x32xf32> to vector<256x32xf32>
    %26 = arith.addf %23, %25 : vector<256x32xf32>
    %cst_22 = arith.constant 0.000000e+00 : f32
    %27 = vector.broadcast %cst_22 : f32 to vector<256x32xf32>
    %28 = arith.maximumf %26, %27 : vector<256x32xf32>
    %29 = vector.shape_cast %28 : vector<256x32xf32> to vector<128x2x32xf32>
    %cst_23 = arith.constant dense<0xFF800000> : vector<128x32xf32>
    %30 = vector.multi_reduction <maximumf>, %29, %cst_23 [1] : vector<128x2x32xf32> to vector<128x32xf32>
    %31 = vector.shape_cast %30 : vector<128x32xf32> to vector<8x2x8x32xf32>
    %32 = vector.extract_strided_slice %31 {offsets = [0, 0, 0, 0], sizes = [8, 1, 8, 32], strides = [1, 1, 1, 1]} : vector<8x2x8x32xf32> to vector<8x1x8x32xf32>
    %33 = vector.shape_cast %32 : vector<8x1x8x32xf32> to vector<8x8x32xf32>
    %34 = vector.extract_strided_slice %31 {offsets = [0, 1, 0, 0], sizes = [8, 1, 8, 32], strides = [1, 1, 1, 1]} : vector<8x2x8x32xf32> to vector<8x1x8x32xf32>
    %35 = vector.shape_cast %34 : vector<8x1x8x32xf32> to vector<8x8x32xf32>
    %36 = arith.maximumf %33, %35 : vector<8x8x32xf32>
    %37 = arith.truncf %36 : vector<8x8x32xf32> to vector<8x8x32xbf16>
    %c0_24 = arith.constant 0 : index
    %c0_25 = arith.constant 0 : index
    %c0_26 = arith.constant 0 : index
    %c0_27 = arith.constant 0 : index
    %38 = vector.load %arg4[%c0_24, %c0_25, %c0_26, %c0_27] : memref<1x8x8x32xbf16, #tpu.memory_space<vmem>>, vector<1x8x8x32xbf16>
    %39 = vector.shape_cast %38 : vector<1x8x8x32xbf16> to vector<8x8x32xbf16>
    %40 = vector.shape_cast %37 : vector<8x8x32xbf16> to vector<1x8x8x32xbf16>
    tpu.vector_store %arg4[%c0_24, %c0_25, %c0_26, %c0_27], %40 {strides = array<i32>} : memref<1x8x8x32xbf16, #tpu.memory_space<vmem>>, vector<1x8x8x32xbf16>,
    return
  }
  func.func @transform_0(%arg0: i32) -> (i32, i32, i32, i32) {
    %c0_i32 = arith.constant 0 : i32
    %c0_i32_0 = arith.constant 0 : i32
    %c0_i32_1 = arith.constant 0 : i32
    %c0_i32_2 = arith.constant 0 : i32
    return %arg0, %c0_i32, %c0_i32_0, %c0_i32_1 : i32, i32, i32, i32
  }
  func.func @transform_1(%arg0: i32) -> (i32, i32, i32) {
    %c0_i32 = arith.constant 0 : i32
    %c0_i32_0 = arith.constant 0 : i32
    %c0_i32_1 = arith.constant 0 : i32
    %c0_i32_2 = arith.constant 0 : i32
    return %c0_i32, %c0_i32_0, %c0_i32_1 : i32, i32, i32
  }
  func.func @transform_2(%arg0: i32) -> (i32, i32) {
    %c0_i32 = arith.constant 0 : i32
    %c0_i32_0 = arith.constant 0 : i32
    %c0_i32_1 = arith.constant 0 : i32
    return %c0_i32, %c0_i32_0 : i32, i32
  }
  func.func @transform_3(%arg0: i32) -> (i32, i32, i32, i32) {
    %c0_i32 = arith.constant 0 : i32
    %c0_i32_0 = arith.constant 0 : i32
    %c0_i32_1 = arith.constant 0 : i32
    %c0_i32_2 = arith.constant 0 : i32
    return %arg0, %c0_i32, %c0_i32_0, %c0_i32_1 : i32, i32, i32, i32
  }
}

module attributes {stable_mosaic.version = 11 : i64} {
  func.func @conv_bn_relu_pool_kernel(%arg0: i32, %arg1: memref<1x10x10x32xbf16, #tpu.memory_space<vmem>>, %arg2: memref<3x96x64xbf16, #tpu.memory_space<vmem>>, %arg3: memref<1x64xf32, #tpu.memory_space<vmem>>, %arg4: memref<1x4x4x64xbf16, #tpu.memory_space<vmem>>) attributes {dimension_semantics = [#tpu.dimension_semantics<parallel>], iteration_bounds = array<i64: 2>, scalar_prefetch = 0 : i64, scratch_operands = 0 : i64, tpu.core_type = #tpu.core_type<tc>, window_params = [{transform_indices = @transform_0, window_bounds = array<i64: 1, 10, 10, 32>}, {pipeline_mode = #tpu.pipeline_mode<synchronous>, transform_indices = @transform_1, window_bounds = array<i64: 3, 96, 64>}, {pipeline_mode = #tpu.pipeline_mode<synchronous>, transform_indices = @transform_2, window_bounds = array<i64: 1, 64>}, {transform_indices = @transform_3, window_bounds = array<i64: 1, 4, 4, 64>}]} {
    %c0 = arith.constant 0 : index
    %c0_0 = arith.constant 0 : index
    %c0_1 = arith.constant 0 : index
    %c0_2 = arith.constant 0 : index
    %0 = vector.load %arg1[%c0, %c0_0, %c0_1, %c0_2] : memref<1x10x10x32xbf16, #tpu.memory_space<vmem>>, vector<1x10x8x32xbf16>
    %1 = vector.shape_cast %0 : vector<1x10x8x32xbf16> to vector<10x8x32xbf16>
    %c0_3 = arith.constant 0 : index
    %c0_4 = arith.constant 0 : index
    %c1 = arith.constant 1 : index
    %c0_5 = arith.constant 0 : index
    %2 = vector.load %arg1[%c0_3, %c0_4, %c1, %c0_5] : memref<1x10x10x32xbf16, #tpu.memory_space<vmem>>, vector<1x10x8x32xbf16>
    %3 = vector.shape_cast %2 : vector<1x10x8x32xbf16> to vector<10x8x32xbf16>
    %c0_6 = arith.constant 0 : index
    %c0_7 = arith.constant 0 : index
    %c2 = arith.constant 2 : index
    %c0_8 = arith.constant 0 : index
    %4 = vector.load %arg1[%c0_6, %c0_7, %c2, %c0_8] : memref<1x10x10x32xbf16, #tpu.memory_space<vmem>>, vector<1x10x8x32xbf16>
    %5 = vector.shape_cast %4 : vector<1x10x8x32xbf16> to vector<10x8x32xbf16>
    %6 = tpu.concatenate %1, %3, %5 in 2 : vector<10x8x32xbf16>, vector<10x8x32xbf16>, vector<10x8x32xbf16> -> vector<10x8x96xbf16>
    %7 = vector.extract_strided_slice %6 {offsets = [0, 0, 0], sizes = [8, 8, 96], strides = [1, 1, 1]} : vector<10x8x96xbf16> to vector<8x8x96xbf16>
    %8 = vector.shape_cast %7 : vector<8x8x96xbf16> to vector<64x96xbf16>
    %c0_9 = arith.constant 0 : index
    %c0_10 = arith.constant 0 : index
    %c0_11 = arith.constant 0 : index
    %9 = vector.load %arg2[%c0_9, %c0_10, %c0_11] : memref<3x96x64xbf16, #tpu.memory_space<vmem>>, vector<1x96x64xbf16>
    %10 = vector.shape_cast %9 : vector<1x96x64xbf16> to vector<96x64xbf16>
    %cst = arith.constant dense<0.000000e+00> : vector<64x64xf32>
    %11 = tpu.matmul %8, %10, %cst {dimension_numbers = #tpu.dot_dimension_numbers<[1], [0], [0], [1], [0, 0, 1, 1], [], []>} : vector<64x96xbf16>, vector<96x64xbf16>, vector<64x64xf32> -> vector<64x64xf32>
    %12 = vector.extract_strided_slice %6 {offsets = [1, 0, 0], sizes = [8, 8, 96], strides = [1, 1, 1]} : vector<10x8x96xbf16> to vector<8x8x96xbf16>
    %13 = vector.shape_cast %12 : vector<8x8x96xbf16> to vector<64x96xbf16>
    %c1_12 = arith.constant 1 : index
    %c0_13 = arith.constant 0 : index
    %c0_14 = arith.constant 0 : index
    %14 = vector.load %arg2[%c1_12, %c0_13, %c0_14] : memref<3x96x64xbf16, #tpu.memory_space<vmem>>, vector<1x96x64xbf16>
    %15 = vector.shape_cast %14 : vector<1x96x64xbf16> to vector<96x64xbf16>
    %cst_15 = arith.constant dense<0.000000e+00> : vector<64x64xf32>
    %16 = tpu.matmul %13, %15, %cst_15 {dimension_numbers = #tpu.dot_dimension_numbers<[1], [0], [0], [1], [0, 0, 1, 1], [], []>} : vector<64x96xbf16>, vector<96x64xbf16>, vector<64x64xf32> -> vector<64x64xf32>
    %17 = arith.addf %11, %16 : vector<64x64xf32>
    %18 = vector.extract_strided_slice %6 {offsets = [2, 0, 0], sizes = [8, 8, 96], strides = [1, 1, 1]} : vector<10x8x96xbf16> to vector<8x8x96xbf16>
    %19 = vector.shape_cast %18 : vector<8x8x96xbf16> to vector<64x96xbf16>
    %c2_16 = arith.constant 2 : index
    %c0_17 = arith.constant 0 : index
    %c0_18 = arith.constant 0 : index
    %20 = vector.load %arg2[%c2_16, %c0_17, %c0_18] : memref<3x96x64xbf16, #tpu.memory_space<vmem>>, vector<1x96x64xbf16>
    %21 = vector.shape_cast %20 : vector<1x96x64xbf16> to vector<96x64xbf16>
    %cst_19 = arith.constant dense<0.000000e+00> : vector<64x64xf32>
    %22 = tpu.matmul %19, %21, %cst_19 {dimension_numbers = #tpu.dot_dimension_numbers<[1], [0], [0], [1], [0, 0, 1, 1], [], []>} : vector<64x96xbf16>, vector<96x64xbf16>, vector<64x64xf32> -> vector<64x64xf32>
    %23 = arith.addf %17, %22 : vector<64x64xf32>
    %c0_20 = arith.constant 0 : index
    %c0_21 = arith.constant 0 : index
    %24 = vector.load %arg3[%c0_20, %c0_21] : memref<1x64xf32, #tpu.memory_space<vmem>>, vector<1x64xf32>
    %25 = vector.broadcast %24 : vector<1x64xf32> to vector<64x64xf32>
    %26 = arith.addf %23, %25 : vector<64x64xf32>
    %cst_22 = arith.constant 0.000000e+00 : f32
    %27 = vector.broadcast %cst_22 : f32 to vector<64x64xf32>
    %28 = arith.maximumf %26, %27 : vector<64x64xf32>
    %29 = vector.shape_cast %28 : vector<64x64xf32> to vector<32x2x64xf32>
    %cst_23 = arith.constant dense<0xFF800000> : vector<32x64xf32>
    %30 = vector.multi_reduction <maximumf>, %29, %cst_23 [1] : vector<32x2x64xf32> to vector<32x64xf32>
    %31 = vector.shape_cast %30 : vector<32x64xf32> to vector<4x2x4x64xf32>
    %32 = vector.extract_strided_slice %31 {offsets = [0, 0, 0, 0], sizes = [4, 1, 4, 64], strides = [1, 1, 1, 1]} : vector<4x2x4x64xf32> to vector<4x1x4x64xf32>
    %33 = vector.shape_cast %32 : vector<4x1x4x64xf32> to vector<4x4x64xf32>
    %34 = vector.extract_strided_slice %31 {offsets = [0, 1, 0, 0], sizes = [4, 1, 4, 64], strides = [1, 1, 1, 1]} : vector<4x2x4x64xf32> to vector<4x1x4x64xf32>
    %35 = vector.shape_cast %34 : vector<4x1x4x64xf32> to vector<4x4x64xf32>
    %36 = arith.maximumf %33, %35 : vector<4x4x64xf32>
    %37 = arith.truncf %36 : vector<4x4x64xf32> to vector<4x4x64xbf16>
    %c0_24 = arith.constant 0 : index
    %c0_25 = arith.constant 0 : index
    %c0_26 = arith.constant 0 : index
    %c0_27 = arith.constant 0 : index
    %38 = vector.load %arg4[%c0_24, %c0_25, %c0_26, %c0_27] : memref<1x4x4x64xbf16, #tpu.memory_space<vmem>>, vector<1x4x4x64xbf16>
    %39 = vector.shape_cast %38 : vector<1x4x4x64xbf16> to vector<4x4x64xbf16>
    %40 = vector.shape_cast %37 : vector<4x4x64xbf16> to vector<1x4x4x64xbf16>
    tpu.vector_store %arg4[%c0_24, %c0_25, %c0_26, %c0_27], %40 {strides = array<i32>} : memref<1x4x4x64xbf16, #tpu.memory_space<vmem>>, vector<1x4x4x64xbf16>,
    return
  }
  func.func @transform_0(%arg0: i32) -> (i32, i32, i32, i32) {
    %c0_i32 = arith.constant 0 : i32
    %c0_i32_0 = arith.constant 0 : i32
    %c0_i32_1 = arith.constant 0 : i32
    %c0_i32_2 = arith.constant 0 : i32
    return %arg0, %c0_i32, %c0_i32_0, %c0_i32_1 : i32, i32, i32, i32
  }
  func.func @transform_1(%arg0: i32) -> (i32, i32, i32) {
    %c0_i32 = arith.constant 0 : i32
    %c0_i32_0 = arith.constant 0 : i32
    %c0_i32_1 = arith.constant 0 : i32
    %c0_i32_2 = arith.constant 0 : i32
    return %c0_i32, %c0_i32_0, %c0_i32_1 : i32, i32, i32
  }
  func.func @transform_2(%arg0: i32) -> (i32, i32) {
    %c0_i32 = arith.constant 0 : i32
    %c0_i32_0 = arith.constant 0 : i32
    %c0_i32_1 = arith.constant 0 : i32
    return %c0_i32, %c0_i32_0 : i32, i32
  }
  func.func @transform_3(%arg0: i32) -> (i32, i32, i32, i32) {
    %c0_i32 = arith.constant 0 : i32
    %c0_i32_0 = arith.constant 0 : i32
    %c0_i32_1 = arith.constant 0 : i32
    %c0_i32_2 = arith.constant 0 : i32
    return %arg0, %c0_i32, %c0_i32_0, %c0_i32_1 : i32, i32, i32, i32
  }
}

module attributes {stable_mosaic.version = 11 : i64} {
  func.func @conv_bn_relu_gap_kernel(%arg0: i32, %arg1: memref<1x4x4x128xbf16, #tpu.memory_space<vmem>>, %arg2: memref<3x384x256xbf16, #tpu.memory_space<vmem>>, %arg3: memref<1x256xf32, #tpu.memory_space<vmem>>, %arg4: memref<1x1x256xf32, #tpu.memory_space<vmem>>) attributes {dimension_semantics = [#tpu.dimension_semantics<parallel>], iteration_bounds = array<i64: 2>, scalar_prefetch = 0 : i64, scratch_operands = 0 : i64, tpu.core_type = #tpu.core_type<tc>, window_params = [{transform_indices = @transform_0, window_bounds = array<i64: 1, 4, 4, 128>}, {pipeline_mode = #tpu.pipeline_mode<synchronous>, transform_indices = @transform_1, window_bounds = array<i64: 3, 384, 256>}, {pipeline_mode = #tpu.pipeline_mode<synchronous>, transform_indices = @transform_2, window_bounds = array<i64: 1, 256>}, {transform_indices = @transform_3, window_bounds = array<i64: 1, 1, 256>}]} {
    %c0 = arith.constant 0 : index
    %c0_0 = arith.constant 0 : index
    %c0_1 = arith.constant 0 : index
    %c0_2 = arith.constant 0 : index
    %0 = vector.load %arg1[%c0, %c0_0, %c0_1, %c0_2] : memref<1x4x4x128xbf16, #tpu.memory_space<vmem>>, vector<1x4x2x128xbf16>
    %1 = vector.shape_cast %0 : vector<1x4x2x128xbf16> to vector<4x2x128xbf16>
    %c0_3 = arith.constant 0 : index
    %c0_4 = arith.constant 0 : index
    %c1 = arith.constant 1 : index
    %c0_5 = arith.constant 0 : index
    %2 = vector.load %arg1[%c0_3, %c0_4, %c1, %c0_5] : memref<1x4x4x128xbf16, #tpu.memory_space<vmem>>, vector<1x4x2x128xbf16>
    %3 = vector.shape_cast %2 : vector<1x4x2x128xbf16> to vector<4x2x128xbf16>
    %c0_6 = arith.constant 0 : index
    %c0_7 = arith.constant 0 : index
    %c2 = arith.constant 2 : index
    %c0_8 = arith.constant 0 : index
    %4 = vector.load %arg1[%c0_6, %c0_7, %c2, %c0_8] : memref<1x4x4x128xbf16, #tpu.memory_space<vmem>>, vector<1x4x2x128xbf16>
    %5 = vector.shape_cast %4 : vector<1x4x2x128xbf16> to vector<4x2x128xbf16>
    %6 = tpu.concatenate %1, %3, %5 in 2 : vector<4x2x128xbf16>, vector<4x2x128xbf16>, vector<4x2x128xbf16> -> vector<4x2x384xbf16>
    %7 = vector.extract_strided_slice %6 {offsets = [0, 0, 0], sizes = [2, 2, 384], strides = [1, 1, 1]} : vector<4x2x384xbf16> to vector<2x2x384xbf16>
    %8 = vector.shape_cast %7 : vector<2x2x384xbf16> to vector<4x384xbf16>
    %c0_9 = arith.constant 0 : index
    %c0_10 = arith.constant 0 : index
    %c0_11 = arith.constant 0 : index
    %9 = vector.load %arg2[%c0_9, %c0_10, %c0_11] : memref<3x384x256xbf16, #tpu.memory_space<vmem>>, vector<1x384x256xbf16>
    %10 = vector.shape_cast %9 : vector<1x384x256xbf16> to vector<384x256xbf16>
    %cst = arith.constant dense<0.000000e+00> : vector<4x256xf32>
    %11 = tpu.matmul %8, %10, %cst {dimension_numbers = #tpu.dot_dimension_numbers<[1], [0], [0], [1], [0, 0, 1, 1], [], []>} : vector<4x384xbf16>, vector<384x256xbf16>, vector<4x256xf32> -> vector<4x256xf32>
    %12 = vector.extract_strided_slice %6 {offsets = [1, 0, 0], sizes = [2, 2, 384], strides = [1, 1, 1]} : vector<4x2x384xbf16> to vector<2x2x384xbf16>
    %13 = vector.shape_cast %12 : vector<2x2x384xbf16> to vector<4x384xbf16>
    %c1_12 = arith.constant 1 : index
    %c0_13 = arith.constant 0 : index
    %c0_14 = arith.constant 0 : index
    %14 = vector.load %arg2[%c1_12, %c0_13, %c0_14] : memref<3x384x256xbf16, #tpu.memory_space<vmem>>, vector<1x384x256xbf16>
    %15 = vector.shape_cast %14 : vector<1x384x256xbf16> to vector<384x256xbf16>
    %cst_15 = arith.constant dense<0.000000e+00> : vector<4x256xf32>
    %16 = tpu.matmul %13, %15, %cst_15 {dimension_numbers = #tpu.dot_dimension_numbers<[1], [0], [0], [1], [0, 0, 1, 1], [], []>} : vector<4x384xbf16>, vector<384x256xbf16>, vector<4x256xf32> -> vector<4x256xf32>
    %17 = arith.addf %11, %16 : vector<4x256xf32>
    %18 = vector.extract_strided_slice %6 {offsets = [2, 0, 0], sizes = [2, 2, 384], strides = [1, 1, 1]} : vector<4x2x384xbf16> to vector<2x2x384xbf16>
    %19 = vector.shape_cast %18 : vector<2x2x384xbf16> to vector<4x384xbf16>
    %c2_16 = arith.constant 2 : index
    %c0_17 = arith.constant 0 : index
    %c0_18 = arith.constant 0 : index
    %20 = vector.load %arg2[%c2_16, %c0_17, %c0_18] : memref<3x384x256xbf16, #tpu.memory_space<vmem>>, vector<1x384x256xbf16>
    %21 = vector.shape_cast %20 : vector<1x384x256xbf16> to vector<384x256xbf16>
    %cst_19 = arith.constant dense<0.000000e+00> : vector<4x256xf32>
    %22 = tpu.matmul %19, %21, %cst_19 {dimension_numbers = #tpu.dot_dimension_numbers<[1], [0], [0], [1], [0, 0, 1, 1], [], []>} : vector<4x384xbf16>, vector<384x256xbf16>, vector<4x256xf32> -> vector<4x256xf32>
    %23 = arith.addf %17, %22 : vector<4x256xf32>
    %c0_20 = arith.constant 0 : index
    %c0_21 = arith.constant 0 : index
    %24 = vector.load %arg3[%c0_20, %c0_21] : memref<1x256xf32, #tpu.memory_space<vmem>>, vector<1x256xf32>
    %25 = vector.broadcast %24 : vector<1x256xf32> to vector<4x256xf32>
    %26 = arith.addf %23, %25 : vector<4x256xf32>
    %cst_22 = arith.constant 0.000000e+00 : f32
    %27 = vector.broadcast %cst_22 : f32 to vector<4x256xf32>
    %28 = arith.maximumf %26, %27 : vector<4x256xf32>
    %cst_23 = arith.constant dense<0.000000e+00> : vector<256xf32>
    %29 = vector.multi_reduction <add>, %28, %cst_23 [0] : vector<4x256xf32> to vector<256xf32>
    %30 = vector.shape_cast %29 : vector<256xf32> to vector<1x256xf32>
    %cst_24 = arith.constant 2.500000e-01 : f32
    %31 = vector.broadcast %cst_24 : f32 to vector<1x256xf32>
    %32 = arith.mulf %30, %31 : vector<1x256xf32>
    %c0_25 = arith.constant 0 : index
    %c0_26 = arith.constant 0 : index
    %c0_27 = arith.constant 0 : index
    %33 = vector.load %arg4[%c0_25, %c0_26, %c0_27] : memref<1x1x256xf32, #tpu.memory_space<vmem>>, vector<1x1x256xf32>
    %34 = vector.shape_cast %33 : vector<1x1x256xf32> to vector<1x256xf32>
    %35 = vector.shape_cast %32 : vector<1x256xf32> to vector<1x1x256xf32>
    tpu.vector_store %arg4[%c0_25, %c0_26, %c0_27], %35 {strides = array<i32>} : memref<1x1x256xf32, #tpu.memory_space<vmem>>, vector<1x1x256xf32>,
    return
  }
  func.func @transform_0(%arg0: i32) -> (i32, i32, i32, i32) {
    %c0_i32 = arith.constant 0 : i32
    %c0_i32_0 = arith.constant 0 : i32
    %c0_i32_1 = arith.constant 0 : i32
    %c0_i32_2 = arith.constant 0 : i32
    return %arg0, %c0_i32, %c0_i32_0, %c0_i32_1 : i32, i32, i32, i32
  }
  func.func @transform_1(%arg0: i32) -> (i32, i32, i32) {
    %c0_i32 = arith.constant 0 : i32
    %c0_i32_0 = arith.constant 0 : i32
    %c0_i32_1 = arith.constant 0 : i32
    %c0_i32_2 = arith.constant 0 : i32
    return %c0_i32, %c0_i32_0, %c0_i32_1 : i32, i32, i32
  }
  func.func @transform_2(%arg0: i32) -> (i32, i32) {
    %c0_i32 = arith.constant 0 : i32
    %c0_i32_0 = arith.constant 0 : i32
    %c0_i32_1 = arith.constant 0 : i32
    return %c0_i32, %c0_i32_0 : i32, i32
  }
  func.func @transform_3(%arg0: i32) -> (i32, i32, i32) {
    %c0_i32 = arith.constant 0 : i32
    %c0_i32_0 = arith.constant 0 : i32
    %c0_i32_1 = arith.constant 0 : i32
    return %arg0, %c0_i32, %c0_i32_0 : i32, i32, i32
  }
}

module attributes {stable_mosaic.version = 11 : i64} {
  func.func @conv_bn_relu_pool_kernel(%arg0: i32, %arg1: memref<1x6x6x64xbf16, #tpu.memory_space<vmem>>, %arg2: memref<3x192x128xbf16, #tpu.memory_space<vmem>>, %arg3: memref<1x128xf32, #tpu.memory_space<vmem>>, %arg4: memref<1x2x2x128xbf16, #tpu.memory_space<vmem>>) attributes {dimension_semantics = [#tpu.dimension_semantics<parallel>], iteration_bounds = array<i64: 2>, scalar_prefetch = 0 : i64, scratch_operands = 0 : i64, tpu.core_type = #tpu.core_type<tc>, window_params = [{transform_indices = @transform_0, window_bounds = array<i64: 1, 6, 6, 64>}, {pipeline_mode = #tpu.pipeline_mode<synchronous>, transform_indices = @transform_1, window_bounds = array<i64: 3, 192, 128>}, {pipeline_mode = #tpu.pipeline_mode<synchronous>, transform_indices = @transform_2, window_bounds = array<i64: 1, 128>}, {transform_indices = @transform_3, window_bounds = array<i64: 1, 2, 2, 128>}]} {
    %c0 = arith.constant 0 : index
    %c0_0 = arith.constant 0 : index
    %c0_1 = arith.constant 0 : index
    %c0_2 = arith.constant 0 : index
    %0 = vector.load %arg1[%c0, %c0_0, %c0_1, %c0_2] : memref<1x6x6x64xbf16, #tpu.memory_space<vmem>>, vector<1x6x4x64xbf16>
    %1 = vector.shape_cast %0 : vector<1x6x4x64xbf16> to vector<6x4x64xbf16>
    %c0_3 = arith.constant 0 : index
    %c0_4 = arith.constant 0 : index
    %c1 = arith.constant 1 : index
    %c0_5 = arith.constant 0 : index
    %2 = vector.load %arg1[%c0_3, %c0_4, %c1, %c0_5] : memref<1x6x6x64xbf16, #tpu.memory_space<vmem>>, vector<1x6x4x64xbf16>
    %3 = vector.shape_cast %2 : vector<1x6x4x64xbf16> to vector<6x4x64xbf16>
    %c0_6 = arith.constant 0 : index
    %c0_7 = arith.constant 0 : index
    %c2 = arith.constant 2 : index
    %c0_8 = arith.constant 0 : index
    %4 = vector.load %arg1[%c0_6, %c0_7, %c2, %c0_8] : memref<1x6x6x64xbf16, #tpu.memory_space<vmem>>, vector<1x6x4x64xbf16>
    %5 = vector.shape_cast %4 : vector<1x6x4x64xbf16> to vector<6x4x64xbf16>
    %6 = tpu.concatenate %1, %3, %5 in 2 : vector<6x4x64xbf16>, vector<6x4x64xbf16>, vector<6x4x64xbf16> -> vector<6x4x192xbf16>
    %7 = vector.extract_strided_slice %6 {offsets = [0, 0, 0], sizes = [4, 4, 192], strides = [1, 1, 1]} : vector<6x4x192xbf16> to vector<4x4x192xbf16>
    %8 = vector.shape_cast %7 : vector<4x4x192xbf16> to vector<16x192xbf16>
    %c0_9 = arith.constant 0 : index
    %c0_10 = arith.constant 0 : index
    %c0_11 = arith.constant 0 : index
    %9 = vector.load %arg2[%c0_9, %c0_10, %c0_11] : memref<3x192x128xbf16, #tpu.memory_space<vmem>>, vector<1x192x128xbf16>
    %10 = vector.shape_cast %9 : vector<1x192x128xbf16> to vector<192x128xbf16>
    %cst = arith.constant dense<0.000000e+00> : vector<16x128xf32>
    %11 = tpu.matmul %8, %10, %cst {dimension_numbers = #tpu.dot_dimension_numbers<[1], [0], [0], [1], [0, 0, 1, 1], [], []>} : vector<16x192xbf16>, vector<192x128xbf16>, vector<16x128xf32> -> vector<16x128xf32>
    %12 = vector.extract_strided_slice %6 {offsets = [1, 0, 0], sizes = [4, 4, 192], strides = [1, 1, 1]} : vector<6x4x192xbf16> to vector<4x4x192xbf16>
    %13 = vector.shape_cast %12 : vector<4x4x192xbf16> to vector<16x192xbf16>
    %c1_12 = arith.constant 1 : index
    %c0_13 = arith.constant 0 : index
    %c0_14 = arith.constant 0 : index
    %14 = vector.load %arg2[%c1_12, %c0_13, %c0_14] : memref<3x192x128xbf16, #tpu.memory_space<vmem>>, vector<1x192x128xbf16>
    %15 = vector.shape_cast %14 : vector<1x192x128xbf16> to vector<192x128xbf16>
    %cst_15 = arith.constant dense<0.000000e+00> : vector<16x128xf32>
    %16 = tpu.matmul %13, %15, %cst_15 {dimension_numbers = #tpu.dot_dimension_numbers<[1], [0], [0], [1], [0, 0, 1, 1], [], []>} : vector<16x192xbf16>, vector<192x128xbf16>, vector<16x128xf32> -> vector<16x128xf32>
    %17 = arith.addf %11, %16 : vector<16x128xf32>
    %18 = vector.extract_strided_slice %6 {offsets = [2, 0, 0], sizes = [4, 4, 192], strides = [1, 1, 1]} : vector<6x4x192xbf16> to vector<4x4x192xbf16>
    %19 = vector.shape_cast %18 : vector<4x4x192xbf16> to vector<16x192xbf16>
    %c2_16 = arith.constant 2 : index
    %c0_17 = arith.constant 0 : index
    %c0_18 = arith.constant 0 : index
    %20 = vector.load %arg2[%c2_16, %c0_17, %c0_18] : memref<3x192x128xbf16, #tpu.memory_space<vmem>>, vector<1x192x128xbf16>
    %21 = vector.shape_cast %20 : vector<1x192x128xbf16> to vector<192x128xbf16>
    %cst_19 = arith.constant dense<0.000000e+00> : vector<16x128xf32>
    %22 = tpu.matmul %19, %21, %cst_19 {dimension_numbers = #tpu.dot_dimension_numbers<[1], [0], [0], [1], [0, 0, 1, 1], [], []>} : vector<16x192xbf16>, vector<192x128xbf16>, vector<16x128xf32> -> vector<16x128xf32>
    %23 = arith.addf %17, %22 : vector<16x128xf32>
    %c0_20 = arith.constant 0 : index
    %c0_21 = arith.constant 0 : index
    %24 = vector.load %arg3[%c0_20, %c0_21] : memref<1x128xf32, #tpu.memory_space<vmem>>, vector<1x128xf32>
    %25 = vector.broadcast %24 : vector<1x128xf32> to vector<16x128xf32>
    %26 = arith.addf %23, %25 : vector<16x128xf32>
    %cst_22 = arith.constant 0.000000e+00 : f32
    %27 = vector.broadcast %cst_22 : f32 to vector<16x128xf32>
    %28 = arith.maximumf %26, %27 : vector<16x128xf32>
    %29 = vector.shape_cast %28 : vector<16x128xf32> to vector<8x2x128xf32>
    %cst_23 = arith.constant dense<0xFF800000> : vector<8x128xf32>
    %30 = vector.multi_reduction <maximumf>, %29, %cst_23 [1] : vector<8x2x128xf32> to vector<8x128xf32>
    %31 = vector.shape_cast %30 : vector<8x128xf32> to vector<2x2x2x128xf32>
    %32 = vector.extract_strided_slice %31 {offsets = [0, 0, 0, 0], sizes = [2, 1, 2, 128], strides = [1, 1, 1, 1]} : vector<2x2x2x128xf32> to vector<2x1x2x128xf32>
    %33 = vector.shape_cast %32 : vector<2x1x2x128xf32> to vector<2x2x128xf32>
    %34 = vector.extract_strided_slice %31 {offsets = [0, 1, 0, 0], sizes = [2, 1, 2, 128], strides = [1, 1, 1, 1]} : vector<2x2x2x128xf32> to vector<2x1x2x128xf32>
    %35 = vector.shape_cast %34 : vector<2x1x2x128xf32> to vector<2x2x128xf32>
    %36 = arith.maximumf %33, %35 : vector<2x2x128xf32>
    %37 = arith.truncf %36 : vector<2x2x128xf32> to vector<2x2x128xbf16>
    %c0_24 = arith.constant 0 : index
    %c0_25 = arith.constant 0 : index
    %c0_26 = arith.constant 0 : index
    %c0_27 = arith.constant 0 : index
    %38 = vector.load %arg4[%c0_24, %c0_25, %c0_26, %c0_27] : memref<1x2x2x128xbf16, #tpu.memory_space<vmem>>, vector<1x2x2x128xbf16>
    %39 = vector.shape_cast %38 : vector<1x2x2x128xbf16> to vector<2x2x128xbf16>
    %40 = vector.shape_cast %37 : vector<2x2x128xbf16> to vector<1x2x2x128xbf16>
    tpu.vector_store %arg4[%c0_24, %c0_25, %c0_26, %c0_27], %40 {strides = array<i32>} : memref<1x2x2x128xbf16, #tpu.memory_space<vmem>>, vector<1x2x2x128xbf16>,
    return
  }
  func.func @transform_0(%arg0: i32) -> (i32, i32, i32, i32) {
    %c0_i32 = arith.constant 0 : i32
    %c0_i32_0 = arith.constant 0 : i32
    %c0_i32_1 = arith.constant 0 : i32
    %c0_i32_2 = arith.constant 0 : i32
    return %arg0, %c0_i32, %c0_i32_0, %c0_i32_1 : i32, i32, i32, i32
  }
  func.func @transform_1(%arg0: i32) -> (i32, i32, i32) {
    %c0_i32 = arith.constant 0 : i32
    %c0_i32_0 = arith.constant 0 : i32
    %c0_i32_1 = arith.constant 0 : i32
    %c0_i32_2 = arith.constant 0 : i32
    return %c0_i32, %c0_i32_0, %c0_i32_1 : i32, i32, i32
  }
  func.func @transform_2(%arg0: i32) -> (i32, i32) {
    %c0_i32 = arith.constant 0 : i32
    %c0_i32_0 = arith.constant 0 : i32
    %c0_i32_1 = arith.constant 0 : i32
    return %c0_i32, %c0_i32_0 : i32, i32
  }
  func.func @transform_3(%arg0: i32) -> (i32, i32, i32, i32) {
    %c0_i32 = arith.constant 0 : i32
    %c0_i32_0 = arith.constant 0 : i32
    %c0_i32_1 = arith.constant 0 : i32
    %c0_i32_2 = arith.constant 0 : i32
    return %arg0, %c0_i32, %c0_i32_0, %c0_i32_1 : i32, i32, i32, i32
  }
}

module attributes {stable_mosaic.version = 11 : i64} {
  func.func @head_kernel(%arg0: i32, %arg1: memref<2x256xf32, #tpu.memory_space<vmem>>, %arg2: memref<256x128xf32, #tpu.memory_space<vmem>>, %arg3: memref<1x128xf32, #tpu.memory_space<vmem>>, %arg4: memref<128x5xf32, #tpu.memory_space<vmem>>, %arg5: memref<1x5xf32, #tpu.memory_space<vmem>>, %arg6: memref<2x5xf32, #tpu.memory_space<vmem>>) attributes {dimension_semantics = [#tpu.dimension_semantics<arbitrary>], iteration_bounds = array<i64: 1>, scalar_prefetch = 0 : i64, scratch_operands = 0 : i64, tpu.core_type = #tpu.core_type<tc>, window_params = [{pipeline_mode = #tpu.pipeline_mode<synchronous>, transform_indices = @transform_0, window_bounds = array<i64: 2, 256>}, {pipeline_mode = #tpu.pipeline_mode<synchronous>, transform_indices = @transform_1, window_bounds = array<i64: 256, 128>}, {pipeline_mode = #tpu.pipeline_mode<synchronous>, transform_indices = @transform_2, window_bounds = array<i64: 1, 128>}, {pipeline_mode = #tpu.pipeline_mode<synchronous>, transform_indices = @transform_3, window_bounds = array<i64: 128, 5>}, {pipeline_mode = #tpu.pipeline_mode<synchronous>, transform_indices = @transform_4, window_bounds = array<i64: 1, 5>}, {pipeline_mode = #tpu.pipeline_mode<synchronous>, transform_indices = @transform_5, window_bounds = array<i64: 2, 5>}]} {
    %c0 = arith.constant 0 : index
    %c0_0 = arith.constant 0 : index
    %0 = vector.load %arg1[%c0, %c0_0] : memref<2x256xf32, #tpu.memory_space<vmem>>, vector<2x256xf32>
    %c0_1 = arith.constant 0 : index
    %c0_2 = arith.constant 0 : index
    %1 = vector.load %arg2[%c0_1, %c0_2] : memref<256x128xf32, #tpu.memory_space<vmem>>, vector<256x128xf32>
    %cst = arith.constant dense<0.000000e+00> : vector<2x128xf32>
    %2 = tpu.matmul %0, %1, %cst {dimension_numbers = #tpu.dot_dimension_numbers<[1], [0], [0], [1], [0, 0, 1, 1], [], []>} : vector<2x256xf32>, vector<256x128xf32>, vector<2x128xf32> -> vector<2x128xf32>
    %c0_3 = arith.constant 0 : index
    %c0_4 = arith.constant 0 : index
    %3 = vector.load %arg3[%c0_3, %c0_4] : memref<1x128xf32, #tpu.memory_space<vmem>>, vector<1x128xf32>
    %4 = vector.broadcast %3 : vector<1x128xf32> to vector<2x128xf32>
    %5 = arith.addf %2, %4 : vector<2x128xf32>
    %cst_5 = arith.constant 0.000000e+00 : f32
    %6 = vector.broadcast %cst_5 : f32 to vector<2x128xf32>
    %7 = arith.maximumf %5, %6 : vector<2x128xf32>
    %c0_6 = arith.constant 0 : index
    %c0_7 = arith.constant 0 : index
    %8 = vector.load %arg4[%c0_6, %c0_7] : memref<128x5xf32, #tpu.memory_space<vmem>>, vector<128x5xf32>
    %cst_8 = arith.constant dense<0.000000e+00> : vector<2x5xf32>
    %9 = tpu.matmul %7, %8, %cst_8 {dimension_numbers = #tpu.dot_dimension_numbers<[1], [0], [0], [1], [0, 0, 1, 1], [], []>} : vector<2x128xf32>, vector<128x5xf32>, vector<2x5xf32> -> vector<2x5xf32>
    %c0_9 = arith.constant 0 : index
    %c0_10 = arith.constant 0 : index
    %10 = vector.load %arg5[%c0_9, %c0_10] : memref<1x5xf32, #tpu.memory_space<vmem>>, vector<1x5xf32>
    %11 = vector.broadcast %10 : vector<1x5xf32> to vector<2x5xf32>
    %12 = arith.addf %9, %11 : vector<2x5xf32>
    %c0_11 = arith.constant 0 : index
    %c0_12 = arith.constant 0 : index
    %13 = vector.load %arg6[%c0_11, %c0_12] : memref<2x5xf32, #tpu.memory_space<vmem>>, vector<2x5xf32>
    tpu.vector_store %arg6[%c0_11, %c0_12], %12 {strides = array<i32>} : memref<2x5xf32, #tpu.memory_space<vmem>>, vector<2x5xf32>,
    return
  }
  func.func @transform_0(%arg0: i32) -> (i32, i32) {
    %c0_i32 = arith.constant 0 : i32
    %c0_i32_0 = arith.constant 0 : i32
    %c0_i32_1 = arith.constant 0 : i32
    return %c0_i32, %c0_i32_0 : i32, i32
  }
  func.func @transform_1(%arg0: i32) -> (i32, i32) {
    %c0_i32 = arith.constant 0 : i32
    %c0_i32_0 = arith.constant 0 : i32
    %c0_i32_1 = arith.constant 0 : i32
    return %c0_i32, %c0_i32_0 : i32, i32
  }
  func.func @transform_2(%arg0: i32) -> (i32, i32) {
    %c0_i32 = arith.constant 0 : i32
    %c0_i32_0 = arith.constant 0 : i32
    %c0_i32_1 = arith.constant 0 : i32
    return %c0_i32, %c0_i32_0 : i32, i32
  }
  func.func @transform_3(%arg0: i32) -> (i32, i32) {
    %c0_i32 = arith.constant 0 : i32
    %c0_i32_0 = arith.constant 0 : i32
    %c0_i32_1 = arith.constant 0 : i32
    return %c0_i32, %c0_i32_0 : i32, i32
  }
  func.func @transform_4(%arg0: i32) -> (i32, i32) {
    %c0_i32 = arith.constant 0 : i32
    %c0_i32_0 = arith.constant 0 : i32
    %c0_i32_1 = arith.constant 0 : i32
    return %c0_i32, %c0_i32_0 : i32, i32
  }
  func.func @transform_5(%arg0: i32) -> (i32, i32) {
    %c0_i32 = arith.constant 0 : i32
    %c0_i32_0 = arith.constant 0 : i32
    %c0_i32_1 = arith.constant 0 : i32
    return %c0_i32, %c0_i32_0 : i32, i32
  }
}

</mosaic_0001>

<bundles_post_ra>
// kernel: yoga_pose_cnn_forward.6
= control target key start
LH: loop header
LB: loop body
LE: loop exit
PB: predicated region body
PF: predicated region fallthrough
CT: control target
= control target key end

     0   :  { %8 = vsyncpa [#allocation3], 0  ;;  %s1585_s12 = smov 0   ;;  %s1854_s0 = inlined_call_operand.vmem [shape: bf16[2,10,10,32], index: 0, kind: input, shape index: {}]   ;;  %s1855_s1 = inlined_call_operand.hbm [shape: bf16[3,96,64], index: 1, kind: input, shape index: {}]   ;;  %s1856_s2 = inlined_call_operand.vmem [shape: f32[1,64], index: 2, kind: input, shape index: {}]   ;;  %s1857_s3 = inlined_call_operand.vmem [shape: bf16[2,4,4,64], index: 3, kind: output, shape index: {}]  }
   0x1 LB: > { %s124_s15 = sshll.u32 %s1855_s1, 4  ;;  %s1372_s16 = sadd.s32 4294967295, %s1558_s12   ;;  %s1558_s12 = sphi %s1585_s12, %s14_s12   ;;  %s125_s15 = int_to_ptr.hbm [resolvable:$true] %s124_s15 }
   0x2   : > { %p1374_p0 = scmp.ge.s32.totalorder %s1558_s12, 1  ;;  %p113_p1 = scmp.lt.s32.totalorder %s1558_s12, 3 }
   0x3   : > { %p1502_p2 = scmp.eq.s32.totalorder %s1372_s16, 0  ;;  %s1560_s17 = smov [#allocation2]  }
   0x4   : > { %p114_p3 = pnand %p1374_p0, %p113_p1  ;;  %s126_s18 = sshll.u32 %s1560_s17, 4  ;;  %s127_s18 = int_to_ptr.vmem [resolvable:$true] %s126_s18 }
   0x5   : > { %s1561_s19 = smov 64   ;;  %s1562_s20 = smov 4  }
   0x6   : > { %p1498_p4 = pneg %p114_p3  ;;  %153 = sbr.rel (%p114_p3) target bundleno = 425 (0x1a9), region = 32 }
   0x8   : > { %p1499_p5 = pnand %p1502_p2, %p1498_p4 }
   0xa   : > { %1501 = dma.hbm_to_vmem [thread:$0]  (!%p1499_p5), %s125_s15, 2304, %s127_s18, [#allocation3], %s1561_s19, %s1561_s19, %s1562_s20  }
   0xb   : > { %1553 = dma.done.wait (%p1502_p2), [#allocation3], 2304  }
   0xc   : > { %1555 = vsyncadd (%p1502_p2), [#allocation3], 4294964992  ;;  %p178_p6 = scmp.lt.s32.totalorder %s1372_s16, 1  ;;  %s1563_s25 = smov 64   ;;  %vm419_vm0 = vcmask 261120   ;;  %vm450_vm1 = vcmask 523264  }
   0xd   : > { %s1564_s26 = smov 32   ;;  %vm552_vm2 = vcmask 785408   ;;  %vm845_vm3 = vcmask 517120   ;;  %vm1134_vm4 = vcmask 1041408   ;;  %vm1251_vm5 = vcmask 1041409  }
   0xe   : > { %s1859_s16 = smov (!%p178_p6, %s1372_s16), 1  ;;  %vm1254_vm6 = vcmask 1042434   ;;  %vm1257_vm7 = vcmask 1043459  }
   0xf   : > { %s1493_s21 = smul.u32 80, %s1859_s16  ;;  %s1468_s29 = sshll.u32 %s1859_s16, 3 }
  0x10   : > { %s1794_s5 = scalar_lea.vmem %s1857_s3, %s1468_s29 }
  0x11   : > { %s1602_s24 = scalar_lea.vmem %s1854_s0, %s1493_s21 }
  0x12   : > { %v201_v0 = vld [vmem:[%s1602_s24 + $0x14] sm:$0x1]  ;;  %v211_v1 = vld [vmem:[%s1602_s24 + $0x10] sm:$0xe]  ;;  %v202_v6 = vld [vmem:[%s1602_s24 + $0x1c] sm:$0x1] }
  0x13   : > { %v1607_v2 = vld [vmem:[%s1602_s24 + $0x10] sm:$0xf]  ;;  %v244_v3 = vunpack.c.l.b16 %v201_v0  ;;  %v371_v4 = vunpack.c.l.b16 %v211_v1  ;;  %v212_v7 = vld [vmem:[%s1602_s24 + $0x18] sm:$0xe]  ;;  %v246_v9 = vunpack.c.l.b16 %v202_v6  ;;  %v200_v15 = vld [vmem:[%s1602_s24 + $0xc] sm:$0x1] }
  0x14   : > { %v243_v5 = vunpack.c.l.b16 %v1607_v2  ;;  %v1613_v8 = vld [vmem:[%s1602_s24 + $0x18] sm:$0xf]  ;;  %v372_v13 = vunpack.c.l.b16 %v212_v7  ;;  %v210_v19 = vld [vmem:[%s1602_s24 + $0x8] sm:$0xe]  ;;  %v199_v20 = vld [vmem:[%s1602_s24 + $0x4] sm:$0x1]  ;;  %v242_v29 = vunpack.c.l.b16 %v200_v15 }
  0x15   : > { %v245_v10 = vunpack.c.l.b16 %v1613_v8  ;;  %v381_v11 = vpack.c.b16 %v244_v3, %v371_v4  ;;  %v1620_v21 = vld [vmem:[%s1602_s24 + $0x28] sm:$0xf]  ;;  %v1623_v22 = vld [vmem:[%s1602_s24] sm:$0xf]  ;;  %v1627_v26 = vld [vmem:[%s1602_s24 + $0x2c] sm:$0x1]  ;;  %v240_v30 = vunpack.c.l.b16 %v199_v20  ;;  %v370_v32 = vunpack.c.l.b16 %v210_v19 }
  0x16   : > { %v261_v12 = vpack.c.b16 %v244_v3, %v243_v5  ;;  %v382_v24 = vpack.c.b16 %v246_v9, %v372_v13  ;;  %v1630_v27 = vld [vmem:[%s1602_s24 + $0x8] sm:$0xf]  ;;  %v239_v31 = vunpack.c.l.b16 %v1623_v22  ;;  %v249_v33 = vunpack.c.l.b16 %v1620_v21  ;;  %v209_v39 = vld [vmem:[%s1602_s24] sm:$0xe]  ;;  %v203_v47 = vld [vmem:[%s1602_s24 + $0x24] sm:$0x1] }
  0x17   : > { %v262_v14 = vpack.c.b16 %v246_v9, %v245_v10  ;;  %v391_v16 = vrot.slane %v381_v11, 1  ;;  %v250_v34 = vunpack.c.l.b16 %v1627_v26  ;;  %v241_v35 = vunpack.c.l.b16 %v1630_v27  ;;  %v1639_v44 = vld [vmem:[%s1602_s24 + $0x20] sm:$0xf]  ;;  %v1648_v58 = vld [vmem:[%s1602_s24 + $0x30] sm:$0xf] }
  0x18   : > { %v284_v17 = vshrl.u32 %v261_v12, 16  ;;  %v286_v18 = vshll.u32 %v261_v12, 16  ;;  %v392_v36 = vrot.slane %v382_v24, 1  ;;  %v259_v40 = vpack.c.b16 %v240_v30, %v239_v31  ;;  %v213_v57 = vld [vmem:[%s1602_s24 + $0x20] sm:$0xe] }
  0x19   : > { %403 = vrot.lane.b32.xlu1 %v391_v16, %s1563_s25  ;;  %v293_v25 = vshll.u32 %v262_v14, 16  ;;  %v291_v37 = vshrl.u32 %v262_v14, 16  ;;  %v260_v41 = vpack.c.b16 %v242_v29, %v241_v35  ;;  %v369_v45 = vunpack.c.l.b16 %v209_v39  ;;  %v205_v60 = vld [vmem:[%s1602_s24 + $0x34] sm:$0x1]  ;;  %v215_v9 = vld [vmem:[%s1602_s24 + $0x30] sm:$0xe] }
  0x1a   : > { %v288_v23 = vrot.slane %v286_v18, 1  ;;  %v270_v42 = vshrl.u32 %v259_v40, 16  ;;  %v272_v43 = vshll.u32 %v259_v40, 16  ;;  %v264_v46 = vpack.c.b16 %v250_v34, %v249_v33  ;;  %v1657_v11 = vld [vmem:[%s1602_s24 + $0x40] sm:$0xf] }
  0x1b   : > { %v295_v38 = vrot.slane %v293_v25, 1  ;;  %v380_v49 = vpack.c.b16 %v242_v29, %v370_v32  ;;  %v279_v51 = vshll.u32 %v260_v41, 16  ;;  %v247_v52 = vunpack.c.l.b16 %v1639_v44  ;;  %v1660_v12 = vld [vmem:[%s1602_s24 + $0x44] sm:$0x1]  ;;  %v214_v24 = vld [vmem:[%s1602_s24 + $0x28] sm:$0xe] }
  0x1c   : > { %v289_v28 = vor.u32 %v288_v23, %v284_v17  ;;  %v274_v50 = vrot.slane %v272_v43, 1  ;;  %v248_v53 = vunpack.c.l.b16 %v203_v47  ;;  %v379_v55 = vpack.c.b16 %v240_v30, %v369_v45  ;;  %v1486_v23 = vld [vmem:[#allocation2 + $0x88] sm:$0xff]  ;;  %v1668_v25 = vld [vmem:[%s1602_s24 + $0x38] sm:$0xf]  ;;  %v1485_v29 = vld [vmem:[#allocation2 + $0x80] sm:$0xff] }
  0x1d   : > { %v296_v48 = vor.u32 %v295_v38, %v291_v37  ;;  %v307_v56 = vshll.u32 %v264_v46, 16  ;;  %v390_v59 = vrot.slane %v380_v49, 1  ;;  %v277_v61 = vshrl.u32 %v260_v41, 16  ;;  %734 = vmatpush.bf16.msra.mxu2 %v1486_v23  ;;  %v206_v33 = vld [vmem:[%s1602_s24 + $0x3c] sm:$0x1] }
  0x1e   : > { %343 = vrot.lane.b32.xlu0 %v289_v28, %s1564_s26  ;;  %v275_v54 = vor.u32 %v274_v50, %v270_v42  ;;  %v281_v62 = vrot.slane %v279_v51, 1  ;;  %v263_v63 = vpack.c.b16 %v248_v53, %v247_v52  ;;  %v373_v0 = vunpack.c.l.b16 %v213_v57  ;;  %v1480_v28 = vld [vmem:[#allocation2 + $0x58] sm:$0xff]  ;;  %v216_v42 = vld [vmem:[%s1602_s24 + $0x38] sm:$0xe]  ;;  %v1679_v47 = vld [vmem:[%s1602_s24 + $0x48] sm:$0xf] }
  0x1f   : > { %v305_v1 = vshrl.u32 %v264_v46, 16  ;;  %v309_v3 = vrot.slane %v307_v56, 1  ;;  %v251_v4 = vunpack.c.l.b16 %v1648_v58  ;;  %v252_v5 = vunpack.c.l.b16 %v205_v60  ;;  %567 = vmatpush.bf16.msra.mxu0 %v1480_v28  ;;  %1487 = vmatpush.bf16.msra.mxu3 %v1480_v28  ;;  %v1483_v23 = vld [vmem:[#allocation2 + $0x70] sm:$0xff]  ;;  %v1482_v28 = vld [vmem:[#allocation2 + $0x68] sm:$0xff] }
  0x20   : > { %339 = vrot.lane.b32.xlu2 %v275_v54, %s1564_s26  ;;  %v389_v6 = vrot.slane %v379_v55, 1  ;;  %v282_v7 = vor.u32 %v281_v62, %v277_v61  ;;  %v300_v10 = vshll.u32 %v263_v63, 16  ;;  %v383_v14 = vpack.c.b16 %v248_v53, %v373_v0  ;;  %v217_v0 = vld [vmem:[%s1602_s24 + $0x40] sm:$0xe] }
  0x21   : > { %405 = vrot.lane.b32.xlu1 %v392_v36, %s1563_s25  ;;  %v310_v13 = vor.u32 %v309_v3, %v305_v1  ;;  %v265_v15 = vpack.c.b16 %v252_v5, %v251_v4  ;;  %v375_v16 = vunpack.c.l.b16 %v215_v9  ;;  %v298_v17 = vshrl.u32 %v263_v63, 16  ;;  %735 = vmatpush.bf16.msra.mxu2 %v1485_v29  ;;  %v1476_v29 = vld [vmem:[#allocation2 + $0x38] sm:$0xff] }
  0x22   : > { %v302_v18 = vrot.slane %v300_v10, 1  ;;  %v255_v19 = vunpack.c.l.b16 %v1657_v11  ;;  %v256_v20 = vunpack.c.l.b16 %v1660_v12  ;;  %v393_v30 = vrot.slane %v383_v14, 1 }
  0x23   : > { %v314_v31 = vshll.u32 %v265_v15, 16  ;;  %v385_v32 = vpack.c.b16 %v252_v5, %v375_v16  ;;  %v374_v37 = vunpack.c.l.b16 %v214_v24  ;;  %v253_v38 = vunpack.c.l.b16 %v1668_v25  ;;  %v1474_v16 = vld [vmem:[#allocation2 + $0x28] sm:$0xff]  ;;  %v1472_v24 = vld [vmem:[#allocation2 + $0x18] sm:$0xff] }
  0x24   : > { %v303_v35 = vor.u32 %v302_v18, %v298_v17  ;;  %v267_v36 = vpack.c.b16 %v256_v20, %v255_v19  ;;  %v254_v39 = vunpack.c.l.b16 %v206_v33  ;;  %v312_v40 = vshrl.u32 %v265_v15, 16  ;;  %v1479_v15 = vld [vmem:[#allocation2 + $0x50] sm:$0xff]  ;;  %v1484_v17 = vld [vmem:[#allocation2 + $0x78] sm:$0xff]  ;;  %650 = vmatpush.bf16.msra.mxu1 %v1474_v16  ;;  %v1478_v18 = vld [vmem:[#allocation2 + $0x48] sm:$0xff] }
  0x25   : > { %v316_v41 = vrot.slane %v314_v31, 1  ;;  %v395_v43 = vrot.slane %v385_v32, 1  ;;  %v384_v46 = vpack.c.b16 %v250_v34, %v374_v37  ;;  %v376_v51 = vunpack.c.l.b16 %v216_v42  ;;  %568 = vmatpush.bf16.msra.mxu0 %v1479_v15  ;;  %736 = vmatpush.bf16.msra.mxu2 %v1484_v17  ;;  %v1473_v19 = vld [vmem:[#allocation2 + $0x20] sm:$0xff]  ;;  %v1475_v32 = vld [vmem:[#allocation2 + $0x30] sm:$0xff]  ;;  %v1470_v33 = vld [vmem:[#allocation2 + $0x8] sm:$0xff] }
  0x26   : > { %345 = vrot.lane.b32.xlu0 %v296_v48, %s1564_s26  ;;  %v328_v45 = vshll.u32 %v267_v36, 16  ;;  %v208_v48 = vld [vmem:[%s1602_s24 + $0x4c] sm:$0x1]  ;;  %v266_v49 = vpack.c.b16 %v254_v39, %v253_v38  ;;  %v257_v52 = vunpack.c.l.b16 %v1679_v47  ;;  %v326_v54 = vshrl.u32 %v267_v36, 16  ;;  %1488 = vmatpush.bf16.msra.mxu3 %v1479_v15 }
  0x27   : > { %v317_v50 = vor.u32 %v316_v41, %v312_v40  ;;  %v258_v53 = vunpack.c.l.b16 %v208_v48  ;;  %v394_v56 = vrot.slane %v384_v46, 1  ;;  %v386_v60 = vpack.c.b16 %v254_v39, %v376_v51  ;;  %v1481_v31 = vld [vmem:[#allocation2 + $0x60] sm:$0xff] }
  0x28   : > { %341 = vrot.lane.b32.xlu2 %v282_v7, %s1564_s26  ;;  %v330_v55 = vrot.slane %v328_v45, 1  ;;  %v321_v57 = vshll.u32 %v266_v49, 16  ;;  %v319_v62 = vshrl.u32 %v266_v49, 16  ;;  %651 = vmatpush.bf16.msra.mxu1 %v1473_v19 }
  0x29   : > { %401 = vrot.lane.b32.xlu1 %v390_v59, %s1563_s25  ;;  %v218_v59 = vld [vmem:[%s1602_s24 + $0x48] sm:$0xe]  ;;  %v268_v26 = vpack.c.b16 %v258_v53, %v257_v52  ;;  %v396_v1 = vrot.slane %v386_v60, 1  ;;  %569 = vmatpush.bf16.msra.mxu0 %v1478_v18 }
  0x2a   : > { %v331_v34 = vor.u32 %v330_v55, %v326_v54  ;;  %v378_v61 = vunpack.c.l.b16 %v218_v59  ;;  %v323_v63 = vrot.slane %v321_v57, 1  ;;  %737 = vmatpush.bf16.msra.mxu2 %v1483_v23  ;;  %1489 = vmatpush.bf16.msra.mxu3 %v1478_v18 }
  0x2b   : > { %v335_v3 = vshll.u32 %v268_v26, 16  ;;  %v333_v7 = vshrl.u32 %v268_v26, 16 }
  0x2c   : > { %v388_v4 = vpack.c.b16 %v258_v53, %v378_v61  ;;  %v324_v5 = vor.u32 %v323_v63, %v319_v62  ;;  %652 = vmatpush.bf16.msra.mxu1 %v1472_v24 }
  0x2d   : > { %v337_v9 = vrot.slane %v335_v3, 1 }
  0x2e   : > { %399 = vrot.lane.b32.xlu0 %v389_v6, %s1563_s25  ;;  %v377_v6 = vunpack.c.l.b16 %v217_v0  ;;  %v398_v10 = vrot.slane %v388_v4, 1  ;;  %738 = vmatpush.bf16.msra.mxu2 %v1482_v28 }
  0x30   : > { %347 = vrot.lane.b32.xlu2 %v303_v35, %s1564_s26  ;;  %v387_v12 = vpack.c.b16 %v256_v20, %v377_v6  ;;  %v1477_v20 = vld [vmem:[#allocation2 + $0x40] sm:$0xff] }
  0x31   : > { %349 = vrot.lane.b32.xlu1 %v310_v13, %s1564_s26  ;;  %v338_v13 = vor.u32 %v337_v9, %v333_v7  ;;  %570 = vmatpush.bf16.msra.mxu0 %v1477_v20  ;;  %v1469_v35 = vld [vmem:[#allocation2] sm:$0xff] }
  0x32   : > { %v397_v14 = vrot.slane %v387_v12, 1  ;;  %1490 = vmatpush.bf16.msra.mxu3 %v1477_v20  ;;  %739 = vmatpush.bf16.msra.mxu2 %v1481_v31 }
  0x35   : > { %571 = vmatpush.bf16.msra.mxu0 %v1476_v29 }
  0x36   : > { %407 = vrot.lane.b32.xlu0 %v393_v30, %s1563_s25  ;;  %v1471_v30 = vld [vmem:[#allocation2 + $0x10] sm:$0xff]  ;;  %1491 = vmatpush.bf16.msra.mxu3 %v1476_v29 }
  0x37   : > { %653 = vmatpush.bf16.msra.mxu1 %v1471_v30 }
  0x38   : > { %409 = vrot.lane.b32.xlu2 %v394_v56, %s1563_s25 }
  0x39   : > { %411 = vrot.lane.b32.xlu1 %v395_v43, %s1563_s25  ;;  %572 = vmatpush.bf16.msra.mxu0 %v1475_v32 }
  0x3a   : > { %1492 = vmatpush.bf16.msra.mxu3 %v1475_v32 }
  0x3b   : > { %654 = vmatpush.bf16.msra.mxu1 %v1470_v33 }
  0x3e   : > { %351 = vrot.lane.b32.xlu0 %v317_v50, %s1564_s26 }
  0x3f   : > { %655 = vmatpush.bf16.msra.mxu1 %v1469_v35  ;;  %v1739_v35 = vld [vmem:[%s1856_s2] ss:$0 sm:$0xff] }
  0x40   : > { %353 = vrot.lane.b32.xlu2 %v324_v5, %s1564_s26 }
  0x41   : > { %355 = vrot.lane.b32.xlu1 %v331_v34, %s1564_s26 }
  0x46   : > { %413 = vrot.lane.b32.xlu0 %v396_v1, %s1563_s25 }
  0x48   : > { %415 = vrot.lane.b32.xlu2 %v397_v14, %s1563_s25 }
  0x49   : > { %417 = vrot.lane.b32.xlu1 %v398_v10, %s1563_s25 }
  0x4e   : > { %357 = vrot.lane.b32.xlu0 %v338_v13, %s1564_s26 }
  0x7a   : > { %v340_v36 = vpop.permute.xlu2 %339 }
  0x7b   : > { %v422_v55 = vsel %vm419_vm0, %v1623_v22, %v340_v36 }
  0x82   : > { %v342_v38 = vpop.permute.xlu2 %341 }
  0x83   : > { %v425_v49 = vsel %vm419_vm0, %v1630_v27, %v342_v38 }
  0x8a   : > { %v348_v46 = vpop.permute.xlu2 %347 }
  0x8b   : > { %v404_v37 = vpop.permute.xlu1 %403  ;;  %v434_v22 = vsel %vm419_vm0, %v1639_v44, %v348_v46 }
  0x90   : > { %v344_v39 = vpop.permute.xlu0 %343 }
  0x91   : > { %v428_v41 = vsel %vm419_vm0, %v1607_v2, %v344_v39 }
  0x92   : > { %v456_v42 = vsel %vm450_vm1, %v428_v41, %v404_v37  ;;  %v410_v27 = vpop.permute.xlu2 %409 }
  0x93   : > { %v406_v40 = vpop.permute.xlu1 %405  ;;  %v505_v50 = vunpack.c.l.b16 %v456_v42 }
  0x98   : > { %v346_v43 = vpop.permute.xlu0 %345 }
  0x99   : > { %v431_v45 = vsel %vm419_vm0, %v1613_v8, %v346_v43 }
  0x9a   : > { %v458_v48 = vsel %vm450_vm1, %v431_v45, %v406_v40  ;;  %v354_v9 = vpop.permute.xlu2 %353 }
  0x9b   : > { %v506_v51 = vunpack.c.l.b16 %v458_v48  ;;  %v402_v52 = vpop.permute.xlu1 %401  ;;  %v443_v44 = vsel %vm419_vm0, %v1668_v25, %v354_v9 }
  0x9c   : > { %v454_v53 = vsel %vm450_vm1, %v425_v49, %v402_v52 }
  0x9d   : > { %v597_v54 = vpack.c.b16 %v506_v51, %v505_v50  ;;  %v504_v2 = vunpack.c.l.b16 %v454_v53 }
  0x9f   : > { %1462 = vmatmul.msk.bf16.vlgmr.msra.gmra.mxu2 %vm552_vm2, %v597_v54  ;;  %v512_v56 = vpack.c.b16 %v505_v50, %v504_v2 }
  0xa0   : > { %v400_v8 = vpop.permute.xlu0 %399 }
  0xa1   : > { %v452_v57 = vsel %vm450_vm1, %v422_v55, %v400_v8  ;;  %1406 = vmatmul.msk.bf16.vlgmr.msra.gmra.mxu0 %vm552_vm2, %v512_v56 }
  0xa2   : > { %v595_v59 = vunpack.c.l.b16 %v452_v57  ;;  %v416_v19 = vpop.permute.xlu2 %415 }
  0xa3   : > { %v350_v26 = vpop.permute.xlu1 %349 }
  0xa4   : > { %v596_v60 = vpack.c.b16 %v504_v2, %v595_v59  ;;  %v437_v34 = vsel %vm419_vm0, %v1620_v21, %v350_v26 }
  0xa5   : > { %v462_v61 = vsel %vm450_vm1, %v437_v34, %v410_v27 }
  0xa6   : > { %1434 = vmatmul.msk.bf16.vlgmr.msra.gmra.mxu1 %vm552_vm2, %v596_v60  ;;  %v508_v63 = vunpack.c.l.b16 %v462_v61 }
  0xa8   : > { %v408_v62 = vpop.permute.xlu0 %407 }
  0xa9   : > { %v460_v0 = vsel %vm450_vm1, %v434_v22, %v408_v62 }
  0xaa   : > { %v507_v1 = vunpack.c.l.b16 %v460_v0 }
  0xab   : > { %v412_v6 = vpop.permute.xlu1 %411 }
  0xac   : > { %v513_v3 = vpack.c.b16 %v507_v1, %v506_v51  ;;  %v598_v4 = vpack.c.b16 %v508_v63, %v507_v1 }
  0xae   : > { %1407 = vmatmul.msk.bf16.vlgmr.msra.gmra.mxu3 %vm552_vm2, %v513_v3 }
  0xaf   : > { %1463 = vmatmul.msk.bf16.gmra.mxu2 %vm552_vm2, %v598_v4 }
  0xb0   : > { %v352_v5 = vpop.permute.xlu0 %351 }
  0xb1   : > { %v440_v21 = vsel %vm419_vm0, %v1648_v58, %v352_v5 }
  0xb2   : > { %v464_v7 = vsel %vm450_vm1, %v440_v21, %v412_v6 }
  0xb3   : > { %v509_v10 = vunpack.c.l.b16 %v464_v7  ;;  %v356_v15 = vpop.permute.xlu1 %355 }
  0xb4   : > { %v446_v18 = vsel %vm419_vm0, %v1657_v11, %v356_v15 }
  0xb5   : > { %v514_v16 = vpack.c.b16 %v509_v10, %v508_v63  ;;  %v468_v20 = vsel %vm450_vm1, %v446_v18, %v416_v19 }
  0xb6   : > { %1435 = vmatmul.msk.bf16.gmra.mxu1 %vm552_vm2, %v597_v54  ;;  %v511_v28 = vunpack.c.l.b16 %v468_v20 }
  0xb8   : > { %v414_v12 = vpop.permute.xlu0 %413 }
  0xb9   : > { %v466_v13 = vsel %vm450_vm1, %v443_v44, %v414_v12 }
  0xba   : > { %v510_v14 = vunpack.c.l.b16 %v466_v13 }
  0xbb   : > { %v418_v23 = vpop.permute.xlu1 %417 }
  0xbc   : > { %v599_v17 = vpack.c.b16 %v510_v14, %v509_v10  ;;  %v515_v30 = vpack.c.b16 %v511_v28, %v510_v14 }
  0xbe   : > { %1408 = vmatmul.msk.bf16.gmra.mxu3 %vm552_vm2, %v514_v16 }
  0xbf   : > { %1464 = vmatmul.msk.bf16.gmra.mxu2 %vm552_vm2, %v599_v17 }
  0xc0   : > { %v358_v58 = vpop.permute.xlu0 %357 }
  0xc1   : > { %v449_v25 = vsel %vm419_vm0, %v1679_v47, %v358_v58 }
  0xc2   : > { %v470_v24 = vsel %vm450_vm1, %v449_v25, %v418_v23 }
  0xc3   : > { %v691_v29 = vunpack.c.l.b16 %v470_v24 }
  0xc5   : > { %v692_v31 = vpack.c.b16 %v691_v29, %v511_v28 }
  0xc6   : > { %1436 = vmatmul.msk.bf16.gmra.mxu1 %vm552_vm2, %v598_v4 }
  0xce   : > { %1409 = vmatmul.msk.bf16.gmra.mxu3 %vm552_vm2, %v515_v30 }
  0xcf   : > { %1465 = vmatmul.msk.bf16.gmra.mxu2 %vm552_vm2, %v692_v31 }
  0xd6   : > { %1437 = vmatmul.msk.bf16.gmra.mxu1 %vm552_vm2, %v599_v17 }
 0x11e   : > { %v574_v11 = vpop.f32.mrf.mxu0 }
 0x122   : > { %v741_v32 = vpop.f32.mrf.mxu2 }
 0x123   : > { %v657_v47 = vpop.f32.mrf.mxu1 }
 0x124   : > { %v658_v33 = vadd.f32 %v657_v47, %v574_v11 }
 0x126   : > { %v761_v36 = vadd.f32 %v741_v32, %v658_v33  ;;  %v576_v46 = vpop.f32.mrf.mxu0 }
 0x128   : > { %v773_v37 = vadd.f32 %v1739_v35, %v761_v36 }
 0x12a   : > { %v781_v38 = vmax.f32 %v773_v37, 0.0  ;;  %v743_v39 = vpop.f32.mrf.mxu2 }
 0x12b   : > { %v659_v40 = vpop.f32.mrf.mxu1 }
 0x12c   : > { %v797_v41 = vrot.slane %v781_v38, 2  ;;  %v798_v42 = vrot.slane %v781_v38, 4  ;;  %v799_v43 = vrot.slane %v781_v38, 6  ;;  %v846_v45 = vsel %vm845_vm3, %v781_v38, -inf }
 0x12d   : > { %v847_v48 = vrot.slane %v846_v45, 4  ;;  %v660_v49 = vadd.f32 %v659_v40, %v576_v46 }
 0x12e   : > { %v853_v50 = vsel %vm845_vm3, %v797_v41, -inf  ;;  %v860_v51 = vsel %vm845_vm3, %v798_v42, -inf  ;;  %v867_v52 = vsel %vm845_vm3, %v799_v43, -inf }
 0x12f   : > { %v848_v53 = vmax.f32 %v846_v45, %v847_v48  ;;  %v854_v54 = vrot.slane %v853_v50, 4  ;;  %v861_v2 = vrot.slane %v860_v51, 4  ;;  %v868_v55 = vrot.slane %v867_v52, 4 }
 0x130   : > { %v762_v8 = vadd.f32 %v743_v39, %v660_v49 }
 0x131   : > { %v849_v56 = vrot.slane %v848_v53, 2  ;;  %v855_v57 = vmax.f32 %v853_v50, %v854_v54  ;;  %v862_v59 = vmax.f32 %v860_v51, %v861_v2  ;;  %v869_v27 = vmax.f32 %v867_v52, %v868_v55  ;;  %v579_v60 = vpop.f32.mrf.mxu3 }
 0x132   : > { %v774_v26 = vadd.f32 %v1739_v35, %v762_v8  ;;  %v746_v34 = vpop.f32.mrf.mxu2 }
 0x133   : > { %v856_v61 = vrot.slane %v855_v57, 2  ;;  %v863_v22 = vrot.slane %v862_v59, 2  ;;  %v870_v62 = vrot.slane %v869_v27, 2  ;;  %v662_v63 = vpop.f32.mrf.mxu1  ;;  %v850_v1 = vmax.f32 %v848_v53, %v849_v56 }
 0x134   : > { %v782_v0 = vmax.f32 %v774_v26, 0.0  ;;  %v663_v4 = vadd.f32 %v662_v63, %v579_v60 }
 0x135   : > { %v857_v3 = vmax.f32 %v855_v57, %v856_v61  ;;  %v864_v9 = vmax.f32 %v862_v59, %v863_v22  ;;  %v871_v44 = vmax.f32 %v869_v27, %v870_v62  ;;  %v851_v15 = vrot.slane %v850_v1, 1 }
 0x136   : > { %v800_v5 = vrot.slane %v782_v0, 2  ;;  %v801_v21 = vrot.slane %v782_v0, 4  ;;  %v802_v6 = vrot.slane %v782_v0, 6  ;;  %v874_v7 = vsel %vm845_vm3, %v782_v0, -inf }
 0x137   : > { %v875_v10 = vrot.slane %v874_v7, 4  ;;  %v858_v16 = vrot.slane %v857_v3, 1  ;;  %v763_v25 = vadd.f32 %v746_v34, %v663_v4  ;;  %v865_v20 = vrot.slane %v864_v9, 1 }
 0x138   : > { %v881_v12 = vsel %vm845_vm3, %v800_v5, -inf  ;;  %v888_v13 = vsel %vm845_vm3, %v801_v21, -inf  ;;  %v895_v14 = vsel %vm845_vm3, %v802_v6, -inf  ;;  %v872_v24 = vrot.slane %v871_v44, 1 }
 0x139   : > { %v882_v17 = vrot.slane %v881_v12, 4  ;;  %v876_v58 = vmax.f32 %v874_v7, %v875_v10  ;;  %v889_v18 = vrot.slane %v888_v13, 4  ;;  %v896_v19 = vrot.slane %v895_v14, 4  ;;  %v581_v23 = vpop.f32.mrf.mxu3 }
 0x13a   : > { %v775_v32 = vadd.f32 %v1739_v35, %v763_v25  ;;  %v748_v47 = vpop.f32.mrf.mxu2  ;;  %v852_v33 = vmax.f32 %v850_v1, %v851_v15  ;;  %v859_v36 = vmax.f32 %v857_v3, %v858_v16  ;;  %v866_v43 = vmax.f32 %v864_v9, %v865_v20 }
 0x13b   : > { %v883_v28 = vmax.f32 %v881_v12, %v882_v17  ;;  %v664_v29 = vpop.f32.mrf.mxu1  ;;  %v877_v30 = vrot.slane %v876_v58, 2  ;;  %v890_v31 = vmax.f32 %v888_v13, %v889_v18  ;;  %v897_v11 = vmax.f32 %v895_v14, %v896_v19 }
 0x13c   : > { %v665_v38 = vadd.f32 %v664_v29, %v581_v23  ;;  %v783_v42 = vmax.f32 %v775_v32, 0.0  ;;  %v873_v45 = vmax.f32 %v871_v44, %v872_v24 }
 0x13d   : > { %v884_v37 = vrot.slane %v883_v28, 2  ;;  %v878_v39 = vmax.f32 %v876_v58, %v877_v30  ;;  %v891_v40 = vrot.slane %v890_v31, 2  ;;  %v898_v41 = vrot.slane %v897_v11, 2 }
 0x13e   : > { %v764_v48 = vadd.f32 %v748_v47, %v665_v38  ;;  %v803_v52 = vrot.slane %v783_v42, 2  ;;  %v804_v54 = vrot.slane %v783_v42, 4  ;;  %v805_v2 = vrot.slane %v783_v42, 6 }
 0x13f   : > { %v885_v46 = vmax.f32 %v883_v28, %v884_v37  ;;  %v879_v49 = vrot.slane %v878_v39, 1  ;;  %v892_v50 = vmax.f32 %v890_v31, %v891_v40  ;;  %v899_v51 = vmax.f32 %v897_v11, %v898_v41 }
 0x140   : > { %v902_v55 = vsel %vm845_vm3, %v783_v42, -inf  ;;  %v909_v60 = vsel %vm845_vm3, %v803_v52, -inf  ;;  %v916_v26 = vsel %vm845_vm3, %v804_v54, -inf  ;;  %v923_v34 = vsel %vm845_vm3, %v805_v2, -inf }
 0x141   : > { %v886_v53 = vrot.slane %v885_v46, 1  ;;  %v880_v8 = vmax.f32 %v878_v39, %v879_v49  ;;  %v893_v56 = vrot.slane %v892_v50, 1  ;;  %v900_v57 = vrot.slane %v899_v51, 1  ;;  %v584_v1 = vpop.f32.mrf.mxu3 }
 0x142   : > { %v903_v59 = vrot.slane %v902_v55, 4  ;;  %v910_v4 = vrot.slane %v909_v60, 4  ;;  %v917_v5 = vrot.slane %v916_v26, 4  ;;  %v924_v21 = vrot.slane %v923_v34, 4  ;;  %v751_v10 = vpop.f32.mrf.mxu2 }
 0x143   : > { %v887_v27 = vmax.f32 %v885_v46, %v886_v53  ;;  %v667_v61 = vpop.f32.mrf.mxu1  ;;  %v894_v22 = vmax.f32 %v892_v50, %v893_v56  ;;  %v901_v62 = vmax.f32 %v899_v51, %v900_v57  ;;  %v1070_v63 = vmax.f32 %v852_v33, %v880_v8 }
 0x144   : > { %v904_v0 = vmax.f32 %v902_v55, %v903_v59  ;;  %v911_v13 = vmax.f32 %v909_v60, %v910_v4  ;;  %v918_v14 = vmax.f32 %v916_v26, %v917_v5  ;;  %v925_v15 = vmax.f32 %v923_v34, %v924_v21 }
 0x145   : > { %v1071_v3 = vmax.f32 %v859_v36, %v887_v27  ;;  %v1072_v6 = vmax.f32 %v866_v43, %v894_v22  ;;  %v1073_v7 = vmax.f32 %v873_v45, %v901_v62  ;;  %v1086_v9 = vpack.c.bf16 %v1070_v63, %v1070_v63 }
 0x146   : > { %v905_v44 = vrot.slane %v904_v0, 2  ;;  %v912_v25 = vrot.slane %v911_v13, 2  ;;  %v919_v23 = vrot.slane %v918_v14, 2  ;;  %v926_v20 = vrot.slane %v925_v15, 2 }
 0x147   : > { %v1087_v12 = vpack.c.bf16 %v1071_v3, %v1071_v3  ;;  %v1088_v16 = vpack.c.bf16 %v1072_v6, %v1072_v6  ;;  %v1089_v17 = vpack.c.bf16 %v1073_v7, %v1073_v7  ;;  %v1118_v58 = vrot.slane %v1086_v9, 2 }
 0x148   : > { %v906_v18 = vmax.f32 %v904_v0, %v905_v44  ;;  %v913_v11 = vmax.f32 %v911_v13, %v912_v25  ;;  %v920_v32 = vmax.f32 %v918_v14, %v919_v23  ;;  %v927_v47 = vmax.f32 %v925_v15, %v926_v20 }
 0x149   : > { %v1119_v19 = vrot.slane %v1087_v12, 2  ;;  %v1120_v24 = vrot.slane %v1088_v16, 2  ;;  %v1121_v28 = vrot.slane %v1089_v17, 2  ;;  %v1137_v29 = vsel %vm1134_vm4, %v1086_v9, %v1118_v58  ;;  %v586_v46 = vpop.f32.mrf.mxu3 }
 0x14a   : > { %v907_v30 = vrot.slane %v906_v18, 1  ;;  %1183 = vst [vmem:[#allocation1] ss:$2 sm:$0xff] %v1137_v29  ;;  %v776_v37 = vadd.f32 %v1739_v35, %v764_v48  ;;  %v914_v39 = vrot.slane %v913_v11, 1  ;;  %v921_v40 = vrot.slane %v920_v32, 1  ;;  %v753_v54 = vpop.f32.mrf.mxu2 }
 0x14b   : > { %v1140_v31 = vsel %vm1134_vm4, %v1087_v12, %v1119_v19  ;;  %v1143_v33 = vsel %vm1134_vm4, %v1088_v16, %v1120_v24  ;;  %v1146_v36 = vsel %vm1134_vm4, %v1089_v17, %v1121_v28  ;;  %v669_v38 = vpop.f32.mrf.mxu1  ;;  %v928_v42 = vrot.slane %v927_v47, 1 }
 0x14c   : > { %1187 = vst [vmem:[#allocation1 + $0x10] ss:$2 sm:$0xff] %v1140_v31  ;;  %v1761_v41 = vmax.f32 %v906_v18, %v907_v30  ;;  %v784_v43 = vmax.f32 %v776_v37, 0.0  ;;  %v668_v45 = vadd.f32 %v667_v61, %v584_v1  ;;  %v1763_v49 = vmax.f32 %v913_v11, %v914_v39 }
 0x14d   : > { %1191 = vst [vmem:[#allocation1 + $0x20] ss:$2 sm:$0xff] %v1143_v33  ;;  %v670_v50 = vadd.f32 %v669_v38, %v586_v46  ;;  %v1766_v2 = vmax.f32 %v920_v32, %v921_v40  ;;  %v929_v57 = vmax.f32 %v927_v47, %v928_v42 }
 0x14e   : > { %1195 = vst [vmem:[#allocation1 + $0x30] ss:$2 sm:$0xff] %v1146_v36  ;;  %v806_v51 = vrot.slane %v784_v43, 2  ;;  %v807_v52 = vrot.slane %v784_v43, 4  ;;  %v808_v53 = vrot.slane %v784_v43, 6  ;;  %v930_v48 = vsel %vm845_vm3, %v784_v43, -inf }
 0x14f   : > { %v931_v55 = vrot.slane %v930_v48, 4  ;;  %v765_v8 = vadd.f32 %v751_v10, %v668_v45  ;;  %v766_v56 = vadd.f32 %v753_v54, %v670_v50 }
 0x150   : > { %v937_v59 = vsel %vm845_vm3, %v806_v51, -inf  ;;  %v944_v27 = vsel %vm845_vm3, %v807_v52, -inf  ;;  %v951_v60 = vsel %vm845_vm3, %v808_v53, -inf }
 0x151   : > { %v1184_v26 = vld.sshfl [vmem:[#allocation1] sm:$0xff pattern:$0x75643120]  ;;  %v932_v34 = vmax.f32 %v930_v48, %v931_v55  ;;  %v938_v61 = vrot.slane %v937_v59, 4  ;;  %v945_v22 = vrot.slane %v944_v27, 4  ;;  %v952_v62 = vrot.slane %v951_v60, 4  ;;  %v589_v52 = vpop.f32.mrf.mxu3 }
 0x152   : > { %v1234_v1 = vunpack.c.l.b16 %v1184_v26  ;;  %v777_v4 = vadd.f32 %v1739_v35, %v765_v8  ;;  %v1773_v5 = vadd.f32 %v1739_v35, %v766_v56 }
 0x153   : > { %v1188_v63 = vld.sshfl [vmem:[#allocation1 + $0x10] sm:$0xff pattern:$0x75643120]  ;;  %v933_v21 = vrot.slane %v932_v34, 2  ;;  %v939_v6 = vmax.f32 %v937_v59, %v938_v61  ;;  %v946_v7 = vmax.f32 %v944_v27, %v945_v22  ;;  %v953_v9 = vmax.f32 %v951_v60, %v952_v62  ;;  %v672_v38 = vpop.f32.mrf.mxu1 }
 0x154   : > { %v1192_v0 = vld.sshfl [vmem:[#allocation1 + $0x20] sm:$0xff pattern:$0x75643120]  ;;  %v1235_v3 = vunpack.c.l.b16 %v1188_v63  ;;  %v1775_v14 = vmax.f32 %v777_v4, 0.0 }
 0x155   : > { %v1196_v44 = vld.sshfl [vmem:[#allocation1 + $0x30] sm:$0xff pattern:$0x75643120]  ;;  %v1236_v10 = vunpack.c.l.b16 %v1192_v0  ;;  %v934_v15 = vmax.f32 %v932_v34, %v933_v21  ;;  %v940_v16 = vrot.slane %v939_v6, 2  ;;  %v947_v17 = vrot.slane %v946_v7, 2  ;;  %v756_v0 = vpop.f32.mrf.mxu2 }
 0x156   : > { %v1237_v12 = vunpack.c.l.b16 %v1196_v44  ;;  %v1250_v13 = vrot.slane %v1235_v3, 7  ;;  %v954_v58 = vrot.slane %v953_v9, 2  ;;  %v809_v23 = vrot.slane %v1775_v14, 2 }
 0x157   : > { %v1253_v19 = vrot.slane %v1236_v10, 6  ;;  %v935_v20 = vrot.slane %v934_v15, 1  ;;  %v941_v24 = vmax.f32 %v939_v6, %v940_v16  ;;  %v948_v28 = vmax.f32 %v946_v7, %v947_v17 }
 0x158   : > { %v1252_v18 = vsel %vm1251_vm5, %v1250_v13, %v1234_v1  ;;  %v1256_v25 = vrot.slane %v1237_v12, 5  ;;  %v955_v29 = vmax.f32 %v953_v9, %v954_v58  ;;  %v810_v31 = vrot.slane %v1775_v14, 4 }
 0x159   : > { %v1255_v30 = vsel %vm1254_vm6, %v1253_v19, %v1252_v18  ;;  %v811_v11 = vrot.slane %v1775_v14, 6  ;;  %v958_v32 = vsel %vm845_vm3, %v1775_v14, -inf  ;;  %v936_v47 = vmax.f32 %v934_v15, %v935_v20  ;;  %v591_v20 = vpop.f32.mrf.mxu3 }
 0x15a   : > { %v942_v33 = vrot.slane %v941_v24, 1  ;;  %v949_v36 = vrot.slane %v948_v28, 1  ;;  %v956_v37 = vrot.slane %v955_v29, 1  ;;  %v1258_v39 = vsel %vm1257_vm7, %v1256_v25, %v1255_v30 }
 0x15b   : > { %v959_v40 = vrot.slane %v958_v32, 4  ;;  %v965_v42 = vsel %vm845_vm3, %v809_v23, -inf  ;;  %v972_v43 = vsel %vm845_vm3, %v810_v31, -inf  ;;  %v1074_v51 = vmax.f32 %v1761_v41, %v936_v47  ;;  %v674_v16 = vpop.f32.mrf.mxu1 }
 0x15c   : > { %v943_v45 = vmax.f32 %v941_v24, %v942_v33  ;;  %v950_v46 = vmax.f32 %v948_v28, %v949_v36  ;;  %v957_v50 = vmax.f32 %v955_v29, %v956_v37  ;;  %v1277_v53 = vpack.c.b16 %v1258_v39, %v1258_v39 }
 0x15d   : > { %v960_v48 = vmax.f32 %v958_v32, %v959_v40  ;;  %v966_v54 = vrot.slane %v965_v42, 4  ;;  %v973_v55 = vrot.slane %v972_v43, 4  ;;  %v1090_v27 = vpack.c.bf16 %v1074_v51, %v1074_v51 }
 0x15e   : > { %v1075_v8 = vmax.f32 %v1763_v49, %v943_v45  ;;  %v1076_v56 = vmax.f32 %v1766_v2, %v950_v46  ;;  %v1077_v59 = vmax.f32 %v929_v57, %v957_v50  ;;  %v1281_v60 = vrot.slane %v1277_v53, 2  ;;  %v758_v45 = vpop.f32.mrf.mxu2 }
 0x15f   : > { %v961_v26 = vrot.slane %v960_v48, 2  ;;  %v967_v41 = vmax.f32 %v965_v42, %v966_v54  ;;  %v974_v34 = vmax.f32 %v972_v43, %v973_v55  ;;  %v1122_v63 = vrot.slane %v1090_v27, 2 }
 0x160   : > { %v1091_v61 = vpack.c.bf16 %v1075_v8, %v1075_v8  ;;  %v1092_v22 = vpack.c.bf16 %v1076_v56, %v1076_v56  ;;  %v1093_v62 = vpack.c.bf16 %v1077_v59, %v1077_v59  ;;  %v1287_v49 = vsel %vm1134_vm4, %v1277_v53, %v1281_v60 }
 0x161   : > { %v962_v2 = vmax.f32 %v960_v48, %v961_v26  ;;  %v968_v57 = vrot.slane %v967_v41, 2  ;;  %v975_v1 = vrot.slane %v974_v34, 2  ;;  %v1149_v6 = vsel %vm1134_vm4, %v1090_v27, %v1122_v63  ;;  %1301 = vst.msk [vmem:[%s1794_s5] sm:$0x3] %vm845_vm3, %v1287_v49 }
 0x162   : > { %v1123_v3 = vrot.slane %v1091_v61, 2  ;;  %v1124_v4 = vrot.slane %v1092_v22, 2  ;;  %v1125_v21 = vrot.slane %v1093_v62, 2  ;;  %1198 = vst [vmem:[#allocation1] ss:$2 sm:$0xff] %v1149_v6  ;;  %v979_v10 = vsel %vm845_vm3, %v811_v11, -inf }
 0x163   : > { %v963_v7 = vrot.slane %v962_v2, 1  ;;  %v969_v9 = vmax.f32 %v967_v41, %v968_v57  ;;  %v976_v44 = vmax.f32 %v974_v34, %v975_v1  ;;  %v980_v15 = vrot.slane %v979_v10, 4 }
 0x164   : > { %v1152_v12 = vsel %vm1134_vm4, %v1091_v61, %v1123_v3  ;;  %v1155_v13 = vsel %vm1134_vm4, %v1092_v22, %v1124_v4  ;;  %v1158_v14 = vsel %vm1134_vm4, %v1093_v62, %v1125_v21  ;;  %v786_v18 = vmax.f32 %v1773_v5, 0.0 }
 0x165   : > { %1201 = vst [vmem:[#allocation1 + $0x10] ss:$2 sm:$0xff] %v1152_v12  ;;  %v970_v17 = vrot.slane %v969_v9, 1  ;;  %v977_v58 = vrot.slane %v976_v44, 1  ;;  %v1805_v19 = vmax.f32 %v962_v2, %v963_v7  ;;  %v981_v25 = vmax.f32 %v979_v10, %v980_v15 }
 0x166   : > { %1204 = vst [vmem:[#allocation1 + $0x20] ss:$2 sm:$0xff] %v1155_v13  ;;  %v673_v23 = vadd.f32 %v672_v38, %v589_v52  ;;  %v812_v28 = vrot.slane %v786_v18, 2  ;;  %v813_v29 = vrot.slane %v786_v18, 4  ;;  %v675_v30 = vadd.f32 %v674_v16, %v591_v20 }
 0x167   : > { %1207 = vst [vmem:[#allocation1 + $0x30] ss:$2 sm:$0xff] %v1158_v14  ;;  %v1807_v24 = vmax.f32 %v969_v9, %v970_v17  ;;  %v982_v31 = vrot.slane %v981_v25, 2  ;;  %v814_v11 = vrot.slane %v786_v18, 6  ;;  %v986_v32 = vsel %vm845_vm3, %v786_v18, -inf }
 0x168   : > { %v767_v47 = vadd.f32 %v756_v0, %v673_v23  ;;  %v978_v33 = vmax.f32 %v976_v44, %v977_v58  ;;  %v987_v36 = vrot.slane %v986_v32, 4  ;;  %v993_v5 = vsel %vm845_vm3, %v812_v28, -inf }
 0x169   : > { %v1000_v37 = vsel %vm845_vm3, %v813_v29, -inf  ;;  %v983_v39 = vmax.f32 %v981_v25, %v982_v31  ;;  %v994_v38 = vrot.slane %v993_v5, 4  ;;  %v1007_v42 = vsel %vm845_vm3, %v814_v11, -inf  ;;  %v1199_v43 = vld.sshfl [vmem:[#allocation1] sm:$0xff pattern:$0x75643120] }
 0x16a   : > { %v1001_v40 = vrot.slane %v1000_v37, 4  ;;  %v988_v46 = vmax.f32 %v986_v32, %v987_v36  ;;  %v1008_v50 = vrot.slane %v1007_v42, 4  ;;  %v779_v51 = vadd.f32 %v1739_v35, %v767_v47 }
 0x16b   : > { %v768_v52 = vadd.f32 %v758_v45, %v675_v30  ;;  %v984_v53 = vrot.slane %v983_v39, 1  ;;  %v995_v48 = vmax.f32 %v993_v5, %v994_v38  ;;  %v1238_v8 = vunpack.c.l.b16 %v1199_v43 }
 0x16c   : > { %v1002_v54 = vmax.f32 %v1000_v37, %v1001_v40  ;;  %v1202_v55 = vld.sshfl [vmem:[#allocation1 + $0x10] sm:$0xff pattern:$0x75643120]  ;;  %v989_v56 = vrot.slane %v988_v46, 2  ;;  %v1009_v59 = vmax.f32 %v1007_v42, %v1008_v50  ;;  %v787_v26 = vmax.f32 %v779_v51, 0.0 }
 0x16d   : > { %v1205_v27 = vld.sshfl [vmem:[#allocation1 + $0x20] sm:$0xff pattern:$0x75643120]  ;;  %v1239_v60 = vunpack.c.l.b16 %v1202_v55  ;;  %v985_v41 = vmax.f32 %v983_v39, %v984_v53  ;;  %v996_v34 = vrot.slane %v995_v48, 2 }
 0x16e   : > { %v1003_v61 = vrot.slane %v1002_v54, 2  ;;  %v1208_v22 = vld.sshfl [vmem:[#allocation1 + $0x30] sm:$0xff pattern:$0x75643120]  ;;  %v1240_v62 = vunpack.c.l.b16 %v1205_v27  ;;  %v990_v63 = vmax.f32 %v988_v46, %v989_v56  ;;  %v1010_v0 = vrot.slane %v1009_v59, 2 }
 0x16f   : > { %v1241_v49 = vunpack.c.l.b16 %v1208_v22  ;;  %v1259_v2 = vrot.slane %v1239_v60, 7  ;;  %v997_v57 = vmax.f32 %v995_v48, %v996_v34  ;;  %v815_v4 = vrot.slane %v787_v26, 2 }
 0x170   : > { %v1004_v1 = vmax.f32 %v1002_v54, %v1003_v61  ;;  %v1261_v3 = vrot.slane %v1240_v62, 6  ;;  %v991_v21 = vrot.slane %v990_v63, 1  ;;  %v1011_v6 = vmax.f32 %v1009_v59, %v1010_v0 }
 0x171   : > { %v1260_v7 = vsel %vm1251_vm5, %v1259_v2, %v1238_v8  ;;  %v1263_v9 = vrot.slane %v1241_v49, 5  ;;  %v998_v44 = vrot.slane %v997_v57, 1  ;;  %v816_v13 = vrot.slane %v787_v26, 4 }
 0x172   : > { %v1005_v10 = vrot.slane %v1004_v1, 1  ;;  %v1262_v12 = vsel %vm1254_vm6, %v1261_v3, %v1260_v7  ;;  %v992_v14 = vmax.f32 %v990_v63, %v991_v21  ;;  %v1012_v15 = vrot.slane %v1011_v6, 1 }
 0x173   : > { %v1264_v16 = vsel %vm1257_vm7, %v1263_v9, %v1262_v12  ;;  %v817_v17 = vrot.slane %v787_v26, 6  ;;  %v999_v58 = vmax.f32 %v997_v57, %v998_v44  ;;  %v1014_v23 = vsel %vm845_vm3, %v787_v26, -inf }
 0x174   : > { %v1006_v18 = vmax.f32 %v1004_v1, %v1005_v10  ;;  %v1278_v25 = vpack.c.b16 %v1264_v16, %v1264_v16  ;;  %v1013_v20 = vmax.f32 %v1011_v6, %v1012_v15  ;;  %v1078_v28 = vmax.f32 %v1805_v19, %v992_v14 }
 0x175   : > { %v1015_v29 = vrot.slane %v1014_v23, 4  ;;  %v1021_v30 = vsel %vm845_vm3, %v815_v4, -inf  ;;  %v1079_v31 = vmax.f32 %v1807_v24, %v999_v58  ;;  %v1028_v39 = vsel %vm845_vm3, %v816_v13, -inf }
 0x176   : > { %v1080_v11 = vmax.f32 %v978_v33, %v1006_v18  ;;  %v1282_v32 = vrot.slane %v1278_v25, 2  ;;  %v1022_v47 = vrot.slane %v1021_v30, 4  ;;  %v1081_v36 = vmax.f32 %v985_v41, %v1013_v20 }
 0x177   : > { %v1094_v5 = vpack.c.bf16 %v1078_v28, %v1078_v28  ;;  %v1016_v37 = vmax.f32 %v1014_v23, %v1015_v29  ;;  %v1095_v38 = vpack.c.bf16 %v1079_v31, %v1079_v31  ;;  %v1029_v46 = vrot.slane %v1028_v39, 4 }
 0x178   : > { %v1096_v40 = vpack.c.bf16 %v1080_v11, %v1080_v11  ;;  %v1290_v42 = vsel %vm1134_vm4, %v1278_v25, %v1282_v32  ;;  %v1023_v43 = vmax.f32 %v1021_v30, %v1022_v47  ;;  %v1097_v19 = vpack.c.bf16 %v1081_v36, %v1081_v36 }
 0x179   : > { %v1126_v45 = vrot.slane %v1094_v5, 2  ;;  %1302 = vst.msk [vmem:[%s1794_s5 + $0x2] sm:$0x3] %vm845_vm3, %v1290_v42  ;;  %v780_v24 = vadd.f32 %v1739_v35, %v768_v52  ;;  %v1127_v33 = vrot.slane %v1095_v38, 2  ;;  %v1035_v51 = vsel %vm845_vm3, %v817_v17, -inf }
 0x17a   : > { %v1128_v50 = vrot.slane %v1096_v40, 2  ;;  %v1129_v53 = vrot.slane %v1097_v19, 2  ;;  %v1017_v54 = vrot.slane %v1016_v37, 2  ;;  %v1030_v55 = vmax.f32 %v1028_v39, %v1029_v46 }
 0x17b   : > { %v1161_v48 = vsel %vm1134_vm4, %v1094_v5, %v1126_v45  ;;  %v1164_v8 = vsel %vm1134_vm4, %v1095_v38, %v1127_v33  ;;  %v1024_v59 = vrot.slane %v1023_v43, 2  ;;  %v1036_v27 = vrot.slane %v1035_v51, 4 }
 0x17c   : > { %v1167_v56 = vsel %vm1134_vm4, %v1096_v40, %v1128_v50  ;;  %1210 = vst [vmem:[#allocation1] ss:$2 sm:$0xff] %v1161_v48  ;;  %v1170_v60 = vsel %vm1134_vm4, %v1097_v19, %v1129_v53  ;;  %v1031_v35 = vrot.slane %v1030_v55, 2  ;;  %v788_v52 = vmax.f32 %v780_v24, 0.0 }
 0x17d   : > { %1213 = vst [vmem:[#allocation1 + $0x10] ss:$2 sm:$0xff] %v1164_v8  ;;  %v1037_v26 = vmax.f32 %v1035_v51, %v1036_v27  ;;  %v1018_v41 = vmax.f32 %v1016_v37, %v1017_v54  ;;  %v1025_v22 = vmax.f32 %v1023_v43, %v1024_v59 }
 0x17e   : > { %1216 = vst [vmem:[#allocation1 + $0x20] ss:$2 sm:$0xff] %v1167_v56  ;;  %v818_v34 = vrot.slane %v788_v52, 2  ;;  %v819_v61 = vrot.slane %v788_v52, 4  ;;  %v820_v63 = vrot.slane %v788_v52, 6  ;;  %v1042_v0 = vsel %vm845_vm3, %v788_v52, -inf }
 0x17f   : > { %1219 = vst [vmem:[#allocation1 + $0x30] ss:$2 sm:$0xff] %v1170_v60  ;;  %v1038_v62 = vrot.slane %v1037_v26, 2  ;;  %v1032_v49 = vmax.f32 %v1030_v55, %v1031_v35  ;;  %v1043_v2 = vrot.slane %v1042_v0, 4  ;;  %v1019_v6 = vrot.slane %v1018_v41, 1 }
 0x180   : > { %v1049_v57 = vsel %vm845_vm3, %v818_v34, -inf  ;;  %v1056_v1 = vsel %vm845_vm3, %v819_v61, -inf  ;;  %v1063_v21 = vsel %vm845_vm3, %v820_v63, -inf  ;;  %v1026_v10 = vrot.slane %v1025_v22, 1 }
 0x181   : > { %v1050_v3 = vrot.slane %v1049_v57, 4  ;;  %v1057_v4 = vrot.slane %v1056_v1, 4  ;;  %v1044_v7 = vmax.f32 %v1042_v0, %v1043_v2  ;;  %v1064_v9 = vrot.slane %v1063_v21, 4 }
 0x182   : > { %v1039_v12 = vmax.f32 %v1037_v26, %v1038_v62  ;;  %v1033_v16 = vrot.slane %v1032_v49, 1  ;;  %v1020_v19 = vmax.f32 %v1018_v41, %v1019_v6  ;;  %v1027_v33 = vmax.f32 %v1025_v22, %v1026_v10 }
 0x183   : > { %v1211_v44 = vld.sshfl [vmem:[#allocation1] sm:$0xff pattern:$0x75643120]  ;;  %v1051_v13 = vmax.f32 %v1049_v57, %v1050_v3  ;;  %v1058_v14 = vmax.f32 %v1056_v1, %v1057_v4  ;;  %v1045_v17 = vrot.slane %v1044_v7, 2  ;;  %v1065_v58 = vmax.f32 %v1063_v21, %v1064_v9 }
 0x184   : > { %v1214_v15 = vld.sshfl [vmem:[#allocation1 + $0x10] sm:$0xff pattern:$0x75643120]  ;;  %v1242_v29 = vunpack.c.l.b16 %v1211_v44  ;;  %v1040_v36 = vrot.slane %v1039_v12, 1  ;;  %v1034_v48 = vmax.f32 %v1032_v49, %v1033_v16 }
 0x185   : > { %v1217_v18 = vld.sshfl [vmem:[#allocation1 + $0x20] sm:$0xff pattern:$0x75643120]  ;;  %v1243_v25 = vunpack.c.l.b16 %v1214_v15  ;;  %v1052_v23 = vrot.slane %v1051_v13, 2  ;;  %v1059_v20 = vrot.slane %v1058_v14, 2  ;;  %v1046_v31 = vmax.f32 %v1044_v7, %v1045_v17 }
 0x186   : > { %v1220_v28 = vld.sshfl [vmem:[#allocation1 + $0x30] sm:$0xff pattern:$0x75643120]  ;;  %v1244_v30 = vunpack.c.l.b16 %v1217_v18  ;;  %v1066_v11 = vrot.slane %v1065_v58, 2  ;;  %v1041_v56 = vmax.f32 %v1039_v12, %v1040_v36 }
 0x187   : > { %v1245_v32 = vunpack.c.l.b16 %v1220_v28  ;;  %v1265_v47 = vrot.slane %v1243_v25, 7  ;;  %v1053_v5 = vmax.f32 %v1051_v13, %v1052_v23  ;;  %v1060_v37 = vmax.f32 %v1058_v14, %v1059_v20 }
 0x188   : > { %v1267_v39 = vrot.slane %v1244_v30, 6  ;;  %v1047_v38 = vrot.slane %v1046_v31, 1  ;;  %v1067_v40 = vmax.f32 %v1065_v58, %v1066_v11 }
 0x189   : > { %v1266_v42 = vsel %vm1251_vm5, %v1265_v47, %v1242_v29  ;;  %v1269_v43 = vrot.slane %v1245_v32, 5  ;;  %v1054_v45 = vrot.slane %v1053_v5, 1  ;;  %v1061_v46 = vrot.slane %v1060_v37, 1 }
 0x18a   : > { %v1268_v24 = vsel %vm1254_vm6, %v1267_v39, %v1266_v42  ;;  %v1048_v50 = vmax.f32 %v1046_v31, %v1047_v38  ;;  %v1068_v51 = vrot.slane %v1067_v40, 1 }
 0x18b   : > { %v1270_v53 = vsel %vm1257_vm7, %v1269_v43, %v1268_v24  ;;  %v1055_v54 = vmax.f32 %v1053_v5, %v1054_v45  ;;  %v1062_v55 = vmax.f32 %v1060_v37, %v1061_v46 }
 0x18c   : > { %v1279_v8 = vpack.c.b16 %v1270_v53, %v1270_v53  ;;  %v1069_v59 = vmax.f32 %v1067_v40, %v1068_v51  ;;  %v1082_v27 = vmax.f32 %v1020_v19, %v1048_v50 }
 0x18d   : > { %v1083_v60 = vmax.f32 %v1027_v33, %v1055_v54  ;;  %v1084_v35 = vmax.f32 %v1034_v48, %v1062_v55 }
 0x18e   : > { %v1283_v52 = vrot.slane %v1279_v8, 2  ;;  %v1085_v26 = vmax.f32 %v1041_v56, %v1069_v59  ;;  %v1098_v41 = vpack.c.bf16 %v1082_v27, %v1082_v27 }
 0x18f   : > { %v1099_v34 = vpack.c.bf16 %v1083_v60, %v1083_v60  ;;  %v1100_v61 = vpack.c.bf16 %v1084_v35, %v1084_v35 }
 0x190   : > { %v1293_v22 = vsel %vm1134_vm4, %v1279_v8, %v1283_v52  ;;  %v1101_v62 = vpack.c.bf16 %v1085_v26, %v1085_v26  ;;  %v1130_v63 = vrot.slane %v1098_v41, 2 }
 0x191   : > { %1303 = vst.msk [vmem:[%s1794_s5 + $0x4] sm:$0x3] %vm845_vm3, %v1293_v22  ;;  %v1131_v0 = vrot.slane %v1099_v34, 2  ;;  %v1132_v49 = vrot.slane %v1100_v61, 2 }
 0x192   : > { %v1133_v2 = vrot.slane %v1101_v62, 2  ;;  %v1173_v57 = vsel %vm1134_vm4, %v1098_v41, %v1130_v63 }
 0x193   : > { %v1176_v1 = vsel %vm1134_vm4, %v1099_v34, %v1131_v0  ;;  %v1179_v3 = vsel %vm1134_vm4, %v1100_v61, %v1132_v49  ;;  %1222 = vst [vmem:[#allocation1] ss:$2 sm:$0xff] %v1173_v57 }
 0x194   : > { %v1182_v4 = vsel %vm1134_vm4, %v1101_v62, %v1133_v2  ;;  %1225 = vst [vmem:[#allocation1 + $0x10] ss:$2 sm:$0xff] %v1176_v1 }
 0x195   : > { %1228 = vst [vmem:[#allocation1 + $0x20] ss:$2 sm:$0xff] %v1179_v3 }
 0x196   : > { %1231 = vst [vmem:[#allocation1 + $0x30] ss:$2 sm:$0xff] %v1182_v4 }
 0x19a   : > { %v1223_v21 = vld.sshfl [vmem:[#allocation1] sm:$0xff pattern:$0x75643120] }
 0x19b   : > { %v1226_v6 = vld.sshfl [vmem:[#allocation1 + $0x10] sm:$0xff pattern:$0x75643120]  ;;  %v1246_v12 = vunpack.c.l.b16 %v1223_v21 }
 0x19c   : > { %v1229_v7 = vld.sshfl [vmem:[#allocation1 + $0x20] sm:$0xff pattern:$0x75643120]  ;;  %v1247_v9 = vunpack.c.l.b16 %v1226_v6 }
 0x19d   : > { %v1232_v44 = vld.sshfl [vmem:[#allocation1 + $0x30] sm:$0xff pattern:$0x75643120]  ;;  %v1248_v10 = vunpack.c.l.b16 %v1229_v7 }
 0x19e   : > { %v1249_v13 = vunpack.c.l.b16 %v1232_v44  ;;  %v1271_v14 = vrot.slane %v1247_v9, 7 }
 0x19f   : > { %v1273_v15 = vrot.slane %v1248_v10, 6 }
 0x1a0   : > { %v1272_v16 = vsel %vm1251_vm5, %v1271_v14, %v1246_v12  ;;  %v1275_v17 = vrot.slane %v1249_v13, 5 }
 0x1a1   : > { %v1274_v58 = vsel %vm1254_vm6, %v1273_v15, %v1272_v16 }
 0x1a2   : > { %v1276_v18 = vsel %vm1257_vm7, %v1275_v17, %v1274_v58 }
 0x1a3   : > { %v1280_v25 = vpack.c.b16 %v1276_v18, %v1276_v18 }
 0x1a5   : > { %v1284_v23 = vrot.slane %v1280_v25, 2 }
 0x1a7   : > { %v1296_v20 = vsel %vm1134_vm4, %v1280_v25, %v1284_v23 }
 0x1a8   : > { %1304 = vst.msk [vmem:[%s1794_s5 + $0x6] sm:$0x3] %vm845_vm3, %v1296_v20 }
 0x1a9 PF: > { %s14_s12 = sadd.s32 1, %s1558_s12  }
 0x1aa   : > { %p11_p7 = scmp.ge.s32.totalorder %s14_s12, 4  }
 0x1ac   :  { %13 = sbr.rel (!%p11_p7) target bundleno = 1 (0x1), region = 72 }
 0x1b1   :  { %1326 = vsyncpa [#allocation3], 1 }
 0x1b2   :  { %1328 = vsyncpa [#allocation3 + $0x1], 1 }

// kernel: yoga_pose_cnn_forward.8
= control target key start
LH: loop header
LB: loop body
LE: loop exit
PB: predicated region body
PF: predicated region fallthrough
CT: control target
= control target key end

     0   :  { %s2355_s12 = smov 0   ;;  %s3307_s0 = inlined_call_operand.vmem [shape: bf16[2,4,4,128], index: 0, kind: input, shape index: {}]   ;;  %s3308_s1 = inlined_call_operand.vmem [shape: bf16[3,384,256], index: 1, kind: input, shape index: {}]   ;;  %s3309_s2 = inlined_call_operand.vmem [shape: f32[1,256], index: 2, kind: input, shape index: {}]   ;;  %s3310_s3 = inlined_call_operand.vmem [shape: f32[2,1,256], index: 3, kind: output, shape index: {}]  }
   0x1 LB: > { %s1488_s13 = sadd.s32 4294967295, %s2333_s12   ;;  %p1492_p0 = scmp.ge.s32.totalorder %s2333_s12, 1  ;;  %s2333_s12 = sphi %s2355_s12, %s13_s12  }
   0x2   : > { %p137_p1 = scmp.lt.s32.totalorder %s2333_s12, 3 }
   0x4   : > { %p138_p2 = pnand %p1492_p0, %p137_p1 }
   0x5   : > { %p160_p3 = scmp.lt.s32.totalorder (!%p138_p2), %s1488_s13, 1 }
   0x6   : > { %141 = sbr.rel (%p138_p2) target bundleno = 341 (0x155), region = 32 }
   0xb   : > { %v1605_v0 = vld [vmem:[%s3308_s1 + $0x1f0] sm:$0xf]  ;;  %v2238_v1 = vld [vmem:[%s3308_s1 + $0x1f4] sm:$0xf0]  ;;  %v2237_v9 = vld [vmem:[%s3308_s1 + $0x1f4] sm:$0xf] }
   0xc   : > { %v1669_v2 = vld [vmem:[%s3308_s1 + $0x270] sm:$0xf]  ;;  %v1606_v3 = vor.u32 %v2238_v1, %v1605_v0  ;;  %v2254_v4 = vld [vmem:[%s3308_s1 + $0x274] sm:$0xf0]  ;;  %v1607_v10 = vld [vmem:[%s3308_s1 + $0x1f8] sm:$0xf0] }
   0xd   : > { %v1733_v5 = vld [vmem:[%s3308_s1 + $0x2f0] sm:$0xf]  ;;  %v2270_v6 = vld [vmem:[%s3308_s1 + $0x2f4] sm:$0xf0]  ;;  %v1670_v7 = vor.u32 %v2254_v4, %v1669_v2  ;;  %v1597_v11 = vld [vmem:[%s3308_s1 + $0x1e0] sm:$0xf]  ;;  %v1610_v12 = vor.u32 %v2237_v9, %v1607_v10 }
   0xe   : > { %v1734_v8 = vor.u32 %v2270_v6, %v1733_v5  ;;  %608 = vmatpush.bf16.msra.mxu0 %v1606_v3  ;;  %v2236_v13 = vld [vmem:[%s3308_s1 + $0x1e4] sm:$0xf0]  ;;  %v1661_v14 = vld [vmem:[%s3308_s1 + $0x260] sm:$0xf]  ;;  %v2235_v20 = vld [vmem:[%s3308_s1 + $0x1e4] sm:$0xf] }
   0xf   : > { %v2252_v15 = vld [vmem:[%s3308_s1 + $0x264] sm:$0xf0]  ;;  %621 = vmatpush.bf16.msra.mxu1 %v1670_v7  ;;  %v1598_v16 = vor.u32 %v2236_v13, %v1597_v11  ;;  %v1725_v18 = vld [vmem:[%s3308_s1 + $0x2e0] sm:$0xf]  ;;  %647 = vmatpush.bf16.msra.mxu3 %v1610_v12  ;;  %v1599_v22 = vld [vmem:[%s3308_s1 + $0x1e8] sm:$0xf0] }
  0x10   : > { %634 = vmatpush.bf16.msra.mxu2 %v1734_v8  ;;  %v1662_v17 = vor.u32 %v2252_v15, %v1661_v14  ;;  %v2268_v19 = vld [vmem:[%s3308_s1 + $0x2e4] sm:$0xf0]  ;;  %v1589_v23 = vld [vmem:[%s3308_s1 + $0x1d0] sm:$0xf]  ;;  %v2234_v24 = vld [vmem:[%s3308_s1 + $0x1d4] sm:$0xf0]  ;;  %v1602_v25 = vor.u32 %v2235_v20, %v1599_v22 }
  0x11   : > { %v1726_v21 = vor.u32 %v2268_v19, %v1725_v18  ;;  %v1653_v26 = vld [vmem:[%s3308_s1 + $0x250] sm:$0xf]  ;;  %v2250_v27 = vld [vmem:[%s3308_s1 + $0x254] sm:$0xf0]  ;;  %v1590_v29 = vor.u32 %v2234_v24, %v1589_v23  ;;  %v2233_v31 = vld [vmem:[%s3308_s1 + $0x1d4] sm:$0xf] }
  0x12   : > { %v1717_v28 = vld [vmem:[%s3308_s1 + $0x2d0] sm:$0xf]  ;;  %609 = vmatpush.bf16.msra.mxu0 %v1598_v16  ;;  %v2266_v30 = vld [vmem:[%s3308_s1 + $0x2d4] sm:$0xf0]  ;;  %v1591_v32 = vld [vmem:[%s3308_s1 + $0x1d8] sm:$0xf0]  ;;  %v1654_v33 = vor.u32 %v2250_v27, %v1653_v26 }
  0x13   : > { %622 = vmatpush.bf16.msra.mxu1 %v1662_v17  ;;  %v1718_v34 = vor.u32 %v2266_v30, %v1717_v28  ;;  %v1581_v35 = vld [vmem:[%s3308_s1 + $0x1c0] sm:$0xf]  ;;  %v2232_v36 = vld [vmem:[%s3308_s1 + $0x1c4] sm:$0xf0]  ;;  %648 = vmatpush.bf16.msra.mxu3 %v1602_v25  ;;  %v1594_v38 = vor.u32 %v2233_v31, %v1591_v32  ;;  %v2231_v42 = vld [vmem:[%s3308_s1 + $0x1c4] sm:$0xf] }
  0x14   : > { %635 = vmatpush.bf16.msra.mxu2 %v1726_v21  ;;  %v1645_v37 = vld [vmem:[%s3308_s1 + $0x240] sm:$0xf]  ;;  %v2248_v39 = vld [vmem:[%s3308_s1 + $0x244] sm:$0xf0]  ;;  %v1583_v43 = vld [vmem:[%s3308_s1 + $0x1c8] sm:$0xf0]  ;;  %v1582_v44 = vor.u32 %v2232_v36, %v1581_v35 }
  0x15   : > { %v1709_v40 = vld [vmem:[%s3308_s1 + $0x2c0] sm:$0xf]  ;;  %v2264_v41 = vld [vmem:[%s3308_s1 + $0x2c4] sm:$0xf0]  ;;  %v1646_v45 = vor.u32 %v2248_v39, %v1645_v37  ;;  %v1573_v47 = vld [vmem:[%s3308_s1 + $0x1b0] sm:$0xf]  ;;  %v1586_v50 = vor.u32 %v2231_v42, %v1583_v43 }
  0x16   : > { %610 = vmatpush.bf16.msra.mxu0 %v1590_v29  ;;  %v1710_v46 = vor.u32 %v2264_v41, %v1709_v40  ;;  %v2230_v48 = vld [vmem:[%s3308_s1 + $0x1b4] sm:$0xf0]  ;;  %v1637_v49 = vld [vmem:[%s3308_s1 + $0x230] sm:$0xf]  ;;  %v2229_v54 = vld [vmem:[%s3308_s1 + $0x1b4] sm:$0xf] }
  0x17   : > { %623 = vmatpush.bf16.msra.mxu1 %v1654_v33  ;;  %649 = vmatpush.bf16.msra.mxu3 %v1594_v38  ;;  %v2246_v51 = vld [vmem:[%s3308_s1 + $0x234] sm:$0xf0]  ;;  %v1701_v52 = vld [vmem:[%s3308_s1 + $0x2b0] sm:$0xf]  ;;  %v1575_v55 = vld [vmem:[%s3308_s1 + $0x1b8] sm:$0xf0]  ;;  %v1574_v56 = vor.u32 %v2230_v48, %v1573_v47 }
  0x18   : > { %636 = vmatpush.bf16.msra.mxu2 %v1718_v34  ;;  %v2262_v53 = vld [vmem:[%s3308_s1 + $0x2b4] sm:$0xf0]  ;;  %v1638_v57 = vor.u32 %v2246_v51, %v1637_v49  ;;  %v1565_v59 = vld [vmem:[%s3308_s1 + $0x1a0] sm:$0xf]  ;;  %v2228_v60 = vld [vmem:[%s3308_s1 + $0x1a4] sm:$0xf0]  ;;  %v1578_v62 = vor.u32 %v2229_v54, %v1575_v55 }
  0x19   : > { %v1702_v58 = vor.u32 %v2262_v53, %v1701_v52  ;;  %v1629_v61 = vld [vmem:[%s3308_s1 + $0x220] sm:$0xf]  ;;  %v2244_v63 = vld [vmem:[%s3308_s1 + $0x224] sm:$0xf0]  ;;  %v2227_v2 = vld [vmem:[%s3308_s1 + $0x1a4] sm:$0xf]  ;;  %v1566_v4 = vor.u32 %v2228_v60, %v1565_v59 }
  0x1a   : > { %611 = vmatpush.bf16.msra.mxu0 %v1582_v44  ;;  %v1693_v0 = vld [vmem:[%s3308_s1 + $0x2a0] sm:$0xf]  ;;  %v2260_v1 = vld [vmem:[%s3308_s1 + $0x2a4] sm:$0xf0]  ;;  %v1567_v3 = vld [vmem:[%s3308_s1 + $0x1a8] sm:$0xf0]  ;;  %v1630_v5 = vor.u32 %v2244_v63, %v1629_v61 }
  0x1b   : > { %624 = vmatpush.bf16.msra.mxu1 %v1646_v45  ;;  %650 = vmatpush.bf16.msra.mxu3 %v1586_v50  ;;  %v1694_v6 = vor.u32 %v2260_v1, %v1693_v0  ;;  %v1557_v7 = vld [vmem:[%s3308_s1 + $0x190] sm:$0xf]  ;;  %v2226_v8 = vld [vmem:[%s3308_s1 + $0x194] sm:$0xf0]  ;;  %v1570_v10 = vor.u32 %v2227_v2, %v1567_v3  ;;  %v2225_v14 = vld [vmem:[%s3308_s1 + $0x194] sm:$0xf] }
  0x1c   : > { %637 = vmatpush.bf16.msra.mxu2 %v1710_v46  ;;  %v1621_v9 = vld [vmem:[%s3308_s1 + $0x210] sm:$0xf]  ;;  %v2242_v11 = vld [vmem:[%s3308_s1 + $0x214] sm:$0xf0]  ;;  %v1559_v15 = vld [vmem:[%s3308_s1 + $0x198] sm:$0xf0]  ;;  %v1558_v16 = vor.u32 %v2226_v8, %v1557_v7 }
  0x1d   : > { %v1685_v12 = vld [vmem:[%s3308_s1 + $0x290] sm:$0xf]  ;;  %v2258_v13 = vld [vmem:[%s3308_s1 + $0x294] sm:$0xf0]  ;;  %v1549_v17 = vld [vmem:[%s3308_s1 + $0x180] sm:$0xf]  ;;  %v1622_v19 = vor.u32 %v2242_v11, %v1621_v9  ;;  %v1562_v24 = vor.u32 %v2225_v14, %v1559_v15 }
  0x1e   : > { %612 = vmatpush.bf16.msra.mxu0 %v1574_v56  ;;  %v2224_v18 = vld [vmem:[%s3308_s1 + $0x184] sm:$0xf0]  ;;  %v1686_v20 = vor.u32 %v2258_v13, %v1685_v12  ;;  %v1613_v21 = vld [vmem:[%s3308_s1 + $0x200] sm:$0xf]  ;;  %v2253_v26 = vld [vmem:[%s3308_s1 + $0x274] sm:$0xf] }
  0x1f   : > { %625 = vmatpush.bf16.msra.mxu1 %v1638_v57  ;;  %651 = vmatpush.bf16.msra.mxu3 %v1578_v62  ;;  %v2240_v22 = vld [vmem:[%s3308_s1 + $0x204] sm:$0xf0]  ;;  %v1677_v23 = vld [vmem:[%s3308_s1 + $0x280] sm:$0xf]  ;;  %v1671_v27 = vld [vmem:[%s3308_s1 + $0x278] sm:$0xf0]  ;;  %v1550_v31 = vor.u32 %v2224_v18, %v1549_v17 }
  0x20   : > { %638 = vmatpush.bf16.msra.mxu2 %v1702_v58  ;;  %v2256_v25 = vld [vmem:[%s3308_s1 + $0x284] sm:$0xf0]  ;;  %v2269_v28 = vld [vmem:[%s3308_s1 + $0x2f4] sm:$0xf]  ;;  %v1735_v29 = vld [vmem:[%s3308_s1 + $0x2f8] sm:$0xf0]  ;;  %v1614_v35 = vor.u32 %v2240_v22, %v1613_v21  ;;  %v1674_v39 = vor.u32 %v2253_v26, %v1671_v27 }
  0x21   : > { %v1797_v30 = vld [vmem:[%s3308_s1 + $0x70] sm:$0xf]  ;;  %v2190_v32 = vld [vmem:[%s3308_s1 + $0x74] sm:$0xf0]  ;;  %v2223_v33 = vld [vmem:[%s3308_s1 + $0x184] sm:$0xf]  ;;  %v1678_v36 = vor.u32 %v2256_v25, %v1677_v23  ;;  %v1738_v40 = vor.u32 %v2269_v28, %v1735_v29 }
  0x22   : > { %613 = vmatpush.bf16.msra.mxu0 %v1566_v4  ;;  %v1551_v34 = vld [vmem:[%s3308_s1 + $0x188] sm:$0xf0]  ;;  %v1861_v37 = vld [vmem:[%s3308_s1 + $0xf0] sm:$0xf]  ;;  %v2206_v38 = vld [vmem:[%s3308_s1 + $0xf4] sm:$0xf0]  ;;  %v1798_v42 = vor.u32 %v2190_v32, %v1797_v30 }
  0x23   : > { %626 = vmatpush.bf16.msra.mxu1 %v1630_v5  ;;  %652 = vmatpush.bf16.msra.mxu3 %v1570_v10  ;;  %v2251_v41 = vld [vmem:[%s3308_s1 + $0x264] sm:$0xf]  ;;  %v1554_v43 = vor.u32 %v2223_v33, %v1551_v34  ;;  %v1663_v44 = vld [vmem:[%s3308_s1 + $0x268] sm:$0xf0]  ;;  %v1862_v47 = vor.u32 %v2206_v38, %v1861_v37  ;;  %v1789_v48 = vld [vmem:[%s3308_s1 + $0x60] sm:$0xf] }
  0x24   : > { %639 = vmatpush.bf16.msra.mxu2 %v1694_v6  ;;  %v2267_v45 = vld [vmem:[%s3308_s1 + $0x2e4] sm:$0xf]  ;;  %v1727_v46 = vld [vmem:[%s3308_s1 + $0x2e8] sm:$0xf0]  ;;  %v2188_v49 = vld [vmem:[%s3308_s1 + $0x64] sm:$0xf0]  ;;  %v1666_v52 = vor.u32 %v2251_v41, %v1663_v44 }
  0x25   : > { %v1853_v50 = vld [vmem:[%s3308_s1 + $0xe0] sm:$0xf]  ;;  %v2204_v51 = vld [vmem:[%s3308_s1 + $0xe4] sm:$0xf0]  ;;  %v1730_v53 = vor.u32 %v2267_v45, %v1727_v46  ;;  %v2249_v54 = vld [vmem:[%s3308_s1 + $0x254] sm:$0xf]  ;;  %v1790_v56 = vor.u32 %v2188_v49, %v1789_v48 }
  0x26   : > { %614 = vmatpush.bf16.msra.mxu0 %v1558_v16  ;;  %v1655_v55 = vld [vmem:[%s3308_s1 + $0x258] sm:$0xf0]  ;;  %v2265_v57 = vld [vmem:[%s3308_s1 + $0x2d4] sm:$0xf]  ;;  %v1854_v59 = vor.u32 %v2204_v51, %v1853_v50  ;;  %v1781_v60 = vld [vmem:[%s3308_s1 + $0x50] sm:$0xf] }
  0x27   : > { %627 = vmatpush.bf16.msra.mxu1 %v1622_v19  ;;  %653 = vmatpush.bf16.msra.mxu3 %v1562_v24  ;;  %v1719_v58 = vld [vmem:[%s3308_s1 + $0x2d8] sm:$0xf0]  ;;  %v2186_v61 = vld [vmem:[%s3308_s1 + $0x54] sm:$0xf0]  ;;  %v1845_v62 = vld [vmem:[%s3308_s1 + $0xd0] sm:$0xf]  ;;  %v1658_v0 = vor.u32 %v2249_v54, %v1655_v55 }
  0x28   : > { %640 = vmatpush.bf16.msra.mxu2 %v1686_v20  ;;  %v2202_v63 = vld [vmem:[%s3308_s1 + $0xd4] sm:$0xf0]  ;;  %s3312_s13 = smov (!%p160_p3, %s1488_s13), 1  ;;  %v1722_v1 = vor.u32 %v2265_v57, %v1719_v58  ;;  %v2247_v2 = vld [vmem:[%s3308_s1 + $0x244] sm:$0xf]  ;;  %v1782_v4 = vor.u32 %v2186_v61, %v1781_v60  ;;  %vm243_vm0 = vcmask 1040384  }
  0x29   : > { %v1647_v3 = vld [vmem:[%s3308_s1 + $0x248] sm:$0xf0]  ;;  %v2263_v5 = vld [vmem:[%s3308_s1 + $0x2c4] sm:$0xf]  ;;  %s2174_s23 = sshll.u32 %s3312_s13, 3  ;;  %v1846_v7 = vor.u32 %v2202_v63, %v1845_v62  ;;  %vm247_vm1 = vcmask 1041408  }
  0x2a   : > { %615 = vmatpush.bf16.msra.mxu0 %v1550_v31  ;;  %v1711_v6 = vld [vmem:[%s3308_s1 + $0x2c8] sm:$0xf0]  ;;  %v1773_v8 = vld [vmem:[%s3308_s1 + $0x40] sm:$0xf]  ;;  %v2184_v9 = vld [vmem:[%s3308_s1 + $0x44] sm:$0xf0]  ;;  %s2655_s30 = scalar_lea.vmem %s3307_s0, %s2174_s23  ;;  %v1650_v12 = vor.u32 %v2247_v2, %v1647_v3 }
  0x2b   : > { %628 = vmatpush.bf16.msra.mxu1 %v1614_v35  ;;  %654 = vmatpush.bf16.msra.mxu3 %v1554_v43  ;;  %v1837_v10 = vld [vmem:[%s3308_s1 + $0xc0] sm:$0xf]  ;;  %v2200_v11 = vld [vmem:[%s3308_s1 + $0xc4] sm:$0xf0]  ;;  %v1714_v13 = vor.u32 %v2263_v5, %v1711_v6  ;;  %v2245_v14 = vld [vmem:[%s3308_s1 + $0x234] sm:$0xf]  ;;  %v1774_v17 = vor.u32 %v2184_v9, %v1773_v8 }
  0x2c   : > { %641 = vmatpush.bf16.msra.mxu2 %v1678_v36  ;;  %v1639_v15 = vld [vmem:[%s3308_s1 + $0x238] sm:$0xf0]  ;;  %v173_v16 = vld [vmem:[%s2655_s30] sm:$0x3]  ;;  %v2261_v18 = vld [vmem:[%s3308_s1 + $0x2b4] sm:$0xf]  ;;  %v1838_v21 = vor.u32 %v2200_v11, %v1837_v10 }
  0x2d   : > { %v1703_v19 = vld [vmem:[%s3308_s1 + $0x2b8] sm:$0xf0]  ;;  %v174_v20 = vld [vmem:[%s2655_s30 + $0x2] sm:$0x3]  ;;  %v1765_v22 = vld [vmem:[%s3308_s1 + $0x30] sm:$0xf]  ;;  %v1642_v24 = vor.u32 %v2245_v14, %v1639_v15 }
  0x2e   : > { %660 = vmatpush.bf16.msrb.mxu0 %v1674_v39  ;;  %v2182_v23 = vld [vmem:[%s3308_s1 + $0x34] sm:$0xf0]  ;;  %182 = vst [vmem:[#allocation1] ss:$4 sm:$0xff] %v173_v16  ;;  %v1706_v25 = vor.u32 %v2261_v18, %v1703_v19  ;;  %v175_v27 = vld [vmem:[%s2655_s30 + $0x4] sm:$0x3] }
  0x2f   : > { %673 = vmatpush.bf16.msrb.mxu1 %v1738_v40  ;;  %948 = vmatpush.bf16.msrb.mxu3 %v1862_v47  ;;  %186 = vst [vmem:[#allocation1 + $0x20] ss:$4 sm:$0xff] %v174_v20  ;;  %v1766_v26 = vor.u32 %v2182_v23, %v1765_v22  ;;  %v176_v28 = vld [vmem:[%s2655_s30 + $0x6] sm:$0x3]  ;;  %v1829_v31 = vld [vmem:[%s3308_s1 + $0xb0] sm:$0xf] }
  0x30   : > { %935 = vmatpush.bf16.msrb.mxu2 %v1798_v42  ;;  %v2198_v32 = vld [vmem:[%s3308_s1 + $0xb4] sm:$0xf0]  ;;  %v2243_v35 = vld [vmem:[%s3308_s1 + $0x224] sm:$0xf]  ;;  %v1631_v36 = vld [vmem:[%s3308_s1 + $0x228] sm:$0xf0] }
  0x31   : > { %v1830_v34 = vor.u32 %v2198_v32, %v1829_v31  ;;  %v177_v37 = vld [vmem:[%s2655_s30] sm:$0x2]  ;;  %v1634_v38 = vor.u32 %v2243_v35, %v1631_v36  ;;  %v2259_v39 = vld [vmem:[%s3308_s1 + $0x2a4] sm:$0xf]  ;;  %v1695_v40 = vld [vmem:[%s3308_s1 + $0x2a8] sm:$0xf0] }
  0x32   : > { %661 = vmatpush.bf16.msrb.mxu0 %v1666_v52  ;;  %v1757_v41 = vld [vmem:[%s3308_s1 + $0x20] sm:$0xf]  ;;  %v1698_v42 = vor.u32 %v2259_v39, %v1695_v40  ;;  %v2180_v43 = vld [vmem:[%s3308_s1 + $0x24] sm:$0xf0]  ;;  %v2241_v49 = vld [vmem:[%s3308_s1 + $0x214] sm:$0xf] }
  0x33   : > { %674 = vmatpush.bf16.msrb.mxu1 %v1730_v53  ;;  %949 = vmatpush.bf16.msrb.mxu3 %v1854_v59  ;;  %v1821_v44 = vld [vmem:[%s3308_s1 + $0xa0] sm:$0xf]  ;;  %v2196_v45 = vld [vmem:[%s3308_s1 + $0xa4] sm:$0xf0]  ;;  %v1758_v47 = vor.u32 %v2180_v43, %v1757_v41  ;;  %v1623_v50 = vld [vmem:[%s3308_s1 + $0x218] sm:$0xf0] }
  0x34   : > { %936 = vmatpush.bf16.msrb.mxu2 %v1790_v56  ;;  %v178_v46 = vld [vmem:[%s2655_s30 + $0x2] sm:$0x2]  ;;  %v1822_v48 = vor.u32 %v2196_v45, %v1821_v44  ;;  %v1626_v52 = vor.u32 %v2241_v49, %v1623_v50  ;;  %v2257_v53 = vld [vmem:[%s3308_s1 + $0x294] sm:$0xf]  ;;  %v1687_v58 = vld [vmem:[%s3308_s1 + $0x298] sm:$0xf0] }
  0x35   : > { %v2685_v29 = vld.sshfl [vmem:[#allocation1] sm:$0xff pattern:$0x73625140]  ;;  %v1690_v59 = vor.u32 %v2257_v53, %v1687_v58  ;;  %v1749_v60 = vld [vmem:[%s3308_s1 + $0x10] sm:$0xf]  ;;  %vm1408_vm2 = vcmask 1043456  }
  0x36   : > { %662 = vmatpush.bf16.msrb.mxu0 %v1658_v0  ;;  %v187_v30 = vld.sshfl [vmem:[#allocation1 + $0x20] sm:$0xff pattern:$0x73625140]  ;;  %189 = vst [vmem:[#allocation1] ss:$4 sm:$0xff] %v175_v27  ;;  %v194_v22 = vshrl.u32 %v2685_v29, 16 }
  0x37   : > { %675 = vmatpush.bf16.msrb.mxu1 %v1722_v1  ;;  %950 = vmatpush.bf16.msrb.mxu3 %v1846_v7  ;;  %192 = vst [vmem:[#allocation1 + $0x20] ss:$4 sm:$0xff] %v176_v28  ;;  %v202_v33 = vshll.u32 %v187_v30, 16  ;;  %v200_v55 = vshrl.u32 %v187_v30, 16  ;;  %v2178_v63 = vld [vmem:[%s3308_s1 + $0x14] sm:$0xf0] }
  0x38   : > { %937 = vmatpush.bf16.msrb.mxu2 %v1782_v4  ;;  %v1813_v0 = vld [vmem:[%s3308_s1 + $0x90] sm:$0xf]  ;;  %v1750_v2 = vor.u32 %v2178_v63, %v1749_v60  ;;  %v2194_v3 = vld [vmem:[%s3308_s1 + $0x94] sm:$0xf0]  ;;  %v2239_v4 = vld [vmem:[%s3308_s1 + $0x204] sm:$0xf] }
  0x39   : > { %v204_v56 = vrot.slane %v202_v33, 1  ;;  %v1615_v5 = vld [vmem:[%s3308_s1 + $0x208] sm:$0xf0]  ;;  %v1814_v6 = vor.u32 %v2194_v3, %v1813_v0  ;;  %v2255_v8 = vld [vmem:[%s3308_s1 + $0x284] sm:$0xf]  ;;  %s1495_s24 = sshll.u32 %s3312_s13, 1 }
  0x3a   : > { %663 = vmatpush.bf16.msrb.mxu0 %v1650_v12  ;;  %v1618_v7 = vor.u32 %v2239_v4, %v1615_v5  ;;  %v1679_v9 = vld [vmem:[%s3308_s1 + $0x288] sm:$0xf0]  ;;  %v1741_v10 = vld [vmem:[%s3308_s1] sm:$0xf]  ;;  %v179_v11 = vld [vmem:[%s2655_s30 + $0x4] sm:$0x2]  ;;  %s168_s27 = scalar_lea.vmem %s3310_s3, %s1495_s24 }
  0x3b   : > { %676 = vmatpush.bf16.msrb.mxu1 %v1714_v13  ;;  %951 = vmatpush.bf16.msrb.mxu3 %v1838_v21  ;;  %v205_v1 = vor.u32 %v204_v56, %v200_v55  ;;  %v196_v12 = vshll.u32 %v2685_v29, 16  ;;  %v1682_v13 = vor.u32 %v2255_v8, %v1679_v9  ;;  %v2176_v14 = vld [vmem:[%s3308_s1 + $0x4] sm:$0xf0]  ;;  %v180_v15 = vld [vmem:[%s2655_s30 + $0x6] sm:$0x2] }
  0x3c   : > { %938 = vmatpush.bf16.msrb.mxu2 %v1774_v17  ;;  %v1742_v16 = vor.u32 %v2176_v14, %v1741_v10  ;;  %v170_v17 = vld [vmem:[%s2655_s30 + $0x2] sm:$0x1]  ;;  %v171_v31 = vld [vmem:[%s2655_s30 + $0x4] sm:$0x1]  ;;  %v169_v39 = vld [vmem:[%s2655_s30] sm:$0x1] }
  0x3d   : > { %v190_v51 = vld.sshfl [vmem:[#allocation1] sm:$0xff pattern:$0x73625140]  ;;  %v241_v20 = vrot.slane %v205_v1, 7  ;;  %v198_v23 = vrot.slane %v196_v12, 1 }
  0x3e   : > { %664 = vmatpush.bf16.msrb.mxu0 %v1642_v24  ;;  %v2728_v54 = vld.sshfl [vmem:[#allocation1 + $0x20] sm:$0xff pattern:$0x73625140]  ;;  %v208_v57 = vshll.u32 %v190_v51, 16  ;;  %219 = vst [vmem:[#allocation1] ss:$4 sm:$0xff] %v177_v37 }
  0x3f   : > { %677 = vmatpush.bf16.msrb.mxu1 %v1706_v25  ;;  %952 = vmatpush.bf16.msrb.mxu3 %v1830_v34  ;;  %224 = vst [vmem:[#allocation1 + $0x20] ss:$4 sm:$0xff] %v178_v46  ;;  %v206_v61 = vshrl.u32 %v190_v51, 16  ;;  %v1805_v25 = vld [vmem:[%s3308_s1 + $0x80] sm:$0xf]  ;;  %v252_v27 = vsel %vm243_vm0, %v170_v17, %v241_v20  ;;  %v199_v29 = vor.u32 %v198_v23, %v194_v22  ;;  %v214_v37 = vshll.u32 %v2728_v54, 16 }
  0x40   : > { %939 = vmatpush.bf16.msrb.mxu2 %v1766_v26  ;;  %v210_v62 = vrot.slane %v208_v57, 1  ;;  %v2192_v26 = vld [vmem:[%s3308_s1 + $0x84] sm:$0xf0]  ;;  %v1925_v45 = vld [vmem:[%s3308_s1 + $0x170] sm:$0xf] }
  0x41   : > { %v1806_v30 = vor.u32 %v2192_v26, %v1805_v25  ;;  %v216_v43 = vrot.slane %v214_v37, 1  ;;  %v2222_v46 = vld [vmem:[%s3308_s1 + $0x174] sm:$0xf0]  ;;  %v2205_v49 = vld [vmem:[%s3308_s1 + $0xf4] sm:$0xf] }
  0x42   : > { %665 = vmatpush.bf16.msrb.mxu0 %v1634_v38  ;;  %v211_v18 = vor.u32 %v210_v62, %v206_v61  ;;  %v239_v38 = vrot.slane %v199_v29, 7  ;;  %v1863_v50 = vld [vmem:[%s3308_s1 + $0xf8] sm:$0xf0]  ;;  %v2221_v51 = vld [vmem:[%s3308_s1 + $0x174] sm:$0xf]  ;;  %v1926_v58 = vor.u32 %v2222_v46, %v1925_v45 }
  0x43   : > { %678 = vmatpush.bf16.msrb.mxu1 %v1698_v42  ;;  %953 = vmatpush.bf16.msrb.mxu3 %v1822_v48  ;;  %v212_v42 = vshrl.u32 %v2728_v54, 16  ;;  %v1799_v48 = vld [vmem:[%s3308_s1 + $0x78] sm:$0xf0]  ;;  %v1917_v54 = vld [vmem:[%s3308_s1 + $0x160] sm:$0xf] }
  0x44   : > { %940 = vmatpush.bf16.msrb.mxu2 %v1758_v47  ;;  %v303_v28 = vrot.slane %v211_v18, 7  ;;  %v246_v44 = vsel %vm243_vm0, %v169_v39, %v239_v38  ;;  %v2189_v47 = vld [vmem:[%s3308_s1 + $0x74] sm:$0xf]  ;;  %v2220_v55 = vld [vmem:[%s3308_s1 + $0x164] sm:$0xf0] }
  0x45   : > { %v220_v19 = vld.sshfl [vmem:[#allocation1] sm:$0xff pattern:$0x73625140]  ;;  %v217_v57 = vor.u32 %v216_v43, %v212_v42  ;;  %v1791_v60 = vld [vmem:[%s3308_s1 + $0x68] sm:$0xf0]  ;;  %v1918_v8 = vor.u32 %v2220_v55, %v1917_v54 }
  0x46   : > { %666 = vmatpush.bf16.msrb.mxu0 %v1626_v52  ;;  %v225_v21 = vld.sshfl [vmem:[#allocation1 + $0x20] sm:$0xff pattern:$0x73625140]  ;;  %228 = vst [vmem:[#allocation1] ss:$4 sm:$0xff] %v179_v11  ;;  %v307_v34 = vsel %vm243_vm0, %v171_v31, %v303_v28  ;;  %v1496_v41 = vrot.slane %v220_v19, 7 }
  0x47   : > { %679 = vmatpush.bf16.msrb.mxu1 %v1690_v59  ;;  %954 = vmatpush.bf16.msrb.mxu3 %v1814_v6  ;;  %232 = vst [vmem:[#allocation1 + $0x20] ss:$4 sm:$0xff] %v180_v15  ;;  %v1497_v24 = vrot.slane %v225_v21, 7  ;;  %v1927_v52 = vld [vmem:[%s3308_s1 + $0x178] sm:$0xf0]  ;;  %v1802_v59 = vor.u32 %v2189_v47, %v1799_v48 }
  0x48   : > { %941 = vmatpush.bf16.msrb.mxu2 %v1750_v2  ;;  %v249_v53 = vsel %vm247_vm1, %v246_v44, %v1496_v41  ;;  %v2187_v56 = vld [vmem:[%s3308_s1 + $0x64] sm:$0xf]  ;;  %v1855_v62 = vld [vmem:[%s3308_s1 + $0xe8] sm:$0xf0]  ;;  %v1866_v2 = vor.u32 %v2205_v49, %v1863_v50  ;;  %v1930_v3 = vor.u32 %v2221_v51, %v1927_v52  ;;  %v1909_v10 = vld [vmem:[%s3308_s1 + $0x150] sm:$0xf] }
  0x49   : > { %v254_v32 = vsel %vm247_vm1, %v252_v27, %v1497_v24  ;;  %v2203_v61 = vld [vmem:[%s3308_s1 + $0xe4] sm:$0xf]  ;;  %v1919_v5 = vld [vmem:[%s3308_s1 + $0x168] sm:$0xf0]  ;;  %v1794_v9 = vor.u32 %v2187_v56, %v1791_v60  ;;  %v2218_v11 = vld [vmem:[%s3308_s1 + $0x154] sm:$0xf0] }
  0x4a   : > { %667 = vmatpush.bf16.msrb.mxu0 %v1618_v7  ;;  %v2219_v4 = vld [vmem:[%s3308_s1 + $0x164] sm:$0xf]  ;;  %v1013_v7 = vrot.slane %v217_v57, 7  ;;  %v1858_v12 = vor.u32 %v2203_v61, %v1855_v62  ;;  %v2185_v14 = vld [vmem:[%s3308_s1 + $0x54] sm:$0xf]  ;;  %v1910_v22 = vor.u32 %v2218_v11, %v1909_v10 }
  0x4b   : > { %680 = vmatpush.bf16.msrb.mxu1 %v1682_v13  ;;  %955 = vmatpush.bf16.msrb.mxu3 %v1806_v30  ;;  %v172_v6 = vld [vmem:[%s2655_s30 + $0x6] sm:$0x1]  ;;  %v1922_v13 = vor.u32 %v2219_v4, %v1919_v5  ;;  %v1783_v15 = vld [vmem:[%s3308_s1 + $0x58] sm:$0xf0]  ;;  %v2217_v18 = vld [vmem:[%s3308_s1 + $0x154] sm:$0xf] }
  0x4c   : > { %942 = vmatpush.bf16.msrb.mxu2 %v1742_v16  ;;  %v2201_v16 = vld [vmem:[%s3308_s1 + $0xd4] sm:$0xf]  ;;  %v1847_v17 = vld [vmem:[%s3308_s1 + $0xd8] sm:$0xf0]  ;;  %v1017_v21 = vsel %vm243_vm0, %v172_v6, %v1013_v7  ;;  %v1786_v23 = vor.u32 %v2185_v14, %v1783_v15  ;;  %v1901_v24 = vld [vmem:[%s3308_s1 + $0x140] sm:$0xf] }
  0x4d   : > { %v229_v33 = vld.sshfl [vmem:[#allocation1] sm:$0xff pattern:$0x73625140]  ;;  %v1911_v19 = vld [vmem:[%s3308_s1 + $0x158] sm:$0xf0]  ;;  %v1850_v26 = vor.u32 %v2201_v16, %v1847_v17 }
  0x4e   : > { %v2778_v35 = vld.sshfl [vmem:[#allocation1 + $0x20] sm:$0xff pattern:$0x73625140]  ;;  %v1498_v36 = vrot.slane %v229_v33, 7  ;;  %v2216_v25 = vld [vmem:[%s3308_s1 + $0x144] sm:$0xf0]  ;;  %v1914_v27 = vor.u32 %v2217_v18, %v1911_v19 }
  0x4f   : > { %359 = vst [vmem:[#allocation1] ss:$9 sm:$0xff] %v254_v32  ;;  %v1931_v20 = vrot.slane %v2778_v35, 7  ;;  %v2183_v28 = vld [vmem:[%s3308_s1 + $0x44] sm:$0xf]  ;;  %v1902_v42 = vor.u32 %v2216_v25, %v1901_v24 }
  0x50   : > { %v2783_v40 = vsel %vm247_vm1, %v307_v34, %v1498_v36  ;;  %v1775_v30 = vld [vmem:[%s3308_s1 + $0x48] sm:$0xf0]  ;;  %v2199_v31 = vld [vmem:[%s3308_s1 + $0xc4] sm:$0xf]  ;;  %v1893_v35 = vld [vmem:[%s3308_s1 + $0x130] sm:$0xf] }
  0x51   : > { %361 = vst [vmem:[#allocation1 + $0x1] ss:$9 sm:$0xff] %v2783_v40  ;;  %v1839_v29 = vld [vmem:[%s3308_s1 + $0xc8] sm:$0xf0]  ;;  %v1019_v34 = vsel %vm247_vm1, %v1017_v21, %v1931_v20  ;;  %v2214_v36 = vld [vmem:[%s3308_s1 + $0x134] sm:$0xf0]  ;;  %v1778_v43 = vor.u32 %v2183_v28, %v1775_v30 }
  0x52   : > { %v1903_v33 = vld [vmem:[%s3308_s1 + $0x148] sm:$0xf0]  ;;  %v2181_v37 = vld [vmem:[%s3308_s1 + $0x34] sm:$0xf]  ;;  %v1767_v38 = vld [vmem:[%s3308_s1 + $0x38] sm:$0xf0]  ;;  %v1842_v45 = vor.u32 %v2199_v31, %v1839_v29  ;;  %v1894_v51 = vor.u32 %v2214_v36, %v1893_v35 }
  0x53   : > { %v2197_v47 = vld [vmem:[%s3308_s1 + $0xb4] sm:$0xf]  ;;  %v1831_v48 = vld [vmem:[%s3308_s1 + $0xb8] sm:$0xf0]  ;;  %v1770_v52 = vor.u32 %v2181_v37, %v1767_v38  ;;  %v2179_v56 = vld [vmem:[%s3308_s1 + $0x24] sm:$0xf] }
  0x54   : > { %v2213_v49 = vld [vmem:[%s3308_s1 + $0x134] sm:$0xf]  ;;  %v1895_v50 = vld [vmem:[%s3308_s1 + $0x138] sm:$0xf0]  ;;  %v1834_v54 = vor.u32 %v2197_v47, %v1831_v48  ;;  %v1759_v57 = vld [vmem:[%s3308_s1 + $0x28] sm:$0xf0] }
  0x55   : > { %v1898_v55 = vor.u32 %v2213_v49, %v1895_v50  ;;  %v2211_v60 = vld [vmem:[%s3308_s1 + $0x124] sm:$0xf]  ;;  %v1887_v61 = vld [vmem:[%s3308_s1 + $0x128] sm:$0xf0]  ;;  %v2193_v6 = vld [vmem:[%s3308_s1 + $0x94] sm:$0xf] }
  0x56   : > { %v1890_v5 = vor.u32 %v2211_v60, %v1887_v61  ;;  %v1815_v7 = vld [vmem:[%s3308_s1 + $0x98] sm:$0xf0]  ;;  %v2175_v14 = vld [vmem:[%s3308_s1 + $0x4] sm:$0xf]  ;;  %v1743_v17 = vld [vmem:[%s3308_s1 + $0x8] sm:$0xf0] }
  0x57   : > { %v1818_v15 = vor.u32 %v2193_v6, %v1815_v7  ;;  %v2191_v18 = vld [vmem:[%s3308_s1 + $0x84] sm:$0xf]  ;;  %v1807_v19 = vld [vmem:[%s3308_s1 + $0x88] sm:$0xf0]  ;;  %v2038_v20 = vld [vmem:[%s3308_s1 + $0x370] sm:$0xf] }
  0x58   : > { %v2831_v63 = vld [vmem:[#allocation1 + $0x12] sm:$0xff]  ;;  %v362_v0 = vld [vmem:[#allocation1] sm:$0xff]  ;;  %v2833_v1 = vld [vmem:[#allocation1 + $0x9] sm:$0xff]  ;;  %v1810_v31 = vor.u32 %v2191_v18, %v1807_v19 }
  0x59   : > { %642 = vmatmul.bf16.vlgmr.msra.gmra.mxu2 %v2831_v63  ;;  %655 = vmatmul.bf16.vlgmr.msra.gmra.mxu3 %v362_v0  ;;  %686 = vst [vmem:[#allocation1] ss:$9 sm:$0xff] %v249_v53  ;;  %v1885_v53 = vld [vmem:[%s3308_s1 + $0x120] sm:$0xf]  ;;  %v2286_v21 = vld [vmem:[%s3308_s1 + $0x374] sm:$0xf0] }
  0x5a   : > { %616 = vmatmul.bf16.vlgmr.msra.gmra.mxu0 %v362_v0  ;;  %629 = vmatmul.bf16.vlgmr.msra.gmra.mxu1 %v2833_v1  ;;  %688 = vst [vmem:[#allocation1 + $0x1] ss:$9 sm:$0xff] %v254_v32  ;;  %v2215_v32 = vld [vmem:[%s3308_s1 + $0x144] sm:$0xf]  ;;  %v1762_v0 = vor.u32 %v2179_v56, %v1759_v57  ;;  %v2166_v24 = vld [vmem:[%s3308_s1 + $0x470] sm:$0xf]  ;;  %v2039_v29 = vor.u32 %v2286_v21, %v2038_v20 }
  0x5b   : > { %961 = vmatpush.bf16.msra.mxu0 %v1926_v58  ;;  %974 = vmatpush.bf16.msra.mxu1 %v1802_v59  ;;  %v1906_v46 = vor.u32 %v2215_v32, %v1903_v33  ;;  %v2195_v58 = vld [vmem:[%s3308_s1 + $0xa4] sm:$0xf]  ;;  %v1823_v59 = vld [vmem:[%s3308_s1 + $0xa8] sm:$0xf0]  ;;  %v2318_v25 = vld [vmem:[%s3308_s1 + $0x474] sm:$0xf0] }
  0x5c   : > { %987 = vmatpush.bf16.msra.mxu2 %v1866_v2  ;;  %1000 = vmatpush.bf16.msra.mxu3 %v1930_v3  ;;  %v1877_v2 = vld [vmem:[%s3308_s1 + $0x110] sm:$0xf]  ;;  %v2210_v3 = vld [vmem:[%s3308_s1 + $0x114] sm:$0xf0]  ;;  %v1826_v4 = vor.u32 %v2195_v58, %v1823_v59  ;;  %v2207_v28 = vld [vmem:[%s3308_s1 + $0x104] sm:$0xf] }
  0x5d   : > { %v1878_v10 = vor.u32 %v2210_v3, %v1877_v2  ;;  %v1871_v30 = vld [vmem:[%s3308_s1 + $0x108] sm:$0xf0]  ;;  %v2030_v32 = vld [vmem:[%s3308_s1 + $0x360] sm:$0xf]  ;;  %v2284_v35 = vld [vmem:[%s3308_s1 + $0x364] sm:$0xf0] }
  0x5e   : > { %v2285_v36 = vld [vmem:[%s3308_s1 + $0x374] sm:$0xf]  ;;  %v2040_v37 = vld [vmem:[%s3308_s1 + $0x378] sm:$0xf0]  ;;  %v1874_v38 = vor.u32 %v2207_v28, %v1871_v30  ;;  %v2031_v47 = vor.u32 %v2284_v35, %v2030_v32  ;;  %v2022_v48 = vld [vmem:[%s3308_s1 + $0x350] sm:$0xf] }
  0x5f   : > { %962 = vmatpush.bf16.msra.mxu0 %v1918_v8  ;;  %975 = vmatpush.bf16.msra.mxu1 %v1794_v9  ;;  %v2209_v8 = vld [vmem:[%s3308_s1 + $0x114] sm:$0xf]  ;;  %v1879_v9 = vld [vmem:[%s3308_s1 + $0x118] sm:$0xf0]  ;;  %v2043_v49 = vor.u32 %v2285_v36, %v2040_v37  ;;  %v2150_v56 = vld [vmem:[%s3308_s1 + $0x450] sm:$0xf] }
  0x60   : > { %988 = vmatpush.bf16.msra.mxu2 %v1858_v12  ;;  %1001 = vmatpush.bf16.msra.mxu3 %v1922_v13  ;;  %v1869_v12 = vld [vmem:[%s3308_s1 + $0x100] sm:$0xf]  ;;  %v2208_v13 = vld [vmem:[%s3308_s1 + $0x104] sm:$0xf0]  ;;  %v1882_v16 = vor.u32 %v2209_v8, %v1879_v9  ;;  %v2314_v57 = vld [vmem:[%s3308_s1 + $0x454] sm:$0xf0] }
  0x61   : > { %v2907_v39 = vld [vmem:[#allocation1] sm:$0xff]  ;;  %v2909_v41 = vld [vmem:[#allocation1 + $0x9] sm:$0xff]  ;;  %v2911_v44 = vld [vmem:[#allocation1 + $0x12] sm:$0xff] }
  0x62   : > { %1069 = vst [vmem:[#allocation1] ss:$9 sm:$0xff] %v2783_v40  ;;  %v2212_v40 = vld [vmem:[%s3308_s1 + $0x124] sm:$0xf0]  ;;  %v2014_v59 = vld [vmem:[%s3308_s1 + $0x340] sm:$0xf] }
  0x63   : > { %963 = vmatpush.bf16.msra.mxu0 %v1910_v22  ;;  %976 = vmatpush.bf16.msra.mxu1 %v1786_v23  ;;  %1071 = vst [vmem:[#allocation1 + $0x1] ss:$9 sm:$0xff] %v1019_v34  ;;  %v1886_v62 = vor.u32 %v2212_v40, %v1885_v53  ;;  %v2102_v22 = vld [vmem:[%s3308_s1 + $0x3f0] sm:$0xf]  ;;  %v2302_v23 = vld [vmem:[%s3308_s1 + $0x3f4] sm:$0xf0]  ;;  %v2167_v34 = vor.u32 %v2318_v25, %v2166_v24 }
  0x64   : > { %989 = vmatpush.bf16.msra.mxu2 %v1850_v26  ;;  %1002 = vmatpush.bf16.msra.mxu3 %v1914_v27  ;;  %v1870_v26 = vor.u32 %v2208_v13, %v1869_v12  ;;  %v1746_v27 = vor.u32 %v2175_v14, %v1743_v17  ;;  %v2103_v33 = vor.u32 %v2302_v23, %v2102_v22  ;;  %v2032_v53 = vld [vmem:[%s3308_s1 + $0x368] sm:$0xf0]  ;;  %v2281_v61 = vld [vmem:[%s3308_s1 + $0x354] sm:$0xf]  ;;  %v2296_v2 = vld [vmem:[%s3308_s1 + $0x3c4] sm:$0xf0] }
  0x65   : > { %v2142_v3 = vld [vmem:[%s3308_s1 + $0x440] sm:$0xf]  ;;  %v2278_v7 = vld [vmem:[%s3308_s1 + $0x334] sm:$0xf0]  ;;  %v2279_v8 = vld [vmem:[%s3308_s1 + $0x344] sm:$0xf] }
  0x66   : > { %v2016_v9 = vld [vmem:[%s3308_s1 + $0x348] sm:$0xf0]  ;;  %v2294_v12 = vld [vmem:[%s3308_s1 + $0x3b4] sm:$0xf0]  ;;  %v2134_v13 = vld [vmem:[%s3308_s1 + $0x430] sm:$0xf] }
  0x67   : > { %964 = vmatpush.bf16.msra.mxu0 %v1902_v42  ;;  %977 = vmatpush.bf16.msra.mxu1 %v1778_v43  ;;  %v2094_v42 = vld [vmem:[%s3308_s1 + $0x3e0] sm:$0xf]  ;;  %v2300_v43 = vld [vmem:[%s3308_s1 + $0x3e4] sm:$0xf0]  ;;  %v2310_v14 = vld [vmem:[%s3308_s1 + $0x434] sm:$0xf0]  ;;  %v2019_v17 = vor.u32 %v2279_v8, %v2016_v9 }
  0x68   : > { %990 = vmatpush.bf16.msra.mxu2 %v1842_v45  ;;  %1003 = vmatpush.bf16.msra.mxu3 %v1906_v46  ;;  %v2158_v45 = vld [vmem:[%s3308_s1 + $0x460] sm:$0xf]  ;;  %v2316_v46 = vld [vmem:[%s3308_s1 + $0x464] sm:$0xf0]  ;;  %v2095_v50 = vor.u32 %v2300_v43, %v2094_v42  ;;  %v2277_v20 = vld [vmem:[%s3308_s1 + $0x334] sm:$0xf]  ;;  %v2135_v22 = vor.u32 %v2310_v14, %v2134_v13 }
  0x69   : > { %943 = vmatmul.bf16.vlgmr.msrb.gmra.mxu2 %v2907_v39  ;;  %956 = vmatmul.bf16.vlgmr.msrb.gmra.mxu3 %v2909_v41  ;;  %v2159_v40 = vor.u32 %v2316_v46, %v2158_v45  ;;  %v2276_v19 = vld [vmem:[%s3308_s1 + $0x324] sm:$0xf0]  ;;  %v2008_v21 = vld [vmem:[%s3308_s1 + $0x338] sm:$0xf0]  ;;  %v2062_v23 = vld [vmem:[%s3308_s1 + $0x3a0] sm:$0xf] }
  0x6a   : > { %668 = vmatmul.bf16.vlgmr.msrb.gmra.mxu0 %v2833_v1  ;;  %681 = vmatmul.bf16.vlgmr.msrb.gmra.mxu1 %v2831_v63  ;;  %v2177_v63 = vld [vmem:[%s3308_s1 + $0x14] sm:$0xf]  ;;  %v1751_v1 = vld [vmem:[%s3308_s1 + $0x18] sm:$0xf0]  ;;  %v2292_v24 = vld [vmem:[%s3308_s1 + $0x3a4] sm:$0xf0]  ;;  %v2011_v30 = vor.u32 %v2277_v20, %v2008_v21 }
  0x6b   : > { %965 = vmatpush.bf16.msra.mxu0 %v1894_v51  ;;  %978 = vmatpush.bf16.msra.mxu1 %v1770_v52  ;;  %v1754_v11 = vor.u32 %v2177_v63, %v1751_v1  ;;  %v2282_v51 = vld [vmem:[%s3308_s1 + $0x354] sm:$0xf0]  ;;  %v2283_v52 = vld [vmem:[%s3308_s1 + $0x364] sm:$0xf]  ;;  %v2006_v63 = vld [vmem:[%s3308_s1 + $0x330] sm:$0xf] }
  0x6c   : > { %991 = vmatpush.bf16.msra.mxu2 %v1834_v54  ;;  %1004 = vmatpush.bf16.msra.mxu3 %v1898_v55  ;;  %v2086_v54 = vld [vmem:[%s3308_s1 + $0x3d0] sm:$0xf]  ;;  %v2298_v55 = vld [vmem:[%s3308_s1 + $0x3d4] sm:$0xf0]  ;;  %v2023_v58 = vor.u32 %v2282_v51, %v2022_v48  ;;  %v2035_v60 = vor.u32 %v2283_v52, %v2032_v53  ;;  %v2126_v25 = vld [vmem:[%s3308_s1 + $0x420] sm:$0xf] }
  0x6d   : > { %v1990_v28 = vld [vmem:[%s3308_s1 + $0x310] sm:$0xf]  ;;  %v2275_v32 = vld [vmem:[%s3308_s1 + $0x324] sm:$0xf]  ;;  %v2290_v36 = vld [vmem:[%s3308_s1 + $0x394] sm:$0xf0] }
  0x6e   : > { %v2054_v35 = vld [vmem:[%s3308_s1 + $0x390] sm:$0xf]  ;;  %v1982_v43 = vld [vmem:[%s3308_s1 + $0x300] sm:$0xf]  ;;  %v2272_v45 = vld [vmem:[%s3308_s1 + $0x304] sm:$0xf0] }
  0x6f   : > { %966 = vmatpush.bf16.msra.mxu0 %v1886_v62  ;;  %979 = vmatpush.bf16.msra.mxu1 %v1762_v0  ;;  %v2024_v62 = vld [vmem:[%s3308_s1 + $0x358] sm:$0xf0]  ;;  %v2151_v0 = vor.u32 %v2314_v57, %v2150_v56  ;;  %v2118_v37 = vld [vmem:[%s3308_s1 + $0x410] sm:$0xf]  ;;  %v2046_v46 = vld [vmem:[%s3308_s1 + $0x380] sm:$0xf]  ;;  %v2055_v48 = vor.u32 %v2290_v36, %v2054_v35 }
  0x70   : > { %992 = vmatpush.bf16.msra.mxu2 %v1826_v4  ;;  %1005 = vmatpush.bf16.msra.mxu3 %v1890_v5  ;;  %v2312_v4 = vld [vmem:[%s3308_s1 + $0x444] sm:$0xf0]  ;;  %v2027_v1 = vor.u32 %v2281_v61, %v2024_v62  ;;  %v1992_v51 = vld [vmem:[%s3308_s1 + $0x318] sm:$0xf0]  ;;  %v2110_v53 = vld [vmem:[%s3308_s1 + $0x400] sm:$0xf] }
  0x71   : > { %v2317_v56 = vld [vmem:[%s3308_s1 + $0x474] sm:$0xf]  ;;  %v2168_v57 = vld [vmem:[%s3308_s1 + $0x478] sm:$0xf0]  ;;  %v1984_v61 = vld [vmem:[%s3308_s1 + $0x308] sm:$0xf0] }
  0x72   : > { %v2297_v9 = vld [vmem:[%s3308_s1 + $0x3d4] sm:$0xf]  ;;  %v2120_v36 = vld [vmem:[%s3308_s1 + $0x418] sm:$0xf0] }
  0x73   : > { %967 = vmatpush.bf16.msra.mxu0 %v1878_v10  ;;  %980 = vmatpush.bf16.msra.mxu1 %v1754_v11  ;;  %v2143_v10 = vor.u32 %v2312_v4, %v2142_v3  ;;  %v2070_v11 = vld [vmem:[%s3308_s1 + $0x3b0] sm:$0xf]  ;;  %v2315_v3 = vld [vmem:[%s3308_s1 + $0x464] sm:$0xf]  ;;  %v2160_v4 = vld [vmem:[%s3308_s1 + $0x468] sm:$0xf0] }
  0x74   : > { %993 = vmatpush.bf16.msra.mxu2 %v1818_v15  ;;  %1006 = vmatpush.bf16.msra.mxu3 %v1882_v16  ;;  %v2007_v15 = vor.u32 %v2278_v7, %v2006_v63  ;;  %v1998_v16 = vld [vmem:[%s3308_s1 + $0x320] sm:$0xf]  ;;  %v2071_v18 = vor.u32 %v2294_v12, %v2070_v11  ;;  %v1074_v7 = vld [vmem:[#allocation1 + $0x12] sm:$0xff]  ;;  %v2163_v8 = vor.u32 %v2315_v3, %v2160_v4  ;;  %v2152_v12 = vld [vmem:[%s3308_s1 + $0x458] sm:$0xf0] }
  0x75   : > { %v2313_v11 = vld [vmem:[%s3308_s1 + $0x454] sm:$0xf] }
  0x76   : > { %v2155_v14 = vor.u32 %v2313_v11, %v2152_v12  ;;  %v2293_v21 = vld [vmem:[%s3308_s1 + $0x3b4] sm:$0xf] }
  0x77   : > { %968 = vmatpush.bf16.msra.mxu0 %v1870_v26  ;;  %981 = vmatpush.bf16.msra.mxu1 %v1746_v27  ;;  %v2308_v26 = vld [vmem:[%s3308_s1 + $0x424] sm:$0xf0]  ;;  %v1999_v27 = vor.u32 %v2276_v19, %v1998_v16  ;;  %v2080_v16 = vld [vmem:[%s3308_s1 + $0x3c8] sm:$0xf0]  ;;  %v2305_v35 = vld [vmem:[%s3308_s1 + $0x414] sm:$0xf] }
  0x78   : > { %994 = vmatpush.bf16.msra.mxu2 %v1810_v31  ;;  %1007 = vmatpush.bf16.msra.mxu3 %v1874_v38  ;;  %v2063_v31 = vor.u32 %v2292_v24, %v2062_v23  ;;  %v2306_v38 = vld [vmem:[%s3308_s1 + $0x414] sm:$0xf0]  ;;  %v2309_v23 = vld [vmem:[%s3308_s1 + $0x434] sm:$0xf]  ;;  %v2136_v24 = vld [vmem:[%s3308_s1 + $0x438] sm:$0xf0] }
  0x79   : > { %v2119_v52 = vor.u32 %v2306_v38, %v2118_v37  ;;  %v2123_v38 = vor.u32 %v2305_v35, %v2120_v36 }
  0x7a   : > { %969 = vmatmul.bf16.vlgmr.msra.gmra.mxu0 %v2911_v44  ;;  %982 = vmatmul.bf16.vlgmr.msra.gmra.mxu1 %v2907_v39  ;;  %v2087_v39 = vor.u32 %v2298_v55, %v2086_v54  ;;  %v2104_v54 = vld [vmem:[%s3308_s1 + $0x3f8] sm:$0xf0]  ;;  %v2304_v55 = vld [vmem:[%s3308_s1 + $0x404] sm:$0xf0] }
  0x7b   : > { %1318 = vmatpush.bf16.msrb.mxu0 %v2039_v29  ;;  %1331 = vmatpush.bf16.msrb.mxu1 %v2103_v33  ;;  %v2274_v29 = vld [vmem:[%s3308_s1 + $0x314] sm:$0xf0]  ;;  %v2000_v33 = vld [vmem:[%s3308_s1 + $0x328] sm:$0xf0]  ;;  %v2111_v62 = vor.u32 %v2304_v55, %v2110_v53 }
  0x7c   : > { %1344 = vmatpush.bf16.msrb.mxu2 %v2167_v34  ;;  %1357 = vmatpush.bf16.msrb.mxu3 %v2043_v49  ;;  %v2127_v34 = vor.u32 %v2308_v26, %v2126_v25  ;;  %v1991_v42 = vor.u32 %v2274_v29, %v1990_v28  ;;  %v2288_v49 = vld [vmem:[%s3308_s1 + $0x384] sm:$0xf0]  ;;  %v2139_v26 = vor.u32 %v2309_v23, %v2136_v24  ;;  %v2064_v28 = vld [vmem:[%s3308_s1 + $0x3a8] sm:$0xf0] }
  0x7d   : > { %995 = vmatmul.bf16.vlgmr.msra.gmra.mxu2 %v2909_v41  ;;  %1008 = vmatmul.bf16.vlgmr.msra.gmra.mxu3 %v2911_v44  ;;  %v2280_v41 = vld [vmem:[%s3308_s1 + $0x344] sm:$0xf0]  ;;  %v2078_v44 = vld [vmem:[%s3308_s1 + $0x3c0] sm:$0xf] }
  0x7e   : > { %v2015_v5 = vor.u32 %v2280_v41, %v2014_v59  ;;  %v2079_v6 = vor.u32 %v2296_v2, %v2078_v44  ;;  %v2271_v41 = vld [vmem:[%s3308_s1 + $0x304] sm:$0xf]  ;;  %v2096_v2 = vld [vmem:[%s3308_s1 + $0x3e8] sm:$0xf0] }
  0x7f   : > { %1319 = vmatpush.bf16.msrb.mxu0 %v2031_v47  ;;  %1332 = vmatpush.bf16.msrb.mxu1 %v2095_v50  ;;  %v2003_v47 = vor.u32 %v2275_v32, %v2000_v33  ;;  %v2273_v50 = vld [vmem:[%s3308_s1 + $0x314] sm:$0xf]  ;;  %v2299_v44 = vld [vmem:[%s3308_s1 + $0x3e4] sm:$0xf]  ;;  %v1987_v63 = vor.u32 %v2271_v41, %v1984_v61 }
  0x80   : > { %1345 = vmatpush.bf16.msrb.mxu2 %v2159_v40  ;;  %1358 = vmatpush.bf16.msrb.mxu3 %v2035_v60  ;;  %v2301_v40 = vld [vmem:[%s3308_s1 + $0x3f4] sm:$0xf]  ;;  %v1995_v59 = vor.u32 %v2273_v50, %v1992_v51  ;;  %v2047_v60 = vor.u32 %v2288_v49, %v2046_v46  ;;  %v2112_v46 = vld [vmem:[%s3308_s1 + $0x408] sm:$0xf0] }
  0x81   : > { %v2289_v33 = vld [vmem:[%s3308_s1 + $0x394] sm:$0xf] }
  0x83   : > { %1320 = vmatpush.bf16.msrb.mxu0 %v2023_v58  ;;  %1333 = vmatpush.bf16.msrb.mxu1 %v2087_v39  ;;  %v1983_v58 = vor.u32 %v2272_v45, %v1982_v43  ;;  %v2107_v39 = vor.u32 %v2301_v40, %v2104_v54  ;;  %v2048_v43 = vld [vmem:[%s3308_s1 + $0x388] sm:$0xf0]  ;;  %v2303_v45 = vld [vmem:[%s3308_s1 + $0x404] sm:$0xf] }
  0x84   : > { %1346 = vmatpush.bf16.msrb.mxu2 %v2151_v0  ;;  %1359 = vmatpush.bf16.msrb.mxu3 %v2027_v1  ;;  %v2171_v0 = vor.u32 %v2317_v56, %v2168_v57  ;;  %v2099_v1 = vor.u32 %v2299_v44, %v2096_v2 }
  0x87   : > { %1321 = vmatpush.bf16.msrb.mxu0 %v2015_v5  ;;  %1334 = vmatpush.bf16.msrb.mxu1 %v2079_v6  ;;  %v1072_v5 = vld [vmem:[#allocation1] sm:$0xff]  ;;  %v1073_v6 = vld [vmem:[#allocation1 + $0x9] sm:$0xff] }
  0x88   : > { %1347 = vmatpush.bf16.msrb.mxu2 %v2143_v10  ;;  %1360 = vmatpush.bf16.msrb.mxu3 %v2019_v17  ;;  %v2088_v10 = vld [vmem:[%s3308_s1 + $0x3d8] sm:$0xf0]  ;;  %v2311_v17 = vld [vmem:[%s3308_s1 + $0x444] sm:$0xf] }
  0x89   : > { %v2091_v13 = vor.u32 %v2297_v9, %v2088_v10 }
  0x8b   : > { %1322 = vmatpush.bf16.msrb.mxu0 %v2007_v15  ;;  %1335 = vmatpush.bf16.msrb.mxu1 %v2071_v18  ;;  %v2295_v15 = vld [vmem:[%s3308_s1 + $0x3c4] sm:$0xf]  ;;  %v2144_v18 = vld [vmem:[%s3308_s1 + $0x448] sm:$0xf0] }
  0x8c   : > { %1348 = vmatpush.bf16.msrb.mxu2 %v2135_v22  ;;  %1361 = vmatpush.bf16.msrb.mxu3 %v2011_v30  ;;  %v2083_v19 = vor.u32 %v2295_v15, %v2080_v16  ;;  %v2147_v20 = vor.u32 %v2311_v17, %v2144_v18  ;;  %v2072_v22 = vld [vmem:[%s3308_s1 + $0x3b8] sm:$0xf0]  ;;  %v2307_v30 = vld [vmem:[%s3308_s1 + $0x424] sm:$0xf] }
  0x8d   : > { %v2075_v25 = vor.u32 %v2293_v21, %v2072_v22 }
  0x8f   : > { %1323 = vmatpush.bf16.msrb.mxu0 %v1999_v27  ;;  %1336 = vmatpush.bf16.msrb.mxu1 %v2063_v31  ;;  %v2291_v27 = vld [vmem:[%s3308_s1 + $0x3a4] sm:$0xf]  ;;  %v2128_v31 = vld [vmem:[%s3308_s1 + $0x428] sm:$0xf0] }
  0x90   : > { %1349 = vmatpush.bf16.msrb.mxu2 %v2127_v34  ;;  %1362 = vmatpush.bf16.msrb.mxu3 %v2003_v47  ;;  %v2067_v29 = vor.u32 %v2291_v27, %v2064_v28  ;;  %v2131_v32 = vor.u32 %v2307_v30, %v2128_v31  ;;  %v2056_v34 = vld [vmem:[%s3308_s1 + $0x398] sm:$0xf0] }
  0x91   : > { %v2059_v37 = vor.u32 %v2289_v33, %v2056_v34 }
  0x93   : > { %1324 = vmatpush.bf16.msrb.mxu0 %v1991_v42  ;;  %1337 = vmatpush.bf16.msrb.mxu1 %v2055_v48  ;;  %v2287_v42 = vld [vmem:[%s3308_s1 + $0x384] sm:$0xf]  ;;  %v2115_v48 = vor.u32 %v2303_v45, %v2112_v46 }
  0x94   : > { %1350 = vmatpush.bf16.msrb.mxu2 %v2119_v52  ;;  %1363 = vmatpush.bf16.msrb.mxu3 %v1995_v59  ;;  %v2051_v47 = vor.u32 %v2287_v42, %v2048_v43 }
  0x97   : > { %1325 = vmatpush.bf16.msrb.mxu0 %v1983_v58  ;;  %1338 = vmatpush.bf16.msrb.mxu1 %v2047_v60 }
  0x98   : > { %1351 = vmatpush.bf16.msrb.mxu2 %v2111_v62  ;;  %1364 = vmatpush.bf16.msrb.mxu3 %v1987_v63 }
  0x9a   : > { %1326 = vmatmul.bf16.vlgmr.msrb.gmra.mxu0 %v1072_v5  ;;  %1339 = vmatmul.bf16.vlgmr.msrb.gmra.mxu1 %v1073_v6 }
  0x9b   : > { %1370 = vmatpush.bf16.msra.mxu0 %v2107_v39  ;;  %1383 = vmatpush.bf16.msra.mxu1 %v2171_v0 }
  0x9c   : > { %1352 = vmatmul.bf16.vlgmr.msrb.gmra.mxu2 %v1074_v7  ;;  %1365 = vmatmul.bf16.vlgmr.msrb.gmra.mxu3 %v1072_v5 }
  0x9f   : > { %1371 = vmatpush.bf16.msra.mxu0 %v2099_v1  ;;  %1384 = vmatpush.bf16.msra.mxu1 %v2163_v8 }
  0xa3   : > { %1372 = vmatpush.bf16.msra.mxu0 %v2091_v13  ;;  %1385 = vmatpush.bf16.msra.mxu1 %v2155_v14 }
  0xa7   : > { %1373 = vmatpush.bf16.msra.mxu0 %v2083_v19  ;;  %1386 = vmatpush.bf16.msra.mxu1 %v2147_v20  ;;  %v1398_v19 = vld [vmem:[%s3309_s2] sm:$0x3] }
  0xa8   : > { %v1400_v22 = vperm.slane %v1398_v19, 0  ;;  %v1401_v36 = vperm.slane %v1398_v19, 1 }
  0xab   : > { %1374 = vmatpush.bf16.msra.mxu0 %v2075_v25  ;;  %1387 = vmatpush.bf16.msra.mxu1 %v2139_v26 }
  0xaf   : > { %1375 = vmatpush.bf16.msra.mxu0 %v2067_v29  ;;  %1388 = vmatpush.bf16.msra.mxu1 %v2131_v32 }
  0xb3   : > { %1376 = vmatpush.bf16.msra.mxu0 %v2059_v37  ;;  %1389 = vmatpush.bf16.msra.mxu1 %v2123_v38 }
  0xb7   : > { %1377 = vmatpush.bf16.msra.mxu0 %v2051_v47  ;;  %1390 = vmatpush.bf16.msra.mxu1 %v2115_v48 }
  0xba   : > { %1378 = vmatmul.bf16.vlgmr.msra.gmra.mxu0 %v1073_v6  ;;  %1391 = vmatmul.bf16.vlgmr.msra.gmra.mxu1 %v1074_v7 }
  0xd7   : > { %v617_v49 = vpop.f32.mrf.mxu0  ;;  %v630_v50 = vpop.f32.mrf.mxu1 }
  0xd8   : > { %v631_v51 = vadd.f32 %v630_v50, %v617_v49 }
  0xdc   : > { %v643_v52 = vpop.f32.mrf.mxu2  ;;  %v656_v53 = vpop.f32.mrf.mxu3 }
  0xdd   : > { %v644_v40 = vadd.f32 %v643_v52, %v631_v51 }
  0xdf   : > { %v619_v54 = vpop.f32.mrf.mxu0  ;;  %v632_v55 = vpop.f32.mrf.mxu1 }
  0xe4   : > { %v645_v56 = vpop.f32.mrf.mxu2  ;;  %v658_v57 = vpop.f32.mrf.mxu3 }
  0xe5   : > { %v1430_v57 = vlaneseq }
  0xe7   : > { %v669_v58 = vpop.f32.mrf.mxu0  ;;  %v682_v59 = vpop.f32.mrf.mxu1  ;;  %vm1432_vm3 = vcmp.lt.s32.totalorder %v1430_v57, 256 }
  0xe8   : > { %v670_v60 = vadd.f32 %v669_v58, %v656_v53 }
  0xea   : > { %v683_v39 = vadd.f32 %v682_v59, %v670_v60 }
  0xec   : > { %v944_v41 = vpop.f32.mrf.mxu2  ;;  %v957_v61 = vpop.f32.mrf.mxu3 }
  0xed   : > { %v945_v62 = vadd.f32 %v944_v41, %v644_v40 }
  0xef   : > { %v958_v0 = vadd.f32 %v957_v61, %v945_v62  ;;  %v671_v44 = vpop.f32.mrf.mxu0  ;;  %v684_v2 = vpop.f32.mrf.mxu1 }
  0xf4   : > { %v946_v3 = vpop.f32.mrf.mxu2  ;;  %v959_v4 = vpop.f32.mrf.mxu3 }
  0xf7   : > { %v970_v5 = vpop.f32.mrf.mxu0  ;;  %v983_v63 = vpop.f32.mrf.mxu1 }
  0xf8   : > { %v971_v20 = vadd.f32 %v970_v5, %v958_v0  ;;  %v984_v27 = vadd.f32 %v983_v63, %v683_v39 }
  0xff   : > { %v972_v6 = vpop.f32.mrf.mxu0  ;;  %v985_v8 = vpop.f32.mrf.mxu1 }
 0x100   : > { %v996_v1 = vpop.f32.mrf.mxu2  ;;  %v1009_v7 = vpop.f32.mrf.mxu3 }
 0x101   : > { %v997_v28 = vadd.f32 %v996_v1, %v984_v27 }
 0x103   : > { %v1010_v34 = vadd.f32 %v1009_v7, %v997_v28 }
 0x108   : > { %v998_v9 = vpop.f32.mrf.mxu2  ;;  %v1011_v10 = vpop.f32.mrf.mxu3 }
 0x117   : > { %v1327_v11 = vpop.f32.mrf.mxu0  ;;  %v1340_v12 = vpop.f32.mrf.mxu1 }
 0x118   : > { %v1341_v13 = vadd.f32 %v1340_v12, %v1327_v11 }
 0x11f   : > { %v1353_v14 = vpop.f32.mrf.mxu2  ;;  %v1329_v15 = vpop.f32.mrf.mxu0 }
 0x120   : > { %v1342_v16 = vpop.f32.mrf.mxu1  ;;  %v1366_v17 = vpop.f32.mrf.mxu3  ;;  %v1354_v18 = vadd.f32 %v1353_v14, %v1341_v13 }
 0x122   : > { %v1396_v21 = vadd.f32 %v1354_v18, %v971_v20 }
 0x124   : > { %v1404_v25 = vadd.f32 %v1400_v22, %v1396_v21 }
 0x126   : > { %v1406_v26 = vmax.f32 %v1404_v25, 0.0 }
 0x127   : > { %v1355_v23 = vpop.f32.mrf.mxu2 }
 0x128   : > { %v1368_v24 = vpop.f32.mrf.mxu3  ;;  %v1409_v30 = vsel %vm1408_vm2, %v1406_v26, 0.0 }
 0x129   : > { %v1410_v33 = vrot.slane %v1409_v30, 4 }
 0x12b   : > { %v1411_v38 = vadd.f32 %v1410_v33, %v1409_v30 }
 0x12d   : > { %v1412_v47 = vrot.slane %v1411_v38, 2 }
 0x12f   : > { %v1413_v50 = vadd.f32 %v1412_v47, %v1411_v38 }
 0x131   : > { %v1414_v53 = vrot.slane %v1413_v50, 1 }
 0x133   : > { %v1415_v55 = vadd.f32 %v1414_v53, %v1413_v50 }
 0x135   : > { %v1423_v59 = vmul.f32 0.25, %v1415_v55 }
 0x137   : > { %v1379_v31 = vpop.f32.mrf.mxu0  ;;  %v1392_v32 = vpop.f32.mrf.mxu1 }
 0x138   : > { %v1380_v29 = vadd.f32 %v1379_v31, %v1366_v17 }
 0x13a   : > { %v1393_v35 = vadd.f32 %v1392_v32, %v1380_v29 }
 0x13c   : > { %v1397_v37 = vadd.f32 %v1393_v35, %v1010_v34 }
 0x13e   : > { %v1405_v42 = vadd.f32 %v1401_v36, %v1397_v37 }
 0x13f   : > { %v1381_v43 = vpop.f32.mrf.mxu0  ;;  %v1394_v46 = vpop.f32.mrf.mxu1 }
 0x140   : > { %v1407_v45 = vmax.f32 %v1405_v42, 0.0 }
 0x142   : > { %v1416_v48 = vsel %vm1408_vm2, %v1407_v45, 0.0 }
 0x143   : > { %v1417_v49 = vrot.slane %v1416_v48, 4 }
 0x145   : > { %v1418_v51 = vadd.f32 %v1417_v49, %v1416_v48 }
 0x147   : > { %v1419_v52 = vrot.slane %v1418_v51, 2 }
 0x149   : > { %v1420_v40 = vadd.f32 %v1419_v52, %v1418_v51 }
 0x14b   : > { %v1421_v54 = vrot.slane %v1420_v40, 1 }
 0x14d   : > { %v1422_v56 = vadd.f32 %v1421_v54, %v1420_v40 }
 0x14f   : > { %v1424_v58 = vmul.f32 0.25, %v1422_v56 }
 0x151   : > { %v1427_v60 = vrot.slane %v1424_v58, 7 }
 0x153   : > { %v1428_v39 = vsel %vm243_vm0, %v1423_v59, %v1427_v60 }
 0x154   : > { %1434 = vst.msk [vmem:[%s168_s27] sm:$0x3] %vm1432_vm3, %v1428_v39 }
 0x155 PF: > { %s13_s12 = sadd.s32 1, %s2333_s12  }
 0x156   : > { %p10_p4 = scmp.ge.s32.totalorder %s13_s12, 4  }
 0x158   :  { %12 = sbr.rel (!%p10_p4) target bundleno = 1 (0x1), region = 69 }

// kernel: yoga_pose_cnn_forward.7
= control target key start
LH: loop header
LB: loop body
LE: loop exit
PB: predicated region body
PF: predicated region fallthrough
CT: control target
= control target key end

     0   :  { %8 = vsyncpa [#allocation3], 0  ;;  %s1249_s12 = smov 0   ;;  %s1327_s0 = inlined_call_operand.vmem [shape: bf16[2,6,6,64], index: 0, kind: input, shape index: {}]   ;;  %s1328_s1 = inlined_call_operand.hbm [shape: bf16[3,192,128], index: 1, kind: input, shape index: {}]   ;;  %s1329_s2 = inlined_call_operand.vmem [shape: f32[1,128], index: 2, kind: input, shape index: {}]   ;;  %s1330_s3 = inlined_call_operand.vmem [shape: bf16[2,2,2,128], index: 3, kind: output, shape index: {}]  }
   0x1 LB: > { %s124_s15 = sshll.u32 %s1328_s1, 4  ;;  %s959_s16 = sadd.s32 4294967295, %s1223_s12   ;;  %s1223_s12 = sphi %s1249_s12, %s14_s12   ;;  %s125_s15 = int_to_ptr.hbm [resolvable:$true] %s124_s15 }
   0x2   : > { %p961_p0 = scmp.ge.s32.totalorder %s1223_s12, 1  ;;  %p113_p1 = scmp.lt.s32.totalorder %s1223_s12, 3 }
   0x3   : > { %p1168_p2 = scmp.eq.s32.totalorder %s959_s16, 0  ;;  %s1225_s17 = smov [#allocation2]  }
   0x4   : > { %p114_p3 = pnand %p961_p0, %p113_p1  ;;  %s126_s18 = sshll.u32 %s1225_s17, 4  ;;  %s127_s18 = int_to_ptr.vmem [resolvable:$true] %s126_s18 }
   0x5   : > { %s1226_s19 = smov 64   ;;  %s1227_s20 = smov 4  }
   0x6   : > { %p1164_p4 = pneg %p114_p3  ;;  %153 = sbr.rel (%p114_p3) target bundleno = 383 (0x17f), region = 32 }
   0x8   : > { %p1165_p5 = pnand %p1168_p2, %p1164_p4 }
   0xa   : > { %1167 = dma.hbm_to_vmem [thread:$0]  (!%p1165_p5), %s125_s15, 4608, %s127_s18, [#allocation3], %s1226_s19, %s1226_s19, %s1227_s20  }
   0xb   : > { %1218 = dma.done.wait (%p1168_p2), [#allocation3], 4608  }
   0xc   : > { %1220 = vsyncadd (%p1168_p2), [#allocation3], 4294962688  ;;  %p177_p6 = scmp.lt.s32.totalorder %s959_s16, 1  ;;  %v1142_v12 = vld [vmem:[#allocation2 + $0x98] sm:$0xff]  ;;  %v1141_v21 = vld [vmem:[#allocation2 + $0x90] sm:$0xff]  ;;  %s1228_s25 = smov 64  }
   0xd   : > { %v1146_v13 = vld [vmem:[#allocation2 + $0xb8] sm:$0xff]  ;;  %469 = vmatpush.bf16.msra.mxu0 %v1142_v12  ;;  %v1145_v22 = vld [vmem:[#allocation2 + $0xb0] sm:$0xff]  ;;  %v1140_v34 = vld [vmem:[#allocation2 + $0x88] sm:$0xff]  ;;  %vm301_vm0 = vcmask 523264   ;;  %vm324_vm1 = vcmask 1041408   ;;  %vm845_vm2 = vcmask 1040384  }
   0xe   : > { %s1332_s16 = smov (!%p177_p6, %s959_s16), 1  ;;  %v1130_v17 = vld [vmem:[#allocation2 + $0x38] sm:$0xff]  ;;  %487 = vmatpush.bf16.msra.mxu1 %v1146_v13  ;;  %v1129_v27 = vld [vmem:[#allocation2 + $0x30] sm:$0xff]  ;;  %v1144_v35 = vld [vmem:[#allocation2 + $0xa8] sm:$0xff]  ;;  %vm876_vm3 = vcmask 1041409  }
   0xf   : > { %s1159_s21 = smul.u32 24, %s1332_s16  ;;  %581 = vmatpush.bf16.msra.mxu2 %v1130_v17  ;;  %v1139_v45 = vld [vmem:[#allocation2 + $0x80] sm:$0xff]  ;;  %v1138_v52 = vld [vmem:[#allocation2 + $0x78] sm:$0xff]  ;;  %v1128_v53 = vld [vmem:[#allocation2 + $0x28] sm:$0xff]  ;;  %s967_s28 = sshll.u32 %s1332_s16, 1 }
  0x10   : > { %v1143_v51 = vld [vmem:[#allocation2 + $0xa0] sm:$0xff]  ;;  %v1154_v54 = vld [vmem:[#allocation2 + $0xf8] sm:$0xff]  ;;  %v1137_v55 = vld [vmem:[#allocation2 + $0x70] sm:$0xff]  ;;  %s185_s4 = scalar_lea.vmem %s1330_s3, %s967_s28 }
  0x11   : > { %s1266_s24 = scalar_lea.vmem %s1327_s0, %s1159_s21  ;;  %470 = vmatpush.bf16.msra.mxu0 %v1141_v21  ;;  %v1127_v56 = vld [vmem:[#allocation2 + $0x20] sm:$0xff]  ;;  %v1153_v57 = vld [vmem:[#allocation2 + $0xf0] sm:$0xff]  ;;  %v1136_v58 = vld [vmem:[#allocation2 + $0x68] sm:$0xff] }
  0x12   : > { %v196_v0 = vld [vmem:[%s1266_s24 + $0xc] sm:$0x7]  ;;  %v194_v1 = vld [vmem:[%s1266_s24 + $0x4] sm:$0x7]  ;;  %v197_v2 = vld [vmem:[%s1266_s24 + $0x10] sm:$0x7]  ;;  %488 = vmatpush.bf16.msra.mxu1 %v1145_v22 }
  0x13   : > { %v214_v3 = vunpack.c.l.b16 %v196_v0  ;;  %v212_v4 = vunpack.c.l.b16 %v194_v1  ;;  %v215_v5 = vunpack.c.l.b16 %v197_v2  ;;  %v195_v6 = vld [vmem:[%s1266_s24 + $0x8] sm:$0x7]  ;;  %v193_v7 = vld [vmem:[%s1266_s24] sm:$0x7]  ;;  %v198_v8 = vld [vmem:[%s1266_s24 + $0x14] sm:$0x7]  ;;  %582 = vmatpush.bf16.msra.mxu2 %v1129_v27 }
  0x14   : > { %v213_v9 = vunpack.c.l.b16 %v195_v6  ;;  %v211_v10 = vunpack.c.l.b16 %v193_v7  ;;  %v216_v11 = vunpack.c.l.b16 %v198_v8  ;;  %v1126_v59 = vld [vmem:[#allocation2 + $0x18] sm:$0xff]  ;;  %v1152_v61 = vld [vmem:[#allocation2 + $0xe8] sm:$0xff]  ;;  %v1135_v62 = vld [vmem:[#allocation2 + $0x60] sm:$0xff] }
  0x15   : > { %v220_v14 = vpack.c.b16 %v214_v3, %v214_v3  ;;  %v218_v15 = vpack.c.b16 %v212_v4, %v212_v4  ;;  %v221_v16 = vpack.c.b16 %v215_v5, %v215_v5  ;;  %471 = vmatpush.bf16.msra.mxu0 %v1140_v34  ;;  %v1134_v60 = vld [vmem:[#allocation2 + $0x58] sm:$0xff]  ;;  %v1125_v63 = vld [vmem:[#allocation2 + $0x10] sm:$0xff]  ;;  %v1151_v1 = vld [vmem:[#allocation2 + $0xe0] sm:$0xff] }
  0x16   : > { %v219_v18 = vpack.c.b16 %v213_v9, %v213_v9  ;;  %v217_v19 = vpack.c.b16 %v211_v10, %v211_v10  ;;  %v222_v20 = vpack.c.b16 %v216_v11, %v216_v11  ;;  %489 = vmatpush.bf16.msra.mxu1 %v1144_v35  ;;  %599 = vmatpush.bf16.msra.mxu3 %v1134_v60  ;;  %v1133_v0 = vld [vmem:[#allocation2 + $0x50] sm:$0xff]  ;;  %v202_v2 = vld [vmem:[%s1266_s24 + $0xc] sm:$0x6]  ;;  %v200_v3 = vld [vmem:[%s1266_s24 + $0x4] sm:$0x6] }
  0x17   : > { %v245_v23 = vshrl.u32 %v220_v14, 16  ;;  %v247_v24 = vshll.u32 %v220_v14, 16  ;;  %v231_v25 = vshrl.u32 %v218_v15, 16  ;;  %v233_v26 = vshll.u32 %v218_v15, 16  ;;  %583 = vmatpush.bf16.msra.mxu2 %v1128_v53  ;;  %v1124_v6 = vld [vmem:[#allocation2 + $0x8] sm:$0xff]  ;;  %v1150_v8 = vld [vmem:[#allocation2 + $0xd8] sm:$0xff] }
  0x18   : > { %v254_v28 = vshll.u32 %v221_v16, 16  ;;  %v240_v29 = vshll.u32 %v219_v18, 16  ;;  %v224_v32 = vshrl.u32 %v217_v19, 16  ;;  %v226_v33 = vshll.u32 %v217_v19, 16  ;;  %v1132_v7 = vld [vmem:[#allocation2 + $0x48] sm:$0xff]  ;;  %v1123_v9 = vld [vmem:[#allocation2] sm:$0xff] }
  0x19   : > { %v249_v30 = vrot.slane %v247_v24, 1  ;;  %v235_v31 = vrot.slane %v233_v26, 1  ;;  %v261_v39 = vshll.u32 %v222_v20, 16  ;;  %v252_v40 = vshrl.u32 %v221_v16, 16  ;;  %472 = vmatpush.bf16.msra.mxu0 %v1139_v45  ;;  %v1131_v10 = vld [vmem:[#allocation2 + $0x40] sm:$0xff]  ;;  %v1149_v11 = vld [vmem:[#allocation2 + $0xd0] sm:$0xff] }
  0x1a   : > { %v228_v38 = vrot.slane %v226_v33, 1  ;;  %v256_v41 = vrot.slane %v254_v28, 1  ;;  %v238_v42 = vshrl.u32 %v219_v18, 16  ;;  %v242_v43 = vrot.slane %v240_v29, 1  ;;  %490 = vmatpush.bf16.msra.mxu1 %v1143_v51  ;;  %600 = vmatpush.bf16.msra.mxu3 %v1133_v0  ;;  %v203_v14 = vld [vmem:[%s1266_s24 + $0x10] sm:$0x6] }
  0x1b   : > { %v250_v36 = vor.u32 %v249_v30, %v245_v23  ;;  %v236_v37 = vor.u32 %v235_v31, %v231_v25  ;;  %v259_v46 = vshrl.u32 %v222_v20, 16  ;;  %v263_v47 = vrot.slane %v261_v39, 1  ;;  %584 = vmatpush.bf16.msra.mxu2 %v1127_v56  ;;  %v201_v15 = vld [vmem:[%s1266_s24 + $0x8] sm:$0x6]  ;;  %v190_v17 = vld [vmem:[%s1266_s24 + $0xc] sm:$0x3] }
  0x1c   : > { %v229_v44 = vor.u32 %v228_v38, %v224_v32  ;;  %v257_v48 = vor.u32 %v256_v41, %v252_v40  ;;  %v243_v49 = vor.u32 %v242_v43, %v238_v42  ;;  %v286_v4 = vunpack.c.l.b16 %v202_v2  ;;  %v188_v19 = vld [vmem:[%s1266_s24 + $0x4] sm:$0x3]  ;;  %v1148_v27 = vld [vmem:[#allocation2 + $0xc8] sm:$0xff]  ;;  %v1157_v32 = vld [vmem:[#allocation2 + $0x110] sm:$0xff] }
  0x1d   : > { %271 = vrot.lane.b32.xlu1 %v250_v36, %s1228_s25  ;;  %267 = vrot.lane.b32.xlu0 %v236_v37, %s1228_s25  ;;  %v264_v50 = vor.u32 %v263_v47, %v259_v46  ;;  %v284_v5 = vunpack.c.l.b16 %v200_v3  ;;  %v287_v20 = vunpack.c.l.b16 %v203_v14  ;;  %v285_v21 = vunpack.c.l.b16 %v201_v15  ;;  %v1158_v26 = vld [vmem:[#allocation2 + $0x118] sm:$0xff]  ;;  %v1147_v33 = vld [vmem:[#allocation2 + $0xc0] sm:$0xff]  ;;  %v191_v36 = vld [vmem:[%s1266_s24 + $0x10] sm:$0x3] }
  0x1e   : > { %265 = vrot.lane.b32.xlu2 %v229_v44, %s1228_s25  ;;  %473 = vmatpush.bf16.msra.mxu0 %v1138_v52  ;;  %v292_v12 = vpack.c.b16 %v286_v4, %v286_v4  ;;  %v199_v34 = vld [vmem:[%s1266_s24] sm:$0x6]  ;;  %v189_v38 = vld [vmem:[%s1266_s24 + $0x8] sm:$0x3]  ;;  %v1156_v44 = vld [vmem:[#allocation2 + $0x108] sm:$0xff] }
  0x1f   : > { %721 = vmatpush.bf16.msrb.mxu1 %v1154_v54  ;;  %585 = vmatpush.bf16.msra.mxu2 %v1126_v59  ;;  %v290_v13 = vpack.c.b16 %v284_v5, %v284_v5  ;;  %v293_v30 = vpack.c.b16 %v287_v20, %v287_v20  ;;  %v291_v31 = vpack.c.b16 %v285_v21, %v285_v21  ;;  %v283_v41 = vunpack.c.l.b16 %v199_v34  ;;  %v1155_v47 = vld [vmem:[#allocation2 + $0x100] sm:$0xff]  ;;  %v204_v52 = vld [vmem:[%s1266_s24 + $0x14] sm:$0x6] }
  0x20   : > { %601 = vmatpush.bf16.msra.mxu3 %v1132_v7  ;;  %v971_v16 = vrot.slane %v292_v12, 7  ;;  %v288_v56 = vunpack.c.l.b16 %v204_v52  ;;  %v192_v60 = vld [vmem:[%s1266_s24 + $0x14] sm:$0x3] }
  0x21   : > { %v969_v18 = vrot.slane %v290_v13, 7  ;;  %v972_v35 = vrot.slane %v293_v30, 7  ;;  %v970_v37 = vrot.slane %v291_v31, 7 }
  0x22   : > { %474 = vmatpush.bf16.msra.mxu0 %v1137_v55 }
  0x23   : > { %722 = vmatpush.bf16.msrb.mxu1 %v1153_v57  ;;  %586 = vmatpush.bf16.msra.mxu2 %v1125_v63 }
  0x24   : > { %602 = vmatpush.bf16.msra.mxu3 %v1131_v10 }
  0x25   : > { %273 = vrot.lane.b32.xlu1 %v257_v48, %s1228_s25  ;;  %269 = vrot.lane.b32.xlu0 %v243_v49, %s1228_s25  ;;  %v289_v48 = vpack.c.b16 %v283_v41, %v283_v41 }
  0x26   : > { %275 = vrot.lane.b32.xlu2 %v264_v50, %s1228_s25  ;;  %475 = vmatpush.bf16.msra.mxu0 %v1136_v58  ;;  %v187_v50 = vld [vmem:[%s1266_s24] sm:$0x3]  ;;  %v294_v58 = vpack.c.b16 %v288_v56, %v288_v56 }
  0x27   : > { %723 = vmatpush.bf16.msrb.mxu1 %v1152_v61  ;;  %587 = vmatpush.bf16.msra.mxu2 %v1124_v6  ;;  %v968_v51 = vrot.slane %v289_v48, 7 }
  0x28   : > { %739 = vmatpush.bf16.msrb.mxu3 %v1158_v26  ;;  %v1071_v61 = vrot.slane %v294_v58, 7 }
  0x2a   : > { %476 = vmatpush.bf16.msra.mxu0 %v1135_v62 }
  0x2b   : > { %724 = vmatpush.bf16.msrb.mxu1 %v1151_v1  ;;  %588 = vmatpush.bf16.msra.mxu2 %v1123_v9 }
  0x2c   : > { %740 = vmatpush.bf16.msrb.mxu3 %v1157_v32 }
  0x2f   : > { %725 = vmatpush.bf16.msrb.mxu1 %v1150_v8 }
  0x30   : > { %741 = vmatpush.bf16.msrb.mxu3 %v1156_v44 }
  0x33   : > { %726 = vmatpush.bf16.msrb.mxu1 %v1149_v11 }
  0x34   : > { %742 = vmatpush.bf16.msrb.mxu3 %v1155_v47 }
  0x37   : > { %727 = vmatpush.bf16.msrb.mxu1 %v1148_v27 }
  0x3b   : > { %728 = vmatpush.bf16.msrb.mxu1 %v1147_v33 }
  0x78   : > { %v266_v49 = vpop.permute.xlu2 %265 }
  0x79   : > { %v304_v53 = vsel %vm301_vm0, %v187_v50, %v266_v49 }
  0x7a   : > { %v326_v57 = vsel %vm324_vm1, %v304_v53, %v968_v51 }
  0x80   : > { %v276_v59 = vpop.permute.xlu2 %275 }
  0x81   : > { %v319_v62 = vsel %vm301_vm0, %v192_v60, %v276_v59 }
  0x82   : > { %v611_v1 = vsel %vm324_vm1, %v319_v62, %v1071_v61 }
  0x8f   : > { %v272_v22 = vpop.permute.xlu1 %271  ;;  %v268_v23 = vpop.permute.xlu0 %267 }
  0x90   : > { %v313_v24 = vsel %vm301_vm0, %v190_v17, %v272_v22  ;;  %v307_v25 = vsel %vm301_vm0, %v188_v19, %v268_v23 }
  0x91   : > { %v332_v28 = vsel %vm324_vm1, %v313_v24, %v971_v16  ;;  %v328_v29 = vsel %vm324_vm1, %v307_v25, %v969_v18  ;;  %v1182_v16 = vld [vmem:[%s1329_s2] ss:$0 sm:$0xff] }
  0x92   : > { %389 = vst [vmem:[#allocation1 + $0x2] ss:$4 sm:$0xff] %v332_v28 }
  0x93   : > { %385 = vst [vmem:[#allocation1] ss:$4 sm:$0xff] %v328_v29 }
  0x97   : > { %v274_v39 = vpop.permute.xlu1 %273  ;;  %v270_v40 = vpop.permute.xlu0 %269 }
  0x98   : > { %v316_v42 = vsel %vm301_vm0, %v191_v36, %v274_v39  ;;  %v310_v43 = vsel %vm301_vm0, %v189_v38, %v270_v40 }
  0x99   : > { %v359_v45 = vsel %vm324_vm1, %v316_v42, %v972_v35  ;;  %v330_v46 = vsel %vm324_vm1, %v310_v43, %v970_v37 }
  0x9a   : > { %391 = vst [vmem:[#allocation1 + $0x3] ss:$4 sm:$0xff] %v359_v45 }
  0x9b   : > { %387 = vst [vmem:[#allocation1 + $0x1] ss:$4 sm:$0xff] %v330_v46 }
  0xa2   : > { %v392_v54 = vld.sshfl [vmem:[#allocation1] sm:$0xff pattern:$0x73625140]  ;;  %v393_v55 = vld.sshfl [vmem:[#allocation1 + $0x8] sm:$0xff pattern:$0x73625140] }
  0xa3   : > { %499 = vst [vmem:[#allocation1 + $0x1] ss:$4 sm:$0xff] %v328_v29  ;;  %477 = vmatmul.bf16.vlgmr.msra.gmra.mxu0 %v392_v54  ;;  %1021 = vmatmul.msk.bf16.vlgmr.msra.gmra.mxu1 %vm301_vm0, %v393_v55 }
  0xa4   : > { %501 = vst [vmem:[#allocation1 + $0x2] ss:$4 sm:$0xff] %v330_v46 }
  0xa5   : > { %503 = vst [vmem:[#allocation1 + $0x3] ss:$4 sm:$0xff] %v332_v28 }
  0xa6   : > { %497 = vst [vmem:[#allocation1] ss:$4 sm:$0xff] %v326_v57 }
  0xad   : > { %v504_v63 = vld.sshfl [vmem:[#allocation1] sm:$0xff pattern:$0x73625140]  ;;  %v505_v0 = vld.sshfl [vmem:[#allocation1 + $0x8] sm:$0xff pattern:$0x73625140] }
  0xae   : > { %589 = vmatmul.bf16.vlgmr.msra.gmra.mxu2 %v504_v63  ;;  %1070 = vmatmul.msk.bf16.vlgmr.msra.gmra.mxu3 %vm301_vm0, %v505_v0  ;;  %637 = vst [vmem:[#allocation1] ss:$4 sm:$0xff] %v330_v46 }
  0xaf   : > { %639 = vst [vmem:[#allocation1 + $0x1] ss:$4 sm:$0xff] %v332_v28 }
  0xb0   : > { %641 = vst [vmem:[#allocation1 + $0x2] ss:$4 sm:$0xff] %v359_v45 }
  0xb1   : > { %643 = vst [vmem:[#allocation1 + $0x3] ss:$4 sm:$0xff] %v611_v1 }
  0xb8   : > { %v644_v2 = vld.sshfl [vmem:[#allocation1] sm:$0xff pattern:$0x73625140]  ;;  %v645_v3 = vld.sshfl [vmem:[#allocation1 + $0x8] sm:$0xff pattern:$0x73625140] }
  0xb9   : > { %729 = vmatmul.bf16.vlgmr.msrb.gmra.mxu1 %v644_v2 }
  0xbe   : > { %1120 = vmatmul.msk.bf16.vlgmr.msrb.gmra.mxu3 %vm301_vm0, %v645_v3 }
 0x120   : > { %v492_v4 = vpop.f32.mrf.mxu1  ;;  %v478_v7 = vpop.f32.mrf.mxu0 }
 0x121   : > { %v493_v10 = vadd.f32 %v492_v4, %v478_v7 }
 0x128   : > { %v494_v6 = vpop.f32.mrf.mxu1  ;;  %v480_v17 = vpop.f32.mrf.mxu0 }
 0x129   : > { %v495_v20 = vadd.f32 %v494_v6, %v480_v17 }
 0x131   : > { %v604_v5 = vpop.f32.mrf.mxu3  ;;  %v590_v9 = vpop.f32.mrf.mxu2 }
 0x132   : > { %v591_v11 = vadd.f32 %v590_v9, %v493_v10 }
 0x134   : > { %v605_v14 = vadd.f32 %v604_v5, %v591_v11 }
 0x136   : > { %v730_v12 = vpop.f32.mrf.mxu1 }
 0x139   : > { %v606_v8 = vpop.f32.mrf.mxu3  ;;  %v592_v19 = vpop.f32.mrf.mxu2 }
 0x13a   : > { %v593_v22 = vadd.f32 %v592_v19, %v495_v20 }
 0x13c   : > { %v607_v32 = vadd.f32 %v606_v8, %v593_v22 }
 0x13e   : > { %v732_v25 = vpop.f32.mrf.mxu1 }
 0x141   : > { %v744_v13 = vpop.f32.mrf.mxu3 }
 0x142   : > { %v745_v15 = vadd.f32 %v744_v13, %v730_v12 }
 0x144   : > { %v749_v18 = vadd.f32 %v745_v15, %v605_v14 }
 0x146   : > { %v755_v21 = vadd.f32 %v1182_v16, %v749_v18 }
 0x148   : > { %v757_v23 = vmax.f32 %v755_v21, 0.0 }
 0x149   : > { %v746_v24 = vpop.f32.mrf.mxu3 }
 0x14a   : > { %v761_v26 = vrot.slane %v757_v23, 2  ;;  %v762_v27 = vrot.slane %v757_v23, 4  ;;  %v763_v28 = vrot.slane %v757_v23, 6  ;;  %v773_v29 = vsel %vm324_vm1, %v757_v23, -inf }
 0x14b   : > { %v774_v30 = vrot.slane %v773_v29, 4  ;;  %v747_v31 = vadd.f32 %v746_v24, %v732_v25 }
 0x14c   : > { %v780_v33 = vsel %vm324_vm1, %v761_v26, -inf  ;;  %v787_v34 = vsel %vm324_vm1, %v762_v27, -inf  ;;  %v794_v35 = vsel %vm324_vm1, %v763_v28, -inf }
 0x14d   : > { %v775_v36 = vmax.f32 %v773_v29, %v774_v30  ;;  %v781_v37 = vrot.slane %v780_v33, 4  ;;  %v788_v38 = vrot.slane %v787_v34, 4  ;;  %v795_v39 = vrot.slane %v794_v35, 4 }
 0x14e   : > { %v750_v40 = vadd.f32 %v747_v31, %v607_v32 }
 0x14f   : > { %v776_v41 = vrot.slane %v775_v36, 2  ;;  %v782_v42 = vmax.f32 %v780_v33, %v781_v37  ;;  %v789_v43 = vmax.f32 %v787_v34, %v788_v38  ;;  %v796_v44 = vmax.f32 %v794_v35, %v795_v39 }
 0x150   : > { %v756_v45 = vadd.f32 %v1182_v16, %v750_v40 }
 0x151   : > { %v777_v46 = vmax.f32 %v775_v36, %v776_v41  ;;  %v783_v47 = vrot.slane %v782_v42, 2  ;;  %v790_v48 = vrot.slane %v789_v43, 2  ;;  %v797_v49 = vrot.slane %v796_v44, 2 }
 0x152   : > { %v758_v50 = vmax.f32 %v756_v45, 0.0 }
 0x153   : > { %v778_v51 = vrot.slane %v777_v46, 1  ;;  %v784_v52 = vmax.f32 %v782_v42, %v783_v47  ;;  %v791_v53 = vmax.f32 %v789_v43, %v790_v48  ;;  %v798_v54 = vmax.f32 %v796_v44, %v797_v49 }
 0x154   : > { %v764_v55 = vrot.slane %v758_v50, 2  ;;  %v765_v56 = vrot.slane %v758_v50, 4  ;;  %v766_v57 = vrot.slane %v758_v50, 6  ;;  %v801_v58 = vsel %vm324_vm1, %v758_v50, -inf }
 0x155   : > { %v779_v59 = vmax.f32 %v777_v46, %v778_v51  ;;  %v785_v60 = vrot.slane %v784_v52, 1  ;;  %v792_v61 = vrot.slane %v791_v53, 1  ;;  %v799_v62 = vrot.slane %v798_v54, 1 }
 0x156   : > { %v802_v63 = vrot.slane %v801_v58, 4  ;;  %v808_v0 = vsel %vm324_vm1, %v764_v55, -inf  ;;  %v815_v1 = vsel %vm324_vm1, %v765_v56, -inf  ;;  %v822_v2 = vsel %vm324_vm1, %v766_v57, -inf }
 0x157   : > { %v786_v3 = vmax.f32 %v784_v52, %v785_v60  ;;  %v793_v4 = vmax.f32 %v791_v53, %v792_v61  ;;  %v800_v5 = vmax.f32 %v798_v54, %v799_v62  ;;  %v809_v6 = vrot.slane %v808_v0, 4 }
 0x158   : > { %v803_v7 = vmax.f32 %v801_v58, %v802_v63  ;;  %v816_v8 = vrot.slane %v815_v1, 4  ;;  %v823_v9 = vrot.slane %v822_v2, 4 }
 0x159   : > { %v829_v10 = vmax.f32 %v779_v59, %v793_v4  ;;  %v830_v11 = vmax.f32 %v786_v3, %v800_v5  ;;  %v810_v12 = vmax.f32 %v808_v0, %v809_v6 }
 0x15a   : > { %v804_v13 = vrot.slane %v803_v7, 2  ;;  %v817_v14 = vmax.f32 %v815_v1, %v816_v8  ;;  %v824_v15 = vmax.f32 %v822_v2, %v823_v9 }
 0x15b   : > { %v833_v16 = vpack.c.bf16 %v829_v10, %v829_v10  ;;  %v834_v17 = vpack.c.bf16 %v830_v11, %v830_v11  ;;  %v811_v18 = vrot.slane %v810_v12, 2 }
 0x15c   : > { %v805_v19 = vmax.f32 %v803_v7, %v804_v13  ;;  %v818_v20 = vrot.slane %v817_v14, 2  ;;  %v825_v21 = vrot.slane %v824_v15, 2 }
 0x15d   : > { %v841_v22 = vrot.slane %v833_v16, 3  ;;  %v842_v23 = vrot.slane %v834_v17, 3  ;;  %v812_v24 = vmax.f32 %v810_v12, %v811_v18 }
 0x15e   : > { %v806_v25 = vrot.slane %v805_v19, 1  ;;  %v819_v26 = vmax.f32 %v817_v14, %v818_v20  ;;  %v826_v27 = vmax.f32 %v824_v15, %v825_v21 }
 0x15f   : > { %v848_v28 = vsel %vm845_vm2, %v833_v16, %v841_v22  ;;  %v851_v29 = vsel %vm845_vm2, %v834_v17, %v842_v23  ;;  %v813_v30 = vrot.slane %v812_v24, 1 }
 0x160   : > { %858 = vst [vmem:[#allocation1] ss:$4 sm:$0xff] %v848_v28  ;;  %v820_v31 = vrot.slane %v819_v26, 1  ;;  %v827_v32 = vrot.slane %v826_v27, 1  ;;  %v807_v34 = vmax.f32 %v805_v19, %v806_v25 }
 0x161   : > { %862 = vst [vmem:[#allocation1 + $0x20] ss:$4 sm:$0xff] %v851_v29  ;;  %v814_v33 = vmax.f32 %v812_v24, %v813_v30 }
 0x162   : > { %v821_v35 = vmax.f32 %v819_v26, %v820_v31  ;;  %v828_v36 = vmax.f32 %v826_v27, %v827_v32 }
 0x164   : > { %v831_v37 = vmax.f32 %v807_v34, %v821_v35  ;;  %v832_v38 = vmax.f32 %v814_v33, %v828_v36 }
 0x166   : > { %v835_v39 = vpack.c.bf16 %v831_v37, %v831_v37  ;;  %v836_v40 = vpack.c.bf16 %v832_v38, %v832_v38 }
 0x167   : > { %v859_v43 = vld [vmem:[#allocation1] sm:$0xf] }
 0x168   : > { %v843_v41 = vrot.slane %v835_v39, 3  ;;  %v844_v42 = vrot.slane %v836_v40, 3  ;;  %v863_v44 = vld [vmem:[#allocation1 + $0x20] sm:$0xf]  ;;  %v871_v48 = vunpack.c.l.b16 %v859_v43 }
 0x169   : > { %v872_v45 = vunpack.c.l.b16 %v863_v44 }
 0x16a   : > { %v854_v46 = vsel %vm845_vm2, %v835_v39, %v843_v41  ;;  %v857_v47 = vsel %vm845_vm2, %v836_v40, %v844_v42 }
 0x16b   : > { %865 = vst [vmem:[#allocation1] ss:$4 sm:$0xff] %v854_v46  ;;  %v875_v49 = vrot.slane %v872_v45, 7 }
 0x16c   : > { %868 = vst [vmem:[#allocation1 + $0x20] ss:$4 sm:$0xff] %v857_v47 }
 0x16d   : > { %v877_v50 = vsel %vm876_vm3, %v875_v49, %v871_v48 }
 0x16e   : > { %v880_v51 = vpack.c.b16 %v877_v50, %v877_v50 }
 0x170   : > { %v882_v52 = vrot.slane %v880_v51, 3 }
 0x172   : > { %v886_v53 = vsel %vm845_vm2, %v880_v51, %v882_v52  ;;  %v866_v54 = vld [vmem:[#allocation1] sm:$0xf] }
 0x173   : > { %v869_v55 = vld [vmem:[#allocation1 + $0x20] sm:$0xf]  ;;  %892 = vst [vmem:[%s185_s4] sm:$0x1] %v886_v53  ;;  %v873_v57 = vunpack.c.l.b16 %v866_v54 }
 0x174   : > { %v874_v56 = vunpack.c.l.b16 %v869_v55 }
 0x176   : > { %v878_v58 = vrot.slane %v874_v56, 7 }
 0x178   : > { %v879_v59 = vsel %vm876_vm3, %v878_v58, %v873_v57 }
 0x179   : > { %v881_v60 = vpack.c.b16 %v879_v59, %v879_v59 }
 0x17b   : > { %v883_v61 = vrot.slane %v881_v60, 3 }
 0x17d   : > { %v889_v62 = vsel %vm845_vm2, %v881_v60, %v883_v61 }
 0x17e   : > { %893 = vst [vmem:[%s185_s4 + $0x1] sm:$0x1] %v889_v62 }
 0x17f PF: > { %s14_s12 = sadd.s32 1, %s1223_s12  }
 0x180   : > { %p11_p7 = scmp.ge.s32.totalorder %s14_s12, 4  }
 0x182   :  { %13 = sbr.rel (!%p11_p7) target bundleno = 1 (0x1), region = 79 }
 0x187   :  { %913 = vsyncpa [#allocation3], 1 }
 0x188   :  { %915 = vsyncpa [#allocation3 + $0x1], 1 }

// kernel: yoga_pose_cnn_forward.5
= control target key start
LH: loop header
LB: loop body
LE: loop exit
PB: predicated region body
PF: predicated region fallthrough
CT: control target
= control target key end

     0   :  { %8 = vsyncpa [#allocation3], 0  ;;  %s3122_s12 = smov 0   ;;  %s4146_s0 = inlined_call_operand.vmem [shape: bf16[2,18,18,3], index: 0, kind: input, shape index: {}]   ;;  %s4147_s1 = inlined_call_operand.hbm [shape: bf16[3,9,32], index: 1, kind: input, shape index: {}]   ;;  %s4148_s2 = inlined_call_operand.vmem [shape: f32[1,32], index: 2, kind: input, shape index: {}]   ;;  %s4149_s3 = inlined_call_operand.vmem [shape: bf16[2,8,8,32], index: 3, kind: output, shape index: {}]  }
   0x1 LB: > { %s124_s15 = sshll.u32 %s4147_s1, 4  ;;  %s2849_s16 = sadd.s32 4294967295, %s3094_s12   ;;  %s3094_s12 = sphi %s3122_s12, %s14_s12   ;;  %s125_s15 = int_to_ptr.hbm [resolvable:$true] %s124_s15 }
   0x2   : > { %p2851_p0 = scmp.ge.s32.totalorder %s3094_s12, 1  ;;  %p113_p1 = scmp.lt.s32.totalorder %s3094_s12, 3 }
   0x3   : > { %p3008_p2 = scmp.eq.s32.totalorder %s2849_s16, 0  ;;  %s3096_s17 = smov [#allocation2]  }
   0x4   : > { %p114_p3 = pnand %p2851_p0, %p113_p1  ;;  %s126_s18 = sshll.u32 %s3096_s17, 4  ;;  %s127_s18 = int_to_ptr.vmem [resolvable:$true] %s126_s18 }
   0x5   : > { %s3097_s19 = smov 64   ;;  %s3098_s20 = smov 4  }
   0x6   : > { %p3004_p4 = pneg %p114_p3  ;;  %153 = sbr.rel (%p114_p3) target bundleno = 650 (0x28a), region = 32 }
   0x8   : > { %p3005_p5 = pnand %p3008_p2, %p3004_p4 }
   0xa   : > { %3007 = dma.hbm_to_vmem [thread:$0]  (!%p3005_p5), %s125_s15, 384, %s127_s18, [#allocation3], %s3097_s19, %s3097_s19, %s3098_s20  }
   0xb   : > { %3080 = dma.done.wait (%p3008_p2), [#allocation3], 384  }
   0xc   : > { %3082 = vsyncadd (%p3008_p2), [#allocation3], 4294966912  ;;  %p178_p6 = scmp.lt.s32.totalorder %s2849_s16, 1  ;;  %vm712_vm0 = vcmask 1046528   ;;  %vm405_vm1 = vsmask.f32 7424 }
   0xd   : > { %s3099_s25 = smov 6   ;;  %s3100_s26 = smov 3   ;;  %vm920_vm2 = vcmask 1043456   ;;  %vm921_vm3 = vcmask 1044480   ;;  %vm803_vm4 = vcmask 23552   ;;  %vm840_vm5 = vcmask 48128  }
   0xe   : > { %s4151_s16 = smov (!%p178_p6, %s2849_s16), 1  ;;  %vm887_vm6 = vcmask 72704   ;;  %vm1541_vm7 = vcmask 254976   ;;  %vm2694_vm8 = vcmask 1041409   ;;  %vm2696_vm9 = vcmask 1042434  }
   0xf   : > { %s2999_s21 = smul.u32 216, %s4151_s16  ;;  %vm2698_vm10 = vcmask 1043459   ;;  %vm2700_vm11 = vcmask 1044484   ;;  %vm2702_vm12 = vcmask 1045509   ;;  %vm2704_vm13 = vcmask 1046534   ;;  %s2921_s29 = sshll.u32 %s4151_s16, 5 }
  0x10   : > { %vm2706_vm14 = vcmask 1047559   ;;  %vm2773_vm15 = vcmask 257024   ;;  %s3620_s5 = scalar_lea.vmem %s4149_s3, %s2921_s29 }
  0x11   : > { %s3139_s24 = scalar_lea.vmem %s4146_s0, %s2999_s21 }
  0x12   : > { %v2972_v0 = vld [vmem:[%s3139_s24 + $0x18] sm:$0xf0]  ;;  %v227_v1 = vld [vmem:[%s3139_s24 + $0x20] sm:$0x1]  ;;  %v2973_v2 = vld [vmem:[%s3139_s24 + $0x18] sm:$0xe] }
  0x13   : > { %v371_v3 = vunpack.c.l.b16 %v227_v1  ;;  %v2974_v4 = vor.u32 %v2973_v2, %v2972_v0  ;;  %v3145_v5 = vld [vmem:[%s3139_s24 + $0x18] sm:$0xff]   ;;  %v3027_v7 = vld [vmem:[%s3139_s24 + $0x9c] sm:$0xf0]  ;;  %v238_v8 = vld [vmem:[%s3139_s24 + $0xa4] sm:$0x1] }
  0x14   : > { %v3148_v6 = vld [vmem:[%s3139_s24 + $0x9c] sm:$0xff]   ;;  %v431_v9 = vshrl.u32 %v3145_v5, 16  ;;  %v433_v10 = vshll.u32 %v3145_v5, 16  ;;  %v382_v14 = vunpack.c.l.b16 %v238_v8  ;;  %v226_v15 = vld [vmem:[%s3139_s24 + $0x14] sm:$0x1]  ;;  %v3157_v17 = vld [vmem:[%s3139_s24 + $0xc] sm:$0xff]  }
  0x15   : > { %v3028_v11 = vld [vmem:[%s3139_s24 + $0x9c] sm:$0xe]  ;;  %v389_v12 = vpack.c.b16 %v371_v3, %v371_v3  ;;  %v719_v13 = vrot.slane %v2974_v4, 1  ;;  %v3083_v18 = vld [vmem:[%s3139_s24 + $0xc] sm:$0xf0]  ;;  %v565_v25 = vshll.u32 %v3148_v6, 16  ;;  %v370_v26 = vunpack.c.l.b16 %v226_v15 }
  0x16   : > { %v435_v16 = vrot.slane %v433_v10, 1  ;;  %v400_v21 = vpack.c.b16 %v382_v14, %v382_v14  ;;  %v3029_v22 = vor.u32 %v3028_v11, %v3027_v7  ;;  %v3084_v23 = vld [vmem:[%s3139_s24 + $0xc] sm:$0xe]  ;;  %v225_v27 = vld [vmem:[%s3139_s24 + $0x8] sm:$0x1]  ;;  %v563_v30 = vshrl.u32 %v3148_v6, 16 }
  0x17   : > { %v720_v19 = vrot.slane %v389_v12, 1  ;;  %v438_v20 = vshll.u32 %v389_v12, 16  ;;  %v567_v31 = vrot.slane %v565_v25, 1  ;;  %v369_v36 = vunpack.c.l.b16 %v225_v27  ;;  %v2969_v38 = vld [vmem:[%s3139_s24] sm:$0xf0]  ;;  %v3183_v56 = vld [vmem:[%s3139_s24 + $0xa8] sm:$0xff]  }
  0x18   : > { %v436_v24 = vor.u32 %v435_v16, %v431_v9  ;;  %v570_v32 = vshll.u32 %v400_v21, 16  ;;  %v752_v34 = vrot.slane %v3029_v22, 1  ;;  %v753_v35 = vrot.slane %v400_v21, 1  ;;  %v2970_v39 = vld [vmem:[%s3139_s24] sm:$0xe]  ;;  %v3172_v44 = vld [vmem:[%s3139_s24 + $0x24] sm:$0xff]  }
  0x19   : > { %v721_v28 = vsel %vm712_vm0, %v719_v13, %v720_v19  ;;  %v440_v29 = vrot.slane %v438_v20, 1  ;;  %v388_v37 = vpack.c.b16 %v370_v26, %v370_v26  ;;  %v228_v40 = vld [vmem:[%s3139_s24 + $0x2c] sm:$0x1]  ;;  %v568_v41 = vor.u32 %v567_v31, %v563_v30  ;;  %v3086_v45 = vld [vmem:[%s3139_s24 + $0x24] sm:$0xf0]  ;;  %v3179_v52 = vld [vmem:[%s3139_s24] sm:$0xff]  }
  0x1a   : > { %771 = vrot.lane.b32.xlu1 %v721_v28, %s3099_s25  ;;  %v572_v42 = vrot.slane %v570_v32, 1  ;;  %v3085_v43 = vor.u32 %v3084_v23, %v3083_v18  ;;  %v3087_v46 = vld [vmem:[%s3139_s24 + $0x24] sm:$0xe]  ;;  %v239_v47 = vld [vmem:[%s3139_s24 + $0xb0] sm:$0x1]  ;;  %v754_v48 = vsel %vm712_vm0, %v752_v34, %v753_v35  ;;  %v387_v49 = vpack.c.b16 %v369_v36, %v369_v36  ;;  %v3191_v4 = vld [vmem:[%s3139_s24 + $0xb4] sm:$0xff]  }
  0x1b   : > { %v441_v33 = vsel %vm405_vm1, %v436_v24, %v440_v29  ;;  %v2971_v50 = vor.u32 %v2970_v39, %v2969_v38  ;;  %v372_v51 = vunpack.c.l.b16 %v228_v40  ;;  %v717_v53 = vrot.slane %v388_v37, 1  ;;  %v3194_v7 = vld [vmem:[%s3139_s24 + $0xb4] sm:$0xf0]  ;;  %v240_v16 = vld [vmem:[%s3139_s24 + $0xbc] sm:$0x1]  ;;  %v3209_v25 = vld [vmem:[%s3139_s24 + $0x30] sm:$0xff]  }
  0x1c   : > { %626 = vrot.lane.b32.xlu0 %v441_v33, %s3100_s26  ;;  %v573_v54 = vsel %vm405_vm1, %v568_v41, %v572_v42  ;;  %v716_v55 = vrot.slane %v3085_v43, 1  ;;  %v383_v57 = vunpack.c.l.b16 %v239_v47  ;;  %v407_v58 = vshrl.u32 %v3179_v52, 16  ;;  %v229_v11 = vld [vmem:[%s3139_s24 + $0x38] sm:$0x1]  ;;  %v3214_v31 = vld [vmem:[%s3139_s24 + $0x3c] sm:$0xff]  }
  0x1d   : > { %v409_v59 = vshll.u32 %v3179_v52, 16  ;;  %v414_v60 = vshll.u32 %v387_v49, 16  ;;  %v713_v61 = vrot.slane %v2971_v50, 1  ;;  %v714_v62 = vrot.slane %v387_v49, 1  ;;  %v3217_v32 = vld [vmem:[%s3139_s24 + $0x3c] sm:$0xf0] }
  0x1e   : > { %v390_v63 = vpack.c.b16 %v372_v51, %v372_v51  ;;  %v3088_v0 = vor.u32 %v3087_v46, %v3086_v45  ;;  %v577_v1 = vshll.u32 %v3183_v56, 16  ;;  %v718_v8 = vsel %vm712_vm0, %v716_v55, %v717_v53  ;;  %v230_v38 = vld [vmem:[%s3139_s24 + $0x44] sm:$0x1]  ;;  %v3031_v55 = vld [vmem:[%s3139_s24 + $0xb4] sm:$0xe] }
  0x1f   : > { %v411_v2 = vrot.slane %v409_v59, 1  ;;  %v416_v3 = vrot.slane %v414_v60, 1  ;;  %v3197_v9 = vpack.c.b16 %v383_v57, %v383_v57  ;;  %v575_v10 = vshrl.u32 %v3183_v56, 16 }
  0x20   : > { %v419_v13 = vshrl.u32 %v3157_v17, 16  ;;  %v421_v14 = vshll.u32 %v3157_v17, 16  ;;  %v426_v15 = vshll.u32 %v388_v37, 16  ;;  %v715_v18 = vsel %vm712_vm0, %v713_v61, %v714_v62 }
  0x21   : > { %v412_v12 = vor.u32 %v411_v2, %v407_v58  ;;  %v723_v19 = vrot.slane %v390_v63, 1  ;;  %v722_v20 = vrot.slane %v3088_v0, 1  ;;  %v579_v21 = vrot.slane %v577_v1, 1  ;;  %v2991_v0 = vld [vmem:[%s3139_s24 + $0xa8] sm:$0xe] }
  0x22   : > { %793 = vrot.lane.b32.xlu1 %v754_v48, %s3099_s25  ;;  %v423_v23 = vrot.slane %v421_v14, 1  ;;  %v582_v24 = vshll.u32 %v3197_v9, 16  ;;  %v373_v26 = vunpack.c.l.b16 %v229_v11  ;;  %v384_v27 = vunpack.c.l.b16 %v240_v16  ;;  %v241_v14 = vld [vmem:[%s3139_s24 + $0xc8] sm:$0x1] }
  0x23   : > { %v417_v22 = vsel %vm405_vm1, %v412_v12, %v416_v3  ;;  %v428_v29 = vrot.slane %v426_v15, 1  ;;  %v445_v30 = vshll.u32 %v3172_v44, 16  ;;  %v589_v34 = vshll.u32 %v3191_v4, 16 }
  0x24   : > { %648 = vrot.lane.b32.xlu0 %v573_v54, %s3100_s26  ;;  %622 = vrot.lane.b32.xlu2 %v417_v22, %s3100_s26  ;;  %v424_v28 = vor.u32 %v423_v23, %v419_v13  ;;  %v3219_v33 = vpack.c.b16 %v384_v27, %v384_v27  ;;  %v724_v35 = vsel %vm712_vm0, %v722_v20, %v723_v19  ;;  %v457_v37 = vshll.u32 %v3209_v25, 16  ;;  %v2993_v27 = vld [vmem:[%s3139_s24 + $0xc0] sm:$0xf0] }
  0x25   : > { %v580_v36 = vor.u32 %v579_v21, %v575_v10  ;;  %v584_v39 = vrot.slane %v582_v24, 1  ;;  %v3226_v40 = vpack.c.b16 %v373_v26, %v373_v26  ;;  %v443_v41 = vshrl.u32 %v3172_v44, 16  ;;  %v2975_v24 = vld [vmem:[%s3139_s24 + $0x30] sm:$0xf0]  ;;  %v2976_v26 = vld [vmem:[%s3139_s24 + $0x30] sm:$0xe] }
  0x26   : > { %v429_v42 = vsel %vm405_vm1, %v424_v28, %v428_v29  ;;  %v447_v43 = vrot.slane %v445_v30, 1  ;;  %v450_v45 = vshll.u32 %v390_v63, 16  ;;  %v587_v46 = vshrl.u32 %v3191_v4, 16  ;;  %v2990_v63 = vld [vmem:[%s3139_s24 + $0xa8] sm:$0xf0] }
  0x27   : > { %v591_v47 = vrot.slane %v589_v34, 1  ;;  %v594_v48 = vshll.u32 %v3219_v33, 16  ;;  %v374_v49 = vunpack.c.l.b16 %v230_v38  ;;  %v585_v50 = vsel %vm405_vm1, %v580_v36, %v584_v39  ;;  %v3265_v38 = vld [vmem:[%s3139_s24 + $0xc0] sm:$0xff]  }
  0x28   : > { %v455_v51 = vshrl.u32 %v3209_v25, 16  ;;  %v459_v53 = vrot.slane %v457_v37, 1  ;;  %v462_v54 = vshll.u32 %v3226_v40, 16  ;;  %v448_v57 = vor.u32 %v447_v43, %v443_v41  ;;  %v231_v41 = vld [vmem:[%s3139_s24 + $0x50] sm:$0x1] }
  0x29   : > { %v452_v58 = vrot.slane %v450_v45, 1  ;;  %v592_v59 = vor.u32 %v591_v47, %v587_v46  ;;  %v596_v60 = vrot.slane %v594_v48, 1  ;;  %v3238_v61 = vpack.c.b16 %v374_v49, %v374_v49  ;;  %v3274_v46 = vld [vmem:[%s3139_s24 + $0x90] sm:$0xff]  }
  0x2a   : > { %769 = vrot.lane.b32.xlu1 %v718_v8, %s3099_s25  ;;  %v469_v62 = vshll.u32 %v3214_v31, 16  ;;  %v460_v1 = vor.u32 %v459_v53, %v455_v51  ;;  %v464_v2 = vrot.slane %v462_v54, 1  ;;  %v2992_v8 = vor.u32 %v2991_v0, %v2990_v63  ;;  %v3278_v48 = vld [vmem:[%s3139_s24 + $0x54] sm:$0xff]   ;;  %v232_v0 = vld [vmem:[%s3139_s24 + $0x5c] sm:$0x1] }
  0x2b   : > { %v453_v3 = vsel %vm405_vm1, %v448_v57, %v452_v58  ;;  %v597_v10 = vsel %vm405_vm1, %v592_v59, %v596_v60  ;;  %v467_v11 = vshrl.u32 %v3214_v31, 16  ;;  %v474_v13 = vshll.u32 %v3238_v61, 16 }
  0x2c   : > { %767 = vrot.lane.b32.xlu0 %v715_v18, %s3099_s25  ;;  %624 = vrot.lane.b32.xlu2 %v429_v42, %s3100_s26  ;;  %v471_v12 = vrot.slane %v469_v62, 1  ;;  %v465_v15 = vsel %vm405_vm1, %v460_v1, %v464_v2  ;;  %v3032_v16 = vor.u32 %v3031_v55, %v3194_v7  ;;  %v3034_v18 = vld [vmem:[%s3139_s24 + $0x3c] sm:$0xe]  ;;  %v755_v19 = vrot.slane %v2992_v8, 1  ;;  %v2994_v7 = vld [vmem:[%s3139_s24 + $0xc0] sm:$0xe] }
  0x2d   : > { %v756_v20 = vrot.slane %v3197_v9, 1  ;;  %v476_v22 = vrot.slane %v474_v13, 1  ;;  %v385_v23 = vunpack.c.l.b16 %v241_v14  ;;  %v759_v29 = vrot.slane %v3219_v33, 1  ;;  %v237_v9 = vld [vmem:[%s3139_s24 + $0x98] sm:$0x1]  ;;  %v3293_v8 = vld [vmem:[%s3139_s24 + $0x48] sm:$0xff]  }
  0x2e   : > { %v472_v21 = vor.u32 %v471_v12, %v467_v11  ;;  %v758_v28 = vrot.slane %v3032_v16, 1  ;;  %v2977_v34 = vor.u32 %v2976_v26, %v2975_v24  ;;  %v2995_v37 = vor.u32 %v2994_v7, %v2993_v27  ;;  %v2978_v55 = vld [vmem:[%s3139_s24 + $0x48] sm:$0xf0]  ;;  %v3037_v11 = vld [vmem:[%s3139_s24 + $0x54] sm:$0xe] }
  0x2f   : > { %v757_v30 = vsel %vm712_vm0, %v755_v19, %v756_v20  ;;  %v403_v36 = vpack.c.b16 %v385_v23, %v385_v23  ;;  %v3035_v39 = vor.u32 %v3034_v18, %v3217_v32  ;;  %v381_v33 = vunpack.c.l.b16 %v237_v9  ;;  %v3036_v32 = vld [vmem:[%s3139_s24 + $0x54] sm:$0xf0] }
  0x30   : > { %v760_v42 = vsel %vm712_vm0, %v758_v28, %v759_v29  ;;  %v725_v43 = vrot.slane %v2977_v34, 1  ;;  %v726_v45 = vrot.slane %v3226_v40, 1  ;;  %v601_v47 = vshll.u32 %v3265_v38, 16  ;;  %v2979_v40 = vld [vmem:[%s3139_s24 + $0x48] sm:$0xe] }
  0x31   : > { %v761_v49 = vrot.slane %v2995_v37, 1  ;;  %v375_v51 = vunpack.c.l.b16 %v231_v41  ;;  %v728_v53 = vrot.slane %v3035_v39, 1  ;;  %v729_v54 = vrot.slane %v3238_v61, 1  ;;  %v233_v41 = vld [vmem:[%s3139_s24 + $0x68] sm:$0x1] }
  0x32   : > { %773 = vrot.lane.b32.xlu1 %v724_v35, %s3099_s25  ;;  %v477_v35 = vsel %vm405_vm1, %v472_v21, %v476_v22  ;;  %v3285_v57 = vpack.c.b16 %v381_v33, %v381_v33  ;;  %v553_v58 = vshll.u32 %v3274_v46, 16  ;;  %v727_v59 = vsel %vm712_vm0, %v725_v43, %v726_v45  ;;  %v2987_v43 = vld [vmem:[%s3139_s24 + $0x90] sm:$0xf0]  ;;  %v2988_v45 = vld [vmem:[%s3139_s24 + $0x90] sm:$0xe] }
  0x33   : > { %v599_v60 = vshrl.u32 %v3265_v38, 16  ;;  %v603_v62 = vrot.slane %v601_v47, 1  ;;  %v606_v63 = vshll.u32 %v403_v36, 16  ;;  %v393_v2 = vpack.c.b16 %v375_v51, %v375_v51 }
  0x34   : > { %650 = vrot.lane.b32.xlu0 %v585_v50, %s3100_s26  ;;  %628 = vrot.lane.b32.xlu2 %v453_v3, %s3100_s26  ;;  %v762_v50 = vrot.slane %v403_v36, 1  ;;  %v2980_v3 = vor.u32 %v2979_v40, %v2978_v55  ;;  %v730_v61 = vsel %vm712_vm0, %v728_v53, %v729_v54  ;;  %v555_v12 = vrot.slane %v553_v58, 1  ;;  %v2981_v53 = vld [vmem:[%s3139_s24 + $0x60] sm:$0xf0]  ;;  %v2982_v54 = vld [vmem:[%s3139_s24 + $0x60] sm:$0xe] }
  0x35   : > { %v558_v13 = vshll.u32 %v3285_v57, 16  ;;  %v376_v14 = vunpack.c.l.b16 %v232_v0  ;;  %v608_v16 = vrot.slane %v606_v63, 1  ;;  %v481_v18 = vshll.u32 %v3293_v8, 16 }
  0x36   : > { %v763_v1 = vsel %vm712_vm0, %v761_v49, %v762_v50  ;;  %v731_v19 = vrot.slane %v2980_v3, 1  ;;  %v732_v20 = vrot.slane %v393_v2, 1  ;;  %v493_v24 = vshll.u32 %v3278_v48, 16  ;;  %v3329_v3 = vld [vmem:[%s3139_s24 + $0x6c] sm:$0xff]  }
  0x37   : > { %v560_v22 = vrot.slane %v558_v13, 1  ;;  %v394_v23 = vpack.c.b16 %v376_v14, %v376_v14  ;;  %v479_v27 = vshrl.u32 %v3293_v8, 16  ;;  %v483_v7 = vrot.slane %v481_v18, 1 }
  0x38   : > { %v486_v28 = vshll.u32 %v393_v2, 16  ;;  %v733_v29 = vsel %vm712_vm0, %v731_v19, %v732_v20  ;;  %v491_v9 = vshrl.u32 %v3278_v48, 16  ;;  %v377_v49 = vunpack.c.l.b16 %v233_v41 }
  0x39   : > { %v498_v36 = vshll.u32 %v394_v23, 16  ;;  %v484_v37 = vor.u32 %v483_v7, %v479_v27  ;;  %v735_v33 = vrot.slane %v394_v23, 1  ;;  %v2989_v51 = vor.u32 %v2988_v45, %v2987_v43  ;;  %v2861_v7 = vld [vmem:[#allocation2 + $0x8] sm:$0xf]  ;;  %v2881_v43 = vld [vmem:[#allocation2] sm:$0xf] }
  0x3a   : > { %652 = vrot.lane.b32.xlu1 %v597_v10, %s3100_s26  ;;  %v551_v10 = vshrl.u32 %v3274_v46, 16  ;;  %v488_v39 = vrot.slane %v486_v28, 1  ;;  %v395_v58 = vpack.c.b16 %v377_v49, %v377_v49  ;;  %v3101_v13 = vmov 65535   ;;  %v2923_v28 = vld [vmem:[#allocation2 + $0x8] sm:$0x10]  ;;  %v3351_v49 = vld [vmem:[%s3139_s24 + $0x78] sm:$0xff]  }
  0x3b   : > { %v922_v14 = vsel %vm920_vm2, 4294967295, %v3101_v13  ;;  %v517_v19 = vshll.u32 %v3329_v3, 16  ;;  %v2922_v45 = vld [vmem:[#allocation2] sm:$0x10] }
  0x3c   : > { %630 = vrot.lane.b32.xlu0 %v465_v15, %s3100_s26  ;;  %795 = vrot.lane.b32.xlu2 %v757_v30, %s3099_s25  ;;  %v604_v15 = vor.u32 %v603_v62, %v599_v60  ;;  %v556_v21 = vor.u32 %v555_v12, %v551_v10  ;;  %v3038_v30 = vor.u32 %v3037_v11, %v3036_v32  ;;  %v500_v32 = vrot.slane %v498_v36, 1  ;;  %v234_v10 = vld [vmem:[%s3139_s24 + $0x74] sm:$0x1] }
  0x3d   : > { %v489_v50 = vsel %vm405_vm1, %v484_v37, %v488_v39  ;;  %v749_v60 = vrot.slane %v2989_v51, 1  ;;  %v750_v62 = vrot.slane %v3285_v57, 1  ;;  %v738_v0 = vrot.slane %v395_v58, 1  ;;  %v2901_v57 = vld [vmem:[#allocation2 + $0x10] sm:$0xf] }
  0x3e   : > { %v609_v26 = vsel %vm405_vm1, %v604_v15, %v608_v16  ;;  %v561_v34 = vsel %vm405_vm1, %v556_v21, %v560_v22  ;;  %v378_v11 = vunpack.c.l.b16 %v234_v10  ;;  %v2924_v12 = vld [vmem:[#allocation2 + $0x10] sm:$0x10]  ;;  %v923_v18 = vsel %vm921_vm3, %v922_v14, 0 }
  0x3f   : > { %v2902_v15 = vor.u32 %v2924_v12, %v2901_v57  ;;  %v515_v21 = vshrl.u32 %v3329_v3, 16  ;;  %v519_v23 = vrot.slane %v517_v19, 1  ;;  %v510_v37 = vshll.u32 %v395_v58, 16  ;;  %v2984_v58 = vld [vmem:[%s3139_s24 + $0x78] sm:$0xf0] }
  0x40   : > { %v396_v16 = vpack.c.b16 %v378_v11, %v378_v11  ;;  %v529_v51 = vshll.u32 %v3351_v49, 16  ;;  %v3040_v11 = vld [vmem:[%s3139_s24 + $0x6c] sm:$0xe]  ;;  %v3089_v19 = vld [vmem:[%s3139_s24 + $0x84] sm:$0xf0] }
  0x41   : > { %v3336_v20 = vand.u32 %v2902_v15, %v923_v18  ;;  %v512_v41 = vrot.slane %v510_v37, 1 }
  0x42   : > { %632 = vrot.lane.b32.xlu1 %v477_v35, %s3100_s26  ;;  %v495_v35 = vrot.slane %v493_v24, 1  ;;  %v522_v22 = vshll.u32 %v396_v16, 16  ;;  %v741_v14 = vrot.slane %v396_v16, 1 }
  0x43   : > { %1135 = vmatpush.bf16.msra.mxu2 %v3336_v20 }
  0x44   : > { %797 = vrot.lane.b32.xlu0 %v760_v42, %s3099_s25  ;;  %775 = vrot.lane.b32.xlu2 %v727_v59, %s3099_s25  ;;  %v734_v42 = vrot.slane %v3038_v30, 1  ;;  %v496_v47 = vor.u32 %v495_v35, %v491_v9  ;;  %v2983_v59 = vor.u32 %v2982_v54, %v2981_v53  ;;  %v524_v24 = vrot.slane %v522_v22, 1  ;;  %v3090_v22 = vld [vmem:[%s3139_s24 + $0x84] sm:$0xe] }
  0x45   : > { %v2862_v30 = vor.u32 %v2923_v28, %v2861_v7  ;;  %v527_v54 = vshrl.u32 %v3351_v49, 16 }
  0x46   : > { %v736_v55 = vsel %vm712_vm0, %v734_v42, %v735_v33  ;;  %v501_v40 = vsel %vm405_vm1, %v496_v47, %v500_v32  ;;  %v737_v63 = vrot.slane %v2983_v59, 1  ;;  %v235_v42 = vld [vmem:[%s3139_s24 + $0x80] sm:$0x1]  ;;  %v2882_v32 = vor.u32 %v2922_v45, %v2881_v43  ;;  %v2985_v59 = vld [vmem:[%s3139_s24 + $0x78] sm:$0xe] }
  0x47   : > { %v925_v9 = vand.u32 %v2862_v30, %v923_v18  ;;  %v379_v47 = vunpack.c.l.b16 %v235_v42 }
  0x48   : > { %v739_v2 = vsel %vm712_vm0, %v737_v63, %v738_v0  ;;  %v1024_v53 = vand.u32 %v2882_v32, %v923_v18  ;;  %v2986_v63 = vor.u32 %v2985_v59, %v2984_v58  ;;  %v3366_v18 = vld [vmem:[%s3139_s24 + $0x84] sm:$0xff]  }
  0x49   : > { %2996 = vmatpush.bf16.msra.mxu3 %v925_v9  ;;  %934 = vmatpush.bf16.msra.mxu0 %v925_v9  ;;  %v539_v32 = vshrl.u32 %v3366_v18, 16 }
  0x4a   : > { %799 = vrot.lane.b32.xlu1 %v763_v1, %s3099_s25  ;;  %v751_v1 = vsel %vm712_vm0, %v749_v60, %v750_v62  ;;  %1033 = vmatpush.bf16.msra.mxu1 %v1024_v53 }
  0x4c   : > { %777 = vrot.lane.b32.xlu0 %v730_v61, %s3099_s25  ;;  %654 = vrot.lane.b32.xlu2 %v609_v26, %s3100_s26  ;;  %v3332_v61 = vld [vmem:[%s3139_s24 + $0x6c] sm:$0xf0]  ;;  %v520_v26 = vor.u32 %v519_v23, %v515_v21  ;;  %v236_v21 = vld [vmem:[%s3139_s24 + $0x8c] sm:$0x1] }
  0x4d   : > { %2997 = vmatpush.bf16.msrb.mxu3 %v1024_v53  ;;  %v3041_v57 = vor.u32 %v3040_v11, %v3332_v61  ;;  %v380_v23 = vunpack.c.l.b16 %v236_v21 }
  0x4e   : > { %v525_v27 = vsel %vm405_vm1, %v520_v26, %v524_v24 }
  0x4f   : > { %v740_v13 = vrot.slane %v3041_v57, 1  ;;  %v398_v26 = vpack.c.b16 %v380_v23, %v380_v23 }
  0x51   : > { %v742_v15 = vsel %vm712_vm0, %v740_v13, %v741_v14  ;;  %v747_v28 = vrot.slane %v398_v26, 1 }
  0x52   : > { %779 = vrot.lane.b32.xlu1 %v733_v29, %s3099_s25  ;;  %v3342_v29 = vld [vmem:[%s3139_s24 + $0x60] sm:$0xff]  }
  0x53   : > { %v503_v35 = vshrl.u32 %v3342_v29, 16 }
  0x54   : > { %646 = vrot.lane.b32.xlu0 %v561_v34, %s3100_s26  ;;  %634 = vrot.lane.b32.xlu2 %v489_v50, %s3100_s26  ;;  %v505_v34 = vshll.u32 %v3342_v29, 16  ;;  %v397_v50 = vpack.c.b16 %v379_v47, %v379_v47 }
  0x56   : > { %v507_v36 = vrot.slane %v505_v34, 1  ;;  %v744_v0 = vrot.slane %v397_v50, 1 }
  0x58   : > { %v508_v39 = vor.u32 %v507_v36, %v503_v35 }
  0x5a   : > { %781 = vrot.lane.b32.xlu1 %v736_v55, %s3099_s25  ;;  %v513_v33 = vsel %vm405_vm1, %v508_v39, %v512_v41  ;;  %v531_v55 = vrot.slane %v529_v51, 1 }
  0x5c   : > { %636 = vrot.lane.b32.xlu0 %v501_v40, %s3100_s26  ;;  %791 = vrot.lane.b32.xlu2 %v751_v1, %s3099_s25  ;;  %v534_v40 = vshll.u32 %v397_v50, 16  ;;  %v532_v60 = vor.u32 %v531_v55, %v527_v54 }
  0x5e   : > { %v536_v62 = vrot.slane %v534_v40, 1 }
  0x60   : > { %v537_v1 = vsel %vm405_vm1, %v532_v60, %v536_v62  ;;  %v3409_v60 = vld [vmem:[%s3139_s24 + $0xcc] sm:$0xff]  }
  0x61   : > { %v3042_v62 = vld [vmem:[%s3139_s24 + $0xcc] sm:$0xf0]  ;;  %v611_v11 = vshrl.u32 %v3409_v60, 16 }
  0x62   : > { %640 = vrot.lane.b32.xlu1 %v525_v27, %s3100_s26  ;;  %v3091_v27 = vor.u32 %v3090_v22, %v3089_v19 }
  0x64   : > { %783 = vrot.lane.b32.xlu0 %v739_v2, %s3099_s25  ;;  %638 = vrot.lane.b32.xlu2 %v513_v33, %s3100_s26  ;;  %v743_v2 = vrot.slane %v2986_v63, 1  ;;  %v746_v16 = vrot.slane %v3091_v27, 1  ;;  %v242_v63 = vld [vmem:[%s3139_s24 + $0xd4] sm:$0x1] }
  0x66   : > { %v745_v10 = vsel %vm712_vm0, %v743_v2, %v744_v0  ;;  %v748_v9 = vsel %vm712_vm0, %v746_v16, %v747_v28  ;;  %v386_v0 = vunpack.c.l.b16 %v242_v63  ;;  %v613_v2 = vshll.u32 %v3409_v60, 16 }
  0x68   : > { %v615_v57 = vrot.slane %v613_v2, 1 }
  0x6a   : > { %787 = vrot.lane.b32.xlu1 %v745_v10, %s3099_s25 }
  0x6c   : > { %642 = vrot.lane.b32.xlu0 %v537_v1, %s3100_s26  ;;  %785 = vrot.lane.b32.xlu2 %v742_v15, %s3099_s25  ;;  %v404_v1 = vpack.c.b16 %v386_v0, %v386_v0  ;;  %v616_v15 = vor.u32 %v615_v57, %v611_v11 }
  0x74   : > { %789 = vrot.lane.b32.xlu0 %v748_v9, %s3099_s25 }
  0x7e   : > { %v623_v12 = vpop.permute.xlu2 %622 }
  0x7f   : > { %v805_v43 = vsel %vm803_vm4, %v3179_v52, %v623_v12  ;;  %v546_v52 = vshll.u32 %v398_v26, 16  ;;  %v618_v12 = vshll.u32 %v404_v1, 16 }
  0x81   : > { %v548_v40 = vrot.slane %v546_v52, 1  ;;  %v620_v19 = vrot.slane %v618_v12, 1 }
  0x83   : > { %v621_v22 = vsel %vm405_vm1, %v616_v15, %v620_v19 }
  0x84   : > { %656 = vrot.lane.b32.xlu1 %v621_v22, %s3100_s26 }
  0x86   : > { %v625_v34 = vpop.permute.xlu2 %624 }
  0x87   : > { %v807_v39 = vsel %vm803_vm4, %v3157_v17, %v625_v34  ;;  %v3043_v34 = vld [vmem:[%s3139_s24 + $0xcc] sm:$0xe] }
  0x8c   : > { %v772_v24 = vpop.permute.xlu1 %771 }
  0x8e   : > { %v627_v7 = vpop.permute.xlu0 %626  ;;  %v629_v41 = vpop.permute.xlu2 %628 }
  0x8f   : > { %v809_v61 = vsel %vm803_vm4, %v3145_v5, %v627_v7  ;;  %v811_v17 = vsel %vm803_vm4, %v3172_v44, %v629_v41 }
  0x90   : > { %v3374_v30 = vsel %vm840_vm5, %v809_v61, %v772_v24 }
  0x91   : > { %2903 = vmatmul.msk.bf16.vlgmr.msra.gmra.mxu2 %vm887_vm6, %v3374_v30 }
  0x94   : > { %v794_v35 = vpop.permute.xlu1 %793 }
  0x96   : > { %v649_v36 = vpop.permute.xlu0 %648  ;;  %v796_v53 = vpop.permute.xlu2 %795 }
  0x97   : > { %v831_v37 = vsel %vm803_vm4, %v3148_v6, %v649_v36  ;;  %v765_v36 = vrot.slane %v404_v1, 1 }
  0x98   : > { %v3383_v5 = vsel %vm840_vm5, %v831_v37, %v794_v35  ;;  %v3044_v35 = vor.u32 %v3043_v34, %v3042_v62 }
  0x99   : > { %2875 = vmatmul.msk.bf16.vlgmr.msra.gmra.mxu3 %vm887_vm6, %v3383_v5 }
  0x9a   : > { %2998 = vmatpush.bf16.msra.mxu3 %v3336_v20  ;;  %v541_v20 = vshll.u32 %v3366_v18, 16 }
  0x9c   : > { %v770_v42 = vpop.permute.xlu1 %769  ;;  %v543_v50 = vrot.slane %v541_v20, 1 }
  0x9d   : > { %v844_v33 = vsel %vm840_vm5, %v807_v39, %v770_v42 }
  0x9e   : > { %v768_v45 = vpop.permute.xlu0 %767  ;;  %2863 = vmatmul.msk.bf16.vlgmr.msra.gmra.mxu0 %vm887_vm6, %v844_v33  ;;  %v544_v55 = vor.u32 %v543_v50, %v539_v32  ;;  %v776_v14 = vpop.permute.xlu2 %775 }
  0x9f   : > { %v842_v6 = vsel %vm840_vm5, %v805_v43, %v768_v45 }
  0xa0   : > { %2883 = vmatmul.msk.bf16.vlgmr.msra.gmra.mxu1 %vm887_vm6, %v842_v6  ;;  %v549_v59 = vsel %vm405_vm1, %v544_v55, %v548_v40 }
  0xa1   : > { %644 = vrot.lane.b32.xlu2 %v549_v59, %s3100_s26 }
  0xa4   : > { %v774_v47 = vpop.permute.xlu1 %773 }
  0xa5   : > { %v848_v51 = vsel %vm840_vm5, %v811_v17, %v774_v47 }
  0xa6   : > { %v651_v54 = vpop.permute.xlu0 %650  ;;  %2904 = vmatmul.msk.bf16.gmra.mxu2 %vm887_vm6, %v848_v51  ;;  %v655_v27 = vpop.permute.xlu2 %654 }
  0xa7   : > { %v833_v44 = vsel %vm803_vm4, %v3183_v56, %v651_v54  ;;  %v837_v16 = vsel %vm803_vm4, %v3265_v38, %v655_v27 }
  0xa8   : > { %v3405_v58 = vsel %vm840_vm5, %v833_v44, %v796_v53 }
  0xa9   : > { %2876 = vmatmul.msk.bf16.gmra.mxu3 %vm887_vm6, %v3405_v58 }
  0xac   : > { %v653_v10 = vpop.permute.xlu1 %652 }
  0xad   : > { %v835_v23 = vsel %vm803_vm4, %v3191_v4, %v653_v10 }
  0xae   : > { %2864 = vmatmul.msk.bf16.gmra.mxu0 %vm887_vm6, %v3374_v30  ;;  %v631_v56 = vpop.permute.xlu0 %630 }
  0xaf   : > { %v813_v13 = vsel %vm803_vm4, %v3209_v25, %v631_v56 }
  0xb0   : > { %2884 = vmatmul.msk.bf16.gmra.mxu1 %vm887_vm6, %v844_v33  ;;  %v850_v21 = vsel %vm840_vm5, %v813_v13, %v776_v14 }
  0xb4   : > { %v633_v26 = vpop.permute.xlu1 %632 }
  0xb5   : > { %v815_v7 = vsel %vm803_vm4, %v3214_v31, %v633_v26  ;;  %v635_v31 = vpop.permute.xlu2 %634 }
  0xb6   : > { %2905 = vmatmul.msk.bf16.gmra.mxu2 %vm887_vm6, %v850_v21  ;;  %v798_v24 = vpop.permute.xlu0 %797  ;;  %v817_v38 = vsel %vm803_vm4, %v3293_v8, %v635_v31 }
  0xb7   : > { %v3430_v25 = vsel %vm840_vm5, %v835_v23, %v798_v24 }
  0xb9   : > { %2877 = vmatmul.msk.bf16.gmra.mxu3 %vm887_vm6, %v3430_v25 }
  0xbc   : > { %v800_v28 = vpop.permute.xlu1 %799 }
  0xbd   : > { %v3445_v9 = vsel %vm840_vm5, %v837_v16, %v800_v28  ;;  %v792_v43 = vpop.permute.xlu2 %791 }
  0xbe   : > { %2865 = vmatmul.msk.bf16.gmra.mxu0 %vm887_vm6, %v848_v51  ;;  %v778_v4 = vpop.permute.xlu0 %777 }
  0xbf   : > { %v852_v61 = vsel %vm840_vm5, %v815_v7, %v778_v4 }
  0xc0   : > { %2885 = vmatmul.msk.bf16.gmra.mxu1 %vm887_vm6, %v3374_v30  ;;  %v764_v30 = vrot.slane %v3044_v35, 1 }
  0xc2   : > { %v766_v37 = vsel %vm712_vm0, %v764_v30, %v765_v36 }
  0xc3   : > { %801 = vrot.lane.b32.xlu2 %v766_v37, %s3099_s25 }
  0xc4   : > { %v780_v39 = vpop.permute.xlu1 %779 }
  0xc5   : > { %v854_v33 = vsel %vm840_vm5, %v817_v38, %v780_v39  ;;  %v639_v20 = vpop.permute.xlu2 %638 }
  0xc6   : > { %2906 = vmatmul.msk.bf16.gmra.mxu2 %vm887_vm6, %v852_v61  ;;  %v647_v41 = vpop.permute.xlu0 %646  ;;  %v821_v47 = vsel %vm803_vm4, %v3342_v29, %v639_v20 }
  0xc7   : > { %v829_v42 = vsel %vm803_vm4, %v3274_v46, %v647_v41 }
  0xc8   : > { %v3460_v45 = vsel %vm840_vm5, %v829_v42, %v792_v43 }
  0xc9   : > { %2878 = vmatmul.msk.bf16.gmra.mxu3 %vm887_vm6, %v3445_v9 }
  0xcc   : > { %v782_v46 = vpop.permute.xlu1 %781 }
  0xce   : > { %2866 = vmatmul.msk.bf16.gmra.mxu0 %vm887_vm6, %v850_v21  ;;  %v637_v6 = vpop.permute.xlu0 %636 }
  0xcf   : > { %v819_v8 = vsel %vm803_vm4, %v3278_v48, %v637_v6 }
  0xd0   : > { %2886 = vmatmul.msk.bf16.gmra.mxu1 %vm887_vm6, %v848_v51  ;;  %v856_v17 = vsel %vm840_vm5, %v819_v8, %v782_v46  ;;  %v786_v51 = vpop.permute.xlu2 %785 }
  0xd4   : > { %v641_v48 = vpop.permute.xlu1 %640 }
  0xd5   : > { %v823_v52 = vsel %vm803_vm4, %v3329_v3, %v641_v48 }
  0xd6   : > { %2907 = vmatmul.msk.bf16.gmra.mxu2 %vm887_vm6, %v854_v33  ;;  %v784_v32 = vpop.permute.xlu0 %783  ;;  %v3485_v53 = vsel %vm840_vm5, %v823_v52, %v786_v51 }
  0xd7   : > { %v858_v50 = vsel %vm840_vm5, %v821_v47, %v784_v32 }
  0xd9   : > { %2895 = vmatmul.msk.bf16.vlgmr.msrb.gmra.mxu3 %vm887_vm6, %v3460_v45 }
  0xdc   : > { %v788_v55 = vpop.permute.xlu1 %787 }
  0xde   : > { %2867 = vmatmul.msk.bf16.gmra.mxu0 %vm887_vm6, %v852_v61  ;;  %v643_v29 = vpop.permute.xlu0 %642 }
  0xdf   : > { %v825_v54 = vsel %vm803_vm4, %v3351_v49, %v643_v29  ;;  %v3507_v49 = vld [vmem:[%s4148_s2] ss:$0 sm:$0xff] }
  0xe0   : > { %2887 = vmatmul.msk.bf16.gmra.mxu1 %vm887_vm6, %v850_v21  ;;  %v3496_v3 = vsel %vm840_vm5, %v825_v54, %v788_v55 }
  0xe6   : > { %2908 = vmatmul.msk.bf16.gmra.mxu2 %vm887_vm6, %v856_v17  ;;  %v790_v2 = vpop.permute.xlu0 %789 }
  0xe9   : > { %2896 = vmatmul.msk.bf16.gmra.mxu3 %vm887_vm6, %v3383_v5 }
  0xee   : > { %2868 = vmatmul.msk.bf16.gmra.mxu0 %vm887_vm6, %v854_v33 }
  0xf0   : > { %2888 = vmatmul.msk.bf16.gmra.mxu1 %vm887_vm6, %v852_v61 }
  0xf6   : > { %2909 = vmatmul.msk.bf16.gmra.mxu2 %vm887_vm6, %v858_v50 }
  0xf9   : > { %2897 = vmatmul.msk.bf16.gmra.mxu3 %vm887_vm6, %v3405_v58 }
  0xfb   : > { %v645_v59 = vpop.permute.xlu2 %644 }
  0xfe   : > { %2869 = vmatmul.msk.bf16.gmra.mxu0 %vm887_vm6, %v856_v17 }
 0x100   : > { %2889 = vmatmul.msk.bf16.gmra.mxu1 %vm887_vm6, %v854_v33 }
 0x106   : > { %2910 = vmatmul.msk.bf16.gmra.mxu2 %vm887_vm6, %v3485_v53 }
 0x109   : > { %2898 = vmatmul.msk.bf16.gmra.mxu3 %vm887_vm6, %v3430_v25 }
 0x10e   : > { %2870 = vmatmul.msk.bf16.gmra.mxu0 %vm887_vm6, %v858_v50 }
 0x110   : > { %2890 = vmatmul.msk.bf16.gmra.mxu1 %vm887_vm6, %v856_v17 }
 0x114   : > { %v1137_v62 = vpop.f32.mrf.mxu2 }
 0x116   : > { %2911 = vmatmul.msk.bf16.gmra.mxu2 %vm887_vm6, %v3496_v3 }
 0x119   : > { %2915 = vmatmul.msk.bf16.vlgmr.msra.gmra.mxu3 %vm887_vm6, %v3405_v58  ;;  %v827_v58 = vsel %vm803_vm4, %v3366_v18, %v645_v59 }
 0x11a   : > { %v3516_v11 = vsel %vm840_vm5, %v827_v58, %v790_v2 }
 0x11b   : > { %v936_v40 = vpop.f32.mrf.mxu0 }
 0x11c   : > { %v3502_v44 = vpop.f32.mrf.mxu3  ;;  %v1139_v18 = vpop.f32.mrf.mxu2 }
 0x11d   : > { %v1035_v63 = vpop.f32.mrf.mxu1 }
 0x11e   : > { %v1036_v0 = vadd.f32 %v1035_v63, %v936_v40  ;;  %2871 = vmatmul.msk.bf16.gmra.mxu0 %vm887_vm6, %v3485_v53 }
 0x120   : > { %v1217_v1 = vadd.f32 %v1137_v62, %v1036_v0  ;;  %2891 = vmatmul.msk.bf16.gmra.mxu1 %vm887_vm6, %v858_v50 }
 0x122   : > { %v1253_v56 = vadd.f32 %v3507_v49, %v1217_v1 }
 0x123   : > { %v938_v10 = vpop.f32.mrf.mxu0 }
 0x124   : > { %v1285_v57 = vmax.f32 %v1253_v56, 0.0  ;;  %v3518_v12 = vpop.f32.mrf.mxu3 }
 0x125   : > { %v1037_v13 = vpop.f32.mrf.mxu1 }
 0x126   : > { %v1349_v14 = vrot.slane %v1285_v57, 2  ;;  %v1350_v15 = vrot.slane %v1285_v57, 4  ;;  %v1351_v19 = vrot.slane %v1285_v57, 6  ;;  %v1542_v21 = vsel %vm1541_vm7, %v1285_v57, -inf  ;;  %2912 = vmatmul.msk.bf16.gmra.mxu2 %vm887_vm6, %v3516_v11 }
 0x127   : > { %v1543_v22 = vrot.slane %v1542_v21, 4  ;;  %v1038_v23 = vadd.f32 %v1037_v13, %v938_v10 }
 0x128   : > { %v1549_v24 = vsel %vm1541_vm7, %v1349_v14, -inf  ;;  %v1556_v26 = vsel %vm1541_vm7, %v1350_v15, -inf  ;;  %v1563_v27 = vsel %vm1541_vm7, %v1351_v19, -inf }
 0x129   : > { %v1544_v7 = vmax.f32 %v1542_v21, %v1543_v22  ;;  %v1550_v4 = vrot.slane %v1549_v24, 4  ;;  %v1557_v61 = vrot.slane %v1556_v26, 4  ;;  %v1564_v16 = vrot.slane %v1563_v27, 4  ;;  %2916 = vmatmul.msk.bf16.gmra.mxu3 %vm887_vm6, %v3430_v25  ;;  %v1142_v43 = vpop.f32.mrf.mxu2 }
 0x12a   : > { %v1218_v28 = vadd.f32 %v1139_v18, %v1038_v23 }
 0x12b   : > { %v1551_v34 = vmax.f32 %v1549_v24, %v1550_v4  ;;  %v1558_v35 = vmax.f32 %v1556_v26, %v1557_v61  ;;  %v941_v31 = vpop.f32.mrf.mxu0  ;;  %v1545_v37 = vrot.slane %v1544_v7, 2  ;;  %v1565_v39 = vmax.f32 %v1563_v27, %v1564_v16 }
 0x12c   : > { %v1254_v36 = vadd.f32 %v3507_v49, %v1218_v28  ;;  %v3529_v30 = vpop.f32.mrf.mxu3 }
 0x12d   : > { %v1552_v38 = vrot.slane %v1551_v34, 2  ;;  %v1040_v41 = vpop.f32.mrf.mxu1  ;;  %v1559_v33 = vrot.slane %v1558_v35, 2  ;;  %v1546_v20 = vmax.f32 %v1544_v7, %v1545_v37  ;;  %v1566_v32 = vrot.slane %v1565_v39, 2 }
 0x12e   : > { %v1286_v42 = vmax.f32 %v1254_v36, 0.0  ;;  %2872 = vmatmul.msk.bf16.gmra.mxu0 %vm887_vm6, %v3496_v3  ;;  %v1041_v6 = vadd.f32 %v1040_v41, %v941_v31 }
 0x12f   : > { %v1553_v47 = vmax.f32 %v1551_v34, %v1552_v38  ;;  %v1560_v29 = vmax.f32 %v1558_v35, %v1559_v33  ;;  %v1567_v58 = vmax.f32 %v1565_v39, %v1566_v32  ;;  %v657_v39 = vpop.permute.xlu1 %656 }
 0x130   : > { %v1352_v25 = vrot.slane %v1286_v42, 2  ;;  %v1353_v8 = vrot.slane %v1286_v42, 4  ;;  %v1354_v46 = vrot.slane %v1286_v42, 6  ;;  %v1570_v17 = vsel %vm1541_vm7, %v1286_v42, -inf  ;;  %2892 = vmatmul.msk.bf16.gmra.mxu1 %vm887_vm6, %v3485_v53 }
 0x131   : > { %v1571_v50 = vrot.slane %v1570_v17, 4  ;;  %v1219_v63 = vadd.f32 %v1142_v43, %v1041_v6  ;;  %v1547_v53 = vrot.slane %v1546_v20, 1  ;;  %v1554_v1 = vrot.slane %v1553_v47, 1  ;;  %v1144_v61 = vpop.f32.mrf.mxu2 }
 0x132   : > { %v1577_v48 = vsel %vm1541_vm7, %v1352_v25, -inf  ;;  %v1584_v52 = vsel %vm1541_vm7, %v1353_v8, -inf  ;;  %v1591_v51 = vsel %vm1541_vm7, %v1354_v46, -inf  ;;  %v1561_v15 = vrot.slane %v1560_v29, 1 }
 0x133   : > { %v1578_v54 = vrot.slane %v1577_v48, 4  ;;  %v943_v55 = vpop.f32.mrf.mxu0  ;;  %v1572_v40 = vmax.f32 %v1570_v17, %v1571_v50  ;;  %v1585_v59 = vrot.slane %v1584_v52, 4  ;;  %v1592_v62 = vrot.slane %v1591_v51, 4 }
 0x134   : > { %v3539_v0 = vpop.f32.mrf.mxu3  ;;  %v1255_v14 = vadd.f32 %v3507_v49, %v1219_v63  ;;  %v3544_v26 = vmax.f32 %v1546_v20, %v1547_v53  ;;  %v3546_v27 = vmax.f32 %v1553_v47, %v1554_v1  ;;  %v1568_v7 = vrot.slane %v1567_v58, 1 }
 0x135   : > { %v1579_v2 = vmax.f32 %v1577_v48, %v1578_v54  ;;  %v1042_v56 = vpop.f32.mrf.mxu1  ;;  %v1573_v10 = vrot.slane %v1572_v40, 2  ;;  %v1586_v57 = vmax.f32 %v1584_v52, %v1585_v59  ;;  %v1593_v13 = vmax.f32 %v1591_v51, %v1592_v62 }
 0x136   : > { %2913 = vmatmul.msk.bf16.gmra.mxu2 %vm887_vm6, %v3460_v45  ;;  %v1043_v21 = vadd.f32 %v1042_v56, %v943_v55  ;;  %v1287_v24 = vmax.f32 %v1255_v14, 0.0  ;;  %v3551_v41 = vmax.f32 %v1560_v29, %v1561_v15  ;;  %v3558_v47 = vmax.f32 %v1567_v58, %v1568_v7  ;;  %v802_v55 = vpop.permute.xlu2 %801 }
 0x137   : > { %v1580_v19 = vrot.slane %v1579_v2, 2  ;;  %v1574_v18 = vmax.f32 %v1572_v40, %v1573_v10  ;;  %v1587_v22 = vrot.slane %v1586_v57, 2  ;;  %v1594_v23 = vrot.slane %v1593_v13, 2 }
 0x138   : > { %v1355_v34 = vrot.slane %v1287_v24, 2  ;;  %v1220_v35 = vadd.f32 %v1144_v61, %v1043_v21  ;;  %v1356_v36 = vrot.slane %v1287_v24, 4  ;;  %v1357_v37 = vrot.slane %v1287_v24, 6 }
 0x139   : > { %v1581_v4 = vmax.f32 %v1579_v2, %v1580_v19  ;;  %2917 = vmatmul.msk.bf16.gmra.mxu3 %vm887_vm6, %v3445_v9  ;;  %v1588_v16 = vmax.f32 %v1586_v57, %v1587_v22  ;;  %v1595_v28 = vmax.f32 %v1593_v13, %v1594_v23  ;;  %v1575_v31 = vrot.slane %v1574_v18, 1 }
 0x13a   : > { %v1598_v38 = vsel %vm1541_vm7, %v1287_v24, -inf  ;;  %v1605_v9 = vsel %vm1541_vm7, %v1355_v34, -inf  ;;  %v1612_v46 = vsel %vm1541_vm7, %v1356_v36, -inf  ;;  %v1619_v17 = vsel %vm1541_vm7, %v1357_v37, -inf }
 0x13b   : > { %v1582_v42 = vrot.slane %v1581_v4, 1  ;;  %v1589_v33 = vrot.slane %v1588_v16, 1  ;;  %v1599_v43 = vrot.slane %v1598_v38, 4  ;;  %v946_v6 = vpop.f32.mrf.mxu0  ;;  %v1596_v8 = vrot.slane %v1595_v28, 1 }
 0x13c   : > { %v3553_v25 = vpop.f32.mrf.mxu3  ;;  %v1606_v50 = vrot.slane %v1605_v9, 4  ;;  %v839_v48 = vsel %vm803_vm4, %v3409_v60, %v657_v39  ;;  %v3564_v52 = vmax.f32 %v1574_v18, %v1575_v31  ;;  %v1613_v51 = vrot.slane %v1612_v46, 4 }
 0x13d   : > { %v1045_v20 = vpop.f32.mrf.mxu1  ;;  %v1600_v32 = vmax.f32 %v1598_v38, %v1599_v43  ;;  %v1620_v29 = vrot.slane %v1619_v17, 4  ;;  %v1256_v54 = vadd.f32 %v3507_v49, %v1220_v35  ;;  %v3567_v40 = vmax.f32 %v1581_v4, %v1582_v42 }
 0x13e   : > { %2873 = vmatmul.msk.bf16.gmra.mxu0 %vm887_vm6, %v3516_v11  ;;  %v3569_v59 = vmax.f32 %v1588_v16, %v1589_v33  ;;  %v1607_v63 = vmax.f32 %v1605_v9, %v1606_v50  ;;  %v3573_v53 = vmax.f32 %v1595_v28, %v1596_v8  ;;  %v1614_v1 = vmax.f32 %v1612_v46, %v1613_v51 }
 0x13f   : > { %v1601_v62 = vrot.slane %v1600_v32, 2  ;;  %v1621_v60 = vmax.f32 %v1619_v17, %v1620_v29  ;;  %v1288_v58 = vmax.f32 %v1256_v54, 0.0  ;;  %v1046_v10 = vadd.f32 %v1045_v20, %v946_v6 }
 0x140   : > { %2893 = vmatmul.msk.bf16.gmra.mxu1 %vm887_vm6, %v3496_v3  ;;  %v1608_v56 = vrot.slane %v1607_v63, 2  ;;  %v876_v57 = vsel %vm840_vm5, %v839_v48, %v802_v55  ;;  %v1615_v13 = vrot.slane %v1614_v1, 2  ;;  %v1147_v3 = vpop.f32.mrf.mxu2 }
 0x141   : > { %v1602_v2 = vmax.f32 %v1600_v32, %v1601_v62  ;;  %v1622_v14 = vrot.slane %v1621_v60, 2  ;;  %v1358_v15 = vrot.slane %v1288_v58, 2  ;;  %v1359_v19 = vrot.slane %v1288_v58, 4 }
 0x142   : > { %v1609_v18 = vmax.f32 %v1607_v63, %v1608_v56  ;;  %v1360_v22 = vrot.slane %v1288_v58, 6  ;;  %v1626_v23 = vsel %vm1541_vm7, %v1288_v58, -inf  ;;  %v1616_v7 = vmax.f32 %v1614_v1, %v1615_v13 }
 0x143   : > { %v1603_v21 = vrot.slane %v1602_v2, 1  ;;  %v1623_v4 = vmax.f32 %v1621_v60, %v1622_v14  ;;  %v1627_v61 = vrot.slane %v1626_v23, 4  ;;  %v1633_v16 = vsel %vm1541_vm7, %v1358_v15, -inf  ;;  %v948_v37 = vpop.f32.mrf.mxu0 }
 0x144   : > { %v3577_v24 = vpop.f32.mrf.mxu3  ;;  %v1610_v35 = vrot.slane %v1609_v18, 1  ;;  %v1634_v31 = vrot.slane %v1633_v16, 4  ;;  %v1640_v36 = vsel %vm1541_vm7, %v1359_v19, -inf  ;;  %v1617_v38 = vrot.slane %v1616_v7, 1 }
 0x145   : > { %v3580_v28 = vpop.f32.mrf.mxu1  ;;  %v1604_v34 = vmax.f32 %v1602_v2, %v1603_v21  ;;  %v1624_v39 = vrot.slane %v1623_v4, 1  ;;  %v1628_v42 = vmax.f32 %v1626_v23, %v1627_v61  ;;  %v1641_v33 = vrot.slane %v1640_v36, 4 }
 0x146   : > { %2914 = vmatmul.msk.bf16.gmra.mxu2 %vm887_vm6, %v3383_v5  ;;  %v1611_v43 = vmax.f32 %v1609_v18, %v1610_v35  ;;  %v1635_v8 = vmax.f32 %v1633_v16, %v1634_v31  ;;  %v1647_v9 = vsel %vm1541_vm7, %v1360_v22, -inf  ;;  %v1618_v46 = vmax.f32 %v1616_v7, %v1617_v38 }
 0x147   : > { %v2438_v6 = vmax.f32 %v3544_v26, %v1604_v34  ;;  %v1625_v17 = vmax.f32 %v1623_v4, %v1624_v39  ;;  %v1629_v20 = vrot.slane %v1628_v42, 2  ;;  %v1642_v32 = vmax.f32 %v1640_v36, %v1641_v33 }
 0x148   : > { %v2439_v50 = vmax.f32 %v3546_v27, %v1611_v43  ;;  %v1636_v48 = vrot.slane %v1635_v8, 2  ;;  %v1648_v51 = vrot.slane %v1647_v9, 4  ;;  %v2440_v29 = vmax.f32 %v3551_v41, %v1618_v46 }
 0x149   : > { %2918 = vmatmul.msk.bf16.gmra.mxu3 %vm887_vm6, %v876_v57  ;;  %v2502_v5 = vpack.c.bf16 %v2438_v6, %v2438_v6  ;;  %v2441_v54 = vmax.f32 %v3558_v47, %v1625_v17  ;;  %v1630_v55 = vmax.f32 %v1628_v42, %v1629_v20  ;;  %v1643_v26 = vrot.slane %v1642_v32, 2  ;;  %v1149_v47 = vpop.f32.mrf.mxu2 }
 0x14a   : > { %v2503_v62 = vpack.c.bf16 %v2439_v50, %v2439_v50  ;;  %v1637_v1 = vmax.f32 %v1635_v8, %v1636_v48  ;;  %v1649_v60 = vmax.f32 %v1647_v9, %v1648_v51  ;;  %v2504_v2 = vpack.c.bf16 %v2440_v29, %v2440_v29 }
 0x14b   : > { %v2630_v63 = vunpack.c.l.b16 %v2502_v5  ;;  %v2505_v56 = vpack.c.bf16 %v2441_v54, %v2441_v54  ;;  %v1631_v57 = vrot.slane %v1630_v55, 1  ;;  %v1644_v27 = vmax.f32 %v1642_v32, %v1643_v26  ;;  %v951_v34 = vpop.f32.mrf.mxu0 }
 0x14c   : > { %v3591_v58 = vpop.f32.mrf.mxu3  ;;  %v2631_v13 = vunpack.c.l.b16 %v2503_v62  ;;  %v1638_v14 = vrot.slane %v1637_v1, 1  ;;  %v1650_v15 = vrot.slane %v1649_v60, 2  ;;  %v1221_v41 = vadd.f32 %v1147_v3, %v1046_v10 }
 0x14d   : > { %v1050_v19 = vpop.f32.mrf.mxu1  ;;  %v2632_v21 = vunpack.c.l.b16 %v2504_v2  ;;  %v2633_v18 = vunpack.c.l.b16 %v2505_v56  ;;  %v1632_v22 = vmax.f32 %v1630_v55, %v1631_v57  ;;  %v1645_v23 = vrot.slane %v1644_v27, 1 }
 0x14e   : > { %2874 = vmatmul.msk.bf16.gmra.mxu0 %vm887_vm6, %v3460_v45  ;;  %v2695_v7 = vsel %vm2694_vm8, %v2631_v13, %v2630_v63  ;;  %v1639_v4 = vmax.f32 %v1637_v1, %v1638_v14  ;;  %v1651_v61 = vmax.f32 %v1649_v60, %v1650_v15  ;;  %v1257_v16 = vadd.f32 %v3507_v49, %v1221_v41 }
 0x14f   : > { %v2697_v10 = vsel %vm2696_vm9, %v2632_v21, %v2695_v7  ;;  %v1646_v3 = vmax.f32 %v1644_v27, %v1645_v23  ;;  %v2442_v35 = vmax.f32 %v3564_v52, %v1632_v22  ;;  %v1048_v45 = vadd.f32 %v3580_v28, %v948_v37 }
 0x150   : > { %2894 = vmatmul.msk.bf16.gmra.mxu1 %vm887_vm6, %v3516_v11  ;;  %v2699_v31 = vsel %vm2698_vm10, %v2633_v18, %v2697_v10  ;;  %v1652_v36 = vrot.slane %v1651_v61, 1  ;;  %v2443_v38 = vmax.f32 %v3567_v40, %v1639_v4  ;;  %v1289_v39 = vmax.f32 %v1257_v16, 0.0 }
 0x151   : > { %v2444_v42 = vmax.f32 %v3569_v59, %v1646_v3  ;;  %v2506_v33 = vpack.c.bf16 %v2442_v35, %v2442_v35  ;;  %v1222_v43 = vadd.f32 %v1149_v47, %v1048_v45  ;;  %v1051_v6 = vadd.f32 %v1050_v19, %v951_v34  ;;  %v1152_v63 = vpop.f32.mrf.mxu2 }
 0x152   : > { %v1653_v11 = vmax.f32 %v1651_v61, %v1652_v36  ;;  %v2507_v8 = vpack.c.bf16 %v2443_v38, %v2443_v38  ;;  %v1361_v9 = vrot.slane %v1289_v39, 2  ;;  %v1362_v46 = vrot.slane %v1289_v39, 4 }
 0x153   : > { %v2508_v17 = vpack.c.bf16 %v2444_v42, %v2444_v42  ;;  %v2634_v28 = vunpack.c.l.b16 %v2506_v33  ;;  %v1363_v37 = vrot.slane %v1289_v39, 6  ;;  %v1654_v20 = vsel %vm1541_vm7, %v1289_v39, -inf  ;;  %v953_v15 = vpop.f32.mrf.mxu0 }
 0x154   : > { %v3605_v52 = vpop.f32.mrf.mxu3  ;;  %v2445_v40 = vmax.f32 %v3573_v53, %v1653_v11  ;;  %v2635_v32 = vunpack.c.l.b16 %v2507_v8  ;;  %v1655_v59 = vrot.slane %v1654_v20, 4  ;;  %v1661_v50 = vsel %vm1541_vm7, %v1361_v9, -inf }
 0x155   : > { %v2636_v5 = vunpack.c.l.b16 %v2508_v17  ;;  %v2701_v48 = vsel %vm2700_vm11, %v2634_v28, %v2699_v31  ;;  %v1662_v51 = vrot.slane %v1661_v50, 4  ;;  %v1668_v29 = vsel %vm1541_vm7, %v1362_v46, -inf  ;;  %v1052_v1 = vpop.f32.mrf.mxu1 }
 0x156   : > { %v2509_v54 = vpack.c.bf16 %v2445_v40, %v2445_v40  ;;  %v2703_v55 = vsel %vm2702_vm12, %v2635_v32, %v2701_v48  ;;  %v1656_v26 = vmax.f32 %v1654_v20, %v1655_v59  ;;  %v1669_v62 = vrot.slane %v1668_v29, 4 }
 0x157   : > { %v2705_v53 = vsel %vm2704_vm13, %v2636_v5, %v2703_v55  ;;  %v1663_v60 = vmax.f32 %v1661_v50, %v1662_v51  ;;  %v1675_v2 = vsel %vm1541_vm7, %v1363_v37, -inf  ;;  %v1258_v56 = vadd.f32 %v3507_v49, %v1222_v43 }
 0x158   : > { %v2637_v57 = vunpack.c.l.b16 %v2509_v54  ;;  %v1657_v27 = vrot.slane %v1656_v26, 2  ;;  %v1670_v13 = vmax.f32 %v1668_v29, %v1669_v62  ;;  %v1676_v14 = vrot.slane %v1675_v2, 4 }
 0x159   : > { %v1664_v41 = vrot.slane %v1663_v60, 2  ;;  %v1290_v47 = vmax.f32 %v1258_v56, 0.0  ;;  %v1223_v19 = vadd.f32 %v1152_v63, %v1051_v6  ;;  %v1053_v21 = vadd.f32 %v1052_v1, %v953_v15  ;;  %v1154_v32 = vpop.f32.mrf.mxu2 }
 0x15a   : > { %v2707_v18 = vsel %vm2706_vm14, %v2637_v57, %v2705_v53  ;;  %v1658_v22 = vmax.f32 %v1656_v26, %v1657_v27  ;;  %v1671_v23 = vrot.slane %v1670_v13, 2  ;;  %v1677_v7 = vmax.f32 %v1675_v2, %v1676_v14 }
 0x15b   : > { %v2757_v61 = vpack.c.b16 %v2707_v18, %v2707_v18  ;;  %v1665_v16 = vmax.f32 %v1663_v60, %v1664_v41  ;;  %v1364_v34 = vrot.slane %v1290_v47, 2  ;;  %v1365_v10 = vrot.slane %v1290_v47, 4  ;;  %v956_v2 = vpop.f32.mrf.mxu0 }
 0x15c   : > { %v1095_v4 = vpop.f32.mrf.mxu3  ;;  %v1659_v3 = vrot.slane %v1658_v22, 1  ;;  %v1672_v35 = vmax.f32 %v1670_v13, %v1671_v23  ;;  %v1678_v45 = vrot.slane %v1677_v7, 2  ;;  %v1366_v31 = vrot.slane %v1290_v47, 6 }
 0x15d   : > { %2774 = vst.msk [vmem:[%s3620_s5] sm:$0xf] %vm2773_vm15, %v2757_v61  ;;  %v1666_v36 = vrot.slane %v1665_v16, 1  ;;  %v1682_v38 = vsel %vm1541_vm7, %v1290_v47, -inf  ;;  %v1689_v39 = vsel %vm1541_vm7, %v1364_v34, -inf  ;;  %v1696_v42 = vsel %vm1541_vm7, %v1365_v10, -inf  ;;  %v1055_v51 = vpop.f32.mrf.mxu1 }
 0x15e   : > { %v3628_v33 = vmax.f32 %v1658_v22, %v1659_v3  ;;  %v1673_v43 = vrot.slane %v1672_v35, 1  ;;  %v1679_v6 = vmax.f32 %v1677_v7, %v1678_v45  ;;  %v1683_v11 = vrot.slane %v1682_v38, 4 }
 0x15f   : > { %v3630_v8 = vmax.f32 %v1665_v16, %v1666_v36  ;;  %v1690_v9 = vrot.slane %v1689_v39, 4  ;;  %v1697_v46 = vrot.slane %v1696_v42, 4  ;;  %v1703_v17 = vsel %vm1541_vm7, %v1366_v31, -inf }
 0x160   : > { %v3633_v28 = vmax.f32 %v1672_v35, %v1673_v43  ;;  %v1680_v37 = vrot.slane %v1679_v6, 1  ;;  %v1684_v20 = vmax.f32 %v1682_v38, %v1683_v11  ;;  %v1704_v40 = vrot.slane %v1703_v17, 4 }
 0x161   : > { %v1691_v59 = vmax.f32 %v1689_v39, %v1690_v9  ;;  %v1698_v50 = vmax.f32 %v1696_v42, %v1697_v46  ;;  %v1259_v5 = vadd.f32 %v3507_v49, %v1223_v19  ;;  %v1224_v48 = vadd.f32 %v1154_v32, %v1053_v21  ;;  %v1157_v42 = vpop.f32.mrf.mxu2 }
 0x162   : > { %v3636_v29 = vmax.f32 %v1679_v6, %v1680_v37  ;;  %v1685_v54 = vrot.slane %v1684_v20, 2  ;;  %v1705_v55 = vmax.f32 %v1703_v17, %v1704_v40  ;;  %v3639_v26 = vadd.f32 %v1095_v4, %v3502_v44 }
 0x163   : > { %v1692_v63 = vrot.slane %v1691_v59, 2  ;;  %v1699_v1 = vrot.slane %v1698_v50, 2  ;;  %v1291_v53 = vmax.f32 %v1259_v5, 0.0  ;;  %v1260_v60 = vadd.f32 %v3507_v49, %v1224_v48 }
 0x164   : > { %v1097_v62 = vpop.f32.mrf.mxu3  ;;  %v1686_v56 = vmax.f32 %v1684_v20, %v1685_v54  ;;  %v1706_v57 = vrot.slane %v1705_v55, 2  ;;  %v1056_v27 = vadd.f32 %v1055_v51, %v956_v2 }
 0x165   : > { %v3643_v13 = vadd.f32 %v1097_v62, %v3518_v12  ;;  %v1693_v14 = vmax.f32 %v1691_v59, %v1692_v63  ;;  %v1700_v15 = vmax.f32 %v1698_v50, %v1699_v1  ;;  %v1367_v41 = vrot.slane %v1291_v53, 2  ;;  %v3658_v5 = vpop.f32.mrf.mxu1 }
 0x166   : > { %v1368_v47 = vrot.slane %v1291_v53, 4  ;;  %v1687_v19 = vrot.slane %v1686_v56, 1  ;;  %v1707_v44 = vmax.f32 %v1705_v55, %v1706_v57  ;;  %v1369_v21 = vrot.slane %v1291_v53, 6 }
 0x167   : > { %v1710_v18 = vsel %vm1541_vm7, %v1291_v53, -inf  ;;  %v1694_v22 = vrot.slane %v1693_v14, 1  ;;  %v1701_v23 = vrot.slane %v1700_v15, 1  ;;  %v1717_v4 = vsel %vm1541_vm7, %v1367_v41, -inf }
 0x168   : > { %v1711_v7 = vrot.slane %v1710_v18, 4  ;;  %v3647_v61 = vmax.f32 %v1686_v56, %v1687_v19  ;;  %v1708_v16 = vrot.slane %v1707_v44, 1  ;;  %v1718_v34 = vrot.slane %v1717_v4, 4 }
 0x169   : > { %v1724_v12 = vsel %vm1541_vm7, %v1368_v47, -inf  ;;  %v3650_v10 = vmax.f32 %v1693_v14, %v1694_v22  ;;  %v3652_v3 = vmax.f32 %v1700_v15, %v1701_v23  ;;  %v1731_v38 = vsel %vm1541_vm7, %v1369_v21, -inf }
 0x16a   : > { %v1712_v35 = vmax.f32 %v1710_v18, %v1711_v7  ;;  %v1725_v45 = vrot.slane %v1724_v12, 4  ;;  %v3654_v31 = vmax.f32 %v1707_v44, %v1708_v16  ;;  %v1719_v36 = vmax.f32 %v1717_v4, %v1718_v34 }
 0x16b   : > { %v1292_v39 = vmax.f32 %v1260_v60, 0.0  ;;  %v1732_v11 = vrot.slane %v1731_v38, 4  ;;  %v1225_v9 = vadd.f32 %v1157_v42, %v1056_v27  ;;  %v958_v60 = vpop.f32.mrf.mxu0 }
 0x16c   : > { %v1713_v43 = vrot.slane %v1712_v35, 2  ;;  %v1726_v6 = vmax.f32 %v1724_v12, %v1725_v45  ;;  %v1720_v46 = vrot.slane %v1719_v36, 2  ;;  %v3665_v45 = vpop.f32.mrf.mxu2 }
 0x16d   : > { %v1370_v17 = vrot.slane %v1292_v39, 2  ;;  %v1371_v37 = vrot.slane %v1292_v39, 4  ;;  %v1372_v20 = vrot.slane %v1292_v39, 6  ;;  %v1733_v59 = vmax.f32 %v1731_v38, %v1732_v11 }
 0x16e   : > { %v1714_v40 = vmax.f32 %v1712_v35, %v1713_v43  ;;  %v1727_v32 = vrot.slane %v1726_v6, 2  ;;  %v1738_v50 = vsel %vm1541_vm7, %v1292_v39, -inf  ;;  %v1721_v48 = vmax.f32 %v1719_v36, %v1720_v46 }
 0x16f   : > { %v1739_v51 = vrot.slane %v1738_v50, 4  ;;  %v1745_v54 = vsel %vm1541_vm7, %v1370_v17, -inf  ;;  %v1752_v55 = vsel %vm1541_vm7, %v1371_v37, -inf  ;;  %v1734_v1 = vrot.slane %v1733_v59, 2  ;;  %v3668_v17 = vpop.f32.mrf.mxu3 }
 0x170   : > { %v1715_v62 = vrot.slane %v1714_v40, 1  ;;  %v1728_v63 = vmax.f32 %v1726_v6, %v1727_v32  ;;  %v1746_v53 = vrot.slane %v1745_v54, 4  ;;  %v1722_v2 = vrot.slane %v1721_v48, 1 }
 0x171   : > { %v1740_v56 = vmax.f32 %v1738_v50, %v1739_v51  ;;  %v1753_v57 = vrot.slane %v1752_v55, 4  ;;  %v1759_v27 = vsel %vm1541_vm7, %v1372_v20, -inf  ;;  %v1735_v41 = vmax.f32 %v1733_v59, %v1734_v1 }
 0x172   : > { %v1716_v14 = vmax.f32 %v1714_v40, %v1715_v62  ;;  %v1729_v15 = vrot.slane %v1728_v63, 1  ;;  %v1747_v47 = vmax.f32 %v1745_v54, %v1746_v53  ;;  %v1723_v19 = vmax.f32 %v1721_v48, %v1722_v2  ;;  %v1060_v40 = vpop.f32.mrf.mxu1 }
 0x173   : > { %v1741_v44 = vrot.slane %v1740_v56, 2  ;;  %v1754_v21 = vmax.f32 %v1752_v55, %v1753_v57  ;;  %v1760_v18 = vrot.slane %v1759_v27, 4  ;;  %v1736_v23 = vrot.slane %v1735_v41, 1  ;;  %v961_v62 = vpop.f32.mrf.mxu0 }
 0x174   : > { %v1730_v22 = vmax.f32 %v1728_v63, %v1729_v15  ;;  %v2446_v7 = vmax.f32 %v3628_v33, %v1716_v14  ;;  %v1748_v4 = vrot.slane %v1747_v47, 2  ;;  %v2447_v16 = vmax.f32 %v3630_v8, %v1723_v19 }
 0x175   : > { %v1742_v34 = vmax.f32 %v1740_v56, %v1741_v44  ;;  %v1755_v12 = vrot.slane %v1754_v21, 2  ;;  %v1761_v35 = vmax.f32 %v1759_v27, %v1760_v18  ;;  %v1737_v36 = vmax.f32 %v1735_v41, %v1736_v23 }
 0x176   : > { %v2448_v38 = vmax.f32 %v3633_v28, %v1730_v22  ;;  %v2510_v39 = vpack.c.bf16 %v2446_v7, %v2446_v7  ;;  %v1749_v42 = vmax.f32 %v1747_v47, %v1748_v4  ;;  %v2511_v43 = vpack.c.bf16 %v2447_v16, %v2447_v16  ;;  %v1162_v7 = vpop.f32.mrf.mxu2 }
 0x177   : > { %v1743_v6 = vrot.slane %v1742_v34, 1  ;;  %v1756_v11 = vmax.f32 %v1754_v21, %v1755_v12  ;;  %v1762_v46 = vrot.slane %v1761_v35, 2  ;;  %v2449_v33 = vmax.f32 %v3636_v29, %v1737_v36 }
 0x178   : > { %v2512_v37 = vpack.c.bf16 %v2448_v38, %v2448_v38  ;;  %v2638_v8 = vunpack.c.l.b16 %v2510_v39  ;;  %v1750_v20 = vrot.slane %v1749_v42, 1  ;;  %v2639_v32 = vunpack.c.l.b16 %v2511_v43 }
 0x179   : > { %v1744_v59 = vmax.f32 %v1742_v34, %v1743_v6  ;;  %v1757_v50 = vrot.slane %v1756_v11, 1  ;;  %v1763_v48 = vmax.f32 %v1761_v35, %v1762_v46  ;;  %v2513_v51 = vpack.c.bf16 %v2449_v33, %v2449_v33  ;;  %v3684_v35 = vpop.f32.mrf.mxu3 }
 0x17a   : > { %v2640_v28 = vunpack.c.l.b16 %v2512_v37  ;;  %v1751_v54 = vmax.f32 %v1749_v42, %v1750_v20  ;;  %v1261_v55 = vadd.f32 %v3507_v49, %v1225_v9  ;;  %v2708_v63 = vsel %vm2694_vm8, %v2639_v32, %v2638_v8  ;;  %v1062_v42 = vpop.f32.mrf.mxu1 }
 0x17b   : > { %v1758_v1 = vmax.f32 %v1756_v11, %v1757_v50  ;;  %v1764_v53 = vrot.slane %v1763_v48, 1  ;;  %v2450_v29 = vmax.f32 %v3647_v61, %v1744_v59  ;;  %v2641_v2 = vunpack.c.l.b16 %v2513_v51  ;;  %v963_v20 = vpop.f32.mrf.mxu0 }
 0x17c   : > { %v2709_v56 = vsel %vm2696_vm9, %v2640_v28, %v2708_v63  ;;  %v2451_v57 = vmax.f32 %v3650_v10, %v1751_v54  ;;  %v1293_v27 = vmax.f32 %v1261_v55, 0.0  ;;  %v1058_v47 = vadd.f32 %v3658_v5, %v958_v60 }
 0x17d   : > { %v1765_v14 = vmax.f32 %v1763_v48, %v1764_v53  ;;  %v2452_v15 = vmax.f32 %v3652_v3, %v1758_v1  ;;  %v2514_v41 = vpack.c.bf16 %v2450_v29, %v2450_v29  ;;  %v2710_v9 = vsel %vm2698_vm10, %v2641_v2, %v2709_v56 }
 0x17e   : > { %v2515_v19 = vpack.c.bf16 %v2451_v57, %v2451_v57  ;;  %v1373_v44 = vrot.slane %v1293_v27, 2  ;;  %v1374_v21 = vrot.slane %v1293_v27, 4  ;;  %v1375_v23 = vrot.slane %v1293_v27, 6 }
 0x17f   : > { %v2453_v18 = vmax.f32 %v3654_v31, %v1765_v14  ;;  %v2516_v61 = vpack.c.bf16 %v2452_v15, %v2452_v15  ;;  %v2642_v22 = vunpack.c.l.b16 %v2514_v41  ;;  %v1766_v10 = vsel %vm1541_vm7, %v1293_v27, -inf  ;;  %v1164_v27 = vpop.f32.mrf.mxu2 }
 0x180   : > { %v2643_v4 = vunpack.c.l.b16 %v2515_v19  ;;  %v1773_v16 = vsel %vm1541_vm7, %v1373_v44, -inf  ;;  %v1780_v3 = vsel %vm1541_vm7, %v1374_v21, -inf  ;;  %v1767_v12 = vrot.slane %v1766_v10, 4 }
 0x181   : > { %v2517_v34 = vpack.c.bf16 %v2453_v18, %v2453_v18  ;;  %v2644_v5 = vunpack.c.l.b16 %v2516_v61  ;;  %v2711_v60 = vsel %vm2700_vm11, %v2642_v22, %v2710_v9  ;;  %v1774_v36 = vrot.slane %v1773_v16, 4  ;;  %v3696_v44 = vpop.f32.mrf.mxu3 }
 0x182   : > { %v2712_v31 = vsel %vm2702_vm12, %v2643_v4, %v2711_v60  ;;  %v1781_v38 = vrot.slane %v1780_v3, 4  ;;  %v1787_v39 = vsel %vm1541_vm7, %v1375_v23, -inf  ;;  %v1768_v11 = vmax.f32 %v1766_v10, %v1767_v12  ;;  %v1065_v23 = vpop.f32.mrf.mxu1 }
 0x183   : > { %v2645_v43 = vunpack.c.l.b16 %v2517_v34  ;;  %v2713_v6 = vsel %vm2704_vm13, %v2644_v5, %v2712_v31  ;;  %v1788_v46 = vrot.slane %v1787_v39, 4  ;;  %v1775_v33 = vmax.f32 %v1773_v16, %v1774_v36  ;;  %v966_v60 = vpop.f32.mrf.mxu0 }
 0x184   : > { %v1782_v37 = vmax.f32 %v1780_v3, %v1781_v38  ;;  %v1226_v8 = vadd.f32 %v3665_v45, %v1058_v47  ;;  %v1769_v59 = vrot.slane %v1768_v11, 2  ;;  %v1061_v48 = vadd.f32 %v1060_v40, %v961_v62 }
 0x185   : > { %v2714_v32 = vsel %vm2706_vm14, %v2645_v43, %v2713_v6  ;;  %v1789_v50 = vmax.f32 %v1787_v39, %v1788_v46  ;;  %v1776_v28 = vrot.slane %v1775_v33, 2  ;;  %v1063_v19 = vadd.f32 %v1062_v42, %v963_v20 }
 0x186   : > { %v2758_v51 = vpack.c.b16 %v2714_v32, %v2714_v32  ;;  %v1783_v54 = vrot.slane %v1782_v37, 2  ;;  %v1262_v55 = vadd.f32 %v3507_v49, %v1226_v8  ;;  %v1770_v63 = vmax.f32 %v1768_v11, %v1769_v59 }
 0x187   : > { %v1790_v1 = vrot.slane %v1789_v50, 2  ;;  %v1227_v53 = vadd.f32 %v1162_v7, %v1061_v48  ;;  %v1777_v29 = vmax.f32 %v1775_v33, %v1776_v28  ;;  %v1228_v36 = vadd.f32 %v1164_v27, %v1063_v19 }
 0x188   : > { %2775 = vst.msk [vmem:[%s3620_s5 + $0x4] sm:$0xf] %vm2773_vm15, %v2758_v51  ;;  %v1784_v2 = vmax.f32 %v1782_v37, %v1783_v54  ;;  %v1294_v56 = vmax.f32 %v1262_v55, 0.0  ;;  %v1771_v45 = vrot.slane %v1770_v63, 1  ;;  %v1066_v38 = vadd.f32 %v1065_v23, %v966_v60  ;;  %v1167_v54 = vpop.f32.mrf.mxu2 }
 0x189   : > { %v1791_v57 = vmax.f32 %v1789_v50, %v1790_v1  ;;  %v1778_v14 = vrot.slane %v1777_v29, 1  ;;  %v1263_v40 = vadd.f32 %v3507_v49, %v1227_v53  ;;  %v3711_v27 = vpop.f32.mrf.mxu3 }
 0x18a   : > { %v1376_v15 = vrot.slane %v1294_v56, 2  ;;  %v1377_v41 = vrot.slane %v1294_v56, 4  ;;  %v1785_v62 = vrot.slane %v1784_v2, 1  ;;  %v1378_v47 = vrot.slane %v1294_v56, 6 }
 0x18b   : > { %v1794_v9 = vsel %vm1541_vm7, %v1294_v56, -inf  ;;  %v3698_v21 = vmax.f32 %v1770_v63, %v1771_v45  ;;  %v1792_v18 = vrot.slane %v1791_v57, 1  ;;  %v3701_v7 = vmax.f32 %v1777_v29, %v1778_v14 }
 0x18c   : > { %v1795_v61 = vrot.slane %v1794_v9, 4  ;;  %v1801_v22 = vsel %vm1541_vm7, %v1376_v15, -inf  ;;  %v1808_v10 = vsel %vm1541_vm7, %v1377_v41, -inf  ;;  %v1815_v49 = vsel %vm1541_vm7, %v1378_v47, -inf }
 0x18d   : > { %v1802_v4 = vrot.slane %v1801_v22, 4  ;;  %v1809_v3 = vrot.slane %v1808_v10, 4  ;;  %v1816_v34 = vrot.slane %v1815_v49, 4  ;;  %v1295_v5 = vmax.f32 %v1263_v40, 0.0 }
 0x18e   : > { %v1796_v16 = vmax.f32 %v1794_v9, %v1795_v61  ;;  %v3705_v12 = vmax.f32 %v1784_v2, %v1785_v62  ;;  %v1793_v14 = vmax.f32 %v1791_v57, %v1792_v18  ;;  %v1067_v62 = vpop.f32.mrf.mxu1  ;;  %v968_v18 = vpop.f32.mrf.mxu0 }
 0x18f   : > { %v1803_v31 = vmax.f32 %v1801_v22, %v1802_v4  ;;  %v1810_v42 = vmax.f32 %v1808_v10, %v1809_v3  ;;  %v1817_v43 = vmax.f32 %v1815_v49, %v1816_v34  ;;  %v1379_v6 = vrot.slane %v1295_v5, 2  ;;  %v3722_v10 = vld [vmem:[%s4148_s2] ss:$0 sm:$0xff] }
 0x190   : > { %v1797_v39 = vrot.slane %v1796_v16, 2  ;;  %v1380_v46 = vrot.slane %v1295_v5, 4  ;;  %v1381_v33 = vrot.slane %v1295_v5, 6  ;;  %v1822_v37 = vsel %vm1541_vm7, %v1295_v5, -inf }
 0x191   : > { %v1804_v11 = vrot.slane %v1803_v31, 2  ;;  %v1811_v20 = vrot.slane %v1810_v42, 2  ;;  %v1818_v32 = vrot.slane %v1817_v43, 2  ;;  %v1823_v59 = vrot.slane %v1822_v37, 4 }
 0x192   : > { %v1798_v8 = vmax.f32 %v1796_v16, %v1797_v39  ;;  %v1829_v48 = vsel %vm1541_vm7, %v1379_v6, -inf  ;;  %v1836_v51 = vsel %vm1541_vm7, %v1380_v46, -inf  ;;  %v1843_v28 = vsel %vm1541_vm7, %v1381_v33, -inf }
 0x193   : > { %v1805_v50 = vmax.f32 %v1803_v31, %v1804_v11  ;;  %v1812_v63 = vmax.f32 %v1810_v42, %v1811_v20  ;;  %v1819_v1 = vmax.f32 %v1817_v43, %v1818_v32  ;;  %v1824_v53 = vmax.f32 %v1822_v37, %v1823_v59  ;;  %v3731_v59 = vpop.f32.mrf.mxu2 }
 0x194   : > { %v1799_v55 = vrot.slane %v1798_v8, 1  ;;  %v1830_v2 = vrot.slane %v1829_v48, 4  ;;  %v1837_v56 = vrot.slane %v1836_v51, 4  ;;  %v1844_v45 = vrot.slane %v1843_v28, 4 }
 0x195   : > { %v1806_v29 = vrot.slane %v1805_v50, 1  ;;  %v1813_v15 = vrot.slane %v1812_v63, 1  ;;  %v1820_v41 = vrot.slane %v1819_v1, 1  ;;  %v1825_v40 = vrot.slane %v1824_v53, 2 }
 0x196   : > { %v3713_v47 = vmax.f32 %v1798_v8, %v1799_v55  ;;  %v1831_v9 = vmax.f32 %v1829_v48, %v1830_v2  ;;  %v1838_v19 = vmax.f32 %v1836_v51, %v1837_v56  ;;  %v1845_v61 = vmax.f32 %v1843_v28, %v1844_v45 }
 0x197   : > { %v3715_v22 = vmax.f32 %v1805_v50, %v1806_v29  ;;  %v3717_v23 = vmax.f32 %v1812_v63, %v1813_v15  ;;  %v1826_v4 = vmax.f32 %v1824_v53, %v1825_v40  ;;  %v1264_v57 = vadd.f32 %v3722_v10, %v1228_v36  ;;  %v3736_v53 = vpop.f32.mrf.mxu3  ;;  %v3739_v15 = vpop.f32.mrf.mxu1 }
 0x198   : > { %v1832_v49 = vrot.slane %v1831_v9, 2  ;;  %v1839_v16 = vrot.slane %v1838_v19, 2  ;;  %v1846_v3 = vrot.slane %v1845_v61, 2  ;;  %v1229_v34 = vadd.f32 %v1167_v54, %v1066_v38 }
 0x199   : > { %v3725_v5 = vmax.f32 %v1819_v1, %v1820_v41  ;;  %v1827_v60 = vrot.slane %v1826_v4, 1  ;;  %v1296_v31 = vmax.f32 %v1264_v57, 0.0  ;;  %v3727_v39 = vadd.f32 %v1067_v62, %v968_v18  ;;  %v3743_v57 = vpop.f32.mrf.mxu0 }
 0x19a   : > { %v1833_v42 = vmax.f32 %v1831_v9, %v1832_v49  ;;  %v1840_v43 = vmax.f32 %v1838_v19, %v1839_v16  ;;  %v1847_v6 = vmax.f32 %v1845_v61, %v1846_v3  ;;  %v1265_v11 = vadd.f32 %v3722_v10, %v1229_v34 }
 0x19b   : > { %v1828_v46 = vmax.f32 %v1826_v4, %v1827_v60  ;;  %v1382_v33 = vrot.slane %v1296_v31, 2  ;;  %v1383_v37 = vrot.slane %v1296_v31, 4  ;;  %v1384_v36 = vrot.slane %v1296_v31, 6 }
 0x19c   : > { %v1834_v8 = vrot.slane %v1833_v42, 1  ;;  %v1841_v20 = vrot.slane %v1840_v43, 1  ;;  %v1848_v32 = vrot.slane %v1847_v6, 1  ;;  %v1850_v38 = vsel %vm1541_vm7, %v1296_v31, -inf }
 0x19d   : > { %v2454_v50 = vmax.f32 %v3698_v21, %v1828_v46  ;;  %v1851_v48 = vrot.slane %v1850_v38, 4  ;;  %v1857_v51 = vsel %vm1541_vm7, %v1382_v33, -inf  ;;  %v1864_v28 = vsel %vm1541_vm7, %v1383_v37, -inf }
 0x19e   : > { %v1835_v54 = vmax.f32 %v1833_v42, %v1834_v8  ;;  %v1842_v55 = vmax.f32 %v1840_v43, %v1841_v20  ;;  %v1849_v63 = vmax.f32 %v1847_v6, %v1848_v32  ;;  %v1858_v1 = vrot.slane %v1857_v51, 4 }
 0x19f   : > { %v2518_v29 = vpack.c.bf16 %v2454_v50, %v2454_v50  ;;  %v1852_v2 = vmax.f32 %v1850_v38, %v1851_v48  ;;  %v1865_v56 = vrot.slane %v1864_v28, 4  ;;  %v1871_v45 = vsel %vm1541_vm7, %v1384_v36, -inf  ;;  %v1172_v38 = vpop.f32.mrf.mxu2 }
 0x1a0   : > { %v2455_v21 = vmax.f32 %v3701_v7, %v1835_v54  ;;  %v2456_v41 = vmax.f32 %v3705_v12, %v1842_v55  ;;  %v2457_v40 = vmax.f32 %v1793_v14, %v1849_v63  ;;  %v1859_v62 = vmax.f32 %v1857_v51, %v1858_v1  ;;  %v3750_v1 = vpop.f32.mrf.mxu3 }
 0x1a1   : > { %v2646_v9 = vunpack.c.l.b16 %v2518_v29  ;;  %v1853_v19 = vrot.slane %v1852_v2, 2  ;;  %v1866_v61 = vmax.f32 %v1864_v28, %v1865_v56  ;;  %v1872_v4 = vrot.slane %v1871_v45, 4 }
 0x1a2   : > { %v2519_v18 = vpack.c.bf16 %v2455_v21, %v2455_v21  ;;  %v2520_v49 = vpack.c.bf16 %v2456_v41, %v2456_v41  ;;  %v2521_v16 = vpack.c.bf16 %v2457_v40, %v2457_v40  ;;  %v1860_v3 = vrot.slane %v1859_v62, 2  ;;  %v1072_v21 = vpop.f32.mrf.mxu1 }
 0x1a3   : > { %v1854_v34 = vmax.f32 %v1852_v2, %v1853_v19  ;;  %v1867_v60 = vrot.slane %v1866_v61, 2  ;;  %v1873_v31 = vmax.f32 %v1871_v45, %v1872_v4  ;;  %v1297_v42 = vmax.f32 %v1265_v11, 0.0 }
 0x1a4   : > { %v2647_v43 = vunpack.c.l.b16 %v2519_v18  ;;  %v2648_v7 = vunpack.c.l.b16 %v2520_v49  ;;  %v2649_v6 = vunpack.c.l.b16 %v2521_v16  ;;  %v1861_v12 = vmax.f32 %v1859_v62, %v1860_v3  ;;  %v973_v49 = vpop.f32.mrf.mxu0 }
 0x1a5   : > { %v1855_v14 = vrot.slane %v1854_v34, 1  ;;  %v1868_v46 = vmax.f32 %v1866_v61, %v1867_v60  ;;  %v1874_v33 = vrot.slane %v1873_v31, 2  ;;  %v1385_v37 = vrot.slane %v1297_v42, 2 }
 0x1a6   : > { %v2715_v36 = vsel %vm2694_vm8, %v2647_v43, %v2646_v9  ;;  %v1862_v8 = vrot.slane %v1861_v12, 1  ;;  %v1386_v20 = vrot.slane %v1297_v42, 4  ;;  %v1387_v32 = vrot.slane %v1297_v42, 6 }
 0x1a7   : > { %v2716_v50 = vsel %vm2696_vm9, %v2648_v7, %v2715_v36  ;;  %v1856_v48 = vmax.f32 %v1854_v34, %v1855_v14  ;;  %v1869_v51 = vrot.slane %v1868_v46, 1  ;;  %v1875_v28 = vmax.f32 %v1873_v31, %v1874_v33 }
 0x1a8   : > { %v2717_v11 = vsel %vm2698_vm10, %v2649_v6, %v2716_v50  ;;  %v1863_v54 = vmax.f32 %v1861_v12, %v1862_v8  ;;  %v1878_v55 = vsel %vm1541_vm7, %v1297_v42, -inf  ;;  %v1885_v63 = vsel %vm1541_vm7, %v1385_v37, -inf }
 0x1a9   : > { %v1870_v29 = vmax.f32 %v1868_v46, %v1869_v51  ;;  %v1876_v2 = vrot.slane %v1875_v28, 1  ;;  %v2458_v56 = vmax.f32 %v3713_v47, %v1856_v48  ;;  %v1879_v45 = vrot.slane %v1878_v55, 4 }
 0x1aa   : > { %v2459_v41 = vmax.f32 %v3715_v22, %v1863_v54  ;;  %v1886_v40 = vrot.slane %v1885_v63, 4  ;;  %v1892_v62 = vsel %vm1541_vm7, %v1386_v20, -inf  ;;  %v1899_v9 = vsel %vm1541_vm7, %v1387_v32, -inf  ;;  %v1174_v32 = vpop.f32.mrf.mxu2 }
 0x1ab   : > { %v1877_v19 = vmax.f32 %v1875_v28, %v1876_v2  ;;  %v2460_v61 = vmax.f32 %v3717_v23, %v1870_v29  ;;  %v2522_v4 = vpack.c.bf16 %v2458_v56, %v2458_v56  ;;  %v1880_v18 = vmax.f32 %v1878_v55, %v1879_v45  ;;  %v1075_v56 = vpop.f32.mrf.mxu1 }
 0x1ac   : > { %v2523_v16 = vpack.c.bf16 %v2459_v41, %v2459_v41  ;;  %v1887_v3 = vmax.f32 %v1885_v63, %v1886_v40  ;;  %v1893_v34 = vrot.slane %v1892_v62, 4  ;;  %v1900_v60 = vrot.slane %v1899_v9, 4  ;;  %v1197_v63 = vpop.f32.mrf.mxu3 }
 0x1ad   : > { %v2461_v47 = vmax.f32 %v3725_v5, %v1877_v19  ;;  %v2524_v31 = vpack.c.bf16 %v2460_v61, %v2460_v61  ;;  %v2650_v42 = vunpack.c.l.b16 %v2522_v4  ;;  %v1881_v22 = vrot.slane %v1880_v18, 2 }
 0x1ae   : > { %v2651_v43 = vunpack.c.l.b16 %v2523_v16  ;;  %v1888_v7 = vrot.slane %v1887_v3, 2  ;;  %v1894_v6 = vmax.f32 %v1892_v62, %v1893_v34  ;;  %v1901_v12 = vmax.f32 %v1899_v9, %v1900_v60 }
 0x1af   : > { %v2525_v14 = vpack.c.bf16 %v2461_v47, %v2461_v47  ;;  %v2652_v46 = vunpack.c.l.b16 %v2524_v31  ;;  %v2718_v23 = vsel %vm2700_vm11, %v2650_v42, %v2717_v11  ;;  %v1882_v33 = vmax.f32 %v1880_v18, %v1881_v22 }
 0x1b0   : > { %v2719_v37 = vsel %vm2702_vm12, %v2651_v43, %v2718_v23  ;;  %v1889_v36 = vmax.f32 %v1887_v3, %v1888_v7  ;;  %v1895_v8 = vrot.slane %v1894_v6, 2  ;;  %v1902_v20 = vrot.slane %v1901_v12, 2 }
 0x1b1   : > { %v2653_v50 = vunpack.c.l.b16 %v2525_v14  ;;  %v2720_v5 = vsel %vm2704_vm13, %v2652_v46, %v2719_v37  ;;  %v1883_v48 = vrot.slane %v1882_v33, 1  ;;  %v1230_v51 = vadd.f32 %v3731_v59, %v3727_v39  ;;  %v976_v39 = vpop.f32.mrf.mxu0 }
 0x1b2   : > { %v1890_v28 = vrot.slane %v1889_v36, 1  ;;  %v1896_v54 = vmax.f32 %v1894_v6, %v1895_v8  ;;  %v1903_v55 = vmax.f32 %v1901_v12, %v1902_v20  ;;  %v1071_v11 = vadd.f32 %v3739_v15, %v3743_v57  ;;  %v1177_v12 = vpop.f32.mrf.mxu2 }
 0x1b3   : > { %v2721_v29 = vsel %vm2706_vm14, %v2653_v50, %v2720_v5  ;;  %v1266_v2 = vadd.f32 %v3722_v10, %v1230_v51  ;;  %v1073_v19 = vadd.f32 %v1072_v21, %v973_v49  ;;  %v1241_v59 = vadd.f32 %v1197_v63, %v3639_v26 }
 0x1b4   : > { %v2759_v45 = vpack.c.b16 %v2721_v29, %v2721_v29  ;;  %v1897_v41 = vrot.slane %v1896_v54, 1  ;;  %v1904_v40 = vrot.slane %v1903_v55, 1  ;;  %v1231_v9 = vadd.f32 %v1172_v38, %v1071_v11 }
 0x1b5   : > { %v1298_v62 = vmax.f32 %v1266_v2, 0.0  ;;  %v3770_v61 = vmax.f32 %v1882_v33, %v1883_v48  ;;  %v3772_v15 = vmax.f32 %v1889_v36, %v1890_v28  ;;  %v1076_v4 = vadd.f32 %v1075_v56, %v976_v39 }
 0x1b6   : > { %2776 = vst.msk [vmem:[%s3620_s5 + $0x8] sm:$0xf] %vm2773_vm15, %v2759_v45  ;;  %v3774_v57 = vmax.f32 %v1896_v54, %v1897_v41  ;;  %v1267_v38 = vadd.f32 %v3722_v10, %v1231_v9  ;;  %v1232_v21 = vadd.f32 %v1174_v32, %v1073_v19  ;;  %v1277_v26 = vadd.f32 %v3722_v10, %v1241_v59 }
 0x1b7   : > { %v1388_v18 = vrot.slane %v1298_v62, 2  ;;  %v1389_v16 = vrot.slane %v1298_v62, 4  ;;  %v1390_v3 = vrot.slane %v1298_v62, 6  ;;  %v1906_v34 = vsel %vm1541_vm7, %v1298_v62, -inf }
 0x1b8   : > { %v1907_v60 = vrot.slane %v1906_v34, 4  ;;  %v3779_v49 = vmax.f32 %v1903_v55, %v1904_v40  ;;  %v1299_v14 = vmax.f32 %v1267_v38, 0.0  ;;  %v1268_v46 = vadd.f32 %v3722_v10, %v1232_v21 }
 0x1b9   : > { %v1913_v47 = vsel %vm1541_vm7, %v1388_v18, -inf  ;;  %v1920_v31 = vsel %vm1541_vm7, %v1389_v16, -inf  ;;  %v1927_v42 = vsel %vm1541_vm7, %v1390_v3, -inf  ;;  %v3785_v23 = vmax.f32 %v1277_v26, 0.0 }
 0x1ba   : > { %v1908_v22 = vmax.f32 %v1906_v34, %v1907_v60  ;;  %v1914_v43 = vrot.slane %v1913_v47, 4  ;;  %v1921_v7 = vrot.slane %v1920_v31, 4  ;;  %v1928_v6 = vrot.slane %v1927_v42, 4 }
 0x1bb   : > { %v1233_v33 = vadd.f32 %v1177_v12, %v1076_v4  ;;  %v1391_v32 = vrot.slane %v1299_v14, 2  ;;  %v1392_v50 = vrot.slane %v1299_v14, 4  ;;  %v1393_v5 = vrot.slane %v1299_v14, 6 }
 0x1bc   : > { %v1909_v37 = vrot.slane %v1908_v22, 2  ;;  %v1915_v36 = vmax.f32 %v1913_v47, %v1914_v43  ;;  %v1922_v8 = vmax.f32 %v1920_v31, %v1921_v7  ;;  %v1929_v20 = vmax.f32 %v1927_v42, %v1928_v6 }
 0x1bd   : > { %v1934_v48 = vsel %vm1541_vm7, %v1299_v14, -inf  ;;  %v1941_v63 = vsel %vm1541_vm7, %v1391_v32, -inf  ;;  %v1948_v29 = vsel %vm1541_vm7, %v1392_v50, -inf  ;;  %v1955_v2 = vsel %vm1541_vm7, %v1393_v5, -inf }
 0x1be   : > { %v1910_v51 = vmax.f32 %v1908_v22, %v1909_v37  ;;  %v1916_v28 = vrot.slane %v1915_v36, 2  ;;  %v1923_v54 = vrot.slane %v1922_v8, 2  ;;  %v1930_v55 = vrot.slane %v1929_v20, 2 }
 0x1bf   : > { %v1935_v11 = vrot.slane %v1934_v48, 4  ;;  %v1942_v9 = vrot.slane %v1941_v63, 4  ;;  %v1949_v19 = vrot.slane %v1948_v29, 4  ;;  %v1956_v39 = vrot.slane %v1955_v2, 4 }
 0x1c0   : > { %v1911_v56 = vrot.slane %v1910_v51, 1  ;;  %v1917_v45 = vmax.f32 %v1915_v36, %v1916_v28  ;;  %v1924_v41 = vmax.f32 %v1922_v8, %v1923_v54  ;;  %v1931_v40 = vmax.f32 %v1929_v20, %v1930_v55 }
 0x1c1   : > { %v1936_v62 = vmax.f32 %v1934_v48, %v1935_v11  ;;  %v3794_v16 = vadd.f32 %v3722_v10, %v1233_v33  ;;  %v1943_v34 = vmax.f32 %v1941_v63, %v1942_v9  ;;  %v1950_v60 = vmax.f32 %v1948_v29, %v1949_v19 }
 0x1c2   : > { %v3791_v59 = vmax.f32 %v1910_v51, %v1911_v56  ;;  %v1918_v4 = vrot.slane %v1917_v45, 1  ;;  %v1925_v18 = vrot.slane %v1924_v41, 1  ;;  %v1957_v38 = vmax.f32 %v1955_v2, %v1956_v39 }
 0x1c3   : > { %v1937_v3 = vrot.slane %v1936_v62, 2  ;;  %v1932_v47 = vrot.slane %v1931_v40, 1  ;;  %v1300_v31 = vmax.f32 %v1268_v46, 0.0  ;;  %v1944_v22 = vrot.slane %v1943_v34, 2 }
 0x1c4   : > { %v3796_v21 = vmax.f32 %v1917_v45, %v1918_v4  ;;  %v3798_v26 = vmax.f32 %v1924_v41, %v1925_v18  ;;  %v1951_v43 = vrot.slane %v1950_v60, 2  ;;  %v1958_v7 = vrot.slane %v1957_v38, 2 }
 0x1c5   : > { %v1938_v42 = vmax.f32 %v1936_v62, %v1937_v3  ;;  %v1394_v6 = vrot.slane %v1300_v31, 2  ;;  %v1395_v12 = vrot.slane %v1300_v31, 4  ;;  %v1396_v14 = vrot.slane %v1300_v31, 6 }
 0x1c6   : > { %v1962_v33 = vsel %vm1541_vm7, %v1300_v31, -inf  ;;  %v1945_v36 = vmax.f32 %v1943_v34, %v1944_v22  ;;  %v1952_v8 = vmax.f32 %v1950_v60, %v1951_v43  ;;  %v1959_v20 = vmax.f32 %v1957_v38, %v1958_v7 }
 0x1c7   : > { %v1939_v37 = vrot.slane %v1938_v42, 1  ;;  %v1963_v32 = vrot.slane %v1962_v33, 4  ;;  %v1969_v50 = vsel %vm1541_vm7, %v1394_v6, -inf  ;;  %v1976_v5 = vsel %vm1541_vm7, %v1395_v12, -inf }
 0x1c8   : > { %v1983_v46 = vsel %vm1541_vm7, %v1396_v14, -inf  ;;  %v1946_v51 = vrot.slane %v1945_v36, 1  ;;  %v1953_v28 = vrot.slane %v1952_v8, 1  ;;  %v1960_v54 = vrot.slane %v1959_v20, 1 }
 0x1c9   : > { %v1940_v48 = vmax.f32 %v1938_v42, %v1939_v37  ;;  %v1964_v55 = vmax.f32 %v1962_v33, %v1963_v32  ;;  %v1970_v11 = vrot.slane %v1969_v50, 4  ;;  %v1977_v63 = vrot.slane %v1976_v5, 4 }
 0x1ca   : > { %v1984_v29 = vrot.slane %v1983_v46, 4  ;;  %v1947_v2 = vmax.f32 %v1945_v36, %v1946_v51  ;;  %v1954_v56 = vmax.f32 %v1952_v8, %v1953_v28  ;;  %v1961_v45 = vmax.f32 %v1959_v20, %v1960_v54 }
 0x1cb   : > { %v2462_v41 = vmax.f32 %v3770_v61, %v1940_v48  ;;  %v1965_v62 = vrot.slane %v1964_v55, 2  ;;  %v1971_v9 = vmax.f32 %v1969_v50, %v1970_v11  ;;  %v1978_v19 = vmax.f32 %v1976_v5, %v1977_v63 }
 0x1cc   : > { %v1985_v39 = vmax.f32 %v1983_v46, %v1984_v29  ;;  %v2463_v4 = vmax.f32 %v3772_v15, %v1947_v2  ;;  %v2464_v18 = vmax.f32 %v3774_v57, %v1954_v56  ;;  %v2465_v3 = vmax.f32 %v3779_v49, %v1961_v45 }
 0x1cd   : > { %v2526_v34 = vpack.c.bf16 %v2462_v41, %v2462_v41  ;;  %v1966_v60 = vmax.f32 %v1964_v55, %v1965_v62  ;;  %v1972_v38 = vrot.slane %v1971_v9, 2  ;;  %v1979_v31 = vrot.slane %v1978_v19, 2 }
 0x1ce   : > { %v1986_v42 = vrot.slane %v1985_v39, 2  ;;  %v1933_v22 = vmax.f32 %v1931_v40, %v1932_v47  ;;  %v2527_v43 = vpack.c.bf16 %v2463_v4, %v2463_v4  ;;  %v2528_v7 = vpack.c.bf16 %v2464_v18, %v2464_v18 }
 0x1cf   : > { %v2529_v6 = vpack.c.bf16 %v2465_v3, %v2465_v3  ;;  %v1967_v61 = vrot.slane %v1966_v60, 1  ;;  %v1973_v12 = vmax.f32 %v1971_v9, %v1972_v38  ;;  %v1980_v14 = vmax.f32 %v1978_v19, %v1979_v31 }
 0x1d0   : > { %v1987_v33 = vmax.f32 %v1985_v39, %v1986_v42  ;;  %v2654_v37 = vunpack.c.l.b16 %v2526_v34  ;;  %v2655_v36 = vunpack.c.l.b16 %v2527_v43  ;;  %v2656_v15 = vunpack.c.l.b16 %v2528_v7  ;;  %v1199_v43 = vpop.f32.mrf.mxu3 }
 0x1d1   : > { %v1421_v57 = vrot.slane %v3785_v23, 2  ;;  %v1968_v8 = vmax.f32 %v1966_v60, %v1967_v61  ;;  %v1974_v49 = vrot.slane %v1973_v12, 1  ;;  %v1981_v20 = vrot.slane %v1980_v14, 1 }
 0x1d2   : > { %v1988_v32 = vrot.slane %v1987_v33, 1  ;;  %v2722_v50 = vsel %vm2694_vm8, %v2655_v36, %v2654_v37  ;;  %v1422_v40 = vrot.slane %v3785_v23, 4  ;;  %v1423_v47 = vrot.slane %v3785_v23, 6 }
 0x1d3   : > { %v2214_v5 = vsel %vm1541_vm7, %v3785_v23, -inf  ;;  %v2657_v46 = vunpack.c.l.b16 %v2529_v6  ;;  %v1975_v48 = vmax.f32 %v1973_v12, %v1974_v49  ;;  %v1982_v51 = vmax.f32 %v1980_v14, %v1981_v20 }
 0x1d4   : > { %v1989_v28 = vmax.f32 %v1987_v33, %v1988_v32  ;;  %v2723_v54 = vsel %vm2696_vm9, %v2656_v15, %v2722_v50  ;;  %v2466_v55 = vmax.f32 %v3791_v59, %v1968_v8  ;;  %v2215_v11 = vrot.slane %v2214_v5, 4 }
 0x1d5   : > { %v2221_v63 = vsel %vm1541_vm7, %v1421_v57, -inf  ;;  %v2467_v29 = vmax.f32 %v3796_v21, %v1975_v48  ;;  %v2468_v2 = vmax.f32 %v3798_v26, %v1982_v51  ;;  %v2228_v23 = vsel %vm1541_vm7, %v1422_v40, -inf }
 0x1d6   : > { %v2469_v56 = vmax.f32 %v1933_v22, %v1989_v28  ;;  %v2222_v45 = vrot.slane %v2221_v63, 4  ;;  %v2530_v41 = vpack.c.bf16 %v2466_v55, %v2466_v55  ;;  %v2216_v62 = vmax.f32 %v2214_v5, %v2215_v11  ;;  %v1077_v55 = vpop.f32.mrf.mxu1 }
 0x1d7   : > { %v2235_v9 = vsel %vm1541_vm7, %v1423_v47, -inf  ;;  %v2531_v19 = vpack.c.bf16 %v2467_v29, %v2467_v29  ;;  %v2532_v39 = vpack.c.bf16 %v2468_v2, %v2468_v2  ;;  %v2229_v3 = vrot.slane %v2228_v23, 4 }
 0x1d8   : > { %v2533_v4 = vpack.c.bf16 %v2469_v56, %v2469_v56  ;;  %v2223_v18 = vmax.f32 %v2221_v63, %v2222_v45  ;;  %v2658_v59 = vunpack.c.l.b16 %v2530_v41  ;;  %v2236_v34 = vrot.slane %v2235_v9, 4  ;;  %v978_v45 = vpop.f32.mrf.mxu0 }
 0x1d9   : > { %v2724_v60 = vsel %vm2698_vm10, %v2657_v46, %v2723_v54  ;;  %v2659_v21 = vunpack.c.l.b16 %v2531_v19  ;;  %v2660_v38 = vunpack.c.l.b16 %v2532_v39  ;;  %v2217_v31 = vrot.slane %v2216_v62, 2 }
 0x1da   : > { %v2725_v26 = vsel %vm2700_vm11, %v2658_v59, %v2724_v60  ;;  %v2224_v42 = vrot.slane %v2223_v18, 2  ;;  %v2230_v22 = vmax.f32 %v2228_v23, %v2229_v3  ;;  %v2661_v7 = vunpack.c.l.b16 %v2533_v4  ;;  %v1202_v60 = vpop.f32.mrf.mxu3 }
 0x1db   : > { %v2726_v6 = vsel %vm2702_vm12, %v2659_v21, %v2725_v26  ;;  %v2237_v61 = vmax.f32 %v2235_v9, %v2236_v34  ;;  %v1301_v12 = vmax.f32 %v3794_v16, 0.0  ;;  %v1242_v57 = vadd.f32 %v1199_v43, %v3643_v13  ;;  %v1179_v26 = vpop.f32.mrf.mxu2 }
 0x1dc   : > { %v2727_v14 = vsel %vm2704_vm13, %v2660_v38, %v2726_v6  ;;  %v2231_v33 = vrot.slane %v2230_v22, 2  ;;  %v2218_v49 = vmax.f32 %v2216_v62, %v2217_v31  ;;  %v3828_v20 = vmax.f32 %v2223_v18, %v2224_v42 }
 0x1dd   : > { %v2728_v37 = vsel %vm2706_vm14, %v2661_v7, %v2727_v14  ;;  %v1397_v36 = vrot.slane %v1301_v12, 2  ;;  %v1398_v15 = vrot.slane %v1301_v12, 4  ;;  %v2238_v32 = vrot.slane %v2237_v61, 2 }
 0x1de   : > { %v2760_v8 = vpack.c.b16 %v2728_v37, %v2728_v37  ;;  %v1399_v50 = vrot.slane %v1301_v12, 6  ;;  %v1990_v40 = vsel %vm1541_vm7, %v1301_v12, -inf  ;;  %v1101_v16 = vadd.f32 %v3668_v17, %v3529_v30 }
 0x1df   : > { %v1997_v47 = vsel %vm1541_vm7, %v1397_v36, -inf  ;;  %v2232_v5 = vmax.f32 %v2230_v22, %v2231_v33  ;;  %v1991_v46 = vrot.slane %v1990_v40, 4  ;;  %v3838_v13 = vadd.f32 %v3684_v35, %v3539_v0 }
 0x1e0   : > { %2777 = vst.msk [vmem:[%s3620_s5 + $0xc] sm:$0xf] %vm2773_vm15, %v2760_v8  ;;  %v1998_v48 = vrot.slane %v1997_v47, 4  ;;  %v2004_v51 = vsel %vm1541_vm7, %v1398_v15, -inf  ;;  %v2011_v28 = vsel %vm1541_vm7, %v1399_v50, -inf  ;;  %v1278_v54 = vadd.f32 %v3722_v10, %v1242_v57 }
 0x1e1   : > { %v2219_v11 = vrot.slane %v2218_v49, 1  ;;  %v2226_v63 = vrot.slane %v3828_v20, 1  ;;  %v1992_v30 = vmax.f32 %v1990_v40, %v1991_v46  ;;  %v2239_v29 = vmax.f32 %v2237_v61, %v2238_v32 }
 0x1e2   : > { %v1999_v17 = vmax.f32 %v1997_v47, %v1998_v48  ;;  %v2005_v2 = vrot.slane %v2004_v51, 4  ;;  %v2012_v56 = vrot.slane %v2011_v28, 4  ;;  %v1310_v41 = vmax.f32 %v1278_v54, 0.0 }
 0x1e3   : > { %v2233_v62 = vrot.slane %v2232_v5, 1  ;;  %v1993_v0 = vrot.slane %v1992_v30, 2  ;;  %v1078_v23 = vadd.f32 %v1077_v55, %v978_v45  ;;  %v2240_v22 = vrot.slane %v2239_v29, 1 }
 0x1e4   : > { %v2000_v35 = vrot.slane %v1999_v17, 2  ;;  %v2006_v9 = vmax.f32 %v2004_v51, %v2005_v2  ;;  %v2013_v19 = vmax.f32 %v2011_v28, %v2012_v56  ;;  %v1424_v39 = vrot.slane %v1310_v41, 2  ;;  %v1080_v28 = vpop.f32.mrf.mxu1 }
 0x1e5   : > { %v1425_v4 = vrot.slane %v1310_v41, 4  ;;  %v1994_v18 = vmax.f32 %v1992_v30, %v1993_v0  ;;  %v1426_v3 = vrot.slane %v1310_v41, 6  ;;  %v2242_v34 = vsel %vm1541_vm7, %v1310_v41, -inf }
 0x1e6   : > { %v2001_v59 = vmax.f32 %v1999_v17, %v2000_v35  ;;  %v2007_v21 = vrot.slane %v2006_v9, 2  ;;  %v2014_v38 = vrot.slane %v2013_v19, 2  ;;  %v2243_v31 = vrot.slane %v2242_v34, 4  ;;  %v981_v17 = vpop.f32.mrf.mxu0 }
 0x1e7   : > { %v2249_v42 = vsel %vm1541_vm7, %v1424_v39, -inf  ;;  %v2256_v7 = vsel %vm1541_vm7, %v1425_v4, -inf  ;;  %v1234_v6 = vadd.f32 %v1179_v26, %v1078_v23  ;;  %v1243_v33 = vadd.f32 %v1202_v60, %v1101_v16  ;;  %v1204_v60 = vpop.f32.mrf.mxu3 }
 0x1e8   : > { %v2250_v43 = vrot.slane %v2249_v42, 4  ;;  %v2008_v61 = vmax.f32 %v2006_v9, %v2007_v21  ;;  %v2244_v12 = vmax.f32 %v2242_v34, %v2243_v31  ;;  %v2257_v14 = vrot.slane %v2256_v7, 4 }
 0x1e9   : > { %v3849_v37 = vadd.f32 %v3696_v44, %v3553_v25  ;;  %v2015_v36 = vmax.f32 %v2013_v19, %v2014_v38  ;;  %v2263_v57 = vsel %vm1541_vm7, %v1426_v3, -inf  ;;  %v3852_v8 = vmax.f32 %v2218_v49, %v2219_v11 }
 0x1ea   : > { %v2251_v15 = vmax.f32 %v2249_v42, %v2250_v43  ;;  %v1995_v32 = vrot.slane %v1994_v18, 1  ;;  %v2002_v50 = vrot.slane %v2001_v59, 1  ;;  %v2245_v40 = vrot.slane %v2244_v12, 2 }
 0x1eb   : > { %v2009_v47 = vrot.slane %v2008_v61, 1  ;;  %v2258_v46 = vmax.f32 %v2256_v7, %v2257_v14  ;;  %v2264_v48 = vrot.slane %v2263_v57, 4  ;;  %v1270_v51 = vadd.f32 %v3722_v10, %v1234_v6 }
 0x1ec   : > { %v3856_v16 = vmax.f32 %v3828_v20, %v2226_v63  ;;  %v3858_v25 = vmax.f32 %v2232_v5, %v2233_v62  ;;  %v3860_v44 = vmax.f32 %v2239_v29, %v2240_v22  ;;  %v1279_v54 = vadd.f32 %v3722_v10, %v1243_v33  ;;  %v1182_v22 = vpop.f32.mrf.mxu2 }
 0x1ed   : > { %v2016_v49 = vrot.slane %v2015_v36, 1  ;;  %v2252_v55 = vrot.slane %v2251_v15, 2  ;;  %v2265_v11 = vmax.f32 %v2263_v57, %v2264_v48  ;;  %v1302_v30 = vmax.f32 %v1270_v51, 0.0 }
 0x1ee   : > { %v3863_v2 = vmax.f32 %v1994_v18, %v1995_v32  ;;  %v3865_v56 = vmax.f32 %v2001_v59, %v2002_v50  ;;  %v2246_v45 = vmax.f32 %v2244_v12, %v2245_v40  ;;  %v1081_v41 = vadd.f32 %v1080_v28, %v981_v17 }
 0x1ef   : > { %v3867_v0 = vmax.f32 %v2008_v61, %v2009_v47  ;;  %v2259_v20 = vrot.slane %v2258_v46, 2  ;;  %v1400_v5 = vrot.slane %v1302_v30, 2  ;;  %v1401_v63 = vrot.slane %v1302_v30, 4 }
 0x1f0   : > { %v2266_v29 = vrot.slane %v2265_v11, 2  ;;  %v1402_v62 = vrot.slane %v1302_v30, 6  ;;  %v2018_v35 = vsel %vm1541_vm7, %v1302_v30, -inf  ;;  %v1311_v23 = vmax.f32 %v1279_v54, 0.0 }
 0x1f1   : > { %v3870_v9 = vmax.f32 %v2015_v36, %v2016_v49  ;;  %v2253_v19 = vmax.f32 %v2251_v15, %v2252_v55  ;;  %v2019_v39 = vrot.slane %v2018_v35, 4  ;;  %v2025_v4 = vsel %vm1541_vm7, %v1400_v5, -inf }
 0x1f2   : > { %v2247_v18 = vrot.slane %v2246_v45, 1  ;;  %v2026_v59 = vrot.slane %v2025_v4, 4  ;;  %v2032_v3 = vsel %vm1541_vm7, %v1401_v63, -inf  ;;  %v2039_v34 = vsel %vm1541_vm7, %v1402_v62, -inf }
 0x1f3   : > { %v2260_v21 = vmax.f32 %v2258_v46, %v2259_v20  ;;  %v2020_v38 = vmax.f32 %v2018_v35, %v2019_v39  ;;  %v2033_v26 = vrot.slane %v2032_v3, 4  ;;  %v2040_v31 = vrot.slane %v2039_v34, 4 }
 0x1f4   : > { %v2267_v42 = vmax.f32 %v2265_v11, %v2266_v29  ;;  %v1427_v43 = vrot.slane %v1311_v23, 2  ;;  %v1428_v7 = vrot.slane %v1311_v23, 4  ;;  %v1429_v6 = vrot.slane %v1311_v23, 6 }
 0x1f5   : > { %v2021_v61 = vrot.slane %v2020_v38, 2  ;;  %v2027_v12 = vmax.f32 %v2025_v4, %v2026_v59  ;;  %v1235_v14 = vadd.f32 %v1182_v22, %v1081_v41  ;;  %v1244_v33 = vadd.f32 %v1204_v60, %v3838_v13 }
 0x1f6   : > { %v2254_v36 = vrot.slane %v2253_v19, 1  ;;  %v2270_v15 = vsel %vm1541_vm7, %v1311_v23, -inf  ;;  %v2277_v57 = vsel %vm1541_vm7, %v1427_v43, -inf  ;;  %v2284_v32 = vsel %vm1541_vm7, %v1428_v7, -inf }
 0x1f7   : > { %v2261_v50 = vrot.slane %v2260_v21, 1  ;;  %v2034_v40 = vmax.f32 %v2032_v3, %v2033_v26  ;;  %v2041_v47 = vmax.f32 %v2039_v34, %v2040_v31  ;;  %v2271_v46 = vrot.slane %v2270_v15, 4 }
 0x1f8   : > { %v2268_v48 = vrot.slane %v2267_v42, 1  ;;  %v2278_v51 = vrot.slane %v2277_v57, 4  ;;  %v2285_v28 = vrot.slane %v2284_v32, 4  ;;  %v2291_v54 = vsel %vm1541_vm7, %v1429_v6, -inf }
 0x1f9   : > { %v3880_v49 = vmax.f32 %v2246_v45, %v2247_v18  ;;  %v3882_v55 = vmax.f32 %v2020_v38, %v2021_v61  ;;  %v2028_v13 = vrot.slane %v2027_v12, 2  ;;  %v2272_v11 = vmax.f32 %v2270_v15, %v2271_v46 }
 0x1fa   : > { %v3884_v30 = vmax.f32 %v2253_v19, %v2254_v36  ;;  %v2279_v17 = vmax.f32 %v2277_v57, %v2278_v51  ;;  %v2286_v41 = vmax.f32 %v2284_v32, %v2285_v28  ;;  %v2292_v20 = vrot.slane %v2291_v54, 4 }
 0x1fb   : > { %v3886_v5 = vmax.f32 %v2260_v21, %v2261_v50  ;;  %v2035_v63 = vrot.slane %v2034_v40, 2  ;;  %v2042_v29 = vrot.slane %v2041_v47, 2  ;;  %v2273_v62 = vrot.slane %v2272_v11, 2 }
 0x1fc   : > { %v3888_v35 = vmax.f32 %v2267_v42, %v2268_v48  ;;  %v2280_v23 = vrot.slane %v2279_v17, 2  ;;  %v2287_v39 = vrot.slane %v2286_v41, 2  ;;  %v2293_v45 = vmax.f32 %v2291_v54, %v2292_v20 }
 0x1fd   : > { %v2023_v4 = vrot.slane %v3882_v55, 1  ;;  %v3891_v18 = vmax.f32 %v2027_v12, %v2028_v13  ;;  %v2274_v59 = vmax.f32 %v2272_v11, %v2273_v62  ;;  %v1271_v19 = vadd.f32 %v3722_v10, %v1235_v14 }
 0x1fe   : > { %v2281_v3 = vmax.f32 %v2279_v17, %v2280_v23  ;;  %v2288_v34 = vmax.f32 %v2286_v41, %v2287_v39  ;;  %v2294_v60 = vrot.slane %v2293_v45, 2  ;;  %v1280_v21 = vadd.f32 %v3722_v10, %v1244_v33 }
 0x1ff   : > { %v3895_v38 = vmax.f32 %v2034_v40, %v2035_v63  ;;  %v3897_v26 = vmax.f32 %v2041_v47, %v2042_v29  ;;  %v2275_v31 = vrot.slane %v2274_v59, 1  ;;  %v1303_v42 = vmax.f32 %v1271_v19, 0.0 }
 0x200   : > { %v2282_v22 = vrot.slane %v2281_v3, 1  ;;  %v2289_v43 = vrot.slane %v2288_v34, 1  ;;  %v2295_v7 = vmax.f32 %v2293_v45, %v2294_v60  ;;  %v1312_v6 = vmax.f32 %v1280_v21, 0.0 }
 0x201   : > { %v2276_v61 = vmax.f32 %v2274_v59, %v2275_v31  ;;  %v1403_v12 = vrot.slane %v1303_v42, 2  ;;  %v1404_v36 = vrot.slane %v1303_v42, 4  ;;  %v1405_v15 = vrot.slane %v1303_v42, 6 }
 0x202   : > { %v2283_v14 = vmax.f32 %v2281_v3, %v2282_v22  ;;  %v2290_v57 = vmax.f32 %v2288_v34, %v2289_v43  ;;  %v2296_v32 = vrot.slane %v2295_v7, 1  ;;  %v2046_v50 = vsel %vm1541_vm7, %v1303_v42, -inf }
 0x203   : > { %v2486_v10 = vmax.f32 %v3852_v8, %v2276_v61  ;;  %v2047_v33 = vrot.slane %v2046_v50, 4  ;;  %v2053_v40 = vsel %vm1541_vm7, %v1403_v12, -inf  ;;  %v2060_v47 = vsel %vm1541_vm7, %v1404_v36, -inf }
 0x204   : > { %v2297_v46 = vmax.f32 %v2295_v7, %v2296_v32  ;;  %v2487_v48 = vmax.f32 %v3856_v16, %v2283_v14  ;;  %v2488_v51 = vmax.f32 %v3858_v25, %v2290_v57  ;;  %v2054_v28 = vrot.slane %v2053_v40, 4 }
 0x205   : > { %v2550_v54 = vpack.c.bf16 %v2486_v10, %v2486_v10  ;;  %v2048_v13 = vmax.f32 %v2046_v50, %v2047_v33  ;;  %v2061_v11 = vrot.slane %v2060_v47, 4  ;;  %v2067_v17 = vsel %vm1541_vm7, %v1405_v15, -inf }
 0x206   : > { %v2489_v41 = vmax.f32 %v3860_v44, %v2297_v46  ;;  %v2551_v20 = vpack.c.bf16 %v2487_v48, %v2487_v48  ;;  %v2552_v8 = vpack.c.bf16 %v2488_v51, %v2488_v51  ;;  %v2055_v63 = vmax.f32 %v2053_v40, %v2054_v28  ;;  %v1082_v48 = vpop.f32.mrf.mxu1 }
 0x207   : > { %v2678_v29 = vunpack.c.l.b16 %v2550_v54  ;;  %v2049_v62 = vrot.slane %v2048_v13, 2  ;;  %v2062_v23 = vmax.f32 %v2060_v47, %v2061_v11  ;;  %v2068_v39 = vrot.slane %v2067_v17, 4  ;;  %v983_v11 = vpop.f32.mrf.mxu0 }
 0x208   : > { %v2553_v45 = vpack.c.bf16 %v2489_v41, %v2489_v41  ;;  %v2679_v59 = vunpack.c.l.b16 %v2551_v20  ;;  %v2680_v16 = vunpack.c.l.b16 %v2552_v8  ;;  %v2056_v19 = vrot.slane %v2055_v63, 2 }
 0x209   : > { %v2050_v25 = vmax.f32 %v2048_v13, %v2049_v62  ;;  %v2063_v3 = vrot.slane %v2062_v23, 2  ;;  %v2069_v34 = vmax.f32 %v2067_v17, %v2068_v39  ;;  %v1430_v60 = vrot.slane %v1312_v6, 2 }
 0x20a   : > { %v2681_v21 = vunpack.c.l.b16 %v2553_v45  ;;  %v2743_v31 = vsel %vm2694_vm8, %v2679_v59, %v2678_v29  ;;  %v2057_v42 = vmax.f32 %v2055_v63, %v2056_v19  ;;  %v1431_v44 = vrot.slane %v1312_v6, 4 }
 0x20b   : > { %v2744_v22 = vsel %vm2696_vm9, %v2680_v16, %v2743_v31  ;;  %v2051_v43 = vrot.slane %v2050_v25, 1  ;;  %v2064_v7 = vmax.f32 %v2062_v23, %v2063_v3  ;;  %v2070_v61 = vrot.slane %v2069_v34, 2  ;;  %v1207_v23 = vpop.f32.mrf.mxu3  ;;  %v1184_v3 = vpop.f32.mrf.mxu2 }
 0x20c   : > { %v3910_v12 = vsel %vm2698_vm10, %v2681_v21, %v2744_v22  ;;  %v2058_v36 = vrot.slane %v2057_v42, 1  ;;  %v1432_v15 = vrot.slane %v1312_v6, 6  ;;  %v2298_v14 = vsel %vm1541_vm7, %v1312_v6, -inf }
 0x20d   : > { %v2052_v57 = vmax.f32 %v2050_v25, %v2051_v43  ;;  %v2065_v32 = vrot.slane %v2064_v7, 1  ;;  %v2071_v50 = vmax.f32 %v2069_v34, %v2070_v61  ;;  %v2299_v10 = vrot.slane %v2298_v14, 4 }
 0x20e   : > { %v2030_v33 = vrot.slane %v3891_v18, 1  ;;  %v2305_v40 = vsel %vm1541_vm7, %v1430_v60, -inf  ;;  %v2312_v47 = vsel %vm1541_vm7, %v1431_v44, -inf  ;;  %v2319_v46 = vsel %vm1541_vm7, %v1432_v15, -inf }
 0x20f   : > { %v3920_v51 = vmax.f32 %v3882_v55, %v2023_v4  ;;  %v2059_v28 = vmax.f32 %v2057_v42, %v2058_v36  ;;  %v2072_v6 = vrot.slane %v2071_v50, 1  ;;  %v2300_v54 = vmax.f32 %v2298_v14, %v2299_v10 }
 0x210   : > { %v2037_v13 = vrot.slane %v3895_v38, 1  ;;  %v2306_v17 = vrot.slane %v2305_v40, 4  ;;  %v2313_v41 = vrot.slane %v2312_v47, 4  ;;  %v2320_v20 = vrot.slane %v2319_v46, 4 }
 0x211   : > { %v2066_v8 = vmax.f32 %v2064_v7, %v2065_v32  ;;  %v2470_v63 = vmax.f32 %v3863_v2, %v2052_v57  ;;  %v2301_v29 = vrot.slane %v2300_v54, 2  ;;  %v1083_v62 = vadd.f32 %v1082_v48, %v983_v11 }
 0x212   : > { %v2044_v39 = vrot.slane %v3897_v26, 1  ;;  %v2307_v45 = vmax.f32 %v2305_v40, %v2306_v17  ;;  %v2314_v55 = vmax.f32 %v2312_v47, %v2313_v41  ;;  %v2321_v4 = vmax.f32 %v2319_v46, %v2320_v20 }
 0x213   : > { %v3926_v59 = vmax.f32 %v3891_v18, %v2030_v33  ;;  %v2073_v16 = vmax.f32 %v2071_v50, %v2072_v6  ;;  %v2471_v19 = vmax.f32 %v3865_v56, %v2059_v28  ;;  %v2302_v25 = vmax.f32 %v2300_v54, %v2301_v29 }
 0x214   : > { %v2308_v34 = vrot.slane %v2307_v45, 2  ;;  %v2315_v60 = vrot.slane %v2314_v55, 2  ;;  %v2322_v21 = vrot.slane %v2321_v4, 2  ;;  %v1245_v2 = vadd.f32 %v1207_v23, %v3849_v37  ;;  %v3942_v37 = vld [vmem:[%s4148_s2] ss:$0 sm:$0xff] }
 0x215   : > { %v3931_v31 = vmax.f32 %v3867_v0, %v2066_v8  ;;  %v2534_v42 = vpack.c.bf16 %v2470_v63, %v2470_v63  ;;  %v2303_v44 = vrot.slane %v2302_v25, 1  ;;  %v1236_v22 = vadd.f32 %v1184_v3, %v1083_v62 }
 0x216   : > { %v3934_v43 = vmax.f32 %v3895_v38, %v2037_v13  ;;  %v2309_v18 = vmax.f32 %v2307_v45, %v2308_v34  ;;  %v2316_v7 = vmax.f32 %v2314_v55, %v2315_v60  ;;  %v2323_v61 = vmax.f32 %v2321_v4, %v2322_v21 }
 0x217   : > { %v3937_v56 = vmax.f32 %v3870_v9, %v2073_v16  ;;  %v2535_v36 = vpack.c.bf16 %v2471_v19, %v2471_v19  ;;  %v2304_v15 = vmax.f32 %v2302_v25, %v2303_v44  ;;  %v1272_v0 = vadd.f32 %v3942_v37, %v1236_v22 }
 0x218   : > { %v2310_v14 = vrot.slane %v2309_v18, 1  ;;  %v2317_v57 = vrot.slane %v2316_v7, 1  ;;  %v2324_v32 = vrot.slane %v2323_v61, 1  ;;  %v1281_v38 = vadd.f32 %v3942_v37, %v1245_v2 }
 0x219   : > { %v2536_v50 = vpack.c.bf16 %v3931_v31, %v3931_v31  ;;  %v3948_v10 = vunpack.c.l.b16 %v2534_v42  ;;  %v2490_v9 = vmax.f32 %v3880_v49, %v2304_v15  ;;  %v1304_v33 = vmax.f32 %v1272_v0, 0.0 }
 0x21a   : > { %v2311_v40 = vmax.f32 %v2309_v18, %v2310_v14  ;;  %v2318_v47 = vmax.f32 %v2316_v7, %v2317_v57  ;;  %v2325_v46 = vmax.f32 %v2323_v61, %v2324_v32  ;;  %v1313_v48 = vmax.f32 %v1281_v38, 0.0 }
 0x21b   : > { %v2554_v28 = vpack.c.bf16 %v2490_v9, %v2490_v9  ;;  %v1406_v6 = vrot.slane %v1304_v33, 2  ;;  %v1407_v54 = vrot.slane %v1304_v33, 4  ;;  %v1408_v13 = vrot.slane %v1304_v33, 6 }
 0x21c   : > { %v2491_v11 = vmax.f32 %v3884_v30, %v2311_v40  ;;  %v2492_v17 = vmax.f32 %v3886_v5, %v2318_v47  ;;  %v2493_v41 = vmax.f32 %v3888_v35, %v2325_v46  ;;  %v2074_v20 = vsel %vm1541_vm7, %v1304_v33, -inf  ;;  %v1085_v33 = vpop.f32.mrf.mxu1 }
 0x21d   : > { %v2682_v8 = vunpack.c.l.b16 %v2554_v28  ;;  %v2075_v63 = vrot.slane %v2074_v20, 4  ;;  %v2081_v49 = vsel %vm1541_vm7, %v1406_v6, -inf  ;;  %v2088_v29 = vsel %vm1541_vm7, %v1407_v54, -inf }
 0x21e   : > { %v2555_v62 = vpack.c.bf16 %v2491_v11, %v2491_v11  ;;  %v2556_v23 = vpack.c.bf16 %v2492_v17, %v2492_v17  ;;  %v2557_v45 = vpack.c.bf16 %v2493_v41, %v2493_v41  ;;  %v2082_v55 = vrot.slane %v2081_v49, 4  ;;  %v986_v11 = vpop.f32.mrf.mxu0 }
 0x21f   : > { %v2746_v4 = vsel %vm2700_vm11, %v2682_v8, %v3910_v12  ;;  %v2076_v30 = vmax.f32 %v2074_v20, %v2075_v63  ;;  %v2089_v16 = vrot.slane %v2088_v29, 4  ;;  %v2095_v5 = vsel %vm1541_vm7, %v1408_v13, -inf }
 0x220   : > { %v2663_v35 = vunpack.c.l.b16 %v2535_v36  ;;  %v2683_v19 = vunpack.c.l.b16 %v2555_v62  ;;  %v2684_v25 = vunpack.c.l.b16 %v2556_v23  ;;  %v2083_v3 = vmax.f32 %v2081_v49, %v2082_v55 }
 0x221   : > { %v2685_v34 = vunpack.c.l.b16 %v2557_v45  ;;  %v2077_v60 = vrot.slane %v2076_v30, 2  ;;  %v2090_v21 = vmax.f32 %v2088_v29, %v2089_v16  ;;  %v2096_v2 = vrot.slane %v2095_v5, 4  ;;  %v1187_v16 = vpop.f32.mrf.mxu2 }
 0x222   : > { %v2747_v31 = vsel %vm2702_vm12, %v2683_v19, %v2746_v4  ;;  %v2084_v42 = vrot.slane %v2083_v3, 2  ;;  %v1433_v44 = vrot.slane %v1313_v48, 2  ;;  %v1434_v22 = vrot.slane %v1313_v48, 4 }
 0x223   : > { %v2748_v18 = vsel %vm2704_vm13, %v2684_v25, %v2747_v31  ;;  %v2078_v12 = vmax.f32 %v2076_v30, %v2077_v60  ;;  %v2091_v7 = vrot.slane %v2090_v21, 2  ;;  %v2097_v61 = vmax.f32 %v2095_v5, %v2096_v2 }
 0x224   : > { %v2749_v36 = vsel %vm2706_vm14, %v2685_v34, %v2748_v18  ;;  %v2085_v15 = vmax.f32 %v2083_v3, %v2084_v42  ;;  %v1435_v0 = vrot.slane %v1313_v48, 6  ;;  %v2326_v14 = vsel %vm1541_vm7, %v1313_v48, -inf }
 0x225   : > { %v2763_v57 = vpack.c.b16 %v2749_v36, %v2749_v36  ;;  %v2079_v32 = vrot.slane %v2078_v12, 1  ;;  %v2092_v38 = vmax.f32 %v2090_v21, %v2091_v7  ;;  %v2098_v9 = vrot.slane %v2097_v61, 2 }
 0x226   : > { %v2537_v40 = vpack.c.bf16 %v3937_v56, %v3937_v56  ;;  %v2664_v47 = vunpack.c.l.b16 %v2536_v50  ;;  %v2086_v46 = vrot.slane %v2085_v15, 1  ;;  %v2333_v28 = vsel %vm1541_vm7, %v1433_v44, -inf  ;;  %v1087_v44 = vpop.f32.mrf.mxu1 }
 0x227   : > { %2780 = vst.msk [vmem:[%s3620_s5 + $0x18] sm:$0xf] %vm2773_vm15, %v2763_v57  ;;  %v2080_v6 = vmax.f32 %v2078_v12, %v2079_v32  ;;  %v2093_v54 = vrot.slane %v2092_v38, 1  ;;  %v2099_v13 = vmax.f32 %v2097_v61, %v2098_v9  ;;  %v2340_v48 = vsel %vm1541_vm7, %v1434_v22, -inf }
 0x228   : > { %v2729_v17 = vsel %vm2694_vm8, %v2663_v35, %v3948_v10  ;;  %v2087_v41 = vmax.f32 %v2085_v15, %v2086_v46  ;;  %v2327_v20 = vrot.slane %v2326_v14, 4  ;;  %v2347_v8 = vsel %vm1541_vm7, %v1435_v0, -inf  ;;  %v988_v0 = vpop.f32.mrf.mxu0 }
 0x229   : > { %v2094_v56 = vmax.f32 %v2092_v38, %v2093_v54  ;;  %v2100_v50 = vrot.slane %v2099_v13, 1  ;;  %v2474_v63 = vmax.f32 %v3920_v51, %v2080_v6  ;;  %v2334_v49 = vrot.slane %v2333_v28, 4  ;;  %v1189_v6 = vpop.f32.mrf.mxu2 }
 0x22a   : > { %v2045_v29 = vmax.f32 %v3897_v26, %v2044_v39  ;;  %v2475_v62 = vmax.f32 %v3926_v59, %v2087_v41  ;;  %v2341_v23 = vrot.slane %v2340_v48, 4  ;;  %v2348_v45 = vrot.slane %v2347_v8, 4 }
 0x22b   : > { %v2730_v55 = vsel %vm2696_vm9, %v2664_v47, %v2729_v17  ;;  %v2101_v10 = vmax.f32 %v2099_v13, %v2100_v50  ;;  %v2476_v4 = vmax.f32 %v3934_v43, %v2094_v56  ;;  %v2538_v30 = vpack.c.bf16 %v2474_v63, %v2474_v63  ;;  %v1209_v43 = vpop.f32.mrf.mxu3 }
 0x22c   : > { %v2665_v5 = vunpack.c.l.b16 %v2537_v40  ;;  %v2539_v35 = vpack.c.bf16 %v2475_v62, %v2475_v62  ;;  %v2328_v19 = vmax.f32 %v2326_v14, %v2327_v20  ;;  %v1086_v51 = vadd.f32 %v1085_v33, %v986_v11 }
 0x22d   : > { %v2477_v25 = vmax.f32 %v2045_v29, %v2101_v10  ;;  %v2540_v3 = vpack.c.bf16 %v2476_v4, %v2476_v4  ;;  %v2666_v34 = vunpack.c.l.b16 %v2538_v30  ;;  %v2335_v60 = vmax.f32 %v2333_v28, %v2334_v49 }
 0x22e   : > { %v2731_v26 = vsel %vm2698_vm10, %v2665_v5, %v2730_v55  ;;  %v2667_v39 = vunpack.c.l.b16 %v2539_v35  ;;  %v2342_v59 = vmax.f32 %v2340_v48, %v2341_v23  ;;  %v2349_v21 = vmax.f32 %v2347_v8, %v2348_v45 }
 0x22f   : > { %v2541_v2 = vpack.c.bf16 %v2477_v25, %v2477_v25  ;;  %v2668_v31 = vunpack.c.l.b16 %v2540_v3  ;;  %v2732_v42 = vsel %vm2700_vm11, %v2666_v34, %v2731_v26  ;;  %v1108_v22 = vadd.f32 %v3711_v27, %v3577_v24 }
 0x230   : > { %v2733_v18 = vsel %vm2702_vm12, %v2667_v39, %v2732_v42  ;;  %v2329_v12 = vrot.slane %v2328_v19, 2  ;;  %v2336_v36 = vrot.slane %v2335_v60, 2  ;;  %v1237_v15 = vadd.f32 %v1187_v16, %v1086_v51  ;;  %v1090_v42 = vpop.f32.mrf.mxu1 }
 0x231   : > { %v2669_v7 = vunpack.c.l.b16 %v2541_v2  ;;  %v2734_v61 = vsel %vm2704_vm13, %v2668_v31, %v2733_v18  ;;  %v2343_v14 = vrot.slane %v2342_v59, 2  ;;  %v2350_v57 = vrot.slane %v2349_v21, 2 }
 0x232   : > { %v1246_v32 = vadd.f32 %v1209_v43, %v1108_v22  ;;  %v1088_v38 = vadd.f32 %v1087_v44, %v988_v0  ;;  %v1273_v33 = vadd.f32 %v3942_v37, %v1237_v15  ;;  %v1111_v27 = vadd.f32 %v3736_v53, %v3591_v58  ;;  %v991_v15 = vpop.f32.mrf.mxu0 }
 0x233   : > { %v2735_v9 = vsel %vm2706_vm14, %v2669_v7, %v2734_v61  ;;  %v2330_v47 = vmax.f32 %v2328_v19, %v2329_v12  ;;  %v2337_v46 = vmax.f32 %v2335_v60, %v2336_v36  ;;  %v2344_v54 = vmax.f32 %v2342_v59, %v2343_v14  ;;  %v1212_v3 = vpop.f32.mrf.mxu3 }
 0x234   : > { %v2761_v40 = vpack.c.b16 %v2735_v9, %v2735_v9  ;;  %v1282_v24 = vadd.f32 %v3942_v37, %v1246_v32  ;;  %v1305_v28 = vmax.f32 %v1273_v33, 0.0  ;;  %v3993_v13 = vmax.f32 %v2349_v21, %v2350_v57 }
 0x235   : > { %v1238_v48 = vadd.f32 %v1189_v6, %v1088_v38  ;;  %v2331_v59 = vrot.slane %v2330_v47, 1  ;;  %v2338_v21 = vrot.slane %v2337_v46, 1  ;;  %v2345_v43 = vrot.slane %v2344_v54, 1 }
 0x236   : > { %2778 = vst.msk [vmem:[%s3620_s5 + $0x10] sm:$0xf] %vm2773_vm15, %v2761_v40  ;;  %v1314_v11 = vmax.f32 %v1282_v24, 0.0  ;;  %v1409_v17 = vrot.slane %v1305_v28, 2  ;;  %v1410_v41 = vrot.slane %v1305_v28, 4  ;;  %v1411_v20 = vrot.slane %v1305_v28, 6 }
 0x237   : > { %v2102_v8 = vsel %vm1541_vm7, %v1305_v28, -inf  ;;  %v1247_v18 = vadd.f32 %v1212_v3, %v1111_v27  ;;  %v1274_v36 = vadd.f32 %v3942_v37, %v1238_v48  ;;  %v2352_v0 = vrot.slane %v3993_v13, 1 }
 0x238   : > { %v2103_v56 = vrot.slane %v2102_v8, 4  ;;  %v1436_v50 = vrot.slane %v1314_v11, 2  ;;  %v1437_v63 = vrot.slane %v1314_v11, 4  ;;  %v1438_v58 = vrot.slane %v1314_v11, 6 }
 0x239   : > { %v2109_v53 = vsel %vm1541_vm7, %v1409_v17, -inf  ;;  %v2116_v49 = vsel %vm1541_vm7, %v1410_v41, -inf  ;;  %v2123_v29 = vsel %vm1541_vm7, %v1411_v20, -inf  ;;  %v2354_v62 = vsel %vm1541_vm7, %v1314_v11, -inf  ;;  %v1192_v20 = vpop.f32.mrf.mxu2 }
 0x23a   : > { %v2104_v23 = vmax.f32 %v2102_v8, %v2103_v56  ;;  %v2110_v45 = vrot.slane %v2109_v53, 4  ;;  %v2117_v55 = vrot.slane %v2116_v49, 4  ;;  %v2124_v10 = vrot.slane %v2123_v29, 4 }
 0x23b   : > { %v2355_v4 = vrot.slane %v2354_v62, 4  ;;  %v2361_v30 = vsel %vm1541_vm7, %v1436_v50, -inf  ;;  %v2368_v16 = vsel %vm1541_vm7, %v1437_v63, -inf  ;;  %v2375_v5 = vsel %vm1541_vm7, %v1438_v58, -inf }
 0x23c   : > { %v2105_v35 = vrot.slane %v2104_v23, 2  ;;  %v2111_v19 = vmax.f32 %v2109_v53, %v2110_v45  ;;  %v2118_v51 = vmax.f32 %v2116_v49, %v2117_v55  ;;  %v2125_v25 = vmax.f32 %v2123_v29, %v2124_v10 }
 0x23d   : > { %v2356_v34 = vmax.f32 %v2354_v62, %v2355_v4  ;;  %v2362_v60 = vrot.slane %v2361_v30, 4  ;;  %v2369_v26 = vrot.slane %v2368_v16, 4  ;;  %v2376_v39 = vrot.slane %v2375_v5, 4 }
 0x23e   : > { %v2106_v2 = vmax.f32 %v2104_v23, %v2105_v35  ;;  %v2112_v31 = vrot.slane %v2111_v19, 2  ;;  %v2119_v44 = vrot.slane %v2118_v51, 2  ;;  %v2126_v22 = vrot.slane %v2125_v25, 2 }
 0x23f   : > { %v2357_v12 = vrot.slane %v2356_v34, 2  ;;  %v2363_v7 = vmax.f32 %v2361_v30, %v2362_v60  ;;  %v2370_v61 = vmax.f32 %v2368_v16, %v2369_v26  ;;  %v2377_v57 = vmax.f32 %v2375_v5, %v2376_v39 }
 0x240   : > { %v2113_v14 = vmax.f32 %v2111_v19, %v2112_v31  ;;  %v1091_v32 = vadd.f32 %v1090_v42, %v991_v15  ;;  %v4007_v38 = vadd.f32 %v3750_v1, %v3605_v52  ;;  %v4009_v9 = vmax.f32 %v2330_v47, %v2331_v59 }
 0x241   : > { %v4011_v33 = vmax.f32 %v2337_v46, %v2338_v21  ;;  %v2107_v40 = vrot.slane %v2106_v2, 1  ;;  %v4013_v24 = vmax.f32 %v2344_v54, %v2345_v43  ;;  %v2120_v27 = vmax.f32 %v2118_v51, %v2119_v44 }
 0x242   : > { %v2127_v28 = vmax.f32 %v2125_v25, %v2126_v22  ;;  %v1283_v6 = vadd.f32 %v3942_v37, %v1247_v18  ;;  %v2358_v11 = vmax.f32 %v2356_v34, %v2357_v12  ;;  %v2364_v48 = vrot.slane %v2363_v7, 2 }
 0x243   : > { %v2371_v17 = vrot.slane %v2370_v61, 2  ;;  %v1306_v41 = vmax.f32 %v1274_v36, 0.0  ;;  %v4017_v8 = vmax.f32 %v3993_v13, %v2352_v0  ;;  %v2114_v52 = vrot.slane %v2113_v14, 1 }
 0x244   : > { %v2378_v1 = vrot.slane %v2377_v57, 2  ;;  %v1239_v47 = vadd.f32 %v1192_v20, %v1091_v32  ;;  %v4019_v46 = vmax.f32 %v2106_v2, %v2107_v40  ;;  %v2121_v63 = vrot.slane %v2120_v27, 1 }
 0x245   : > { %v1412_v56 = vrot.slane %v1306_v41, 2  ;;  %v1413_v54 = vrot.slane %v1306_v41, 4  ;;  %v2130_v50 = vsel %vm1541_vm7, %v1306_v41, -inf  ;;  %v2128_v58 = vrot.slane %v2127_v28, 1 }
 0x246   : > { %v1414_v53 = vrot.slane %v1306_v41, 6  ;;  %v2131_v49 = vrot.slane %v2130_v50, 4  ;;  %v2359_v29 = vrot.slane %v2358_v11, 1  ;;  %v2365_v62 = vmax.f32 %v2363_v7, %v2364_v48 }
 0x247   : > { %v2372_v23 = vmax.f32 %v2370_v61, %v2371_v17  ;;  %v1315_v45 = vmax.f32 %v1283_v6, 0.0  ;;  %v4022_v55 = vmax.f32 %v2113_v14, %v2114_v52  ;;  %v2379_v13 = vmax.f32 %v2377_v57, %v2378_v1  ;;  %v1214_v17 = vpop.f32.mrf.mxu3 }
 0x248   : > { %v2137_v10 = vsel %vm1541_vm7, %v1412_v56, -inf  ;;  %v2144_v4 = vsel %vm1541_vm7, %v1413_v54, -inf  ;;  %v4027_v19 = vmax.f32 %v2120_v27, %v2121_v63  ;;  %v4029_v51 = vmax.f32 %v2127_v28, %v2128_v58 }
 0x249   : > { %v1439_v30 = vrot.slane %v1315_v45, 2  ;;  %v1440_v16 = vrot.slane %v1315_v45, 4  ;;  %v1441_v5 = vrot.slane %v1315_v45, 6  ;;  %v2382_v35 = vsel %vm1541_vm7, %v1315_v45, -inf }
 0x24a   : > { %v2132_v25 = vmax.f32 %v2130_v50, %v2131_v49  ;;  %v2151_v3 = vsel %vm1541_vm7, %v1414_v53, -inf  ;;  %v2383_v34 = vrot.slane %v2382_v35, 4  ;;  %v2366_v59 = vrot.slane %v2365_v62, 1 }
 0x24b   : > { %v2389_v60 = vsel %vm1541_vm7, %v1439_v30, -inf  ;;  %v2396_v26 = vsel %vm1541_vm7, %v1440_v16, -inf  ;;  %v2403_v39 = vsel %vm1541_vm7, %v1441_v5, -inf  ;;  %v2373_v21 = vrot.slane %v2372_v23, 1 }
 0x24c   : > { %v2138_v2 = vrot.slane %v2137_v10, 4  ;;  %v2145_v31 = vrot.slane %v2144_v4, 4  ;;  %v2384_v42 = vmax.f32 %v2382_v35, %v2383_v34  ;;  %v2390_v43 = vrot.slane %v2389_v60, 4 }
 0x24d   : > { %v2397_v44 = vrot.slane %v2396_v26, 4  ;;  %v2404_v22 = vrot.slane %v2403_v39, 4  ;;  %v4035_v18 = vmax.f32 %v2358_v11, %v2359_v29  ;;  %v2380_v12 = vrot.slane %v2379_v13, 1 }
 0x24e   : > { %v2133_v7 = vrot.slane %v2132_v25, 2  ;;  %v2152_v61 = vrot.slane %v2151_v3, 4  ;;  %v2385_v36 = vrot.slane %v2384_v42, 2  ;;  %v2391_v15 = vmax.f32 %v2389_v60, %v2390_v43 }
 0x24f   : > { %v2398_v0 = vmax.f32 %v2396_v26, %v2397_v44  ;;  %v2405_v14 = vmax.f32 %v2403_v39, %v2404_v22  ;;  %v4037_v57 = vmax.f32 %v2365_v62, %v2366_v59  ;;  %v4039_v32 = vmax.f32 %v2372_v23, %v2373_v21 }
 0x250   : > { %v4041_v40 = vmax.f32 %v2137_v10, %v2138_v2  ;;  %v4043_v27 = vmax.f32 %v2144_v4, %v2145_v31  ;;  %v2386_v28 = vmax.f32 %v2384_v42, %v2385_v36  ;;  %v2392_v6 = vrot.slane %v2391_v15, 2 }
 0x251   : > { %v2399_v48 = vrot.slane %v2398_v0, 2  ;;  %v2406_v11 = vrot.slane %v2405_v14, 2  ;;  %v4045_v41 = vmax.f32 %v2379_v13, %v2380_v12  ;;  %v4047_v20 = vmax.f32 %v2132_v25, %v2133_v7 }
 0x252   : > { %v4049_v52 = vmax.f32 %v2151_v3, %v2152_v61  ;;  %v1275_v1 = vadd.f32 %v3942_v37, %v1239_v47  ;;  %v2387_v56 = vrot.slane %v2386_v28, 1  ;;  %v2393_v54 = vmax.f32 %v2391_v15, %v2392_v6 }
 0x253   : > { %v2400_v50 = vmax.f32 %v2398_v0, %v2399_v48  ;;  %v2407_v63 = vmax.f32 %v2405_v14, %v2406_v11  ;;  %v2140_v58 = vrot.slane %v4041_v40, 2  ;;  %v2147_v53 = vrot.slane %v4043_v27, 2 }
 0x254   : > { %v1307_v49 = vmax.f32 %v1275_v1, 0.0  ;;  %v1248_v29 = vadd.f32 %v1214_v17, %v4007_v38  ;;  %v2388_v62 = vmax.f32 %v2386_v28, %v2387_v56  ;;  %v2394_v23 = vrot.slane %v2393_v54, 1 }
 0x255   : > { %v2401_v45 = vrot.slane %v2400_v50, 1  ;;  %v2408_v13 = vrot.slane %v2407_v63, 1  ;;  %v2135_v11 = vrot.slane %v4047_v20, 1 }
 0x256   : > { %v1415_v10 = vrot.slane %v1307_v49, 2  ;;  %v1416_v4 = vrot.slane %v1307_v49, 4  ;;  %v1417_v30 = vrot.slane %v1307_v49, 6  ;;  %v2158_v47 = vsel %vm1541_vm7, %v1307_v49, -inf }
 0x257   : > { %v2395_v16 = vmax.f32 %v2393_v54, %v2394_v23  ;;  %v2402_v5 = vmax.f32 %v2400_v50, %v2401_v45  ;;  %v2409_v35 = vmax.f32 %v2407_v63, %v2408_v13  ;;  %v2494_v25 = vmax.f32 %v4009_v9, %v2388_v62  ;;  %v1092_v54 = vpop.f32.mrf.mxu1  ;;  %v993_v45 = vpop.f32.mrf.mxu0 }
 0x258   : > { %v2159_v3 = vrot.slane %v2158_v47, 4  ;;  %v2165_v34 = vsel %vm1541_vm7, %v1415_v10, -inf  ;;  %v2172_v60 = vsel %vm1541_vm7, %v1416_v4, -inf  ;;  %v2179_v38 = vsel %vm1541_vm7, %v1417_v30, -inf }
 0x259   : > { %v2495_v26 = vmax.f32 %v4011_v33, %v2395_v16  ;;  %v2496_v39 = vmax.f32 %v4013_v24, %v2402_v5  ;;  %v2497_v59 = vmax.f32 %v4017_v8, %v2409_v35  ;;  %v2558_v21 = vpack.c.bf16 %v2494_v25, %v2494_v25 }
 0x25a   : > { %v2160_v2 = vmax.f32 %v2158_v47, %v2159_v3  ;;  %v2166_v31 = vrot.slane %v2165_v34, 4  ;;  %v2173_v42 = vrot.slane %v2172_v60, 4  ;;  %v2180_v43 = vrot.slane %v2179_v38, 4 }
 0x25b   : > { %v2154_v9 = vrot.slane %v4049_v52, 2  ;;  %v2559_v44 = vpack.c.bf16 %v2495_v26, %v2495_v26  ;;  %v2560_v22 = vpack.c.bf16 %v2496_v39, %v2496_v39  ;;  %v2561_v12 = vpack.c.bf16 %v2497_v59, %v2497_v59  ;;  %v1194_v59 = vpop.f32.mrf.mxu2 }
 0x25c   : > { %v2161_v7 = vrot.slane %v2160_v2, 2  ;;  %v2167_v61 = vmax.f32 %v2165_v34, %v2166_v31  ;;  %v2174_v36 = vmax.f32 %v2172_v60, %v2173_v42  ;;  %v2181_v15 = vmax.f32 %v2179_v38, %v2180_v43 }
 0x25d   : > { %v2686_v0 = vunpack.c.l.b16 %v2558_v21  ;;  %v2687_v33 = vunpack.c.l.b16 %v2559_v44  ;;  %v2688_v14 = vunpack.c.l.b16 %v2560_v22  ;;  %v1284_v24 = vadd.f32 %v3942_v37, %v1248_v29 }
 0x25e   : > { %v2162_v8 = vmax.f32 %v2160_v2, %v2161_v7  ;;  %v2168_v28 = vrot.slane %v2167_v61, 2  ;;  %v2175_v6 = vrot.slane %v2174_v36, 2  ;;  %v2182_v48 = vrot.slane %v2181_v15, 2 }
 0x25f   : > { %v2689_v17 = vunpack.c.l.b16 %v2561_v12  ;;  %v2750_v1 = vsel %vm2694_vm8, %v2687_v33, %v2686_v0  ;;  %v1316_v56 = vmax.f32 %v1284_v24, 0.0  ;;  %v1093_v16 = vadd.f32 %v1092_v54, %v993_v45 }
 0x260   : > { %v2751_v50 = vsel %vm2696_vm9, %v2688_v14, %v2750_v1  ;;  %v2163_v63 = vrot.slane %v2162_v8, 1  ;;  %v2169_v49 = vmax.f32 %v2167_v61, %v2168_v28  ;;  %v2176_v62 = vmax.f32 %v2174_v36, %v2175_v6 }
 0x261   : > { %v4069_v23 = vsel %vm2698_vm10, %v2689_v17, %v2751_v50  ;;  %v2183_v29 = vmax.f32 %v2181_v15, %v2182_v48  ;;  %v1442_v13 = vrot.slane %v1316_v56, 2  ;;  %v1443_v10 = vrot.slane %v1316_v56, 4 }
 0x262   : > { %v2170_v4 = vrot.slane %v2169_v49, 1  ;;  %v2177_v30 = vrot.slane %v2176_v62, 1  ;;  %v1444_v47 = vrot.slane %v1316_v56, 6  ;;  %v4072_v5 = vmax.f32 %v4041_v40, %v2140_v58 }
 0x263   : > { %v2410_v35 = vsel %vm1541_vm7, %v1316_v56, -inf  ;;  %v2417_v25 = vsel %vm1541_vm7, %v1442_v13, -inf  ;;  %v2424_v3 = vsel %vm1541_vm7, %v1443_v10, -inf  ;;  %v4080_v34 = vmax.f32 %v4043_v27, %v2147_v53 }
 0x264   : > { %v2164_v60 = vmax.f32 %v2162_v8, %v2163_v63  ;;  %v2184_v38 = vrot.slane %v2183_v29, 1  ;;  %v2411_v26 = vrot.slane %v2410_v35, 4  ;;  %v2171_v39 = vmax.f32 %v2169_v49, %v2170_v4 }
 0x265   : > { %v2418_v21 = vrot.slane %v2417_v25, 4  ;;  %v2425_v2 = vrot.slane %v2424_v3, 4  ;;  %v2431_v40 = vsel %vm1541_vm7, %v1444_v47, -inf  ;;  %v4084_v58 = vmax.f32 %v4049_v52, %v2154_v9 }
 0x266   : > { %v2178_v31 = vmax.f32 %v2176_v62, %v2177_v30  ;;  %v2412_v42 = vmax.f32 %v2410_v35, %v2411_v26  ;;  %v1240_v43 = vadd.f32 %v1194_v59, %v1093_v16  ;;  %v4087_v44 = vmax.f32 %v4047_v20, %v2135_v11 }
 0x267   : > { %v2419_v27 = vmax.f32 %v2417_v25, %v2418_v21  ;;  %v2426_v53 = vmax.f32 %v2424_v3, %v2425_v2  ;;  %v2432_v22 = vrot.slane %v2431_v40, 4  ;;  %v2142_v12 = vrot.slane %v4072_v5, 1 }
 0x268   : > { %v2185_v7 = vmax.f32 %v2183_v29, %v2184_v38  ;;  %v4091_v61 = vmax.f32 %v4019_v46, %v2164_v60  ;;  %v2413_v36 = vrot.slane %v2412_v42, 2  ;;  %v2479_v15 = vmax.f32 %v4022_v55, %v2171_v39 }
 0x269   : > { %v2420_v52 = vrot.slane %v2419_v27, 2  ;;  %v2427_v9 = vrot.slane %v2426_v53, 2  ;;  %v2433_v0 = vmax.f32 %v2431_v40, %v2432_v22  ;;  %v2149_v33 = vrot.slane %v4080_v34, 1 }
 0x26a   : > { %v4096_v20 = vmax.f32 %v4027_v19, %v2178_v31  ;;  %v2414_v14 = vmax.f32 %v2412_v42, %v2413_v36  ;;  %v1276_v24 = vadd.f32 %v3942_v37, %v1240_v43  ;;  %v2156_v8 = vrot.slane %v4084_v58, 1 }
 0x26b   : > { %v2421_v28 = vmax.f32 %v2419_v27, %v2420_v52  ;;  %v2428_v6 = vmax.f32 %v2426_v53, %v2427_v9  ;;  %v2434_v46 = vrot.slane %v2433_v0, 2  ;;  %v4101_v48 = vmax.f32 %v4029_v51, %v2185_v7 }
 0x26c   : > { %v2542_v55 = vpack.c.bf16 %v4091_v61, %v4091_v61  ;;  %v2415_v11 = vrot.slane %v2414_v14, 1  ;;  %v1308_v17 = vmax.f32 %v1276_v24, 0.0  ;;  %v2543_v1 = vpack.c.bf16 %v2479_v15, %v2479_v15 }
 0x26d   : > { %v2422_v56 = vrot.slane %v2421_v28, 1  ;;  %v2429_v19 = vrot.slane %v2428_v6, 1  ;;  %v2435_v54 = vmax.f32 %v2433_v0, %v2434_v46  ;;  %v2544_v37 = vpack.c.bf16 %v4096_v20, %v4096_v20 }
 0x26e   : > { %v2416_v50 = vmax.f32 %v2414_v14, %v2415_v11  ;;  %v1418_v63 = vrot.slane %v1308_v17, 2  ;;  %v1419_v49 = vrot.slane %v1308_v17, 4  ;;  %v1420_v51 = vrot.slane %v1308_v17, 6 }
 0x26f   : > { %v2423_v62 = vmax.f32 %v2421_v28, %v2422_v56  ;;  %v2430_v29 = vmax.f32 %v2428_v6, %v2429_v19  ;;  %v2436_v45 = vrot.slane %v2435_v54, 1  ;;  %v2186_v10 = vsel %vm1541_vm7, %v1308_v17, -inf }
 0x270   : > { %v2498_v13 = vmax.f32 %v4035_v18, %v2416_v50  ;;  %v2193_v4 = vsel %vm1541_vm7, %v1418_v63, -inf  ;;  %v2200_v30 = vsel %vm1541_vm7, %v1419_v49, -inf  ;;  %v2187_v25 = vrot.slane %v2186_v10, 4 }
 0x271   : > { %v2437_v47 = vmax.f32 %v2435_v54, %v2436_v45  ;;  %v2499_v16 = vmax.f32 %v4037_v57, %v2423_v62  ;;  %v2500_v35 = vmax.f32 %v4039_v32, %v2430_v29  ;;  %v2194_v60 = vrot.slane %v2193_v4, 4 }
 0x272   : > { %v2562_v3 = vpack.c.bf16 %v2498_v13, %v2498_v13  ;;  %v2201_v38 = vrot.slane %v2200_v30, 4  ;;  %v2207_v26 = vsel %vm1541_vm7, %v1420_v51, -inf  ;;  %v2188_v21 = vmax.f32 %v2186_v10, %v2187_v25 }
 0x273   : > { %v2501_v39 = vmax.f32 %v4045_v41, %v2437_v47  ;;  %v2563_v18 = vpack.c.bf16 %v2499_v16, %v2499_v16  ;;  %v2564_v59 = vpack.c.bf16 %v2500_v35, %v2500_v35  ;;  %v2195_v40 = vmax.f32 %v2193_v4, %v2194_v60 }
 0x274   : > { %v2690_v2 = vunpack.c.l.b16 %v2562_v3  ;;  %v2202_v31 = vmax.f32 %v2200_v30, %v2201_v38  ;;  %v2208_v42 = vrot.slane %v2207_v26, 4  ;;  %v2189_v53 = vrot.slane %v2188_v21, 2 }
 0x275   : > { %v2565_v43 = vpack.c.bf16 %v2501_v39, %v2501_v39  ;;  %v2691_v27 = vunpack.c.l.b16 %v2563_v18  ;;  %v2692_v57 = vunpack.c.l.b16 %v2564_v59  ;;  %v2196_v22 = vrot.slane %v2195_v40, 2 }
 0x276   : > { %v2753_v32 = vsel %vm2700_vm11, %v2690_v2, %v4069_v23  ;;  %v2203_v7 = vrot.slane %v2202_v31, 2  ;;  %v2209_v61 = vmax.f32 %v2207_v26, %v2208_v42  ;;  %v2671_v36 = vunpack.c.l.b16 %v2543_v1 }
 0x277   : > { %v2693_v15 = vunpack.c.l.b16 %v2565_v43  ;;  %v2754_v41 = vsel %vm2702_vm12, %v2691_v27, %v2753_v32  ;;  %v2190_v52 = vmax.f32 %v2188_v21, %v2189_v53  ;;  %v2197_v0 = vmax.f32 %v2195_v40, %v2196_v22 }
 0x278   : > { %v2755_v9 = vsel %vm2704_vm13, %v2692_v57, %v2754_v41  ;;  %v2204_v20 = vmax.f32 %v2202_v31, %v2203_v7  ;;  %v2210_v14 = vrot.slane %v2209_v61, 2  ;;  %v2143_v24 = vmax.f32 %v4072_v5, %v2142_v12 }
 0x279   : > { %v2670_v28 = vunpack.c.l.b16 %v2542_v55  ;;  %v2756_v23 = vsel %vm2706_vm14, %v2693_v15, %v2755_v9  ;;  %v2191_v6 = vrot.slane %v2190_v52, 1  ;;  %v2198_v11 = vrot.slane %v2197_v0, 1 }
 0x27a   : > { %v2764_v46 = vpack.c.b16 %v2756_v23, %v2756_v23  ;;  %v2205_v17 = vrot.slane %v2204_v20, 1  ;;  %v2211_v1 = vmax.f32 %v2209_v61, %v2210_v14  ;;  %v2150_v56 = vmax.f32 %v4080_v34, %v2149_v33 }
 0x27b   : > { %v2545_v19 = vpack.c.bf16 %v4101_v48, %v4101_v48  ;;  %v2672_v54 = vunpack.c.l.b16 %v2544_v37  ;;  %v2192_v50 = vmax.f32 %v2190_v52, %v2191_v6  ;;  %v2736_v63 = vsel %vm2694_vm8, %v2671_v36, %v2670_v28 }
 0x27c   : > { %2781 = vst.msk [vmem:[%s3620_s5 + $0x1c] sm:$0xf] %vm2773_vm15, %v2764_v46  ;;  %v2199_v5 = vmax.f32 %v2197_v0, %v2198_v11  ;;  %v2206_v12 = vmax.f32 %v2204_v20, %v2205_v17  ;;  %v2212_v55 = vrot.slane %v2211_v1, 1  ;;  %v2157_v62 = vmax.f32 %v4084_v58, %v2156_v8 }
 0x27d   : > { %v2482_v49 = vmax.f32 %v4087_v44, %v2192_v50  ;;  %v2737_v48 = vsel %vm2696_vm9, %v2672_v54, %v2736_v63  ;;  %v2673_v45 = vunpack.c.l.b16 %v2545_v19 }
 0x27e   : > { %v2213_v29 = vmax.f32 %v2211_v1, %v2212_v55  ;;  %v2483_v34 = vmax.f32 %v2143_v24, %v2199_v5  ;;  %v2484_v33 = vmax.f32 %v2150_v56, %v2206_v12 }
 0x27f   : > { %v2546_v37 = vpack.c.bf16 %v2482_v49, %v2482_v49  ;;  %v2738_v30 = vsel %vm2698_vm10, %v2673_v45, %v2737_v48 }
 0x280   : > { %v2485_v51 = vmax.f32 %v2157_v62, %v2213_v29  ;;  %v2547_v13 = vpack.c.bf16 %v2483_v34, %v2483_v34  ;;  %v2548_v10 = vpack.c.bf16 %v2484_v33, %v2484_v33 }
 0x281   : > { %v2674_v4 = vunpack.c.l.b16 %v2546_v37 }
 0x282   : > { %v2549_v47 = vpack.c.bf16 %v2485_v51, %v2485_v51  ;;  %v2675_v44 = vunpack.c.l.b16 %v2547_v13  ;;  %v2676_v16 = vunpack.c.l.b16 %v2548_v10 }
 0x283   : > { %v2739_v35 = vsel %vm2700_vm11, %v2674_v4, %v2738_v30 }
 0x284   : > { %v2677_v58 = vunpack.c.l.b16 %v2549_v47  ;;  %v2740_v8 = vsel %vm2702_vm12, %v2675_v44, %v2739_v35 }
 0x285   : > { %v2741_v25 = vsel %vm2704_vm13, %v2676_v16, %v2740_v8 }
 0x286   : > { %v2742_v3 = vsel %vm2706_vm14, %v2677_v58, %v2741_v25 }
 0x287   : > { %v2762_v60 = vpack.c.b16 %v2742_v3, %v2742_v3 }
 0x289   : > { %2779 = vst.msk [vmem:[%s3620_s5 + $0x14] sm:$0xf] %vm2773_vm15, %v2762_v60 }
 0x28a PF: > { %s14_s12 = sadd.s32 1, %s3094_s12  }
 0x28b   : > { %p11_p7 = scmp.ge.s32.totalorder %s14_s12, 4  }
 0x28d   :  { %13 = sbr.rel (!%p11_p7) target bundleno = 1 (0x1), region = 69 }
 0x292   :  { %2803 = vsyncpa [#allocation3], 1 }
 0x293   :  { %2805 = vsyncpa [#allocation3 + $0x1], 1 }

// kernel: yoga_pose_cnn_forward.9
= control target key start
LH: loop header
LB: loop body
LE: loop exit
PB: predicated region body
PF: predicated region fallthrough
CT: control target
= control target key end

     0   :  { %10 = vsyncpa [#allocation3], 0  ;;  %s383_s0 = inlined_call_operand.vmem [shape: f32[2,256], index: 0, kind: input, shape index: {}]   ;;  %s384_s1 = inlined_call_operand.vmem [shape: f32[256,128], index: 1, kind: input, shape index: {}]   ;;  %s385_s2 = inlined_call_operand.vmem [shape: f32[1,128], index: 2, kind: input, shape index: {}]   ;;  %s386_s3 = inlined_call_operand.hbm [shape: f32[128,5], index: 3, kind: input, shape index: {}]   ;;  %s387_s4 = inlined_call_operand.vmem [shape: f32[1,5], index: 4, kind: input, shape index: {}]   ;;  %s388_s5 = inlined_call_operand.hbm [shape: f32[2,5], index: 5, kind: output, shape index: {}]  }
   0x1   :  { %11 = vsyncpa [#allocation4], 0  ;;  %s22_s20 = sshll.u32 %s386_s3, 4  ;;  %s238_s21 = smov [#allocation2]   ;;  %s23_s20 = int_to_ptr.hbm [resolvable:$true] %s22_s20 }
   0x2   :  { %s24_s22 = sshll.u32 %s238_s21, 4  ;;  %s239_s23 = smov 128   ;;  %s25_s22 = int_to_ptr.vmem [resolvable:$true] %s24_s22 }
   0x3   :  { %s240_s24 = smov 8  }
   0x4   :  { %30 = dma.hbm_to_vmem [thread:$0]  %s23_s20, 2048, %s25_s22, [#allocation3], %s239_s23, %s239_s23, %s240_s24  }
   0x5   :  { %234 = dma.done.wait [#allocation3], 2048  }
   0x6   :  { %235 = vsyncadd [#allocation3], 4294965248  ;;  %v53_v0 = vld [vmem:[%s384_s1 + $0x78] sm:$0xff]  ;;  %v52_v1 = vld [vmem:[%s384_s1 + $0x70] sm:$0xff]  ;;  %s241_s14 = smov [#allocation5]   ;;  %s170_s18 = sshll.u32 %s388_s5, 4  ;;  %s171_s18 = int_to_ptr.hbm [resolvable:$true] %s170_s18 }
   0x7   :  { %v69_v2 = vld [vmem:[%s384_s1 + $0xf8] sm:$0xff]  ;;  %80 = vmatpush.msra.mxu0 %v53_v0  ;;  %v68_v3 = vld [vmem:[%s384_s1 + $0xf0] sm:$0xff]  ;;  %v51_v4 = vld [vmem:[%s384_s1 + $0x68] sm:$0xff]  ;;  %s168_s15 = sshll.u32 %s241_s14, 4  ;;  %vm161_vm0 = vcmask 33792   ;;  %s169_s15 = int_to_ptr.vmem [resolvable:$true] %s168_s15 }
   0x8   :  { %100 = vmatpush.msra.mxu1 %v69_v2  ;;  %v67_v5 = vld [vmem:[%s384_s1 + $0xe8] sm:$0xff]  ;;  %v50_v6 = vld [vmem:[%s384_s1 + $0x60] sm:$0xff]  ;;  %v49_v8 = vld [vmem:[%s384_s1 + $0x58] sm:$0xff] }
   0x9   :  { %81 = vmatpush.msra.mxu0 %v52_v1  ;;  %v66_v7 = vld [vmem:[%s384_s1 + $0xe0] sm:$0xff]  ;;  %v65_v9 = vld [vmem:[%s384_s1 + $0xd8] sm:$0xff]  ;;  %v48_v10 = vld [vmem:[%s384_s1 + $0x50] sm:$0xff] }
   0xa   :  { %101 = vmatpush.msra.mxu1 %v68_v3  ;;  %v64_v11 = vld [vmem:[%s384_s1 + $0xd0] sm:$0xff]  ;;  %v47_v12 = vld [vmem:[%s384_s1 + $0x48] sm:$0xff]  ;;  %v37_v14 = vld [vmem:[%s383_s0] sm:$0xf] }
   0xb   :  { %82 = vmatpush.msra.mxu0 %v51_v4  ;;  %v63_v13 = vld [vmem:[%s384_s1 + $0xc8] sm:$0xff]  ;;  %75 = vst [vmem:[#allocation1] ss:$4 sm:$0xff] %v37_v14  ;;  %v136_v15 = vld [vmem:[#allocation2 + $0x78] sm:$0xff]  ;;  %v135_v16 = vld [vmem:[#allocation2 + $0x70] sm:$0xff] }
   0xc   :  { %102 = vmatpush.msra.mxu1 %v67_v5  ;;  %v46_v17 = vld [vmem:[%s384_s1 + $0x40] sm:$0xff]  ;;  %141 = vmatpush.msra.mxu2 %v136_v15  ;;  %v134_v19 = vld [vmem:[#allocation2 + $0x68] sm:$0xff]  ;;  %v45_v20 = vld [vmem:[%s384_s1 + $0x38] sm:$0xff] }
   0xd   :  { %83 = vmatpush.msra.mxu0 %v50_v6  ;;  %v62_v18 = vld [vmem:[%s384_s1 + $0xc0] sm:$0xff]  ;;  %v61_v21 = vld [vmem:[%s384_s1 + $0xb8] sm:$0xff]  ;;  %v133_v22 = vld [vmem:[#allocation2 + $0x60] sm:$0xff] }
   0xe   :  { %103 = vmatpush.msra.mxu1 %v66_v7  ;;  %142 = vmatpush.msra.mxu2 %v135_v16  ;;  %v44_v23 = vld [vmem:[%s384_s1 + $0x30] sm:$0xff]  ;;  %v132_v25 = vld [vmem:[#allocation2 + $0x58] sm:$0xff]  ;;  %v43_v26 = vld [vmem:[%s384_s1 + $0x28] sm:$0xff] }
   0xf   :  { %84 = vmatpush.msra.mxu0 %v49_v8  ;;  %v60_v24 = vld [vmem:[%s384_s1 + $0xb0] sm:$0xff]  ;;  %v59_v27 = vld [vmem:[%s384_s1 + $0xa8] sm:$0xff]  ;;  %v131_v28 = vld [vmem:[#allocation2 + $0x50] sm:$0xff] }
  0x10   :  { %104 = vmatpush.msra.mxu1 %v65_v9  ;;  %143 = vmatpush.msra.mxu2 %v134_v19  ;;  %v42_v29 = vld [vmem:[%s384_s1 + $0x20] sm:$0xff]  ;;  %v130_v31 = vld [vmem:[#allocation2 + $0x48] sm:$0xff]  ;;  %v41_v32 = vld [vmem:[%s384_s1 + $0x18] sm:$0xff] }
  0x11   :  { %85 = vmatpush.msra.mxu0 %v48_v10  ;;  %v58_v30 = vld [vmem:[%s384_s1 + $0xa0] sm:$0xff]  ;;  %v57_v33 = vld [vmem:[%s384_s1 + $0x98] sm:$0xff]  ;;  %v129_v34 = vld [vmem:[#allocation2 + $0x40] sm:$0xff] }
  0x12   :  { %105 = vmatpush.msra.mxu1 %v64_v11  ;;  %144 = vmatpush.msra.mxu2 %v133_v22  ;;  %v40_v35 = vld [vmem:[%s384_s1 + $0x10] sm:$0xff]  ;;  %v128_v37 = vld [vmem:[#allocation2 + $0x38] sm:$0xff]  ;;  %v39_v38 = vld [vmem:[%s384_s1 + $0x8] sm:$0xff] }
  0x13   :  { %86 = vmatpush.msra.mxu0 %v47_v12  ;;  %v56_v36 = vld [vmem:[%s384_s1 + $0x90] sm:$0xff]  ;;  %v55_v39 = vld [vmem:[%s384_s1 + $0x88] sm:$0xff]  ;;  %v127_v40 = vld [vmem:[#allocation2 + $0x30] sm:$0xff] }
  0x14   :  { %106 = vmatpush.msra.mxu1 %v63_v13  ;;  %145 = vmatpush.msra.mxu2 %v132_v25  ;;  %v38_v41 = vld [vmem:[%s384_s1] sm:$0xff]  ;;  %v77_v44 = vld.sshfl [vmem:[#allocation1 + $0x8] sm:$0xff pattern:$0x73625140]  ;;  %v126_v45 = vld [vmem:[#allocation2 + $0x28] sm:$0xff] }
  0x15   :  { %87 = vmatpush.msra.mxu0 %v46_v17  ;;  %v54_v42 = vld [vmem:[%s384_s1 + $0x80] sm:$0xff]  ;;  %v125_v46 = vld [vmem:[#allocation2 + $0x20] sm:$0xff]  ;;  %v123_v48 = vld [vmem:[#allocation2 + $0x10] sm:$0xff] }
  0x16   :  { %107 = vmatpush.msra.mxu1 %v62_v18  ;;  %146 = vmatpush.msra.mxu2 %v131_v28  ;;  %v76_v43 = vld.sshfl [vmem:[#allocation1] sm:$0xff pattern:$0x73625140]  ;;  %v122_v49 = vld [vmem:[#allocation2 + $0x8] sm:$0xff]  ;;  %v121_v50 = vld [vmem:[#allocation2] sm:$0xff] }
  0x17   :  { %88 = vmatpush.msra.mxu0 %v45_v20  ;;  %v124_v47 = vld [vmem:[#allocation2 + $0x18] sm:$0xff] }
  0x18   :  { %108 = vmatpush.msra.mxu1 %v61_v21  ;;  %147 = vmatpush.msra.mxu2 %v130_v31  ;;  %v184_v51 = vld [vmem:[%s385_s2] ss:$0 sm:$0xff] }
  0x19   :  { %89 = vmatpush.msra.mxu0 %v44_v23  ;;  %v185_v57 = vld [vmem:[%s387_s4] ss:$0 sm:$0xff] }
  0x1a   :  { %109 = vmatpush.msra.mxu1 %v60_v24  ;;  %148 = vmatpush.msra.mxu2 %v129_v34 }
  0x1b   :  { %90 = vmatpush.msra.mxu0 %v43_v26 }
  0x1c   :  { %110 = vmatpush.msra.mxu1 %v59_v27  ;;  %149 = vmatpush.msra.mxu2 %v128_v37 }
  0x1d   :  { %91 = vmatpush.msra.mxu0 %v42_v29 }
  0x1e   :  { %111 = vmatpush.msra.mxu1 %v58_v30  ;;  %150 = vmatpush.msra.mxu2 %v127_v40 }
  0x1f   :  { %92 = vmatpush.msra.mxu0 %v41_v32 }
  0x20   :  { %112 = vmatpush.msra.mxu1 %v57_v33  ;;  %151 = vmatpush.msra.mxu2 %v126_v45 }
  0x21   :  { %93 = vmatpush.msra.mxu0 %v40_v35 }
  0x22   :  { %113 = vmatpush.msra.mxu1 %v56_v36  ;;  %152 = vmatpush.msra.mxu2 %v125_v46 }
  0x23   :  { %94 = vmatpush.msra.mxu0 %v39_v38 }
  0x24   :  { %114 = vmatpush.msra.mxu1 %v55_v39  ;;  %153 = vmatpush.msra.mxu2 %v124_v47 }
  0x25   :  { %95 = vmatpush.msra.mxu0 %v38_v41 }
  0x26   :  { %115 = vmatpush.msra.mxu1 %v54_v42  ;;  %96 = vmatmul.f32.vlgmr.msra.gmra.mxu0 %v76_v43 }
  0x27   :  { %116 = vmatmul.f32.vlgmr.msra.gmra.mxu1 %v77_v44  ;;  %154 = vmatpush.msra.mxu2 %v123_v48 }
  0x29   :  { %155 = vmatpush.msra.mxu2 %v122_v49 }
  0x2b   :  { %156 = vmatpush.msra.mxu2 %v121_v50 }
  0xa3   :  { %v97_v52 = vpop.f32.mrf.mxu0 }
  0xa4   :  { %v117_v53 = vpop.f32.mrf.mxu1  ;;  %v98_v54 = vadd.f32 %v184_v51, %v97_v52 }
  0xa6   :  { %v118_v55 = vadd.f32 %v117_v53, %v98_v54 }
  0xa8   :  { %v120_v56 = vmax.f32 %v118_v55, 0.0 }
  0xaa   :  { %157 = vmatmul.f32.vlgmr.msra.gmra.mxu2 %v120_v56 }
 0x12d   :  { %v158_v58 = vpop.f32.mrf.mxu2 }
 0x12e   :  { %v159_v59 = vadd.f32 %v185_v57, %v158_v58 }
 0x130   :  { %162 = vst.msk [vmem:[#allocation5] sm:$0x3] %vm161_vm0, %v159_v59 }
 0x131   :  { %173 = dma.vmem_to_hbm [thread:$0]  %s169_s15, 32, %s171_s18, [#allocation4]  }
 0x132   :  { %236 = dma.done.wait [#allocation4], 32  }
 0x133   :  { %237 = vsyncadd [#allocation4], 4294967264 }
 0x134   :  { %178 = vsyncpa [#allocation3], 1 }
 0x135   :  { %179 = vsyncpa [#allocation4], 1 }

</bundles_post_ra>
